<compile_context>
chip_gen: v5e
topology: v5e:2x2
jax: 0.10.0
libtpu: 0.0.40
codegen_flags: <defaults>
</compile_context>

<pallas_src>
import jax
import jax.numpy as jnp
from jax.experimental import pallas as pl
from jax.experimental.pallas import tpu as pltpu

BN_EPS = 1e-5

# 3x3 tap groups per output parity.
#   parity 0 (even out row/col): tap {0} hits original index -1, taps {1,2} hit 0
#   parity 1 (odd  out row/col): taps {0,1} hit original index 0, tap {2} hits +1
_TAP_SETS = (((0,), (1, 2)), ((0, 1), (2,)))


def _round_up(x, m):
    return (x + m - 1) // m * m


def _vmem_budget_bytes():
    """Working-set budget per generation (v7x: 64 MiB VMEM; v5e/v6e: 128 MiB)."""
    kind = ""
    try:
        kind = jax.devices()[0].device_kind.lower()
    except Exception:
        pass
    if "v7" in kind:
        return 40 * 1024 * 1024
    if "v5" in kind or "v6" in kind:
        return 96 * 1024 * 1024
    return 24 * 1024 * 1024          # older / unknown chips: stay conservative


def _pick_tile_rows(H, W, C_in, C_out_eff, budget):
    """TH = largest divisor of H whose working set fits the VMEM budget (fail loudly)."""
    K = 4 * C_in

    def working_set(th):
        tm = th * W
        slab = (H + 2) * (W + 2) * C_in * 2          # bf16 padded image (per buffer)
        weights = 4 * K * C_out_eff * 2
        ak = th * W * K * 2                          # K-concat scratch (bf16)
        acc = tm * C_out_eff * 4                     # one streamed f32 parity tile
        out = 4 * tm * C_out_eff * 2                 # bf16 output block (per buffer)
        return 2 * slab + 2 * weights + ak + 2 * acc + 2 * out + (2 << 20)

    ok = [d for d in range(1, H + 1)
          if H % d == 0 and (d * W) % 8 == 0 and working_set(d) <= budget]
    if not ok:
        raise ValueError(
            "up_conv Pallas kernel: no row tile satisfies the VMEM budget "
            f"(H={H}, W={W}, C_in={C_in}, C_out_eff={C_out_eff}, budget={budget}B). "
            "Pad W to a multiple of 8 and/or use a halo-DMA variant for large images.")
    target_rows = 2048 if budget > 64 * 1024 * 1024 else 1024
    cap = max(1, target_rows // max(W, 1))
    if H >= 2:
        cap = min(cap, max(1, H // 2))   # keep >=2 row tiles so output writeback overlaps
    under = [d for d in ok if d <= cap]
    th = max(under) if under else min(ok)
    return th, working_set(th)


def _effective_weights(conv_w, c_out_eff):
    """[4, 4*C_in, c_out_eff] bf16: per-parity 2x2 effective kernels, taps stacked
    along the contraction dim (K-fusion)."""
    c_out, c_in = conv_w.shape[0], conv_w.shape[1]
    w_hwio = jnp.transpose(conv_w.astype(jnp.float32), (2, 3, 1, 0))  # [3,3,Cin,Cout]
    per_parity = []
    for a in range(2):
        for b in range(2):
            taps = []
            for dr in range(2):
                for dc in range(2):
                    m = jnp.zeros((c_in, c_out), jnp.float32)
                    for kh in _TAP_SETS[a][dr]:
                        for kw in _TAP_SETS[b][dc]:
                            m = m + w_hwio[kh, kw]
                    taps.append(m)
            per_parity.append(jnp.concatenate(taps, axis=0))   # [4*Cin, Cout]
    we = jnp.stack(per_parity, axis=0)                          # [4, 4*Cin, Cout]
    we = jnp.pad(we, ((0, 0), (0, 0), (0, c_out_eff - c_out)))
    return we.astype(jnp.bfloat16)


def up_conv_forward(x, conv_w, conv_b, bn_gamma, bn_beta):
    """Forward of `up_conv` (train-mode BN).  x: [N, C_in, H, W] NCHW; returns NCHW f32."""
    del conv_b  # exactly cancelled by train-mode BN mean subtraction

    N, C_in, H, W = x.shape
    C_out = conv_w.shape[0]
    H2, W2 = 2 * H, 2 * W
    K = 4 * C_in
    # lane-dense padding only for large channel counts; small C_out stores masked
    # (avoids up-to-16x HBM write amplification).
    C_out_eff = C_out if C_out < 128 else _round_up(C_out, 128)

    budget = _vmem_budget_bytes()
    TH, ws = _pick_tile_rows(H, W, C_in, C_out_eff, budget)
    MT = H // TH
    TM = TH * W
    vmem_limit = min(budget, max(ws + (4 << 20), 16 * 1024 * 1024))

    # --- wrapper-side prep (~1x pass over x; no upsample/im2col in HBM) ---
    x_nhwc = jnp.transpose(x, (0, 2, 3, 1)).astype(jnp.bfloat16)   # [N,H,W,Cin]
    x_p = jnp.pad(x_nhwc, ((0, 0), (1, 1), (1, 1), (0, 0)))        # pad=1, original res
    we = _effective_weights(conv_w, C_out_eff)                      # [4, K, C_out_eff]

    # per-channel stats shift ~= E[conv output] (guards E[y^2]-E[y]^2 cancellation)
    w_hwio = jnp.transpose(conv_w.astype(jnp.float32), (2, 3, 1, 0))
    xbar = jnp.mean(x.astype(jnp.float32), axis=(0, 2, 3))          # [C_in]
    t_shift = jnp.einsum("hwio,i->o", w_hwio, xbar)
    t_shift = jnp.pad(t_shift, (0, C_out_eff - C_out)).reshape(1, C_out_eff)

    def conv_parity(x_ref, w_ref, ak_ref, y0, k):
        """One [TM, C_out_eff] f32 pre-BN conv tile for output parity k = 2*a + b."""
        a, b = k // 2, k % 2
        # Gather the four 2x2 taps into a contiguous [TH, W, 4*C_in] scratch so that
        # (1) the four tap matmuls fuse into ONE MXU matmul with K = 4*C_in, and
        # (2) the flatten to [TM, K] happens on a dense buffer, not on a strided
        #     slice of the padded slab (no hidden relayout feeding the MXU).
        for dr in range(2):
            for dc in range(2):
                tp = dr * 2 + dc
                ak_ref[:, :, tp * C_in:(tp + 1) * C_in] = (
                    x_ref[pl.ds(y0 + a + dr, TH), pl.ds(b + dc, W), :])
        ak = ak_ref[...].reshape(TM, K)
        return jnp.dot(ak, w_ref[k], preferred_element_type=jnp.float32)

    # ---- pass A: per-image, per-channel shifted sum / sum-of-squares ----
    def stats_kernel(x_ref, w_ref, t_ref, sum_ref, sq_ref, ak_ref):
        m = pl.program_id(1)
        y0 = pl.multiple_of(m * TH, TH)

        @pl.when(m == 0)
        def _init():
            sum_ref[...] = jnp.zeros_like(sum_ref)
            sq_ref[...] = jnp.zeros_like(sq_ref)

        t = t_ref[...]
        s = jnp.zeros((1, C_out_eff), jnp.float32)
        ss = jnp.zeros((1, C_out_eff), jnp.float32)
        for k in range(4):                       # parities streamed: one tile live
            y = conv_parity(x_ref, w_ref, ak_ref, y0, k) - t
            s = s + jnp.sum(y, axis=0, keepdims=True)
            ss = ss + jnp.sum(y * y, axis=0, keepdims=True)
        sum_ref[...] = sum_ref[...] + s
        sq_ref[...] = sq_ref[...] + ss

    x_spec = pl.BlockSpec((None, H + 2, W + 2, C_in), lambda n, m: (n, 0, 0, 0))
    w_spec = pl.BlockSpec((4, K, C_out_eff), lambda n, m: (0, 0, 0))
    vec_spec = pl.BlockSpec((1, C_out_eff), lambda n, m: (0, 0))
    stat_spec = pl.BlockSpec((None, 1, C_out_eff), lambda n, m: (n, 0, 0))
    scratch = [pltpu.VMEM((TH, W, K), jnp.bfloat16)]

    img_sum, img_sq = pl.pallas_call(
        stats_kernel,
        out_shape=(jax.ShapeDtypeStruct((N, 1, C_out_eff), jnp.float32),
                   jax.ShapeDtypeStruct((N, 1, C_out_eff), jnp.float32)),
        grid=(N, MT),
        in_specs=[x_spec, w_spec, vec_spec],
        out_specs=(stat_spec, stat_spec),
        scratch_shapes=scratch,
        compiler_params=pltpu.CompilerParams(
            # per-image partial sums => the n axis may shard across TensorCores
            dimension_semantics=("parallel", "arbitrary"),
            vmem_limit_bytes=vmem_limit),
    )(x_p, we, t_shift)

    # tiny per-channel BN folding (wrapper-side, f32)
    cnt = jnp.float32(N * H2 * W2)
    s1 = jnp.sum(img_sum, axis=0) / cnt                     # [1, C_out_eff]
    s2 = jnp.sum(img_sq, axis=0) / cnt
    mean = t_shift + s1
    var = jnp.maximum(s2 - s1 * s1, 0.0)                    # shifted => stable
    inv_std = jax.lax.rsqrt(var + BN_EPS)
    gamma_p = jnp.pad(bn_gamma.astype(jnp.float32),
                      (0, C_out_eff - C_out)).reshape(1, C_out_eff)
    beta_p = jnp.pad(bn_beta.astype(jnp.float32),
                     (0, C_out_eff - C_out)).reshape(1, C_out_eff)
    scale = gamma_p * inv_std
    shift = beta_p - mean * scale

    # ---- pass B: recompute conv tile, fused BN affine + ReLU, bf16 writeback ----
    def apply_kernel(x_ref, w_ref, scale_ref, shift_ref, o_ref, ak_ref):
        y0 = pl.multiple_of(pl.program_id(1) * TH, TH)
        sc = scale_ref[...]
        sh = shift_ref[...]
        for k in range(4):                       # streamed: compute -> store -> drop
            y = conv_parity(x_ref, w_ref, ak_ref, y0, k)
            o_ref[k] = jnp.maximum(y * sc + sh, 0.0).astype(o_ref.dtype)

    out_p = pl.pallas_call(
        apply_kernel,
        out_shape=jax.ShapeDtypeStruct((N, 4, H * W, C_out_eff), jnp.bfloat16),
        grid=(N, MT),
        in_specs=[x_spec, w_spec, vec_spec, vec_spec],
        out_specs=pl.BlockSpec((None, 4, TM, C_out_eff), lambda n, m: (n, 0, m, 0)),
        scratch_shapes=scratch,
        compiler_params=pltpu.CompilerParams(
            dimension_semantics=("parallel", "parallel"),
            vmem_limit_bytes=vmem_limit),
    )(x_p, we, scale, shift)

    # parity-blocked NHWC -> NCHW (single XLA transpose of the unpadded bf16 output;
    # an NHWC consumer could consume out_p directly and skip this round trip)
    out = out_p[..., :C_out].reshape(N, 2, 2, H, W, C_out)
    out = jnp.transpose(out, (0, 5, 3, 1, 4, 2)).reshape(N, C_out, H2, W2)
    return out.astype(jnp.float32)


def _reference_forward(x, conv_w, conv_b, bn_gamma, bn_beta):
    """Pure-JAX f32 reference of the PyTorch module (train-mode BN)."""
    xu = jnp.repeat(jnp.repeat(x, 2, axis=2), 2, axis=3)
    y = jax.lax.conv_general_dilated(
        xu, conv_w, window_strides=(1, 1), padding=((1, 1), (1, 1)),
        dimension_numbers=("NCHW", "OIHW", "NCHW"),
        precision=jax.lax.Precision.HIGHEST)
    y = y + conv_b.reshape(1, -1, 1, 1)
    mean = jnp.mean(y, axis=(0, 2, 3), keepdims=True)
    var = jnp.mean(jnp.square(y - mean), axis=(0, 2, 3), keepdims=True)
    y = (y - mean) * jax.lax.rsqrt(var + BN_EPS)
    y = y * bn_gamma.reshape(1, -1, 1, 1) + bn_beta.reshape(1, -1, 1, 1)
    return jnp.maximum(y, 0.0)


if __name__ == "__main__":
    # small shapes consistent with the module: N=2, in_ch=4, out_ch=8, 16x16 spatial
    N, in_ch, out_ch, H, W = 2, 4, 8, 16, 16

    key = jax.random.PRNGKey(0)
    kx, kw, kb = jax.random.split(key, 3)
    x = jax.random.normal(kx, (N, in_ch, H, W), dtype=jnp.float32)

    # deterministic parameter init (mimics Conv2d default fan-in scaling)
    fan_in = in_ch * 3 * 3
    bound = 1.0 / (fan_in ** 0.5)
    conv_w = jax.random.uniform(kw, (out_ch, in_ch, 3, 3), jnp.float32, -bound, bound)
    conv_b = jax.random.uniform(kb, (out_ch,), jnp.float32, -bound, bound)
    bn_gamma = jnp.ones((out_ch,), jnp.float32)   # BatchNorm2d default weight
    bn_beta = jnp.zeros((out_ch,), jnp.float32)   # BatchNorm2d default bias

    fwd = jax.jit(up_conv_forward)
    y = fwd(x, conv_w, conv_b, bn_gamma, bn_beta)
    jax.block_until_ready(y)
    assert y.shape == (N, out_ch, 2 * H, 2 * W), y.shape

    # loose tolerance: the kernel feeds the MXU and writes the output in bf16
    y_ref = _reference_forward(x, conv_w, conv_b, bn_gamma, bn_beta)
    max_err = float(jnp.max(jnp.abs(y - y_ref)))
    assert max_err < 1e-1, max_err

    print("KERNEL_OK")
</pallas_src>

<mosaic_0001>
module attributes {stable_mosaic.version = 11 : i64} {
  func.func @stats_kernel(%arg0: i32, %arg1: i32, %arg2: memref<1x18x18x4xbf16, #tpu.memory_space<vmem>>, %arg3: memref<4x16x8xbf16, #tpu.memory_space<vmem>>, %arg4: memref<1x8xf32, #tpu.memory_space<vmem>>, %arg5: memref<1x1x8xf32, #tpu.memory_space<vmem>>, %arg6: memref<1x1x8xf32, #tpu.memory_space<vmem>>, %arg7: memref<8x16x16xbf16, #tpu.memory_space<vmem>>) attributes {dimension_semantics = [#tpu.dimension_semantics<parallel>, #tpu.dimension_semantics<arbitrary>], iteration_bounds = array<i64: 2, 2>, scalar_prefetch = 0 : i64, scratch_operands = 1 : i64, tpu.core_type = #tpu.core_type<tc>, window_params = [{transform_indices = @transform_0, window_bounds = array<i64: 1, 18, 18, 4>}, {pipeline_mode = #tpu.pipeline_mode<synchronous>, transform_indices = @transform_1, window_bounds = array<i64: 4, 16, 8>}, {pipeline_mode = #tpu.pipeline_mode<synchronous>, transform_indices = @transform_2, window_bounds = array<i64: 1, 8>}, {transform_indices = @transform_3, window_bounds = array<i64: 1, 1, 8>}, {transform_indices = @transform_4, window_bounds = array<i64: 1, 1, 8>}]} {
    %c8_i32 = arith.constant 8 : i32
    %0 = arith.muli %arg1, %c8_i32 : i32
    %1 = tpu.assume_multiple %0, 8 : i32
    %c0_i32 = arith.constant 0 : i32
    %2 = arith.cmpi eq, %arg1, %c0_i32 : i32
    %3 = arith.extui %2 : i1 to i32
    %c0_i32_0 = arith.constant 0 : i32
    %4 = arith.cmpi ne, %3, %c0_i32_0 : i32
    scf.if %4 {
      %cst_172 = arith.constant 0.000000e+00 : f32
      %172 = vector.broadcast %cst_172 : f32 to vector<1x8xf32>
      %c0_173 = arith.constant 0 : index
      %c0_174 = arith.constant 0 : index
      %c0_175 = arith.constant 0 : index
      %173 = vector.load %arg5[%c0_173, %c0_174, %c0_175] : memref<1x1x8xf32, #tpu.memory_space<vmem>>, vector<1x1x8xf32>
      %174 = vector.shape_cast %173 : vector<1x1x8xf32> to vector<1x8xf32>
      %175 = vector.shape_cast %172 : vector<1x8xf32> to vector<1x1x8xf32>
      tpu.vector_store %arg5[%c0_173, %c0_174, %c0_175], %175 {strides = array<i32>} : memref<1x1x8xf32, #tpu.memory_space<vmem>>, vector<1x1x8xf32>,
      %cst_176 = arith.constant 0.000000e+00 : f32
      %176 = vector.broadcast %cst_176 : f32 to vector<1x8xf32>
      %c0_177 = arith.constant 0 : index
      %c0_178 = arith.constant 0 : index
      %c0_179 = arith.constant 0 : index
      %177 = vector.load %arg6[%c0_177, %c0_178, %c0_179] : memref<1x1x8xf32, #tpu.memory_space<vmem>>, vector<1x1x8xf32>
      %178 = vector.shape_cast %177 : vector<1x1x8xf32> to vector<1x8xf32>
      %179 = vector.shape_cast %176 : vector<1x8xf32> to vector<1x1x8xf32>
      tpu.vector_store %arg6[%c0_177, %c0_178, %c0_179], %179 {strides = array<i32>} : memref<1x1x8xf32, #tpu.memory_space<vmem>>, vector<1x1x8xf32>,
    } else {
    }
    %c0 = arith.constant 0 : index
    %c0_1 = arith.constant 0 : index
    %5 = vector.load %arg4[%c0, %c0_1] : memref<1x8xf32, #tpu.memory_space<vmem>>, vector<1x8xf32>
    %cst = arith.constant 0.000000e+00 : f32
    %6 = vector.broadcast %cst : f32 to vector<1x8xf32>
    %cst_2 = arith.constant 0.000000e+00 : f32
    %7 = vector.broadcast %cst_2 : f32 to vector<1x8xf32>
    %c0_i32_3 = arith.constant 0 : i32
    %8 = arith.addi %1, %c0_i32_3 : i32
    %c0_i32_4 = arith.constant 0 : i32
    %9 = arith.addi %8, %c0_i32_4 : i32
    %c0_5 = arith.constant 0 : index
    %10 = arith.index_cast %9 : i32 to index
    %c0_6 = arith.constant 0 : index
    %c0_7 = arith.constant 0 : index
    %11 = vector.load %arg2[%c0_5, %10, %c0_6, %c0_7] : memref<1x18x18x4xbf16, #tpu.memory_space<vmem>>, vector<1x8x16x4xbf16>
    %12 = vector.shape_cast %11 : vector<1x8x16x4xbf16> to vector<8x16x4xbf16>
    %c0_8 = arith.constant 0 : index
    %c0_9 = arith.constant 0 : index
    %c0_10 = arith.constant 0 : index
    %13 = vector.load %arg7[%c0_8, %c0_9, %c0_10] : memref<8x16x16xbf16, #tpu.memory_space<vmem>>, vector<8x16x4xbf16>
    tpu.vector_store %arg7[%c0_8, %c0_9, %c0_10], %12 {strides = array<i32>} : memref<8x16x16xbf16, #tpu.memory_space<vmem>>, vector<8x16x4xbf16>,
    %c0_i32_11 = arith.constant 0 : i32
    %14 = arith.addi %1, %c0_i32_11 : i32
    %c0_i32_12 = arith.constant 0 : i32
    %15 = arith.addi %14, %c0_i32_12 : i32
    %c0_13 = arith.constant 0 : index
    %16 = arith.index_cast %15 : i32 to index
    %c1 = arith.constant 1 : index
    %c0_14 = arith.constant 0 : index
    %17 = vector.load %arg2[%c0_13, %16, %c1, %c0_14] : memref<1x18x18x4xbf16, #tpu.memory_space<vmem>>, vector<1x8x16x4xbf16>
    %18 = vector.shape_cast %17 : vector<1x8x16x4xbf16> to vector<8x16x4xbf16>
    %c0_15 = arith.constant 0 : index
    %c0_16 = arith.constant 0 : index
    %c4 = arith.constant 4 : index
    %19 = vector.load %arg7[%c0_15, %c0_16, %c4] : memref<8x16x16xbf16, #tpu.memory_space<vmem>>, vector<8x16x4xbf16>
    tpu.vector_store %arg7[%c0_15, %c0_16, %c4], %18 {strides = array<i32>} : memref<8x16x16xbf16, #tpu.memory_space<vmem>>, vector<8x16x4xbf16>,
    %c0_i32_17 = arith.constant 0 : i32
    %20 = arith.addi %1, %c0_i32_17 : i32
    %c1_i32 = arith.constant 1 : i32
    %21 = arith.addi %20, %c1_i32 : i32
    %c0_18 = arith.constant 0 : index
    %22 = arith.index_cast %21 : i32 to index
    %c0_19 = arith.constant 0 : index
    %c0_20 = arith.constant 0 : index
    %23 = vector.load %arg2[%c0_18, %22, %c0_19, %c0_20] : memref<1x18x18x4xbf16, #tpu.memory_space<vmem>>, vector<1x8x16x4xbf16>
    %24 = vector.shape_cast %23 : vector<1x8x16x4xbf16> to vector<8x16x4xbf16>
    %c0_21 = arith.constant 0 : index
    %c0_22 = arith.constant 0 : index
    %c8 = arith.constant 8 : index
    %25 = vector.load %arg7[%c0_21, %c0_22, %c8] : memref<8x16x16xbf16, #tpu.memory_space<vmem>>, vector<8x16x4xbf16>
    tpu.vector_store %arg7[%c0_21, %c0_22, %c8], %24 {strides = array<i32>} : memref<8x16x16xbf16, #tpu.memory_space<vmem>>, vector<8x16x4xbf16>,
    %c0_i32_23 = arith.constant 0 : i32
    %26 = arith.addi %1, %c0_i32_23 : i32
    %c1_i32_24 = arith.constant 1 : i32
    %27 = arith.addi %26, %c1_i32_24 : i32
    %c0_25 = arith.constant 0 : index
    %28 = arith.index_cast %27 : i32 to index
    %c1_26 = arith.constant 1 : index
    %c0_27 = arith.constant 0 : index
    %29 = vector.load %arg2[%c0_25, %28, %c1_26, %c0_27] : memref<1x18x18x4xbf16, #tpu.memory_space<vmem>>, vector<1x8x16x4xbf16>
    %30 = vector.shape_cast %29 : vector<1x8x16x4xbf16> to vector<8x16x4xbf16>
    %c0_28 = arith.constant 0 : index
    %c0_29 = arith.constant 0 : index
    %c12 = arith.constant 12 : index
    %31 = vector.load %arg7[%c0_28, %c0_29, %c12] : memref<8x16x16xbf16, #tpu.memory_space<vmem>>, vector<8x16x4xbf16>
    tpu.vector_store %arg7[%c0_28, %c0_29, %c12], %30 {strides = array<i32>} : memref<8x16x16xbf16, #tpu.memory_space<vmem>>, vector<8x16x4xbf16>,
    %c0_30 = arith.constant 0 : index
    %c0_31 = arith.constant 0 : index
    %c0_32 = arith.constant 0 : index
    %32 = vector.load %arg7[%c0_30, %c0_31, %c0_32] : memref<8x16x16xbf16, #tpu.memory_space<vmem>>, vector<8x16x16xbf16>
    %33 = vector.shape_cast %32 : vector<8x16x16xbf16> to vector<128x16xbf16>
    %c0_33 = arith.constant 0 : index
    %c0_34 = arith.constant 0 : index
    %c0_35 = arith.constant 0 : index
    %34 = vector.load %arg3[%c0_33, %c0_34, %c0_35] : memref<4x16x8xbf16, #tpu.memory_space<vmem>>, vector<1x16x8xbf16>
    %35 = vector.shape_cast %34 : vector<1x16x8xbf16> to vector<16x8xbf16>
    %cst_36 = arith.constant dense<0.000000e+00> : vector<128x8xf32>
    %36 = tpu.matmul %33, %35, %cst_36 {dimension_numbers = #tpu.dot_dimension_numbers<[1], [0], [0], [1], [0, 0, 1, 1], [], []>} : vector<128x16xbf16>, vector<16x8xbf16>, vector<128x8xf32> -> vector<128x8xf32>
    %37 = vector.broadcast %5 : vector<1x8xf32> to vector<128x8xf32>
    %38 = arith.subf %36, %37 : vector<128x8xf32>
    %cst_37 = arith.constant dense<0.000000e+00> : vector<8xf32>
    %39 = vector.multi_reduction <add>, %38, %cst_37 [0] : vector<128x8xf32> to vector<8xf32>
    %40 = vector.shape_cast %39 : vector<8xf32> to vector<1x8xf32>
    %41 = arith.addf %6, %40 : vector<1x8xf32>
    %42 = arith.mulf %38, %38 : vector<128x8xf32>
    %cst_38 = arith.constant dense<0.000000e+00> : vector<8xf32>
    %43 = vector.multi_reduction <add>, %42, %cst_38 [0] : vector<128x8xf32> to vector<8xf32>
    %44 = vector.shape_cast %43 : vector<8xf32> to vector<1x8xf32>
    %45 = arith.addf %7, %44 : vector<1x8xf32>
    %c0_i32_39 = arith.constant 0 : i32
    %46 = arith.addi %1, %c0_i32_39 : i32
    %c0_i32_40 = arith.constant 0 : i32
    %47 = arith.addi %46, %c0_i32_40 : i32
    %c0_41 = arith.constant 0 : index
    %48 = arith.index_cast %47 : i32 to index
    %c1_42 = arith.constant 1 : index
    %c0_43 = arith.constant 0 : index
    %49 = vector.load %arg2[%c0_41, %48, %c1_42, %c0_43] : memref<1x18x18x4xbf16, #tpu.memory_space<vmem>>, vector<1x8x16x4xbf16>
    %50 = vector.shape_cast %49 : vector<1x8x16x4xbf16> to vector<8x16x4xbf16>
    %c0_44 = arith.constant 0 : index
    %c0_45 = arith.constant 0 : index
    %c0_46 = arith.constant 0 : index
    %51 = vector.load %arg7[%c0_44, %c0_45, %c0_46] : memref<8x16x16xbf16, #tpu.memory_space<vmem>>, vector<8x16x4xbf16>
    tpu.vector_store %arg7[%c0_44, %c0_45, %c0_46], %50 {strides = array<i32>} : memref<8x16x16xbf16, #tpu.memory_space<vmem>>, vector<8x16x4xbf16>,
    %c0_i32_47 = arith.constant 0 : i32
    %52 = arith.addi %1, %c0_i32_47 : i32
    %c0_i32_48 = arith.constant 0 : i32
    %53 = arith.addi %52, %c0_i32_48 : i32
    %c0_49 = arith.constant 0 : index
    %54 = arith.index_cast %53 : i32 to index
    %c2 = arith.constant 2 : index
    %c0_50 = arith.constant 0 : index
    %55 = vector.load %arg2[%c0_49, %54, %c2, %c0_50] : memref<1x18x18x4xbf16, #tpu.memory_space<vmem>>, vector<1x8x16x4xbf16>
    %56 = vector.shape_cast %55 : vector<1x8x16x4xbf16> to vector<8x16x4xbf16>
    %c0_51 = arith.constant 0 : index
    %c0_52 = arith.constant 0 : index
    %c4_53 = arith.constant 4 : index
    %57 = vector.load %arg7[%c0_51, %c0_52, %c4_53] : memref<8x16x16xbf16, #tpu.memory_space<vmem>>, vector<8x16x4xbf16>
    tpu.vector_store %arg7[%c0_51, %c0_52, %c4_53], %56 {strides = array<i32>} : memref<8x16x16xbf16, #tpu.memory_space<vmem>>, vector<8x16x4xbf16>,
    %c0_i32_54 = arith.constant 0 : i32
    %58 = arith.addi %1, %c0_i32_54 : i32
    %c1_i32_55 = arith.constant 1 : i32
    %59 = arith.addi %58, %c1_i32_55 : i32
    %c0_56 = arith.constant 0 : index
    %60 = arith.index_cast %59 : i32 to index
    %c1_57 = arith.constant 1 : index
    %c0_58 = arith.constant 0 : index
    %61 = vector.load %arg2[%c0_56, %60, %c1_57, %c0_58] : memref<1x18x18x4xbf16, #tpu.memory_space<vmem>>, vector<1x8x16x4xbf16>
    %62 = vector.shape_cast %61 : vector<1x8x16x4xbf16> to vector<8x16x4xbf16>
    %c0_59 = arith.constant 0 : index
    %c0_60 = arith.constant 0 : index
    %c8_61 = arith.constant 8 : index
    %63 = vector.load %arg7[%c0_59, %c0_60, %c8_61] : memref<8x16x16xbf16, #tpu.memory_space<vmem>>, vector<8x16x4xbf16>
    tpu.vector_store %arg7[%c0_59, %c0_60, %c8_61], %62 {strides = array<i32>} : memref<8x16x16xbf16, #tpu.memory_space<vmem>>, vector<8x16x4xbf16>,
    %c0_i32_62 = arith.constant 0 : i32
    %64 = arith.addi %1, %c0_i32_62 : i32
    %c1_i32_63 = arith.constant 1 : i32
    %65 = arith.addi %64, %c1_i32_63 : i32
    %c0_64 = arith.constant 0 : index
    %66 = arith.index_cast %65 : i32 to index
    %c2_65 = arith.constant 2 : index
    %c0_66 = arith.constant 0 : index
    %67 = vector.load %arg2[%c0_64, %66, %c2_65, %c0_66] : memref<1x18x18x4xbf16, #tpu.memory_space<vmem>>, vector<1x8x16x4xbf16>
    %68 = vector.shape_cast %67 : vector<1x8x16x4xbf16> to vector<8x16x4xbf16>
    %c0_67 = arith.constant 0 : index
    %c0_68 = arith.constant 0 : index
    %c12_69 = arith.constant 12 : index
    %69 = vector.load %arg7[%c0_67, %c0_68, %c12_69] : memref<8x16x16xbf16, #tpu.memory_space<vmem>>, vector<8x16x4xbf16>
    tpu.vector_store %arg7[%c0_67, %c0_68, %c12_69], %68 {strides = array<i32>} : memref<8x16x16xbf16, #tpu.memory_space<vmem>>, vector<8x16x4xbf16>,
    %c0_70 = arith.constant 0 : index
    %c0_71 = arith.constant 0 : index
    %c0_72 = arith.constant 0 : index
    %70 = vector.load %arg7[%c0_70, %c0_71, %c0_72] : memref<8x16x16xbf16, #tpu.memory_space<vmem>>, vector<8x16x16xbf16>
    %71 = vector.shape_cast %70 : vector<8x16x16xbf16> to vector<128x16xbf16>
    %c1_73 = arith.constant 1 : index
    %c0_74 = arith.constant 0 : index
    %c0_75 = arith.constant 0 : index
    %72 = vector.load %arg3[%c1_73, %c0_74, %c0_75] : memref<4x16x8xbf16, #tpu.memory_space<vmem>>, vector<1x16x8xbf16>
    %73 = vector.shape_cast %72 : vector<1x16x8xbf16> to vector<16x8xbf16>
    %cst_76 = arith.constant dense<0.000000e+00> : vector<128x8xf32>
    %74 = tpu.matmul %71, %73, %cst_76 {dimension_numbers = #tpu.dot_dimension_numbers<[1], [0], [0], [1], [0, 0, 1, 1], [], []>} : vector<128x16xbf16>, vector<16x8xbf16>, vector<128x8xf32> -> vector<128x8xf32>
    %75 = vector.broadcast %5 : vector<1x8xf32> to vector<128x8xf32>
    %76 = arith.subf %74, %75 : vector<128x8xf32>
    %cst_77 = arith.constant dense<0.000000e+00> : vector<8xf32>
    %77 = vector.multi_reduction <add>, %76, %cst_77 [0] : vector<128x8xf32> to vector<8xf32>
    %78 = vector.shape_cast %77 : vector<8xf32> to vector<1x8xf32>
    %79 = arith.addf %41, %78 : vector<1x8xf32>
    %80 = arith.mulf %76, %76 : vector<128x8xf32>
    %cst_78 = arith.constant dense<0.000000e+00> : vector<8xf32>
    %81 = vector.multi_reduction <add>, %80, %cst_78 [0] : vector<128x8xf32> to vector<8xf32>
    %82 = vector.shape_cast %81 : vector<8xf32> to vector<1x8xf32>
    %83 = arith.addf %45, %82 : vector<1x8xf32>
    %c1_i32_79 = arith.constant 1 : i32
    %84 = arith.addi %1, %c1_i32_79 : i32
    %c0_i32_80 = arith.constant 0 : i32
    %85 = arith.addi %84, %c0_i32_80 : i32
    %c0_81 = arith.constant 0 : index
    %86 = arith.index_cast %85 : i32 to index
    %c0_82 = arith.constant 0 : index
    %c0_83 = arith.constant 0 : index
    %87 = vector.load %arg2[%c0_81, %86, %c0_82, %c0_83] : memref<1x18x18x4xbf16, #tpu.memory_space<vmem>>, vector<1x8x16x4xbf16>
    %88 = vector.shape_cast %87 : vector<1x8x16x4xbf16> to vector<8x16x4xbf16>
    %c0_84 = arith.constant 0 : index
    %c0_85 = arith.constant 0 : index
    %c0_86 = arith.constant 0 : index
    %89 = vector.load %arg7[%c0_84, %c0_85, %c0_86] : memref<8x16x16xbf16, #tpu.memory_space<vmem>>, vector<8x16x4xbf16>
    tpu.vector_store %arg7[%c0_84, %c0_85, %c0_86], %88 {strides = array<i32>} : memref<8x16x16xbf16, #tpu.memory_space<vmem>>, vector<8x16x4xbf16>,
    %c1_i32_87 = arith.constant 1 : i32
    %90 = arith.addi %1, %c1_i32_87 : i32
    %c0_i32_88 = arith.constant 0 : i32
    %91 = arith.addi %90, %c0_i32_88 : i32
    %c0_89 = arith.constant 0 : index
    %92 = arith.index_cast %91 : i32 to index
    %c1_90 = arith.constant 1 : index
    %c0_91 = arith.constant 0 : index
    %93 = vector.load %arg2[%c0_89, %92, %c1_90, %c0_91] : memref<1x18x18x4xbf16, #tpu.memory_space<vmem>>, vector<1x8x16x4xbf16>
    %94 = vector.shape_cast %93 : vector<1x8x16x4xbf16> to vector<8x16x4xbf16>
    %c0_92 = arith.constant 0 : index
    %c0_93 = arith.constant 0 : index
    %c4_94 = arith.constant 4 : index
    %95 = vector.load %arg7[%c0_92, %c0_93, %c4_94] : memref<8x16x16xbf16, #tpu.memory_space<vmem>>, vector<8x16x4xbf16>
    tpu.vector_store %arg7[%c0_92, %c0_93, %c4_94], %94 {strides = array<i32>} : memref<8x16x16xbf16, #tpu.memory_space<vmem>>, vector<8x16x4xbf16>,
    %c1_i32_95 = arith.constant 1 : i32
    %96 = arith.addi %1, %c1_i32_95 : i32
    %c1_i32_96 = arith.constant 1 : i32
    %97 = arith.addi %96, %c1_i32_96 : i32
    %c0_97 = arith.constant 0 : index
    %98 = arith.index_cast %97 : i32 to index
    %c0_98 = arith.constant 0 : index
    %c0_99 = arith.constant 0 : index
    %99 = vector.load %arg2[%c0_97, %98, %c0_98, %c0_99] : memref<1x18x18x4xbf16, #tpu.memory_space<vmem>>, vector<1x8x16x4xbf16>
    %100 = vector.shape_cast %99 : vector<1x8x16x4xbf16> to vector<8x16x4xbf16>
    %c0_100 = arith.constant 0 : index
    %c0_101 = arith.constant 0 : index
    %c8_102 = arith.constant 8 : index
    %101 = vector.load %arg7[%c0_100, %c0_101, %c8_102] : memref<8x16x16xbf16, #tpu.memory_space<vmem>>, vector<8x16x4xbf16>
    tpu.vector_store %arg7[%c0_100, %c0_101, %c8_102], %100 {strides = array<i32>} : memref<8x16x16xbf16, #tpu.memory_space<vmem>>, vector<8x16x4xbf16>,
    %c1_i32_103 = arith.constant 1 : i32
    %102 = arith.addi %1, %c1_i32_103 : i32
    %c1_i32_104 = arith.constant 1 : i32
    %103 = arith.addi %102, %c1_i32_104 : i32
    %c0_105 = arith.constant 0 : index
    %104 = arith.index_cast %103 : i32 to index
    %c1_106 = arith.constant 1 : index
    %c0_107 = arith.constant 0 : index
    %105 = vector.load %arg2[%c0_105, %104, %c1_106, %c0_107] : memref<1x18x18x4xbf16, #tpu.memory_space<vmem>>, vector<1x8x16x4xbf16>
    %106 = vector.shape_cast %105 : vector<1x8x16x4xbf16> to vector<8x16x4xbf16>
    %c0_108 = arith.constant 0 : index
    %c0_109 = arith.constant 0 : index
    %c12_110 = arith.constant 12 : index
    %107 = vector.load %arg7[%c0_108, %c0_109, %c12_110] : memref<8x16x16xbf16, #tpu.memory_space<vmem>>, vector<8x16x4xbf16>
    tpu.vector_store %arg7[%c0_108, %c0_109, %c12_110], %106 {strides = array<i32>} : memref<8x16x16xbf16, #tpu.memory_space<vmem>>, vector<8x16x4xbf16>,
    %c0_111 = arith.constant 0 : index
    %c0_112 = arith.constant 0 : index
    %c0_113 = arith.constant 0 : index
    %108 = vector.load %arg7[%c0_111, %c0_112, %c0_113] : memref<8x16x16xbf16, #tpu.memory_space<vmem>>, vector<8x16x16xbf16>
    %109 = vector.shape_cast %108 : vector<8x16x16xbf16> to vector<128x16xbf16>
    %c2_114 = arith.constant 2 : index
    %c0_115 = arith.constant 0 : index
    %c0_116 = arith.constant 0 : index
    %110 = vector.load %arg3[%c2_114, %c0_115, %c0_116] : memref<4x16x8xbf16, #tpu.memory_space<vmem>>, vector<1x16x8xbf16>
    %111 = vector.shape_cast %110 : vector<1x16x8xbf16> to vector<16x8xbf16>
    %cst_117 = arith.constant dense<0.000000e+00> : vector<128x8xf32>
    %112 = tpu.matmul %109, %111, %cst_117 {dimension_numbers = #tpu.dot_dimension_numbers<[1], [0], [0], [1], [0, 0, 1, 1], [], []>} : vector<128x16xbf16>, vector<16x8xbf16>, vector<128x8xf32> -> vector<128x8xf32>
    %113 = vector.broadcast %5 : vector<1x8xf32> to vector<128x8xf32>
    %114 = arith.subf %112, %113 : vector<128x8xf32>
    %cst_118 = arith.constant dense<0.000000e+00> : vector<8xf32>
    %115 = vector.multi_reduction <add>, %114, %cst_118 [0] : vector<128x8xf32> to vector<8xf32>
    %116 = vector.shape_cast %115 : vector<8xf32> to vector<1x8xf32>
    %117 = arith.addf %79, %116 : vector<1x8xf32>
    %118 = arith.mulf %114, %114 : vector<128x8xf32>
    %cst_119 = arith.constant dense<0.000000e+00> : vector<8xf32>
    %119 = vector.multi_reduction <add>, %118, %cst_119 [0] : vector<128x8xf32> to vector<8xf32>
    %120 = vector.shape_cast %119 : vector<8xf32> to vector<1x8xf32>
    %121 = arith.addf %83, %120 : vector<1x8xf32>
    %c1_i32_120 = arith.constant 1 : i32
    %122 = arith.addi %1, %c1_i32_120 : i32
    %c0_i32_121 = arith.constant 0 : i32
    %123 = arith.addi %122, %c0_i32_121 : i32
    %c0_122 = arith.constant 0 : index
    %124 = arith.index_cast %123 : i32 to index
    %c1_123 = arith.constant 1 : index
    %c0_124 = arith.constant 0 : index
    %125 = vector.load %arg2[%c0_122, %124, %c1_123, %c0_124] : memref<1x18x18x4xbf16, #tpu.memory_space<vmem>>, vector<1x8x16x4xbf16>
    %126 = vector.shape_cast %125 : vector<1x8x16x4xbf16> to vector<8x16x4xbf16>
    %c0_125 = arith.constant 0 : index
    %c0_126 = arith.constant 0 : index
    %c0_127 = arith.constant 0 : index
    %127 = vector.load %arg7[%c0_125, %c0_126, %c0_127] : memref<8x16x16xbf16, #tpu.memory_space<vmem>>, vector<8x16x4xbf16>
    tpu.vector_store %arg7[%c0_125, %c0_126, %c0_127], %126 {strides = array<i32>} : memref<8x16x16xbf16, #tpu.memory_space<vmem>>, vector<8x16x4xbf16>,
    %c1_i32_128 = arith.constant 1 : i32
    %128 = arith.addi %1, %c1_i32_128 : i32
    %c0_i32_129 = arith.constant 0 : i32
    %129 = arith.addi %128, %c0_i32_129 : i32
    %c0_130 = arith.constant 0 : index
    %130 = arith.index_cast %129 : i32 to index
    %c2_131 = arith.constant 2 : index
    %c0_132 = arith.constant 0 : index
    %131 = vector.load %arg2[%c0_130, %130, %c2_131, %c0_132] : memref<1x18x18x4xbf16, #tpu.memory_space<vmem>>, vector<1x8x16x4xbf16>
    %132 = vector.shape_cast %131 : vector<1x8x16x4xbf16> to vector<8x16x4xbf16>
    %c0_133 = arith.constant 0 : index
    %c0_134 = arith.constant 0 : index
    %c4_135 = arith.constant 4 : index
    %133 = vector.load %arg7[%c0_133, %c0_134, %c4_135] : memref<8x16x16xbf16, #tpu.memory_space<vmem>>, vector<8x16x4xbf16>
    tpu.vector_store %arg7[%c0_133, %c0_134, %c4_135], %132 {strides = array<i32>} : memref<8x16x16xbf16, #tpu.memory_space<vmem>>, vector<8x16x4xbf16>,
    %c1_i32_136 = arith.constant 1 : i32
    %134 = arith.addi %1, %c1_i32_136 : i32
    %c1_i32_137 = arith.constant 1 : i32
    %135 = arith.addi %134, %c1_i32_137 : i32
    %c0_138 = arith.constant 0 : index
    %136 = arith.index_cast %135 : i32 to index
    %c1_139 = arith.constant 1 : index
    %c0_140 = arith.constant 0 : index
    %137 = vector.load %arg2[%c0_138, %136, %c1_139, %c0_140] : memref<1x18x18x4xbf16, #tpu.memory_space<vmem>>, vector<1x8x16x4xbf16>
    %138 = vector.shape_cast %137 : vector<1x8x16x4xbf16> to vector<8x16x4xbf16>
    %c0_141 = arith.constant 0 : index
    %c0_142 = arith.constant 0 : index
    %c8_143 = arith.constant 8 : index
    %139 = vector.load %arg7[%c0_141, %c0_142, %c8_143] : memref<8x16x16xbf16, #tpu.memory_space<vmem>>, vector<8x16x4xbf16>
    tpu.vector_store %arg7[%c0_141, %c0_142, %c8_143], %138 {strides = array<i32>} : memref<8x16x16xbf16, #tpu.memory_space<vmem>>, vector<8x16x4xbf16>,
    %c1_i32_144 = arith.constant 1 : i32
    %140 = arith.addi %1, %c1_i32_144 : i32
    %c1_i32_145 = arith.constant 1 : i32
    %141 = arith.addi %140, %c1_i32_145 : i32
    %c0_146 = arith.constant 0 : index
    %142 = arith.index_cast %141 : i32 to index
    %c2_147 = arith.constant 2 : index
    %c0_148 = arith.constant 0 : index
    %143 = vector.load %arg2[%c0_146, %142, %c2_147, %c0_148] : memref<1x18x18x4xbf16, #tpu.memory_space<vmem>>, vector<1x8x16x4xbf16>
    %144 = vector.shape_cast %143 : vector<1x8x16x4xbf16> to vector<8x16x4xbf16>
    %c0_149 = arith.constant 0 : index
    %c0_150 = arith.constant 0 : index
    %c12_151 = arith.constant 12 : index
    %145 = vector.load %arg7[%c0_149, %c0_150, %c12_151] : memref<8x16x16xbf16, #tpu.memory_space<vmem>>, vector<8x16x4xbf16>
    tpu.vector_store %arg7[%c0_149, %c0_150, %c12_151], %144 {strides = array<i32>} : memref<8x16x16xbf16, #tpu.memory_space<vmem>>, vector<8x16x4xbf16>,
    %c0_152 = arith.constant 0 : index
    %c0_153 = arith.constant 0 : index
    %c0_154 = arith.constant 0 : index
    %146 = vector.load %arg7[%c0_152, %c0_153, %c0_154] : memref<8x16x16xbf16, #tpu.memory_space<vmem>>, vector<8x16x16xbf16>
    %147 = vector.shape_cast %146 : vector<8x16x16xbf16> to vector<128x16xbf16>
    %c3 = arith.constant 3 : index
    %c0_155 = arith.constant 0 : index
    %c0_156 = arith.constant 0 : index
    %148 = vector.load %arg3[%c3, %c0_155, %c0_156] : memref<4x16x8xbf16, #tpu.memory_space<vmem>>, vector<1x16x8xbf16>
    %149 = vector.shape_cast %148 : vector<1x16x8xbf16> to vector<16x8xbf16>
    %cst_157 = arith.constant dense<0.000000e+00> : vector<128x8xf32>
    %150 = tpu.matmul %147, %149, %cst_157 {dimension_numbers = #tpu.dot_dimension_numbers<[1], [0], [0], [1], [0, 0, 1, 1], [], []>} : vector<128x16xbf16>, vector<16x8xbf16>, vector<128x8xf32> -> vector<128x8xf32>
    %151 = vector.broadcast %5 : vector<1x8xf32> to vector<128x8xf32>
    %152 = arith.subf %150, %151 : vector<128x8xf32>
    %cst_158 = arith.constant dense<0.000000e+00> : vector<8xf32>
    %153 = vector.multi_reduction <add>, %152, %cst_158 [0] : vector<128x8xf32> to vector<8xf32>
    %154 = vector.shape_cast %153 : vector<8xf32> to vector<1x8xf32>
    %155 = arith.addf %117, %154 : vector<1x8xf32>
    %156 = arith.mulf %152, %152 : vector<128x8xf32>
    %cst_159 = arith.constant dense<0.000000e+00> : vector<8xf32>
    %157 = vector.multi_reduction <add>, %156, %cst_159 [0] : vector<128x8xf32> to vector<8xf32>
    %158 = vector.shape_cast %157 : vector<8xf32> to vector<1x8xf32>
    %159 = arith.addf %121, %158 : vector<1x8xf32>
    %c0_160 = arith.constant 0 : index
    %c0_161 = arith.constant 0 : index
    %c0_162 = arith.constant 0 : index
    %160 = vector.load %arg5[%c0_160, %c0_161, %c0_162] : memref<1x1x8xf32, #tpu.memory_space<vmem>>, vector<1x1x8xf32>
    %161 = vector.shape_cast %160 : vector<1x1x8xf32> to vector<1x8xf32>
    %162 = arith.addf %161, %155 : vector<1x8xf32>
    %c0_163 = arith.constant 0 : index
    %c0_164 = arith.constant 0 : index
    %c0_165 = arith.constant 0 : index
    %163 = vector.load %arg5[%c0_163, %c0_164, %c0_165] : memref<1x1x8xf32, #tpu.memory_space<vmem>>, vector<1x1x8xf32>
    %164 = vector.shape_cast %163 : vector<1x1x8xf32> to vector<1x8xf32>
    %165 = vector.shape_cast %162 : vector<1x8xf32> to vector<1x1x8xf32>
    tpu.vector_store %arg5[%c0_163, %c0_164, %c0_165], %165 {strides = array<i32>} : memref<1x1x8xf32, #tpu.memory_space<vmem>>, vector<1x1x8xf32>,
    %c0_166 = arith.constant 0 : index
    %c0_167 = arith.constant 0 : index
    %c0_168 = arith.constant 0 : index
    %166 = vector.load %arg6[%c0_166, %c0_167, %c0_168] : memref<1x1x8xf32, #tpu.memory_space<vmem>>, vector<1x1x8xf32>
    %167 = vector.shape_cast %166 : vector<1x1x8xf32> to vector<1x8xf32>
    %168 = arith.addf %167, %159 : vector<1x8xf32>
    %c0_169 = arith.constant 0 : index
    %c0_170 = arith.constant 0 : index
    %c0_171 = arith.constant 0 : index
    %169 = vector.load %arg6[%c0_169, %c0_170, %c0_171] : memref<1x1x8xf32, #tpu.memory_space<vmem>>, vector<1x1x8xf32>
    %170 = vector.shape_cast %169 : vector<1x1x8xf32> to vector<1x8xf32>
    %171 = vector.shape_cast %168 : vector<1x8xf32> to vector<1x1x8xf32>
    tpu.vector_store %arg6[%c0_169, %c0_170, %c0_171], %171 {strides = array<i32>} : memref<1x1x8xf32, #tpu.memory_space<vmem>>, vector<1x1x8xf32>,
    return
  }
  func.func @transform_0(%arg0: i32, %arg1: i32) -> (i32, i32, i32, i32) {
    %c0_i32 = arith.constant 0 : i32
    %c0_i32_0 = arith.constant 0 : i32
    %c0_i32_1 = arith.constant 0 : i32
    %c0_i32_2 = arith.constant 0 : i32
    return %arg0, %c0_i32, %c0_i32_0, %c0_i32_1 : i32, i32, i32, i32
  }
  func.func @transform_1(%arg0: i32, %arg1: i32) -> (i32, i32, i32) {
    %c0_i32 = arith.constant 0 : i32
    %c0_i32_0 = arith.constant 0 : i32
    %c0_i32_1 = arith.constant 0 : i32
    %c0_i32_2 = arith.constant 0 : i32
    return %c0_i32, %c0_i32_0, %c0_i32_1 : i32, i32, i32
  }
  func.func @transform_2(%arg0: i32, %arg1: i32) -> (i32, i32) {
    %c0_i32 = arith.constant 0 : i32
    %c0_i32_0 = arith.constant 0 : i32
    %c0_i32_1 = arith.constant 0 : i32
    return %c0_i32, %c0_i32_0 : i32, i32
  }
  func.func @transform_3(%arg0: i32, %arg1: i32) -> (i32, i32, i32) {
    %c0_i32 = arith.constant 0 : i32
    %c0_i32_0 = arith.constant 0 : i32
    %c0_i32_1 = arith.constant 0 : i32
    return %arg0, %c0_i32, %c0_i32_0 : i32, i32, i32
  }
  func.func @transform_4(%arg0: i32, %arg1: i32) -> (i32, i32, i32) {
    %c0_i32 = arith.constant 0 : i32
    %c0_i32_0 = arith.constant 0 : i32
    %c0_i32_1 = arith.constant 0 : i32
    return %arg0, %c0_i32, %c0_i32_0 : i32, i32, i32
  }
}

module attributes {stable_mosaic.version = 11 : i64} {
  func.func @apply_kernel(%arg0: i32, %arg1: i32, %arg2: memref<1x18x18x4xbf16, #tpu.memory_space<vmem>>, %arg3: memref<4x16x8xbf16, #tpu.memory_space<vmem>>, %arg4: memref<1x8xf32, #tpu.memory_space<vmem>>, %arg5: memref<1x8xf32, #tpu.memory_space<vmem>>, %arg6: memref<1x4x128x8xbf16, #tpu.memory_space<vmem>>, %arg7: memref<8x16x16xbf16, #tpu.memory_space<vmem>>) attributes {dimension_semantics = [#tpu.dimension_semantics<parallel>, #tpu.dimension_semantics<parallel>], iteration_bounds = array<i64: 2, 2>, scalar_prefetch = 0 : i64, scratch_operands = 1 : i64, tpu.core_type = #tpu.core_type<tc>, window_params = [{transform_indices = @transform_0, window_bounds = array<i64: 1, 18, 18, 4>}, {pipeline_mode = #tpu.pipeline_mode<synchronous>, transform_indices = @transform_1, window_bounds = array<i64: 4, 16, 8>}, {pipeline_mode = #tpu.pipeline_mode<synchronous>, transform_indices = @transform_2, window_bounds = array<i64: 1, 8>}, {pipeline_mode = #tpu.pipeline_mode<synchronous>, transform_indices = @transform_3, window_bounds = array<i64: 1, 8>}, {transform_indices = @transform_4, window_bounds = array<i64: 1, 4, 128, 8>}]} {
    %c8_i32 = arith.constant 8 : i32
    %0 = arith.muli %arg1, %c8_i32 : i32
    %1 = tpu.assume_multiple %0, 8 : i32
    %c0 = arith.constant 0 : index
    %c0_0 = arith.constant 0 : index
    %2 = vector.load %arg4[%c0, %c0_0] : memref<1x8xf32, #tpu.memory_space<vmem>>, vector<1x8xf32>
    %c0_1 = arith.constant 0 : index
    %c0_2 = arith.constant 0 : index
    %3 = vector.load %arg5[%c0_1, %c0_2] : memref<1x8xf32, #tpu.memory_space<vmem>>, vector<1x8xf32>
    %c0_i32 = arith.constant 0 : i32
    %4 = arith.addi %1, %c0_i32 : i32
    %c0_i32_3 = arith.constant 0 : i32
    %5 = arith.addi %4, %c0_i32_3 : i32
    %c0_4 = arith.constant 0 : index
    %6 = arith.index_cast %5 : i32 to index
    %c0_5 = arith.constant 0 : index
    %c0_6 = arith.constant 0 : index
    %7 = vector.load %arg2[%c0_4, %6, %c0_5, %c0_6] : memref<1x18x18x4xbf16, #tpu.memory_space<vmem>>, vector<1x8x16x4xbf16>
    %8 = vector.shape_cast %7 : vector<1x8x16x4xbf16> to vector<8x16x4xbf16>
    %c0_7 = arith.constant 0 : index
    %c0_8 = arith.constant 0 : index
    %c0_9 = arith.constant 0 : index
    %9 = vector.load %arg7[%c0_7, %c0_8, %c0_9] : memref<8x16x16xbf16, #tpu.memory_space<vmem>>, vector<8x16x4xbf16>
    tpu.vector_store %arg7[%c0_7, %c0_8, %c0_9], %8 {strides = array<i32>} : memref<8x16x16xbf16, #tpu.memory_space<vmem>>, vector<8x16x4xbf16>,
    %c0_i32_10 = arith.constant 0 : i32
    %10 = arith.addi %1, %c0_i32_10 : i32
    %c0_i32_11 = arith.constant 0 : i32
    %11 = arith.addi %10, %c0_i32_11 : i32
    %c0_12 = arith.constant 0 : index
    %12 = arith.index_cast %11 : i32 to index
    %c1 = arith.constant 1 : index
    %c0_13 = arith.constant 0 : index
    %13 = vector.load %arg2[%c0_12, %12, %c1, %c0_13] : memref<1x18x18x4xbf16, #tpu.memory_space<vmem>>, vector<1x8x16x4xbf16>
    %14 = vector.shape_cast %13 : vector<1x8x16x4xbf16> to vector<8x16x4xbf16>
    %c0_14 = arith.constant 0 : index
    %c0_15 = arith.constant 0 : index
    %c4 = arith.constant 4 : index
    %15 = vector.load %arg7[%c0_14, %c0_15, %c4] : memref<8x16x16xbf16, #tpu.memory_space<vmem>>, vector<8x16x4xbf16>
    tpu.vector_store %arg7[%c0_14, %c0_15, %c4], %14 {strides = array<i32>} : memref<8x16x16xbf16, #tpu.memory_space<vmem>>, vector<8x16x4xbf16>,
    %c0_i32_16 = arith.constant 0 : i32
    %16 = arith.addi %1, %c0_i32_16 : i32
    %c1_i32 = arith.constant 1 : i32
    %17 = arith.addi %16, %c1_i32 : i32
    %c0_17 = arith.constant 0 : index
    %18 = arith.index_cast %17 : i32 to index
    %c0_18 = arith.constant 0 : index
    %c0_19 = arith.constant 0 : index
    %19 = vector.load %arg2[%c0_17, %18, %c0_18, %c0_19] : memref<1x18x18x4xbf16, #tpu.memory_space<vmem>>, vector<1x8x16x4xbf16>
    %20 = vector.shape_cast %19 : vector<1x8x16x4xbf16> to vector<8x16x4xbf16>
    %c0_20 = arith.constant 0 : index
    %c0_21 = arith.constant 0 : index
    %c8 = arith.constant 8 : index
    %21 = vector.load %arg7[%c0_20, %c0_21, %c8] : memref<8x16x16xbf16, #tpu.memory_space<vmem>>, vector<8x16x4xbf16>
    tpu.vector_store %arg7[%c0_20, %c0_21, %c8], %20 {strides = array<i32>} : memref<8x16x16xbf16, #tpu.memory_space<vmem>>, vector<8x16x4xbf16>,
    %c0_i32_22 = arith.constant 0 : i32
    %22 = arith.addi %1, %c0_i32_22 : i32
    %c1_i32_23 = arith.constant 1 : i32
    %23 = arith.addi %22, %c1_i32_23 : i32
    %c0_24 = arith.constant 0 : index
    %24 = arith.index_cast %23 : i32 to index
    %c1_25 = arith.constant 1 : index
    %c0_26 = arith.constant 0 : index
    %25 = vector.load %arg2[%c0_24, %24, %c1_25, %c0_26] : memref<1x18x18x4xbf16, #tpu.memory_space<vmem>>, vector<1x8x16x4xbf16>
    %26 = vector.shape_cast %25 : vector<1x8x16x4xbf16> to vector<8x16x4xbf16>
    %c0_27 = arith.constant 0 : index
    %c0_28 = arith.constant 0 : index
    %c12 = arith.constant 12 : index
    %27 = vector.load %arg7[%c0_27, %c0_28, %c12] : memref<8x16x16xbf16, #tpu.memory_space<vmem>>, vector<8x16x4xbf16>
    tpu.vector_store %arg7[%c0_27, %c0_28, %c12], %26 {strides = array<i32>} : memref<8x16x16xbf16, #tpu.memory_space<vmem>>, vector<8x16x4xbf16>,
    %c0_29 = arith.constant 0 : index
    %c0_30 = arith.constant 0 : index
    %c0_31 = arith.constant 0 : index
    %28 = vector.load %arg7[%c0_29, %c0_30, %c0_31] : memref<8x16x16xbf16, #tpu.memory_space<vmem>>, vector<8x16x16xbf16>
    %29 = vector.shape_cast %28 : vector<8x16x16xbf16> to vector<128x16xbf16>
    %c0_32 = arith.constant 0 : index
    %c0_33 = arith.constant 0 : index
    %c0_34 = arith.constant 0 : index
    %30 = vector.load %arg3[%c0_32, %c0_33, %c0_34] : memref<4x16x8xbf16, #tpu.memory_space<vmem>>, vector<1x16x8xbf16>
    %31 = vector.shape_cast %30 : vector<1x16x8xbf16> to vector<16x8xbf16>
    %cst = arith.constant dense<0.000000e+00> : vector<128x8xf32>
    %32 = tpu.matmul %29, %31, %cst {dimension_numbers = #tpu.dot_dimension_numbers<[1], [0], [0], [1], [0, 0, 1, 1], [], []>} : vector<128x16xbf16>, vector<16x8xbf16>, vector<128x8xf32> -> vector<128x8xf32>
    %33 = vector.broadcast %2 : vector<1x8xf32> to vector<128x8xf32>
    %34 = arith.mulf %32, %33 : vector<128x8xf32>
    %35 = vector.broadcast %3 : vector<1x8xf32> to vector<128x8xf32>
    %36 = arith.addf %34, %35 : vector<128x8xf32>
    %cst_35 = arith.constant 0.000000e+00 : f32
    %37 = vector.broadcast %cst_35 : f32 to vector<128x8xf32>
    %38 = arith.maximumf %36, %37 : vector<128x8xf32>
    %39 = arith.truncf %38 : vector<128x8xf32> to vector<128x8xbf16>
    %c0_36 = arith.constant 0 : index
    %c0_37 = arith.constant 0 : index
    %c0_38 = arith.constant 0 : index
    %c0_39 = arith.constant 0 : index
    %40 = vector.load %arg6[%c0_36, %c0_37, %c0_38, %c0_39] : memref<1x4x128x8xbf16, #tpu.memory_space<vmem>>, vector<1x1x128x8xbf16>
    %41 = vector.shape_cast %40 : vector<1x1x128x8xbf16> to vector<128x8xbf16>
    %42 = vector.shape_cast %39 : vector<128x8xbf16> to vector<1x1x128x8xbf16>
    tpu.vector_store %arg6[%c0_36, %c0_37, %c0_38, %c0_39], %42 {strides = array<i32>} : memref<1x4x128x8xbf16, #tpu.memory_space<vmem>>, vector<1x1x128x8xbf16>,
    %c0_i32_40 = arith.constant 0 : i32
    %43 = arith.addi %1, %c0_i32_40 : i32
    %c0_i32_41 = arith.constant 0 : i32
    %44 = arith.addi %43, %c0_i32_41 : i32
    %c0_42 = arith.constant 0 : index
    %45 = arith.index_cast %44 : i32 to index
    %c1_43 = arith.constant 1 : index
    %c0_44 = arith.constant 0 : index
    %46 = vector.load %arg2[%c0_42, %45, %c1_43, %c0_44] : memref<1x18x18x4xbf16, #tpu.memory_space<vmem>>, vector<1x8x16x4xbf16>
    %47 = vector.shape_cast %46 : vector<1x8x16x4xbf16> to vector<8x16x4xbf16>
    %c0_45 = arith.constant 0 : index
    %c0_46 = arith.constant 0 : index
    %c0_47 = arith.constant 0 : index
    %48 = vector.load %arg7[%c0_45, %c0_46, %c0_47] : memref<8x16x16xbf16, #tpu.memory_space<vmem>>, vector<8x16x4xbf16>
    tpu.vector_store %arg7[%c0_45, %c0_46, %c0_47], %47 {strides = array<i32>} : memref<8x16x16xbf16, #tpu.memory_space<vmem>>, vector<8x16x4xbf16>,
    %c0_i32_48 = arith.constant 0 : i32
    %49 = arith.addi %1, %c0_i32_48 : i32
    %c0_i32_49 = arith.constant 0 : i32
    %50 = arith.addi %49, %c0_i32_49 : i32
    %c0_50 = arith.constant 0 : index
    %51 = arith.index_cast %50 : i32 to index
    %c2 = arith.constant 2 : index
    %c0_51 = arith.constant 0 : index
    %52 = vector.load %arg2[%c0_50, %51, %c2, %c0_51] : memref<1x18x18x4xbf16, #tpu.memory_space<vmem>>, vector<1x8x16x4xbf16>
    %53 = vector.shape_cast %52 : vector<1x8x16x4xbf16> to vector<8x16x4xbf16>
    %c0_52 = arith.constant 0 : index
    %c0_53 = arith.constant 0 : index
    %c4_54 = arith.constant 4 : index
    %54 = vector.load %arg7[%c0_52, %c0_53, %c4_54] : memref<8x16x16xbf16, #tpu.memory_space<vmem>>, vector<8x16x4xbf16>
    tpu.vector_store %arg7[%c0_52, %c0_53, %c4_54], %53 {strides = array<i32>} : memref<8x16x16xbf16, #tpu.memory_space<vmem>>, vector<8x16x4xbf16>,
    %c0_i32_55 = arith.constant 0 : i32
    %55 = arith.addi %1, %c0_i32_55 : i32
    %c1_i32_56 = arith.constant 1 : i32
    %56 = arith.addi %55, %c1_i32_56 : i32
    %c0_57 = arith.constant 0 : index
    %57 = arith.index_cast %56 : i32 to index
    %c1_58 = arith.constant 1 : index
    %c0_59 = arith.constant 0 : index
    %58 = vector.load %arg2[%c0_57, %57, %c1_58, %c0_59] : memref<1x18x18x4xbf16, #tpu.memory_space<vmem>>, vector<1x8x16x4xbf16>
    %59 = vector.shape_cast %58 : vector<1x8x16x4xbf16> to vector<8x16x4xbf16>
    %c0_60 = arith.constant 0 : index
    %c0_61 = arith.constant 0 : index
    %c8_62 = arith.constant 8 : index
    %60 = vector.load %arg7[%c0_60, %c0_61, %c8_62] : memref<8x16x16xbf16, #tpu.memory_space<vmem>>, vector<8x16x4xbf16>
    tpu.vector_store %arg7[%c0_60, %c0_61, %c8_62], %59 {strides = array<i32>} : memref<8x16x16xbf16, #tpu.memory_space<vmem>>, vector<8x16x4xbf16>,
    %c0_i32_63 = arith.constant 0 : i32
    %61 = arith.addi %1, %c0_i32_63 : i32
    %c1_i32_64 = arith.constant 1 : i32
    %62 = arith.addi %61, %c1_i32_64 : i32
    %c0_65 = arith.constant 0 : index
    %63 = arith.index_cast %62 : i32 to index
    %c2_66 = arith.constant 2 : index
    %c0_67 = arith.constant 0 : index
    %64 = vector.load %arg2[%c0_65, %63, %c2_66, %c0_67] : memref<1x18x18x4xbf16, #tpu.memory_space<vmem>>, vector<1x8x16x4xbf16>
    %65 = vector.shape_cast %64 : vector<1x8x16x4xbf16> to vector<8x16x4xbf16>
    %c0_68 = arith.constant 0 : index
    %c0_69 = arith.constant 0 : index
    %c12_70 = arith.constant 12 : index
    %66 = vector.load %arg7[%c0_68, %c0_69, %c12_70] : memref<8x16x16xbf16, #tpu.memory_space<vmem>>, vector<8x16x4xbf16>
    tpu.vector_store %arg7[%c0_68, %c0_69, %c12_70], %65 {strides = array<i32>} : memref<8x16x16xbf16, #tpu.memory_space<vmem>>, vector<8x16x4xbf16>,
    %c0_71 = arith.constant 0 : index
    %c0_72 = arith.constant 0 : index
    %c0_73 = arith.constant 0 : index
    %67 = vector.load %arg7[%c0_71, %c0_72, %c0_73] : memref<8x16x16xbf16, #tpu.memory_space<vmem>>, vector<8x16x16xbf16>
    %68 = vector.shape_cast %67 : vector<8x16x16xbf16> to vector<128x16xbf16>
    %c1_74 = arith.constant 1 : index
    %c0_75 = arith.constant 0 : index
    %c0_76 = arith.constant 0 : index
    %69 = vector.load %arg3[%c1_74, %c0_75, %c0_76] : memref<4x16x8xbf16, #tpu.memory_space<vmem>>, vector<1x16x8xbf16>
    %70 = vector.shape_cast %69 : vector<1x16x8xbf16> to vector<16x8xbf16>
    %cst_77 = arith.constant dense<0.000000e+00> : vector<128x8xf32>
    %71 = tpu.matmul %68, %70, %cst_77 {dimension_numbers = #tpu.dot_dimension_numbers<[1], [0], [0], [1], [0, 0, 1, 1], [], []>} : vector<128x16xbf16>, vector<16x8xbf16>, vector<128x8xf32> -> vector<128x8xf32>
    %72 = vector.broadcast %2 : vector<1x8xf32> to vector<128x8xf32>
    %73 = arith.mulf %71, %72 : vector<128x8xf32>
    %74 = vector.broadcast %3 : vector<1x8xf32> to vector<128x8xf32>
    %75 = arith.addf %73, %74 : vector<128x8xf32>
    %cst_78 = arith.constant 0.000000e+00 : f32
    %76 = vector.broadcast %cst_78 : f32 to vector<128x8xf32>
    %77 = arith.maximumf %75, %76 : vector<128x8xf32>
    %78 = arith.truncf %77 : vector<128x8xf32> to vector<128x8xbf16>
    %c0_79 = arith.constant 0 : index
    %c1_80 = arith.constant 1 : index
    %c0_81 = arith.constant 0 : index
    %c0_82 = arith.constant 0 : index
    %79 = vector.load %arg6[%c0_79, %c1_80, %c0_81, %c0_82] : memref<1x4x128x8xbf16, #tpu.memory_space<vmem>>, vector<1x1x128x8xbf16>
    %80 = vector.shape_cast %79 : vector<1x1x128x8xbf16> to vector<128x8xbf16>
    %81 = vector.shape_cast %78 : vector<128x8xbf16> to vector<1x1x128x8xbf16>
    tpu.vector_store %arg6[%c0_79, %c1_80, %c0_81, %c0_82], %81 {strides = array<i32>} : memref<1x4x128x8xbf16, #tpu.memory_space<vmem>>, vector<1x1x128x8xbf16>,
    %c1_i32_83 = arith.constant 1 : i32
    %82 = arith.addi %1, %c1_i32_83 : i32
    %c0_i32_84 = arith.constant 0 : i32
    %83 = arith.addi %82, %c0_i32_84 : i32
    %c0_85 = arith.constant 0 : index
    %84 = arith.index_cast %83 : i32 to index
    %c0_86 = arith.constant 0 : index
    %c0_87 = arith.constant 0 : index
    %85 = vector.load %arg2[%c0_85, %84, %c0_86, %c0_87] : memref<1x18x18x4xbf16, #tpu.memory_space<vmem>>, vector<1x8x16x4xbf16>
    %86 = vector.shape_cast %85 : vector<1x8x16x4xbf16> to vector<8x16x4xbf16>
    %c0_88 = arith.constant 0 : index
    %c0_89 = arith.constant 0 : index
    %c0_90 = arith.constant 0 : index
    %87 = vector.load %arg7[%c0_88, %c0_89, %c0_90] : memref<8x16x16xbf16, #tpu.memory_space<vmem>>, vector<8x16x4xbf16>
    tpu.vector_store %arg7[%c0_88, %c0_89, %c0_90], %86 {strides = array<i32>} : memref<8x16x16xbf16, #tpu.memory_space<vmem>>, vector<8x16x4xbf16>,
    %c1_i32_91 = arith.constant 1 : i32
    %88 = arith.addi %1, %c1_i32_91 : i32
    %c0_i32_92 = arith.constant 0 : i32
    %89 = arith.addi %88, %c0_i32_92 : i32
    %c0_93 = arith.constant 0 : index
    %90 = arith.index_cast %89 : i32 to index
    %c1_94 = arith.constant 1 : index
    %c0_95 = arith.constant 0 : index
    %91 = vector.load %arg2[%c0_93, %90, %c1_94, %c0_95] : memref<1x18x18x4xbf16, #tpu.memory_space<vmem>>, vector<1x8x16x4xbf16>
    %92 = vector.shape_cast %91 : vector<1x8x16x4xbf16> to vector<8x16x4xbf16>
    %c0_96 = arith.constant 0 : index
    %c0_97 = arith.constant 0 : index
    %c4_98 = arith.constant 4 : index
    %93 = vector.load %arg7[%c0_96, %c0_97, %c4_98] : memref<8x16x16xbf16, #tpu.memory_space<vmem>>, vector<8x16x4xbf16>
    tpu.vector_store %arg7[%c0_96, %c0_97, %c4_98], %92 {strides = array<i32>} : memref<8x16x16xbf16, #tpu.memory_space<vmem>>, vector<8x16x4xbf16>,
    %c1_i32_99 = arith.constant 1 : i32
    %94 = arith.addi %1, %c1_i32_99 : i32
    %c1_i32_100 = arith.constant 1 : i32
    %95 = arith.addi %94, %c1_i32_100 : i32
    %c0_101 = arith.constant 0 : index
    %96 = arith.index_cast %95 : i32 to index
    %c0_102 = arith.constant 0 : index
    %c0_103 = arith.constant 0 : index
    %97 = vector.load %arg2[%c0_101, %96, %c0_102, %c0_103] : memref<1x18x18x4xbf16, #tpu.memory_space<vmem>>, vector<1x8x16x4xbf16>
    %98 = vector.shape_cast %97 : vector<1x8x16x4xbf16> to vector<8x16x4xbf16>
    %c0_104 = arith.constant 0 : index
    %c0_105 = arith.constant 0 : index
    %c8_106 = arith.constant 8 : index
    %99 = vector.load %arg7[%c0_104, %c0_105, %c8_106] : memref<8x16x16xbf16, #tpu.memory_space<vmem>>, vector<8x16x4xbf16>
    tpu.vector_store %arg7[%c0_104, %c0_105, %c8_106], %98 {strides = array<i32>} : memref<8x16x16xbf16, #tpu.memory_space<vmem>>, vector<8x16x4xbf16>,
    %c1_i32_107 = arith.constant 1 : i32
    %100 = arith.addi %1, %c1_i32_107 : i32
    %c1_i32_108 = arith.constant 1 : i32
    %101 = arith.addi %100, %c1_i32_108 : i32
    %c0_109 = arith.constant 0 : index
    %102 = arith.index_cast %101 : i32 to index
    %c1_110 = arith.constant 1 : index
    %c0_111 = arith.constant 0 : index
    %103 = vector.load %arg2[%c0_109, %102, %c1_110, %c0_111] : memref<1x18x18x4xbf16, #tpu.memory_space<vmem>>, vector<1x8x16x4xbf16>
    %104 = vector.shape_cast %103 : vector<1x8x16x4xbf16> to vector<8x16x4xbf16>
    %c0_112 = arith.constant 0 : index
    %c0_113 = arith.constant 0 : index
    %c12_114 = arith.constant 12 : index
    %105 = vector.load %arg7[%c0_112, %c0_113, %c12_114] : memref<8x16x16xbf16, #tpu.memory_space<vmem>>, vector<8x16x4xbf16>
    tpu.vector_store %arg7[%c0_112, %c0_113, %c12_114], %104 {strides = array<i32>} : memref<8x16x16xbf16, #tpu.memory_space<vmem>>, vector<8x16x4xbf16>,
    %c0_115 = arith.constant 0 : index
    %c0_116 = arith.constant 0 : index
    %c0_117 = arith.constant 0 : index
    %106 = vector.load %arg7[%c0_115, %c0_116, %c0_117] : memref<8x16x16xbf16, #tpu.memory_space<vmem>>, vector<8x16x16xbf16>
    %107 = vector.shape_cast %106 : vector<8x16x16xbf16> to vector<128x16xbf16>
    %c2_118 = arith.constant 2 : index
    %c0_119 = arith.constant 0 : index
    %c0_120 = arith.constant 0 : index
    %108 = vector.load %arg3[%c2_118, %c0_119, %c0_120] : memref<4x16x8xbf16, #tpu.memory_space<vmem>>, vector<1x16x8xbf16>
    %109 = vector.shape_cast %108 : vector<1x16x8xbf16> to vector<16x8xbf16>
    %cst_121 = arith.constant dense<0.000000e+00> : vector<128x8xf32>
    %110 = tpu.matmul %107, %109, %cst_121 {dimension_numbers = #tpu.dot_dimension_numbers<[1], [0], [0], [1], [0, 0, 1, 1], [], []>} : vector<128x16xbf16>, vector<16x8xbf16>, vector<128x8xf32> -> vector<128x8xf32>
    %111 = vector.broadcast %2 : vector<1x8xf32> to vector<128x8xf32>
    %112 = arith.mulf %110, %111 : vector<128x8xf32>
    %113 = vector.broadcast %3 : vector<1x8xf32> to vector<128x8xf32>
    %114 = arith.addf %112, %113 : vector<128x8xf32>
    %cst_122 = arith.constant 0.000000e+00 : f32
    %115 = vector.broadcast %cst_122 : f32 to vector<128x8xf32>
    %116 = arith.maximumf %114, %115 : vector<128x8xf32>
    %117 = arith.truncf %116 : vector<128x8xf32> to vector<128x8xbf16>
    %c0_123 = arith.constant 0 : index
    %c2_124 = arith.constant 2 : index
    %c0_125 = arith.constant 0 : index
    %c0_126 = arith.constant 0 : index
    %118 = vector.load %arg6[%c0_123, %c2_124, %c0_125, %c0_126] : memref<1x4x128x8xbf16, #tpu.memory_space<vmem>>, vector<1x1x128x8xbf16>
    %119 = vector.shape_cast %118 : vector<1x1x128x8xbf16> to vector<128x8xbf16>
    %120 = vector.shape_cast %117 : vector<128x8xbf16> to vector<1x1x128x8xbf16>
    tpu.vector_store %arg6[%c0_123, %c2_124, %c0_125, %c0_126], %120 {strides = array<i32>} : memref<1x4x128x8xbf16, #tpu.memory_space<vmem>>, vector<1x1x128x8xbf16>,
    %c1_i32_127 = arith.constant 1 : i32
    %121 = arith.addi %1, %c1_i32_127 : i32
    %c0_i32_128 = arith.constant 0 : i32
    %122 = arith.addi %121, %c0_i32_128 : i32
    %c0_129 = arith.constant 0 : index
    %123 = arith.index_cast %122 : i32 to index
    %c1_130 = arith.constant 1 : index
    %c0_131 = arith.constant 0 : index
    %124 = vector.load %arg2[%c0_129, %123, %c1_130, %c0_131] : memref<1x18x18x4xbf16, #tpu.memory_space<vmem>>, vector<1x8x16x4xbf16>
    %125 = vector.shape_cast %124 : vector<1x8x16x4xbf16> to vector<8x16x4xbf16>
    %c0_132 = arith.constant 0 : index
    %c0_133 = arith.constant 0 : index
    %c0_134 = arith.constant 0 : index
    %126 = vector.load %arg7[%c0_132, %c0_133, %c0_134] : memref<8x16x16xbf16, #tpu.memory_space<vmem>>, vector<8x16x4xbf16>
    tpu.vector_store %arg7[%c0_132, %c0_133, %c0_134], %125 {strides = array<i32>} : memref<8x16x16xbf16, #tpu.memory_space<vmem>>, vector<8x16x4xbf16>,
    %c1_i32_135 = arith.constant 1 : i32
    %127 = arith.addi %1, %c1_i32_135 : i32
    %c0_i32_136 = arith.constant 0 : i32
    %128 = arith.addi %127, %c0_i32_136 : i32
    %c0_137 = arith.constant 0 : index
    %129 = arith.index_cast %128 : i32 to index
    %c2_138 = arith.constant 2 : index
    %c0_139 = arith.constant 0 : index
    %130 = vector.load %arg2[%c0_137, %129, %c2_138, %c0_139] : memref<1x18x18x4xbf16, #tpu.memory_space<vmem>>, vector<1x8x16x4xbf16>
    %131 = vector.shape_cast %130 : vector<1x8x16x4xbf16> to vector<8x16x4xbf16>
    %c0_140 = arith.constant 0 : index
    %c0_141 = arith.constant 0 : index
    %c4_142 = arith.constant 4 : index
    %132 = vector.load %arg7[%c0_140, %c0_141, %c4_142] : memref<8x16x16xbf16, #tpu.memory_space<vmem>>, vector<8x16x4xbf16>
    tpu.vector_store %arg7[%c0_140, %c0_141, %c4_142], %131 {strides = array<i32>} : memref<8x16x16xbf16, #tpu.memory_space<vmem>>, vector<8x16x4xbf16>,
    %c1_i32_143 = arith.constant 1 : i32
    %133 = arith.addi %1, %c1_i32_143 : i32
    %c1_i32_144 = arith.constant 1 : i32
    %134 = arith.addi %133, %c1_i32_144 : i32
    %c0_145 = arith.constant 0 : index
    %135 = arith.index_cast %134 : i32 to index
    %c1_146 = arith.constant 1 : index
    %c0_147 = arith.constant 0 : index
    %136 = vector.load %arg2[%c0_145, %135, %c1_146, %c0_147] : memref<1x18x18x4xbf16, #tpu.memory_space<vmem>>, vector<1x8x16x4xbf16>
    %137 = vector.shape_cast %136 : vector<1x8x16x4xbf16> to vector<8x16x4xbf16>
    %c0_148 = arith.constant 0 : index
    %c0_149 = arith.constant 0 : index
    %c8_150 = arith.constant 8 : index
    %138 = vector.load %arg7[%c0_148, %c0_149, %c8_150] : memref<8x16x16xbf16, #tpu.memory_space<vmem>>, vector<8x16x4xbf16>
    tpu.vector_store %arg7[%c0_148, %c0_149, %c8_150], %137 {strides = array<i32>} : memref<8x16x16xbf16, #tpu.memory_space<vmem>>, vector<8x16x4xbf16>,
    %c1_i32_151 = arith.constant 1 : i32
    %139 = arith.addi %1, %c1_i32_151 : i32
    %c1_i32_152 = arith.constant 1 : i32
    %140 = arith.addi %139, %c1_i32_152 : i32
    %c0_153 = arith.constant 0 : index
    %141 = arith.index_cast %140 : i32 to index
    %c2_154 = arith.constant 2 : index
    %c0_155 = arith.constant 0 : index
    %142 = vector.load %arg2[%c0_153, %141, %c2_154, %c0_155] : memref<1x18x18x4xbf16, #tpu.memory_space<vmem>>, vector<1x8x16x4xbf16>
    %143 = vector.shape_cast %142 : vector<1x8x16x4xbf16> to vector<8x16x4xbf16>
    %c0_156 = arith.constant 0 : index
    %c0_157 = arith.constant 0 : index
    %c12_158 = arith.constant 12 : index
    %144 = vector.load %arg7[%c0_156, %c0_157, %c12_158] : memref<8x16x16xbf16, #tpu.memory_space<vmem>>, vector<8x16x4xbf16>
    tpu.vector_store %arg7[%c0_156, %c0_157, %c12_158], %143 {strides = array<i32>} : memref<8x16x16xbf16, #tpu.memory_space<vmem>>, vector<8x16x4xbf16>,
    %c0_159 = arith.constant 0 : index
    %c0_160 = arith.constant 0 : index
    %c0_161 = arith.constant 0 : index
    %145 = vector.load %arg7[%c0_159, %c0_160, %c0_161] : memref<8x16x16xbf16, #tpu.memory_space<vmem>>, vector<8x16x16xbf16>
    %146 = vector.shape_cast %145 : vector<8x16x16xbf16> to vector<128x16xbf16>
    %c3 = arith.constant 3 : index
    %c0_162 = arith.constant 0 : index
    %c0_163 = arith.constant 0 : index
    %147 = vector.load %arg3[%c3, %c0_162, %c0_163] : memref<4x16x8xbf16, #tpu.memory_space<vmem>>, vector<1x16x8xbf16>
    %148 = vector.shape_cast %147 : vector<1x16x8xbf16> to vector<16x8xbf16>
    %cst_164 = arith.constant dense<0.000000e+00> : vector<128x8xf32>
    %149 = tpu.matmul %146, %148, %cst_164 {dimension_numbers = #tpu.dot_dimension_numbers<[1], [0], [0], [1], [0, 0, 1, 1], [], []>} : vector<128x16xbf16>, vector<16x8xbf16>, vector<128x8xf32> -> vector<128x8xf32>
    %150 = vector.broadcast %2 : vector<1x8xf32> to vector<128x8xf32>
    %151 = arith.mulf %149, %150 : vector<128x8xf32>
    %152 = vector.broadcast %3 : vector<1x8xf32> to vector<128x8xf32>
    %153 = arith.addf %151, %152 : vector<128x8xf32>
    %cst_165 = arith.constant 0.000000e+00 : f32
    %154 = vector.broadcast %cst_165 : f32 to vector<128x8xf32>
    %155 = arith.maximumf %153, %154 : vector<128x8xf32>
    %156 = arith.truncf %155 : vector<128x8xf32> to vector<128x8xbf16>
    %c0_166 = arith.constant 0 : index
    %c3_167 = arith.constant 3 : index
    %c0_168 = arith.constant 0 : index
    %c0_169 = arith.constant 0 : index
    %157 = vector.load %arg6[%c0_166, %c3_167, %c0_168, %c0_169] : memref<1x4x128x8xbf16, #tpu.memory_space<vmem>>, vector<1x1x128x8xbf16>
    %158 = vector.shape_cast %157 : vector<1x1x128x8xbf16> to vector<128x8xbf16>
    %159 = vector.shape_cast %156 : vector<128x8xbf16> to vector<1x1x128x8xbf16>
    tpu.vector_store %arg6[%c0_166, %c3_167, %c0_168, %c0_169], %159 {strides = array<i32>} : memref<1x4x128x8xbf16, #tpu.memory_space<vmem>>, vector<1x1x128x8xbf16>,
    return
  }
  func.func @transform_0(%arg0: i32, %arg1: i32) -> (i32, i32, i32, i32) {
    %c0_i32 = arith.constant 0 : i32
    %c0_i32_0 = arith.constant 0 : i32
    %c0_i32_1 = arith.constant 0 : i32
    %c0_i32_2 = arith.constant 0 : i32
    return %arg0, %c0_i32, %c0_i32_0, %c0_i32_1 : i32, i32, i32, i32
  }
  func.func @transform_1(%arg0: i32, %arg1: i32) -> (i32, i32, i32) {
    %c0_i32 = arith.constant 0 : i32
    %c0_i32_0 = arith.constant 0 : i32
    %c0_i32_1 = arith.constant 0 : i32
    %c0_i32_2 = arith.constant 0 : i32
    return %c0_i32, %c0_i32_0, %c0_i32_1 : i32, i32, i32
  }
  func.func @transform_2(%arg0: i32, %arg1: i32) -> (i32, i32) {
    %c0_i32 = arith.constant 0 : i32
    %c0_i32_0 = arith.constant 0 : i32
    %c0_i32_1 = arith.constant 0 : i32
    return %c0_i32, %c0_i32_0 : i32, i32
  }
  func.func @transform_3(%arg0: i32, %arg1: i32) -> (i32, i32) {
    %c0_i32 = arith.constant 0 : i32
    %c0_i32_0 = arith.constant 0 : i32
    %c0_i32_1 = arith.constant 0 : i32
    return %c0_i32, %c0_i32_0 : i32, i32
  }
  func.func @transform_4(%arg0: i32, %arg1: i32) -> (i32, i32, i32, i32) {
    %c0_i32 = arith.constant 0 : i32
    %c0_i32_0 = arith.constant 0 : i32
    %c0_i32_1 = arith.constant 0 : i32
    return %arg0, %c0_i32, %arg1, %c0_i32_0 : i32, i32, i32, i32
  }
}

</mosaic_0001>

<bundles_post_ra>
// kernel: up_conv_forward.3
= control target key start
LH: loop header
LB: loop body
LE: loop exit
PB: predicated region body
PF: predicated region fallthrough
CT: control target
= control target key end

     0   :  { %s5331_s15 = smov 0   ;;  %s5333_s16 = smov 0   ;;  %s7556_s0 = inlined_call_operand.vmem [shape: bf16[2,18,18,4], index: 0, kind: input, shape index: {}]   ;;  %s7557_s1 = inlined_call_operand.vmem [shape: bf16[4,16,8], index: 1, kind: input, shape index: {}]   ;;  %s7558_s2 = inlined_call_operand.vmem [shape: f32[1,8], index: 2, kind: input, shape index: {}]   ;;  %s7559_s3 = inlined_call_operand.vmem [shape: f32[1,8], index: 3, kind: input, shape index: {}]   ;;  %s7560_s4 = inlined_call_operand.vmem [shape: bf16[2,4,256,8], index: 4, kind: output, shape index: {}]  }
   0x1   :  { %s5335_s17 = smov 0   ;;  %s5337_s18 = smov 0  }
   0x2   :  { %s5339_s19 = smov 0   ;;  %s5341_s20 = smov 0  }
   0x3   :  { %s5343_s21 = smov 0  }
   0x4 LB: > { %s23_s22 = sadd.s32 1, %s5293_s19  ;;  %s26_s23 = sadd.s32 1, %s5297_s20  ;;  %s5301_s21 = sphi %s5343_s21, %s14_s21   ;;  %s5297_s20 = sphi %s5341_s20, %s7571_s20   ;;  %s5293_s19 = sphi %s5339_s19, %s7570_s19   ;;  %s5289_s18 = sphi %s5337_s18, %s7569_s18   ;;  %s5285_s17 = sphi %s5335_s17, %s7568_s17   ;;  %s5281_s16 = sphi %s5333_s16, %s7567_s16   ;;  %s5277_s15 = sphi %s5331_s15, %s7566_s15  }
   0x5   : > { %p24_p0 = scmp.ge.s32.totalorder %s23_s22, 2  ;;  %s4598_s24 = sadd.s32 4294967295, %s5301_s21  }
   0x6   : > { %p134_p1 = scmp.ne.s32.totalorder %s5281_s16, %s5277_s15  ;;  %p135_p2 = scmp.eq.s32.totalorder %s4598_s24, 3 }
   0x7   : > { %s7573_s22 = smov (%p24_p0, %s23_s22), 0  ;;  %s7575_s23 = smov (!%p24_p0, %s26_s23), %s5297_s20 }
   0x8   : > { %s120_s25 = ssub.s32 %s5293_s19, %s7573_s22  ;;  %p28_p3 = scmp.ge.s32.totalorder %s7575_s23, 2 }
   0x9   : > { %p4602_p4 = scmp.ge.s32.totalorder %s5301_s21, 1  ;;  %p5377_p5 = por %p135_p2, %p134_p1 }
   0xa   : > { %p176_p6 = scmp.lt.s32.totalorder %s5301_s21, 5  ;;  %s7577_s23 = smov (%p28_p3, %s7575_s23), 0 }
   0xb   : > { %s119_s27 = ssub.s32 %s5297_s20, %s7577_s23  ;;  %s124_s29 = sadd.s32 1, %s5281_s16 }
   0xc   : > { %p177_p7 = pnand %p4602_p4, %p176_p6  ;;  %s121_s28 = sor.u32 %s120_s25, %s119_s27 }
   0xd   : > { %p122_p8 = scmp.eq.s32.totalorder %s121_s28, 0  ;;  %p201_p9 = scmp.lt.s32.totalorder (!%p177_p7), %s5289_s18, 1 }
   0xe   : > { %180 = sbr.rel (%p177_p7) target bundleno = 822 (0x336), region = 36  ;;  %s5303_s12 = smov (!%p177_p7), 4  }
   0xf   : > { %s5388_s30 = scalar_select %p122_p8, %s5281_s16, %s124_s29  }
  0x10   : > { %s5144_s6 = smul.u32 (!%p177_p7), 96, %s5285_s17  ;;  %s5304_s13 = smov (!%p177_p7), 8  }
  0x11   : > { %s5305_s14 = smov (!%p177_p7), 12  }
  0x13   : > { %s202_s5 = scalar_select %p201_p9, %s5289_s18, 1  ;;  %vm271_vm0 = vsmask.f32 3328  ;;  %vm272_vm1 = vsmask.f32 7440  ;;  %vm230_vm3 = vcmask 27648  }
  0x14   : > { %vm5407_vm2 = vmor %vm271_vm0, %vm272_vm1  ;;  %vm514_vm4 = vcmask 60448   ;;  %vm1434_vm5 = vcmask 1042432   ;;  %vm1435_vm6 = vcmask 1046532   ;;  %vm615_vm8 = vcmask 93248   ;;  %s5140_s8 = sshll.u32 (%p5377_p5), %s5289_s18, 7 }
  0x15   : > { %s5181_s7 = smul.u32 216, %s202_s5  ;;  %vm5646_vm7 = vmor %vm1434_vm5, %vm1435_vm6  ;;  %vm896_vm9 = vcmask 126048   ;;  %vm977_vm10 = vcmask 130048   ;;  %vm1121_vm11 = vcmask 60416  }
  0x17   : > { %s205_s10 = scalar_lea.vmem %s7556_s0, %s5181_s7 }
  0x18   : > { %s5396_s11 = scalar_lea.vmem %s205_s10, %s5144_s6  ;;  %s198_s6 = sand.u32 1, %s5277_s15  }
  0x19   : > { %v250_v0 = vld [vmem:[%s5396_s11 + $0xc] sm:$0xf]  ;;  %v251_v1 = vld [vmem:[%s5396_s11 + $0x10] sm:$0xf]  ;;  %v247_v2 = vld [vmem:[%s5396_s11] sm:$0xf] }
  0x1a   : > { %v299_v3 = vshrl.u32 %v250_v0, 16  ;;  %v302_v4 = vshll.u32 %v250_v0, 16  ;;  %v308_v5 = vshll.u32 %v251_v1, 16  ;;  %v312_v6 = vshrl.u32 %v251_v1, 16  ;;  %v248_v7 = vld [vmem:[%s5396_s11 + $0x4] sm:$0xf] }
  0x1b   : > { %v275_v8 = vshrl.u32 %v247_v2, 16  ;;  %v278_v9 = vshll.u32 %v247_v2, 16  ;;  %v284_v10 = vshll.u32 %v248_v7, 16  ;;  %v288_v11 = vshrl.u32 %v248_v7, 16  ;;  %v252_v12 = vld [vmem:[%s5396_s11 + $0x14] sm:$0x1] }
  0x1c   : > { %v301_v13 = vrot.slane %v299_v3, 4  ;;  %v304_v14 = vrot.slane %v302_v4, 5  ;;  %v310_v15 = vrot.slane %v308_v5, 5  ;;  %v314_v16 = vrot.slane %v312_v6, 4  ;;  %v249_v17 = vld [vmem:[%s5396_s11 + $0x8] sm:$0x1] }
  0x1d   : > { %v277_v18 = vrot.slane %v275_v8, 4  ;;  %v280_v19 = vrot.slane %v278_v9, 5  ;;  %v290_v20 = vrot.slane %v288_v11, 4  ;;  %v257_v21 = vld [vmem:[%s5396_s11 + $0x28] sm:$0xf]  ;;  %v286_v23 = vrot.slane %v284_v10, 5 }
  0x1e   : > { %v305_v22 = vor.u32 %v304_v14, %v301_v13  ;;  %v315_v24 = vor.u32 %v314_v16, %v310_v15  ;;  %v318_v25 = vshll.u32 %v252_v12, 16  ;;  %v356_v28 = vshll.u32 %v257_v21, 16  ;;  %v256_v30 = vld [vmem:[%s5396_s11 + $0x24] sm:$0xf]  ;;  %v253_v35 = vld [vmem:[%s5396_s11 + $0x18] sm:$0xf] }
  0x1f   : > { %v281_v27 = vor.u32 %v280_v19, %v277_v18  ;;  %v360_v29 = vshrl.u32 %v257_v21, 16  ;;  %v291_v32 = vor.u32 %v290_v20, %v286_v23  ;;  %v294_v33 = vshll.u32 %v249_v17, 16  ;;  %v254_v40 = vld [vmem:[%s5396_s11 + $0x1c] sm:$0xf]  ;;  %v258_v42 = vld [vmem:[%s5396_s11 + $0x2c] sm:$0x1] }
  0x20   : > { %v306_v31 = vrot.slane %v305_v22, 4  ;;  %v316_v37 = vrot.slane %v315_v24, 4  ;;  %v320_v38 = vrot.slane %v318_v25, 5  ;;  %v347_v39 = vshrl.u32 %v256_v30, 16  ;;  %v262_v50 = vld [vmem:[%s5396_s11 + $0x3c] sm:$0xf] }
  0x21   : > { %v282_v34 = vrot.slane %v281_v27, 4  ;;  %v5420_v43 = vrot.slane %v356_v28, 5  ;;  %v362_v44 = vrot.slane %v360_v29, 4  ;;  %v350_v45 = vshll.u32 %v256_v30, 16  ;;  %v260_v58 = vld [vmem:[%s5396_s11 + $0x34] sm:$0xf] }
  0x22   : > { %v311_v36 = vsel %vm5407_vm2, %v306_v31, %v310_v15  ;;  %v292_v46 = vrot.slane %v291_v32, 4  ;;  %v296_v47 = vrot.slane %v294_v33, 5  ;;  %v323_v48 = vshrl.u32 %v253_v35, 16  ;;  %v255_v6 = vld [vmem:[%s5396_s11 + $0x20] sm:$0x1]  ;;  %s6537_s15 = sshll.u32 %s198_s6, 8 }
  0x23   : > { %470 = vrot.lane.b32.xlu1 %v311_v36, %s5303_s12  ;;  %v287_v41 = vsel %vm5407_vm2, %v282_v34, %v286_v23  ;;  %v326_v49 = vshll.u32 %v253_v35, 16  ;;  %v349_v51 = vrot.slane %v347_v39, 4  ;;  %v352_v52 = vrot.slane %v350_v45, 5  ;;  %v263_v10 = vld [vmem:[%s5396_s11 + $0x40] sm:$0xf]  ;;  %s6582_s24 = scalar_lea.vmem [#allocation3], %s6537_s15 }
  0x24   : > { %466 = vrot.lane.b32.xlu0 %v287_v41, %s5303_s12  ;;  %v332_v53 = vshll.u32 %v254_v40, 16  ;;  %v336_v54 = vshrl.u32 %v254_v40, 16  ;;  %v366_v55 = vshll.u32 %v258_v42, 16  ;;  %v325_v56 = vrot.slane %v323_v48, 4  ;;  %v261_v15 = vld [vmem:[%s5396_s11 + $0x38] sm:$0x1] }
  0x25   : > { %v328_v57 = vrot.slane %v326_v49, 5  ;;  %v363_v59 = vor.u32 %v362_v44, %v5420_v43  ;;  %v395_v61 = vshrl.u32 %v262_v50, 16  ;;  %v398_v62 = vshll.u32 %v262_v50, 16  ;;  %v266_v20 = vld [vmem:[%s5396_s11 + $0x4c] sm:$0xf] }
  0x26   : > { %v338_v60 = vrot.slane %v336_v54, 4  ;;  %v321_v63 = vsel %vm5407_vm2, %v316_v37, %v320_v38  ;;  %v334_v1 = vrot.slane %v332_v53, 5  ;;  %v297_v2 = vsel %vm5407_vm2, %v292_v46, %v296_v47  ;;  %v259_v21 = vld [vmem:[%s5396_s11 + $0x30] sm:$0xf]  ;;  %v265_v24 = vld [vmem:[%s5396_s11 + $0x48] sm:$0xf] }
  0x27   : > { %v329_v0 = vor.u32 %v328_v57, %v325_v56  ;;  %v353_v3 = vor.u32 %v352_v52, %v349_v51  ;;  %v380_v4 = vshll.u32 %v260_v58, 16  ;;  %v384_v5 = vshrl.u32 %v260_v58, 16  ;;  %v267_v48 = vld [vmem:[%s5396_s11 + $0x50] sm:$0x1]  ;;  %v269_v52 = vld [vmem:[%s5396_s11 + $0x58] sm:$0xf] }
  0x28   : > { %v368_v7 = vrot.slane %v366_v55, 5  ;;  %v364_v9 = vrot.slane %v363_v59, 4  ;;  %v397_v11 = vrot.slane %v395_v61, 4  ;;  %v400_v12 = vrot.slane %v398_v62, 5  ;;  %v264_v53 = vld [vmem:[%s5396_s11 + $0x44] sm:$0x1] }
  0x29   : > { %v330_v8 = vrot.slane %v329_v0, 4  ;;  %v339_v13 = vor.u32 %v338_v60, %v334_v1  ;;  %v382_v16 = vrot.slane %v380_v4, 5  ;;  %v386_v17 = vrot.slane %v384_v5, 4  ;;  %v268_v56 = vld [vmem:[%s5396_s11 + $0x54] sm:$0xf] }
  0x2a   : > { %v342_v18 = vshll.u32 %v255_v6, 16  ;;  %v354_v19 = vrot.slane %v353_v3, 4  ;;  %v369_v25 = vsel %vm5407_vm2, %v364_v9, %v368_v7  ;;  %v401_v27 = vor.u32 %v400_v12, %v397_v11 }
  0x2b   : > { %472 = vrot.lane.b32.xlu1 %v321_v63, %s5303_s12  ;;  %v335_v14 = vsel %vm5407_vm2, %v330_v8, %v334_v1  ;;  %v340_v22 = vrot.slane %v339_v13, 4  ;;  %v404_v28 = vshll.u32 %v263_v10, 16  ;;  %v390_v29 = vshll.u32 %v261_v15, 16 }
  0x2c   : > { %468 = vrot.lane.b32.xlu0 %v297_v2, %s5303_s12  ;;  %474 = vrot.lane.b32.xlu2 %v335_v14, %s5303_s12  ;;  %v344_v23 = vrot.slane %v342_v18, 5  ;;  %v387_v30 = vor.u32 %v386_v17, %v382_v16  ;;  %v428_v31 = vshll.u32 %v266_v20, 16  ;;  %v432_v32 = vshrl.u32 %v266_v20, 16 }
  0x2d   : > { %v371_v33 = vshrl.u32 %v259_v21, 16  ;;  %v359_v34 = vsel %vm5407_vm2, %v354_v19, %v5420_v43  ;;  %v419_v35 = vshrl.u32 %v265_v24, 16  ;;  %v422_v36 = vshll.u32 %v265_v24, 16  ;;  %v4610_v24 = vld [vmem:[%s5396_s11 + $0xc] sm:$0xf] }
  0x2e   : > { %v374_v37 = vshll.u32 %v259_v21, 16  ;;  %v408_v38 = vshrl.u32 %v263_v10, 16  ;;  %v345_v39 = vsel %vm5407_vm2, %v340_v22, %v344_v23  ;;  %v402_v41 = vrot.slane %v401_v27, 4  ;;  %v270_v10 = vld [vmem:[%s5396_s11 + $0x5c] sm:$0x1] }
  0x2f   : > { %v373_v40 = vrot.slane %v371_v33, 4  ;;  %v406_v42 = vrot.slane %v404_v28, 5  ;;  %v388_v43 = vrot.slane %v387_v30, 4  ;;  %v392_v45 = vrot.slane %v390_v29, 5  ;;  %v4613_v28 = vld [vmem:[%s5396_s11 + $0x1c] sm:$0xf] }
  0x30   : > { %v376_v44 = vrot.slane %v374_v37, 5  ;;  %v430_v46 = vrot.slane %v428_v31, 5  ;;  %v434_v47 = vrot.slane %v432_v32, 4  ;;  %v421_v49 = vrot.slane %v419_v35, 4  ;;  %v4612_v29 = vld [vmem:[%s5396_s11 + $0x18] sm:$0xf] }
  0x31   : > { %v424_v50 = vrot.slane %v422_v36, 5  ;;  %v410_v54 = vrot.slane %v408_v38, 4  ;;  %v407_v57 = vsel %vm5407_vm2, %v402_v41, %v406_v42  ;;  %v393_v58 = vsel %vm5407_vm2, %v388_v43, %v392_v45  ;;  %v4611_v30 = vld [vmem:[%s5396_s11 + $0x10] sm:$0xf]  ;;  %v4615_v32 = vld [vmem:[%s5396_s11 + $0x28] sm:$0xf] }
  0x32   : > { %v377_v51 = vor.u32 %v376_v44, %v373_v40  ;;  %v435_v59 = vor.u32 %v434_v47, %v430_v46  ;;  %v438_v60 = vshll.u32 %v267_v48, 16  ;;  %v452_v62 = vshll.u32 %v269_v52, 16  ;;  %v4616_v31 = vld [vmem:[%s5396_s11 + $0x30] sm:$0xf]  ;;  %v4614_v33 = vld [vmem:[%s5396_s11 + $0x24] sm:$0xf] }
  0x33   : > { %480 = vrot.lane.b32.xlu1 %v369_v25, %s5303_s12  ;;  %v425_v61 = vor.u32 %v424_v50, %v421_v49  ;;  %v456_v63 = vshrl.u32 %v269_v52, 16  ;;  %v414_v0 = vshll.u32 %v264_v53, 16  ;;  %v411_v2 = vor.u32 %v410_v54, %v406_v42  ;;  %v4618_v35 = vld [vmem:[%s5396_s11 + $0x3c] sm:$0xf]  ;;  %v4617_v36 = vld [vmem:[%s5396_s11 + $0x34] sm:$0xf] }
  0x34   : > { %478 = vrot.lane.b32.xlu0 %v359_v34, %s5303_s12  ;;  %476 = vrot.lane.b32.xlu2 %v345_v39, %s5303_s12  ;;  %v378_v55 = vrot.slane %v377_v51, 4  ;;  %v443_v3 = vshrl.u32 %v268_v56, 16  ;;  %v446_v4 = vshll.u32 %v268_v56, 16  ;;  %v436_v5 = vrot.slane %v435_v59, 4  ;;  %v4619_v34 = vld [vmem:[%s5396_s11 + $0x40] sm:$0xf] }
  0x35   : > { %v440_v6 = vrot.slane %v438_v60, 5  ;;  %v426_v7 = vrot.slane %v425_v61, 4  ;;  %v454_v8 = vrot.slane %v452_v62, 5  ;;  %v458_v9 = vrot.slane %v456_v63, 4  ;;  %v4629_v37 = vld [vmem:[%s5396_s11 + $0x18] sm:$0xf] }
  0x36   : > { %v383_v1 = vsel %vm5407_vm2, %v378_v55, %v382_v16  ;;  %v412_v11 = vrot.slane %v411_v2, 4  ;;  %v416_v12 = vrot.slane %v414_v0, 5  ;;  %v445_v13 = vrot.slane %v443_v3, 4  ;;  %v4627_v38 = vld [vmem:[%s5396_s11 + $0x10] sm:$0xf] }
  0x37   : > { %v448_v14 = vrot.slane %v446_v4, 5  ;;  %v441_v15 = vsel %vm5407_vm2, %v436_v5, %v440_v6  ;;  %v431_v16 = vsel %vm5407_vm2, %v426_v7, %v430_v46  ;;  %v459_v17 = vor.u32 %v458_v9, %v454_v8  ;;  %v4626_v44 = vld [vmem:[%s5396_s11 + $0xc] sm:$0xf]  ;;  %v4622_v43 = vld [vmem:[%s5396_s11 + $0x54] sm:$0xf] }
  0x38   : > { %v462_v18 = vshll.u32 %v270_v10, 16  ;;  %v417_v19 = vsel %vm5407_vm2, %v412_v11, %v416_v12  ;;  %v681_v39 = vshrl.u32 %v4629_v37, 16  ;;  %v684_v40 = vshll.u32 %v4629_v37, 16  ;;  %v4621_v45 = vld [vmem:[%s5396_s11 + $0x4c] sm:$0xf] }
  0x39   : > { %v449_v20 = vor.u32 %v448_v14, %v445_v13  ;;  %v460_v21 = vrot.slane %v459_v17, 4  ;;  %v666_v41 = vshll.u32 %v4627_v38, 16  ;;  %v670_v42 = vshrl.u32 %v4627_v38, 16  ;;  %v4620_v46 = vld [vmem:[%s5396_s11 + $0x48] sm:$0xf] }
  0x3a   : > { %v464_v22 = vrot.slane %v462_v18, 5  ;;  %v683_v47 = vrot.slane %v681_v39, 4  ;;  %v686_v48 = vrot.slane %v684_v40, 5  ;;  %v4630_v51 = vld [vmem:[%s5396_s11 + $0x1c] sm:$0xf]  ;;  %v657_v53 = vshrl.u32 %v4626_v44, 16 }
  0x3b   : > { %486 = vrot.lane.b32.xlu1 %v407_v57, %s5303_s12  ;;  %v450_v23 = vrot.slane %v449_v20, 4  ;;  %v5506_v49 = vrot.slane %v666_v41, 5  ;;  %v672_v50 = vrot.slane %v670_v42, 4  ;;  %v4628_v52 = vld [vmem:[%s5396_s11 + $0x14] sm:$0x1]  ;;  %v660_v54 = vshll.u32 %v4626_v44, 16 }
  0x3c   : > { %484 = vrot.lane.b32.xlu0 %v393_v58, %s5303_s12  ;;  %482 = vrot.lane.b32.xlu2 %v383_v1, %s5303_s12  ;;  %v465_v25 = vsel %vm5407_vm2, %v460_v21, %v464_v22  ;;  %v4633_v55 = vld [vmem:[%s5396_s11 + $0x28] sm:$0xf]  ;;  %v4632_v56 = vld [vmem:[%s5396_s11 + $0x24] sm:$0xf]  ;;  %v687_v57 = vor.u32 %v686_v48, %v683_v47  ;;  %v690_v58 = vshll.u32 %v4630_v51, 16  ;;  %v676_v60 = vshll.u32 %v4628_v52, 16 }
  0x3d   : > { %v455_v27 = vsel %vm5407_vm2, %v450_v23, %v454_v8  ;;  %v673_v59 = vor.u32 %v672_v50, %v5506_v49  ;;  %v714_v61 = vshll.u32 %v4633_v55, 16  ;;  %v718_v62 = vshrl.u32 %v4633_v55, 16  ;;  %v4625_v1 = vld [vmem:[%s5396_s11 + $0x64] sm:$0xf]  ;;  %v4634_v2 = vld [vmem:[%s5396_s11 + $0x2c] sm:$0x1] }
  0x3e   : > { %v659_v63 = vrot.slane %v657_v53, 4  ;;  %v662_v0 = vrot.slane %v660_v54, 5  ;;  %v705_v3 = vshrl.u32 %v4632_v56, 16  ;;  %v708_v4 = vshll.u32 %v4632_v56, 16  ;;  %v4624_v5 = vld [vmem:[%s5396_s11 + $0x60] sm:$0xf] }
  0x3f   : > { %v694_v6 = vshrl.u32 %v4630_v51, 16  ;;  %v4638_v7 = vld [vmem:[%s5396_s11 + $0x3c] sm:$0xf]  ;;  %v688_v8 = vrot.slane %v687_v57, 4  ;;  %v5520_v9 = vrot.slane %v690_v58, 5  ;;  %v674_v10 = vrot.slane %v673_v59, 4 }
  0x40   : > { %v678_v11 = vrot.slane %v676_v60, 5  ;;  %v4636_v12 = vld [vmem:[%s5396_s11 + $0x34] sm:$0xf]  ;;  %v4623_v13 = vld [vmem:[%s5396_s11 + $0x58] sm:$0xf]  ;;  %v5524_v14 = vrot.slane %v714_v61, 5  ;;  %v663_v17 = vor.u32 %v662_v0, %v659_v63 }
  0x41   : > { %v707_v18 = vrot.slane %v705_v3, 4  ;;  %v753_v20 = vshrl.u32 %v4638_v7, 16  ;;  %v756_v21 = vshll.u32 %v4638_v7, 16  ;;  %v738_v22 = vshll.u32 %v4636_v12, 16  ;;  %v218_v23 = vld [vmem:[%s5396_s11 + $0x18] sm:$0xf] }
  0x42   : > { %235 = vst.msk [vmem:[#allocation2 + $0x10] sm:$0xf] %vm230_vm3, %v218_v23  ;;  %v4637_v37 = vld [vmem:[%s5396_s11 + $0x38] sm:$0x1]  ;;  %v4642_v53 = vld [vmem:[%s5396_s11 + $0x4c] sm:$0xf] }
  0x43   : > { %492 = vrot.lane.b32.xlu1 %v441_v15, %s5303_s12  ;;  %v720_v15 = vrot.slane %v718_v62, 4  ;;  %v755_v41 = vrot.slane %v753_v20, 4  ;;  %v758_v42 = vrot.slane %v756_v21, 5  ;;  %v5547_v44 = vrot.slane %v738_v22, 5  ;;  %v4641_v54 = vld [vmem:[%s5396_s11 + $0x48] sm:$0xf] }
  0x44   : > { %490 = vrot.lane.b32.xlu0 %v431_v16, %s5303_s12  ;;  %488 = vrot.lane.b32.xlu2 %v417_v19, %s5303_s12  ;;  %v724_v16 = vshll.u32 %v4634_v2, 16  ;;  %v710_v19 = vrot.slane %v708_v4, 5  ;;  %v748_v52 = vshll.u32 %v4637_v37, 16  ;;  %v219_v56 = vld [vmem:[%s5396_s11 + $0x1c] sm:$0xf]  ;;  %v786_v63 = vshll.u32 %v4642_v53, 16 }
  0x45   : > { %v759_v57 = vor.u32 %v758_v42, %v755_v41  ;;  %236 = vst.msk [vmem:[#allocation2 + $0x14] sm:$0xf] %vm230_vm3, %v219_v56  ;;  %v217_v58 = vld [vmem:[%s5396_s11 + $0x10] sm:$0xf]  ;;  %v215_v59 = vld [vmem:[%s5396_s11 + $0x4] sm:$0xf] }
  0x46   : > { %v726_v40 = vrot.slane %v724_v16, 5  ;;  %234 = vst.msk [vmem:[#allocation2 + $0xc] sm:$0xf] %vm230_vm3, %v217_v58  ;;  %v790_v0 = vshrl.u32 %v4642_v53, 16  ;;  %v780_v2 = vshll.u32 %v4641_v54, 16 }
  0x47   : > { %232 = vst.msk [vmem:[#allocation2 + $0x4] sm:$0xf] %vm230_vm3, %v215_v59  ;;  %v4643_v4 = vld [vmem:[%s5396_s11 + $0x50] sm:$0x1]  ;;  %v4645_v20 = vld [vmem:[%s5396_s11 + $0x58] sm:$0xf] }
  0x48   : > { %v796_v16 = vshll.u32 %v4643_v4, 16  ;;  %v222_v21 = vld [vmem:[%s5396_s11 + $0x30] sm:$0xf]  ;;  %v221_v22 = vld [vmem:[%s5396_s11 + $0x28] sm:$0xf] }
  0x49   : > { %239 = vst.msk [vmem:[#allocation2 + $0x20] sm:$0xf] %vm230_vm3, %v222_v21  ;;  %v220_v23 = vld [vmem:[%s5396_s11 + $0x24] sm:$0xf]  ;;  %v224_v53 = vld [vmem:[%s5396_s11 + $0x3c] sm:$0xf] }
  0x4a   : > { %238 = vst.msk [vmem:[#allocation2 + $0x1c] sm:$0xf] %vm230_vm3, %v221_v22  ;;  %v798_v37 = vrot.slane %v796_v16, 5  ;;  %v1388_v21 = vld [vmem:[%s5396_s11 + $0x8] sm:$0x1] }
  0x4b   : > { %567 = vrot.lane.b32.xlu1 %v4610_v24, %s5304_s13  ;;  %v4635_v24 = vld [vmem:[%s5396_s11 + $0x30] sm:$0xf]  ;;  %237 = vst.msk [vmem:[#allocation2 + $0x18] sm:$0xf] %vm230_vm3, %v220_v23  ;;  %v1386_v22 = vld [vmem:[%s5396_s11] sm:$0xe] }
  0x4c   : > { %496 = vrot.lane.b32.xlu0 %v465_v25, %s5303_s12  ;;  %494 = vrot.lane.b32.xlu2 %v455_v27, %s5303_s12  ;;  %v216_v25 = vld [vmem:[%s5396_s11 + $0xc] sm:$0xf]  ;;  %v214_v27 = vld [vmem:[%s5396_s11] sm:$0xf]  ;;  %v729_v38 = vshrl.u32 %v4635_v24, 16  ;;  %v732_v39 = vshll.u32 %v4635_v24, 16 }
  0x4d   : > { %233 = vst.msk [vmem:[#allocation2 + $0x8] sm:$0xf] %vm230_vm3, %v216_v25 }
  0x4e   : > { %231 = vst.msk [vmem:[#allocation2] sm:$0xf] %vm230_vm3, %v214_v27  ;;  %v731_v55 = vrot.slane %v729_v38, 4 }
  0x4f   : > { %241 = vst.msk [vmem:[#allocation2 + $0x28] sm:$0xf] %vm230_vm3, %v224_v53 }
  0x53   : > { %573 = vrot.lane.b32.xlu1 %v4613_v28, %s5304_s13  ;;  %v664_v28 = vrot.slane %v663_v17, 4  ;;  %v782_v17 = vrot.slane %v780_v2, 5 }
  0x54   : > { %571 = vrot.lane.b32.xlu0 %v4612_v29, %s5304_s13  ;;  %569 = vrot.lane.b32.xlu2 %v4611_v30, %s5304_s13  ;;  %v742_v29 = vshrl.u32 %v4636_v12, 16  ;;  %v696_v30 = vrot.slane %v694_v6, 4 }
  0x5b   : > { %579 = vrot.lane.b32.xlu1 %v4616_v31, %s5304_s13  ;;  %v721_v31 = vor.u32 %v720_v15, %v5524_v14  ;;  %v792_v15 = vrot.slane %v790_v0, 4 }
  0x5c   : > { %577 = vrot.lane.b32.xlu0 %v4615_v32, %s5304_s13  ;;  %575 = vrot.lane.b32.xlu2 %v4614_v33, %s5304_s13  ;;  %v711_v32 = vor.u32 %v710_v19, %v707_v18  ;;  %v4631_v33 = vld [vmem:[%s5396_s11 + $0x20] sm:$0x1] }
  0x5d   : > { %v700_v47 = vshll.u32 %v4631_v33, 16  ;;  %v722_v48 = vrot.slane %v721_v31, 4  ;;  %v4647_v18 = vld [vmem:[%s5396_s11 + $0x60] sm:$0xf]  ;;  %v4640_v31 = vld [vmem:[%s5396_s11 + $0x44] sm:$0x1] }
  0x5e   : > { %v712_v50 = vrot.slane %v711_v32, 4  ;;  %v825_v24 = vshrl.u32 %v4647_v18, 16  ;;  %v828_v25 = vshll.u32 %v4647_v18, 16  ;;  %v4644_v32 = vld [vmem:[%s5396_s11 + $0x54] sm:$0xf] }
  0x5f   : > { %v702_v62 = vrot.slane %v700_v47, 5  ;;  %v727_v3 = vsel %vm5407_vm2, %v722_v48, %v726_v40  ;;  %v772_v40 = vshll.u32 %v4640_v31, 16  ;;  %v801_v41 = vshrl.u32 %v4644_v32, 16 }
  0x60   : > { %v717_v6 = vsel %vm5407_vm2, %v712_v50, %v5524_v14  ;;  %v804_v42 = vshll.u32 %v4644_v32, 16  ;;  %v827_v47 = vrot.slane %v825_v24, 4  ;;  %v830_v48 = vrot.slane %v828_v25, 5  ;;  %v4646_v50 = vld [vmem:[%s5396_s11 + $0x5c] sm:$0x1] }
  0x61   : > { %v803_v56 = vrot.slane %v801_v41, 4  ;;  %v820_v0 = vshll.u32 %v4646_v50, 16  ;;  %v4694_v31 = vrot.slane %v1386_v22, 9  ;;  %v1390_v32 = vld [vmem:[%s5396_s11 + $0x10] sm:$0xf] }
  0x62   : > { %v1393_v41 = vld [vmem:[%s5396_s11 + $0x1c] sm:$0xf]  ;;  %v1398_v22 = vld [vmem:[%s5396_s11 + $0x30] sm:$0xe] }
  0x63   : > { %585 = vrot.lane.b32.xlu1 %v4619_v34, %s5304_s13  ;;  %v693_v34 = vsel %vm5407_vm2, %v688_v8, %v5520_v9 }
  0x64   : > { %583 = vrot.lane.b32.xlu0 %v4618_v35, %s5304_s13  ;;  %581 = vrot.lane.b32.xlu2 %v4617_v36, %s5304_s13  ;;  %v679_v35 = vsel %vm5407_vm2, %v674_v10, %v678_v11  ;;  %v5544_v36 = vld [vmem:[%s5396_s11 + $0x40] sm:$0xf]  ;;  %v760_v10 = vrot.slane %v759_v57, 4  ;;  %v806_v57 = vrot.slane %v804_v42, 5  ;;  %v1446_v42 = vrot.slane %v1390_v32, 5 }
  0x65   : > { %v762_v51 = vshll.u32 %v5544_v36, 16  ;;  %v766_v8 = vshrl.u32 %v5544_v36, 16 }
  0x67   : > { %v764_v7 = vrot.slane %v762_v51, 5  ;;  %v768_v27 = vrot.slane %v766_v8, 4 }
  0x69   : > { %v765_v33 = vsel %vm5407_vm2, %v760_v10, %v764_v7  ;;  %v1387_v10 = vld [vmem:[%s5396_s11 + $0x4] sm:$0xf] }
  0x6b   : > { %591 = vrot.lane.b32.xlu1 %v4622_v43, %s5304_s13  ;;  %v669_v43 = vsel %vm5407_vm2, %v664_v28, %v5506_v49  ;;  %v734_v49 = vrot.slane %v732_v39, 5  ;;  %v769_v39 = vor.u32 %v768_v27, %v764_v7 }
  0x6c   : > { %589 = vrot.lane.b32.xlu0 %v4621_v45, %s5304_s13  ;;  %587 = vrot.lane.b32.xlu2 %v4620_v46, %s5304_s13  ;;  %v744_v45 = vrot.slane %v742_v29, 4  ;;  %v697_v46 = vor.u32 %v696_v30, %v5520_v9  ;;  %v750_v9 = vrot.slane %v748_v52, 5 }
  0x6e   : > { %v745_v60 = vor.u32 %v744_v45, %v5547_v44  ;;  %v698_v61 = vrot.slane %v697_v46, 4  ;;  %v4648_v46 = vld [vmem:[%s5396_s11 + $0x64] sm:$0xf] }
  0x70   : > { %v746_v11 = vrot.slane %v745_v60, 4  ;;  %v703_v12 = vsel %vm5407_vm2, %v698_v61, %v702_v62  ;;  %v831_v60 = vor.u32 %v830_v48, %v827_v47  ;;  %v834_v61 = vshll.u32 %v4648_v46, 16 }
  0x71   : > { %v1453_v48 = vrot.slane %v1393_v41, 5 }
  0x72   : > { %v751_v36 = vsel %vm5407_vm2, %v746_v11, %v750_v9  ;;  %v832_v4 = vrot.slane %v831_v60, 4  ;;  %v822_v9 = vrot.slane %v820_v0, 5 }
  0x73   : > { %597 = vrot.lane.b32.xlu1 %v4625_v1, %s5304_s13  ;;  %v777_v1 = vshrl.u32 %v4641_v54, 16  ;;  %v223_v54 = vld [vmem:[%s5396_s11 + $0x34] sm:$0xf] }
  0x74   : > { %595 = vrot.lane.b32.xlu0 %v4624_v5, %s5304_s13  ;;  %593 = vrot.lane.b32.xlu2 %v4623_v13, %s5304_s13  ;;  %v735_v5 = vor.u32 %v734_v49, %v731_v55  ;;  %v5575_v13 = vrot.slane %v786_v63, 5  ;;  %v770_v55 = vrot.slane %v769_v39, 4  ;;  %v774_v49 = vrot.slane %v772_v40, 5  ;;  %240 = vst.msk [vmem:[#allocation2 + $0x24] sm:$0xf] %vm230_vm3, %v223_v54 }
  0x75   : > { %v779_v14 = vrot.slane %v777_v1, 4  ;;  %v838_v1 = vshrl.u32 %v4648_v46, 16  ;;  %v1392_v39 = vld [vmem:[%s5396_s11 + $0x18] sm:$0xe]  ;;  %v1389_v46 = vld [vmem:[%s5396_s11 + $0xc] sm:$0xe] }
  0x76   : > { %v736_v19 = vrot.slane %v735_v5, 4  ;;  %v793_v28 = vor.u32 %v792_v15, %v5575_v13  ;;  %v775_v2 = vsel %vm5407_vm2, %v770_v55, %v774_v49  ;;  %v836_v5 = vrot.slane %v834_v61, 5  ;;  %v227_v15 = vld [vmem:[%s5396_s11 + $0x4c] sm:$0xf]  ;;  %v1394_v61 = vld [vmem:[%s5396_s11 + $0x20] sm:$0x1] }
  0x77   : > { %v783_v29 = vor.u32 %v782_v17, %v779_v14  ;;  %v4649_v14 = vld [vmem:[%s5396_s11 + $0x68] sm:$0x1]  ;;  %244 = vst.msk [vmem:[#allocation2 + $0x34] sm:$0xf] %vm230_vm3, %v227_v15  ;;  %v4696_v47 = vrot.slane %v1392_v39, 9  ;;  %v4695_v54 = vrot.slane %v1389_v46, 9 }
  0x78   : > { %v741_v38 = vsel %vm5407_vm2, %v736_v19, %v5547_v44  ;;  %v225_v44 = vld [vmem:[%s5396_s11 + $0x40] sm:$0xf]  ;;  %v226_v17 = vld [vmem:[%s5396_s11 + $0x48] sm:$0xf]  ;;  %v837_v18 = vsel %vm5407_vm2, %v832_v4, %v836_v5  ;;  %v1439_v19 = vrot.slane %v1387_v10, 5  ;;  %v844_v25 = vshll.u32 %v4649_v14, 16 }
  0x79   : > { %v784_v45 = vrot.slane %v783_v29, 4  ;;  %242 = vst.msk [vmem:[#allocation2 + $0x2c] sm:$0xf] %vm230_vm3, %v225_v44  ;;  %v1396_v44 = vld [vmem:[%s5396_s11 + $0x28] sm:$0xf]  ;;  %v1454_v49 = vsel %vm5646_vm7, %v4696_v47, %v1453_v48  ;;  %v1447_v60 = vsel %vm5646_vm7, %v4695_v54, %v1446_v42 }
  0x7a   : > { %243 = vst.msk [vmem:[#allocation2 + $0x30] sm:$0xf] %vm230_vm3, %v226_v17  ;;  %v1441_v27 = vrot.slane %v1439_v19, 4  ;;  %v1440_v40 = vsel %vm5646_vm7, %v4694_v31, %v1439_v19  ;;  %v5701_v14 = vld [vmem:[%s5396_s11 + $0x4c] sm:$0xf] }
  0x7b   : > { %852 = vrot.lane.b32.xlu1 %v693_v34, %s5305_s14  ;;  %v810_v34 = vshll.u32 %v4645_v20, 16  ;;  %v789_v62 = vsel %vm5407_vm2, %v784_v45, %v5575_v13  ;;  %v840_v13 = vrot.slane %v838_v1, 4  ;;  %v5714_v31 = vld [vmem:[%s5396_s11 + $0x10] sm:$0xf] }
  0x7c   : > { %850 = vrot.lane.b32.xlu0 %v679_v35, %s5305_s14  ;;  %848 = vrot.lane.b32.xlu2 %v669_v43, %s5305_s14  ;;  %v814_v35 = vshrl.u32 %v4645_v20, 16  ;;  %v794_v43 = vrot.slane %v793_v28, 4  ;;  %v1442_v28 = vrot.slane %v1388_v21, 5  ;;  %v4711_v46 = vld [vmem:[%s5396_s11 + $0x30] sm:$0xf] }
  0x7d   : > { %v5603_v51 = vrot.slane %v810_v34, 5  ;;  %v841_v24 = vor.u32 %v840_v13, %v836_v5  ;;  %v1401_v5 = vld [vmem:[%s5396_s11 + $0x3c] sm:$0xe] }
  0x7e   : > { %v816_v52 = vrot.slane %v814_v35, 4  ;;  %v799_v59 = vsel %vm5407_vm2, %v794_v43, %v798_v37  ;;  %v846_v35 = vrot.slane %v844_v25, 5  ;;  %v1391_v43 = vld [vmem:[%s5396_s11 + $0x14] sm:$0x1]  ;;  %v4699_v19 = vrot.slane %v1401_v5, 9 }
  0x7f   : > { %v842_v34 = vrot.slane %v841_v24, 4  ;;  %v1481_v24 = vrot.slane %v5701_v14, 5  ;;  %v4715_v5 = vld [vmem:[%s5396_s11 + $0x40] sm:$0xf]  ;;  %v5774_v14 = vld [vmem:[%s5396_s11 + $0x34] sm:$0xf] }
  0x80   : > { %v817_v63 = vor.u32 %v816_v52, %v5603_v51  ;;  %v1449_v52 = vrot.slane %v1391_v43, 5 }
  0x81   : > { %v847_v45 = vsel %vm5407_vm2, %v842_v34, %v846_v35  ;;  %v4698_v35 = vrot.slane %v1398_v22, 9 }
  0x82   : > { %v818_v8 = vrot.slane %v817_v63, 4 }
  0x83   : > { %858 = vrot.lane.b32.xlu1 %v727_v3, %s5305_s14  ;;  %v807_v3 = vor.u32 %v806_v57, %v803_v56  ;;  %v1460_v56 = vrot.slane %v1396_v44, 5 }
  0x84   : > { %856 = vrot.lane.b32.xlu0 %v717_v6, %s5305_s14  ;;  %854 = vrot.lane.b32.xlu2 %v703_v12, %s5305_s14  ;;  %v228_v6 = vld [vmem:[%s5396_s11 + $0x54] sm:$0xf]  ;;  %v823_v20 = vsel %vm5407_vm2, %v818_v8, %v822_v9  ;;  %v5692_v8 = vld [vmem:[%s5396_s11 + $0x40] sm:$0xf] }
  0x85   : > { %245 = vst.msk [vmem:[#allocation2 + $0x38] sm:$0xf] %vm230_vm3, %v228_v6  ;;  %v808_v12 = vrot.slane %v807_v3, 4  ;;  %v4702_v3 = vld [vmem:[%s5396_s11 + $0xc] sm:$0xf]  ;;  %v1455_v6 = vrot.slane %v1453_v48, 4 }
  0x86   : > { %v475_v30 = vpop.permute.xlu2 %474  ;;  %v1400_v9 = vld [vmem:[%s5396_s11 + $0x38] sm:$0x1]  ;;  %v1582_v13 = vshrl.u32 %v4702_v3, 16  ;;  %v1585_v15 = vshll.u32 %v4702_v3, 16  ;;  %v1409_v48 = vld [vmem:[%s5396_s11 + $0x5c] sm:$0x1] }
  0x87   : > { %519 = vst.msk [vmem:[#allocation2 + $0x10] sm:$0xf] %vm514_vm4, %v475_v30  ;;  %v813_v23 = vsel %vm5407_vm2, %v808_v12, %v5603_v51  ;;  %v1448_v51 = vrot.slane %v1446_v42, 4  ;;  %v1470_v21 = vrot.slane %v1400_v9, 5  ;;  %v1483_v42 = vrot.slane %v1481_v24, 4 }
  0x88   : > { %v1584_v25 = vrot.slane %v1582_v13, 4 }
  0x89   : > { %v1450_v57 = vsel %vm5646_vm7, %v1448_v51, %v1449_v52 }
  0x8b   : > { %864 = vrot.lane.b32.xlu1 %v765_v33, %s5305_s14 }
  0x8c   : > { %862 = vrot.lane.b32.xlu0 %v751_v36, %s5305_s14  ;;  %860 = vrot.lane.b32.xlu2 %v741_v38, %s5305_s14  ;;  %v229_v36 = vld [vmem:[%s5396_s11 + $0x58] sm:$0xf]  ;;  %v1443_v38 = vsel %vm5646_vm7, %v1441_v27, %v1442_v28  ;;  %v1587_v27 = vrot.slane %v1585_v15, 5 }
  0x8d   : > { %246 = vst.msk [vmem:[#allocation2 + $0x3c] sm:$0xf] %vm230_vm3, %v229_v36  ;;  %v5718_v36 = vld [vmem:[%s5396_s11 + $0x58] sm:$0xf] }
  0x8e   : > { %v477_v58 = vpop.permute.xlu2 %476  ;;  %v1588_v43 = vor.u32 %v1587_v27, %v1584_v25 }
  0x8f   : > { %520 = vst.msk [vmem:[#allocation2 + $0x14] sm:$0xf] %vm514_vm4, %v477_v58  ;;  %v1397_v58 = vld [vmem:[%s5396_s11 + $0x2c] sm:$0x1] }
  0x90   : > { %v1463_v63 = vrot.slane %v1397_v58, 5  ;;  %v1657_v58 = vshll.u32 %v4711_v46, 16 }
  0x92   : > { %v1659_v15 = vrot.slane %v1657_v58, 5 }
  0x93   : > { %870 = vrot.lane.b32.xlu1 %v799_v59, %s5305_s14  ;;  %v1395_v59 = vld [vmem:[%s5396_s11 + $0x24] sm:$0xe] }
  0x94   : > { %868 = vrot.lane.b32.xlu0 %v789_v62, %s5305_s14  ;;  %866 = vrot.lane.b32.xlu2 %v775_v2, %s5305_s14  ;;  %v1462_v62 = vrot.slane %v1460_v56, 4  ;;  %v4697_v1 = vrot.slane %v1395_v59, 9  ;;  %v1399_v2 = vld [vmem:[%s5396_s11 + $0x34] sm:$0xf]  ;;  %v5742_v59 = vrot.slane %v1588_v43, 4 }
  0x95   : > { %v471_v7 = vpop.permute.xlu1 %470  ;;  %v1467_v12 = vrot.slane %v1399_v2, 5 }
  0x96   : > { %517 = vst.msk [vmem:[#allocation2 + $0x8] sm:$0xf] %vm514_vm4, %v471_v7  ;;  %v467_v11 = vpop.permute.xlu0 %466  ;;  %v483_v16 = vpop.permute.xlu2 %482  ;;  %v1456_v7 = vrot.slane %v1394_v61, 5  ;;  %v1595_v61 = vshrl.u32 %v5714_v31, 16 }
  0x97   : > { %515 = vst.msk [vmem:[#allocation2] sm:$0xf] %vm514_vm4, %v467_v11  ;;  %v1464_v11 = vsel %vm5646_vm7, %v1462_v62, %v1463_v63  ;;  %v1468_v44 = vsel %vm5646_vm7, %v4698_v35, %v1467_v12  ;;  %v1491_v62 = vrot.slane %v1409_v48, 5  ;;  %v4709_v63 = vld [vmem:[%s5396_s11 + $0x28] sm:$0xf] }
  0x98   : > { %523 = vst.msk [vmem:[#allocation2 + $0x20] sm:$0xf] %vm514_vm4, %v483_v16  ;;  %v1461_v16 = vsel %vm5646_vm7, %v4697_v1, %v1460_v56  ;;  %v1457_v17 = vsel %vm5646_vm7, %v1455_v6, %v1456_v7  ;;  %v1403_v56 = vld [vmem:[%s5396_s11 + $0x44] sm:$0x1]  ;;  %v4714_v6 = vld [vmem:[%s5396_s11 + $0x3c] sm:$0xf] }
  0x99   : > { %v1477_v9 = vrot.slane %v1403_v56, 5  ;;  %v1597_v27 = vrot.slane %v1595_v61, 4 }
  0x9b   : > { %876 = vrot.lane.b32.xlu1 %v837_v18, %s5305_s14  ;;  %v4706_v18 = vld [vmem:[%s5396_s11 + $0x1c] sm:$0xf] }
  0x9c   : > { %874 = vrot.lane.b32.xlu0 %v823_v20, %s5305_s14  ;;  %872 = vrot.lane.b32.xlu2 %v813_v23, %s5305_s14  ;;  %v1474_v20 = vrot.slane %v5692_v8, 5  ;;  %v1469_v23 = vrot.slane %v1467_v12, 4  ;;  %v1615_v32 = vshll.u32 %v4706_v18, 16 }
  0x9d   : > { %v473_v29 = vpop.permute.xlu1 %472 }
  0x9e   : > { %518 = vst.msk [vmem:[#allocation2 + $0xc] sm:$0xf] %vm514_vm4, %v473_v29  ;;  %v469_v33 = vpop.permute.xlu0 %468  ;;  %v489_v37 = vpop.permute.xlu2 %488  ;;  %v1406_v29 = vld [vmem:[%s5396_s11 + $0x50] sm:$0x1]  ;;  %v1471_v41 = vsel %vm5646_vm7, %v1469_v23, %v1470_v21  ;;  %v5734_v51 = vrot.slane %v1615_v32, 5  ;;  %v1476_v8 = vrot.slane %v1474_v20, 4 }
  0x9f   : > { %516 = vst.msk [vmem:[#allocation2 + $0x4] sm:$0xf] %vm514_vm4, %v469_v33  ;;  %v1619_v33 = vshrl.u32 %v4706_v18, 16  ;;  %v1484_v47 = vrot.slane %v1406_v29, 5  ;;  %v1687_v18 = vshll.u32 %v4715_v5, 16  ;;  %v1678_v21 = vshrl.u32 %v4714_v6, 16 }
  0xa0   : > { %526 = vst.msk [vmem:[#allocation2 + $0x2c] sm:$0xf] %vm514_vm4, %v489_v37  ;;  %v1475_v37 = vsel %vm5646_vm7, %v4699_v19, %v1474_v20  ;;  %v1691_v19 = vshrl.u32 %v4715_v5, 16  ;;  %v1681_v20 = vshll.u32 %v4714_v6, 16  ;;  %v1478_v29 = vsel %vm5646_vm7, %v1476_v8, %v1477_v9  ;;  %v4710_v32 = vld [vmem:[%s5396_s11 + $0x2c] sm:$0x1] }
  0xa1   : > { %v1621_v52 = vrot.slane %v1619_v33, 4  ;;  %v1485_v1 = vsel %vm5646_vm7, %v1483_v42, %v1484_v47  ;;  %v1680_v42 = vrot.slane %v1678_v21, 4  ;;  %v1663_v47 = vshll.u32 %v5774_v14, 16  ;;  %v4718_v8 = vld [vmem:[%s5396_s11 + $0x4c] sm:$0xf] }
  0xa2   : > { %v1683_v43 = vrot.slane %v1681_v20, 5  ;;  %v1649_v48 = vshll.u32 %v4710_v32, 16 }
  0xa3   : > { %1495 = vrot.lane.b32.xlu1 %v1443_v38, %s5303_s12  ;;  %v1404_v38 = vld [vmem:[%s5396_s11 + $0x48] sm:$0xe]  ;;  %v1622_v3 = vor.u32 %v1621_v52, %v5734_v51 }
  0xa4   : > { %1493 = vrot.lane.b32.xlu0 %v1440_v40, %s5303_s12  ;;  %878 = vrot.lane.b32.xlu2 %v847_v45, %s5305_s14  ;;  %v4705_v40 = vld [vmem:[%s5396_s11 + $0x18] sm:$0xf]  ;;  %v1591_v45 = vshll.u32 %v5714_v31, 16  ;;  %v5806_v5 = vrot.slane %v1649_v48, 5 }
  0xa5   : > { %v481_v50 = vpop.permute.xlu1 %480  ;;  %v1606_v54 = vshrl.u32 %v4705_v40, 16  ;;  %v5763_v23 = vrot.slane %v1622_v3, 4  ;;  %v4720_v3 = vld [vmem:[%s5396_s11 + $0x54] sm:$0xf] }
  0xa6   : > { %522 = vst.msk [vmem:[#allocation2 + $0x1c] sm:$0xf] %vm514_vm4, %v481_v50  ;;  %v479_v53 = vpop.permute.xlu0 %478  ;;  %v495_v55 = vpop.permute.xlu2 %494  ;;  %v1488_v50 = vrot.slane %v5718_v36, 5 }
  0xa7   : > { %521 = vst.msk [vmem:[#allocation2 + $0x18] sm:$0xf] %vm514_vm4, %v479_v53  ;;  %v4707_v53 = vld [vmem:[%s5396_s11 + $0x20] sm:$0x1] }
  0xa8   : > { %529 = vst.msk [vmem:[#allocation2 + $0x38] sm:$0xf] %vm514_vm4, %v495_v55  ;;  %v1609_v55 = vshll.u32 %v4705_v40, 16  ;;  %v1490_v2 = vrot.slane %v1488_v50, 4  ;;  %v5786_v40 = vrot.slane %v1687_v18, 5  ;;  %v1729_v18 = vshll.u32 %v4720_v3, 16 }
  0xaa   : > { %v1492_v33 = vsel %vm5646_vm7, %v1490_v2, %v1491_v62  ;;  %v1684_v2 = vor.u32 %v1683_v43, %v1680_v42 }
  0xab   : > { %1501 = vrot.lane.b32.xlu1 %v1454_v49, %s5303_s12  ;;  %v4700_v49 = vrot.slane %v1404_v38, 9 }
  0xac   : > { %1499 = vrot.lane.b32.xlu0 %v1450_v57, %s5303_s12  ;;  %1497 = vrot.lane.b32.xlu2 %v1447_v60, %s5303_s12  ;;  %v1654_v57 = vshrl.u32 %v4711_v46, 16  ;;  %v5744_v60 = vrot.slane %v1591_v45, 5  ;;  %v1138_v45 = vld [vmem:[%s5396_s11] sm:$0xf]  ;;  %v5831_v21 = vrot.slane %v1684_v2, 4 }
  0xad   : > { %v487_v0 = vpop.permute.xlu1 %486  ;;  %v1482_v22 = vsel %vm5646_vm7, %v4700_v49, %v1481_v24  ;;  %v4704_v24 = vld [vmem:[%s5396_s11 + $0x14] sm:$0x1]  ;;  %v1163_v61 = vshrl.u32 %v1138_v45, 16  ;;  %v1166_v62 = vshll.u32 %v1138_v45, 16 }
  0xae   : > { %525 = vst.msk [vmem:[#allocation2 + $0x28] sm:$0xf] %vm514_vm4, %v487_v0  ;;  %v485_v4 = vpop.permute.xlu0 %484  ;;  %v570_v10 = vpop.permute.xlu2 %569  ;;  %v1656_v13 = vrot.slane %v1654_v57, 4  ;;  %v1598_v52 = vor.u32 %v1597_v27, %v5744_v60 }
  0xaf   : > { %524 = vst.msk [vmem:[#allocation2 + $0x24] sm:$0xf] %vm514_vm4, %v485_v4  ;;  %v1625_v4 = vshll.u32 %v4707_v53, 16  ;;  %v4716_v53 = vld [vmem:[%s5396_s11 + $0x44] sm:$0x1] }
  0xb0   : > { %617 = vst.msk [vmem:[#allocation2 + $0x4] sm:$0xf] %vm615_vm8, %v570_v10  ;;  %v1608_v10 = vrot.slane %v1606_v54, 4  ;;  %v1660_v35 = vor.u32 %v1659_v15, %v1656_v13  ;;  %v5808_v6 = vrot.slane %v1598_v52, 4  ;;  %v5821_v13 = vld [vmem:[%s5396_s11 + $0x58] sm:$0xf] }
  0xb1   : > { %v5765_v25 = vrot.slane %v1625_v4, 5  ;;  %v5804_v4 = vrot.slane %v1663_v47, 5  ;;  %v1165_v15 = vrot.slane %v1163_v61, 4  ;;  %v1735_v27 = vshll.u32 %v5821_v13, 16 }
  0xb3   : > { %1507 = vrot.lane.b32.xlu1 %v1464_v11, %s5303_s12  ;;  %v1611_v11 = vrot.slane %v1609_v55, 5 }
  0xb4   : > { %1505 = vrot.lane.b32.xlu0 %v1461_v16, %s5303_s12  ;;  %1503 = vrot.lane.b32.xlu2 %v1457_v17, %s5303_s12  ;;  %v1639_v16 = vshll.u32 %v4709_v63, 16  ;;  %v1643_v17 = vshrl.u32 %v4709_v63, 16 }
  0xb5   : > { %v493_v28 = vpop.permute.xlu1 %492  ;;  %v1612_v31 = vor.u32 %v1611_v11, %v1608_v10  ;;  %v5818_v10 = vld [vmem:[%s5396_s11 + $0x4] sm:$0xf] }
  0xb6   : > { %528 = vst.msk [vmem:[#allocation2 + $0x34] sm:$0xf] %vm514_vm4, %v493_v28  ;;  %v491_v34 = vpop.permute.xlu0 %490  ;;  %v576_v39 = vpop.permute.xlu2 %575  ;;  %v1594_v28 = vsel %vm5407_vm2, %v5742_v59, %v5744_v60  ;;  %v1645_v38 = vrot.slane %v1643_v17, 4  ;;  %v5797_v59 = vrot.slane %v1660_v35, 4  ;;  %v1667_v60 = vshrl.u32 %v5774_v14, 16 }
  0xb7   : > { %527 = vst.msk [vmem:[#allocation2 + $0x30] sm:$0xf] %vm514_vm4, %v491_v34  ;;  %v1407_v34 = vld [vmem:[%s5396_s11 + $0x54] sm:$0xe]  ;;  %v5794_v55 = vrot.slane %v1612_v31, 4  ;;  %v1726_v17 = vshrl.u32 %v4720_v3, 16 }
  0xb8   : > { %620 = vst.msk [vmem:[#allocation2 + $0x10] sm:$0xf] %vm615_vm8, %v576_v39  ;;  %v4708_v39 = vld [vmem:[%s5396_s11 + $0x24] sm:$0xf]  ;;  %v4701_v49 = vrot.slane %v1407_v34, 9  ;;  %v1176_v47 = vshrl.u32 %v5818_v10, 16 }
  0xb9   : > { %v1630_v56 = vshrl.u32 %v4708_v39, 16  ;;  %v1633_v57 = vshll.u32 %v4708_v39, 16  ;;  %v1141_v31 = vld [vmem:[%s5396_s11 + $0xc] sm:$0xf]  ;;  %v4719_v35 = vld [vmem:[%s5396_s11 + $0x50] sm:$0x1] }
  0xba   : > { %v1489_v9 = vsel %vm5646_vm7, %v4701_v49, %v1488_v50  ;;  %v1728_v43 = vrot.slane %v1726_v17, 4  ;;  %v1187_v45 = vshrl.u32 %v1141_v31, 16  ;;  %v1739_v49 = vshrl.u32 %v5821_v13, 16  ;;  %v4713_v14 = vld [vmem:[%s5396_s11 + $0x38] sm:$0x1] }
  0xbb   : > { %1513 = vrot.lane.b32.xlu1 %v1475_v37, %s5303_s12  ;;  %v5782_v37 = vrot.slane %v1639_v16, 5  ;;  %v1632_v11 = vrot.slane %v1630_v56, 4  ;;  %v1168_v16 = vrot.slane %v1166_v62, 5  ;;  %v1143_v56 = vld [vmem:[%s5396_s11 + $0x14] sm:$0x1]  ;;  %v1721_v61 = vshll.u32 %v4719_v35, 16 }
  0xbc   : > { %1511 = vrot.lane.b32.xlu0 %v1471_v41, %s5303_s12  ;;  %1509 = vrot.lane.b32.xlu2 %v1468_v44, %s5303_s12  ;;  %v1693_v41 = vrot.slane %v1691_v19, 4  ;;  %v1601_v44 = vshll.u32 %v4704_v24, 16  ;;  %v1628_v24 = vsel %vm5407_vm2, %v5763_v23, %v5765_v25  ;;  %v1731_v23 = vrot.slane %v1729_v18, 5  ;;  %v4724_v25 = vld [vmem:[%s5396_s11 + $0x64] sm:$0xf] }
  0xbd   : > { %v568_v0 = vpop.permute.xlu1 %567  ;;  %v1646_v63 = vor.u32 %v1645_v38, %v5782_v37  ;;  %v1142_v38 = vld [vmem:[%s5396_s11 + $0x10] sm:$0xf]  ;;  %v1169_v42 = vor.u32 %v1168_v16, %v1165_v15  ;;  %v1759_v62 = vshll.u32 %v4724_v25, 16  ;;  %v1669_v3 = vrot.slane %v1667_v60, 4  ;;  %v4722_v13 = vld [vmem:[%s5396_s11 + $0x5c] sm:$0x1] }
  0xbe   : > { %616 = vst.msk [vmem:[#allocation2] sm:$0xf] %vm615_vm8, %v568_v0  ;;  %v497_v7 = vpop.permute.xlu0 %496  ;;  %v582_v12 = vpop.permute.xlu2 %581  ;;  %v1694_v0 = vor.u32 %v1693_v41, %v5786_v40  ;;  %v1666_v16 = vsel %vm5407_vm2, %v5797_v59, %v5804_v4 }
  0xbf   : > { %530 = vst.msk [vmem:[#allocation2 + $0x3c] sm:$0xf] %vm514_vm4, %v497_v7  ;;  %v5810_v7 = vrot.slane %v1601_v44, 5  ;;  %v5825_v19 = vrot.slane %v1646_v63, 4  ;;  %v1196_v44 = vshll.u32 %v1142_v38, 16 }
  0xc0   : > { %623 = vst.msk [vmem:[#allocation2 + $0x1c] sm:$0xf] %vm615_vm8, %v582_v12  ;;  %v1635_v12 = vrot.slane %v1633_v57, 5  ;;  %v5827_v36 = vrot.slane %v1694_v0, 4  ;;  %v5867_v57 = vrot.slane %v1169_v42, 4 }
  0xc1   : > { %v1604_v41 = vsel %vm5407_vm2, %v5808_v6, %v5810_v7  ;;  %v4723_v63 = vld [vmem:[%s5396_s11 + $0x60] sm:$0xf]  ;;  %v1652_v17 = vsel %vm5407_vm2, %v5825_v19, %v5806_v5  ;;  %v1673_v19 = vshll.u32 %v4713_v14, 16  ;;  %v1690_v14 = vsel %vm5407_vm2, %v5831_v21, %v5786_v40 }
  0xc2   : > { %v1636_v34 = vor.u32 %v1635_v12, %v1632_v11  ;;  %v5153_v6 = vld [vmem:[%s7557_s1] sm:$0xff]  ;;  %v1763_v11 = vshrl.u32 %v4724_v25, 16  ;;  %v1750_v60 = vshrl.u32 %v4723_v63, 16  ;;  %v1753_v15 = vshll.u32 %v4723_v63, 16  ;;  %v1140_v25 = vld [vmem:[%s5396_s11 + $0x8] sm:$0x1] }
  0xc3   : > { %1519 = vrot.lane.b32.xlu1 %v1485_v1, %s5303_s12  ;;  %v1697_v1 = vshll.u32 %v4716_v53, 16  ;;  %1009 = vmatpush.bf16.msra.mxu0 %v5153_v6 }
  0xc4   : > { %1517 = vrot.lane.b32.xlu0 %v1482_v22, %s5303_s12  ;;  %1515 = vrot.lane.b32.xlu2 %v1478_v29, %s5303_s12  ;;  %v1172_v22 = vshll.u32 %v5818_v10, 16  ;;  %v1715_v29 = vshrl.u32 %v4718_v8, 16  ;;  %v1206_v10 = vshll.u32 %v1143_v56, 16  ;;  %v1755_v42 = vrot.slane %v1753_v15, 5  ;;  %v1146_v15 = vld [vmem:[%s5396_s11 + $0x20] sm:$0x1] }
  0xc5   : > { %v574_v46 = vpop.permute.xlu1 %573  ;;  %v5829_v50 = vrot.slane %v1697_v1, 5  ;;  %v1189_v1 = vrot.slane %v1187_v45, 4 }
  0xc6   : > { %619 = vst.msk [vmem:[#allocation2 + $0xc] sm:$0xf] %vm615_vm8, %v574_v46  ;;  %v572_v54 = vpop.permute.xlu0 %571  ;;  %v588_v58 = vpop.permute.xlu2 %587  ;;  %v1190_v46 = vshll.u32 %v1141_v31, 16  ;;  %v1717_v52 = vrot.slane %v1715_v29, 4  ;;  %v5858_v53 = vrot.slane %v1172_v22, 5  ;;  %v1670_v31 = vor.u32 %v1669_v3, %v5804_v4 }
  0xc7   : > { %618 = vst.msk [vmem:[#allocation2 + $0x8] sm:$0xf] %vm615_vm8, %v572_v54  ;;  %v5860_v54 = vrot.slane %v1636_v34, 4  ;;  %v1147_v22 = vld [vmem:[%s5396_s11 + $0x24] sm:$0xf]  ;;  %v1178_v4 = vrot.slane %v1176_v47, 4 }
  0xc8   : > { %626 = vst.msk [vmem:[#allocation2 + $0x28] sm:$0xf] %vm615_vm8, %v588_v58  ;;  %v1732_v58 = vor.u32 %v1731_v23, %v1728_v43  ;;  %v1192_v2 = vrot.slane %v1190_v46, 5  ;;  %v1235_v34 = vshrl.u32 %v1147_v22, 16  ;;  %v1238_v35 = vshll.u32 %v1147_v22, 16 }
  0xc9   : > { %v1675_v47 = vrot.slane %v1673_v19, 5  ;;  %v1182_v3 = vshll.u32 %v1140_v25, 16  ;;  %v1150_v19 = vld [vmem:[%s5396_s11 + $0x30] sm:$0xf] }
  0xca   : > { %v1193_v59 = vor.u32 %v1192_v2, %v1189_v1  ;;  %v1240_v63 = vrot.slane %v1238_v35, 5  ;;  %v1179_v2 = vor.u32 %v1178_v4, %v5858_v53  ;;  %v5972_v35 = vld [vmem:[%s5396_s11 + $0x18] sm:$0xe]  ;;  %v1151_v4 = vld [vmem:[%s5396_s11 + $0x34] sm:$0xf] }
  0xcb   : > { %1773 = vrot.lane.b32.xlu1 %v1594_v28, %s5304_s13  ;;  %v1711_v28 = vshll.u32 %v4718_v8, 16  ;;  %v5955_v21 = vrot.slane %v1182_v3, 5  ;;  %v1745_v3 = vshll.u32 %v4722_v13, 16 }
  0xcc   : > { %1523 = vrot.lane.b32.xlu0 %v1492_v33, %s5303_s12  ;;  %1521 = vrot.lane.b32.xlu2 %v1489_v9, %s5303_s12  ;;  %v1618_v33 = vsel %vm5407_vm2, %v5794_v55, %v5734_v51  ;;  %v1200_v51 = vshrl.u32 %v1142_v38, 16  ;;  %v5862_v55 = vrot.slane %v1735_v27, 5  ;;  %v5878_v9 = vrot.slane %v1196_v44, 5  ;;  %v4717_v27 = vld [vmem:[%s5396_s11 + $0x48] sm:$0xf] }
  0xcd   : > { %v580_v20 = vpop.permute.xlu1 %579  ;;  %v5856_v48 = vrot.slane %v1711_v28, 5  ;;  %v5898_v28 = vrot.slane %v1721_v61, 5  ;;  %v1702_v38 = vshrl.u32 %v4717_v27, 16  ;;  %v5915_v23 = vrot.slane %v1193_v59, 4  ;;  %v5924_v44 = vld [vmem:[%s5396_s11 + $0x28] sm:$0xf] }
  0xce   : > { %622 = vst.msk [vmem:[#allocation2 + $0x18] sm:$0xf] %vm615_vm8, %v580_v20  ;;  %v578_v32 = vpop.permute.xlu0 %577  ;;  %v594_v39 = vpop.permute.xlu2 %593  ;;  %v1202_v0 = vrot.slane %v1200_v51, 4  ;;  %v1642_v20 = vsel %vm5407_vm2, %v5860_v54, %v5782_v37  ;;  %v1765_v37 = vrot.slane %v1763_v11, 4  ;;  %v1671_v51 = vrot.slane %v1670_v31, 4 }
  0xcf   : > { %621 = vst.msk [vmem:[#allocation2 + $0x14] sm:$0xf] %vm615_vm8, %v578_v32  ;;  %v1718_v8 = vor.u32 %v1717_v52, %v5856_v48  ;;  %v5902_v32 = vrot.slane %v1732_v58, 4  ;;  %v1175_v52 = vsel %vm5407_vm2, %v5867_v57, %v5858_v53  ;;  %v1145_v54 = vld [vmem:[%s5396_s11 + $0x1c] sm:$0xf]  ;;  %v1705_v56 = vshll.u32 %v4717_v27, 16 }
  0xd0   : > { %629 = vst.msk [vmem:[#allocation2 + $0x34] sm:$0xf] %vm615_vm8, %v594_v39  ;;  %v1203_v29 = vor.u32 %v1202_v0, %v5878_v9  ;;  %v5910_v39 = vrot.slane %v1206_v10, 5  ;;  %v1704_v0 = vrot.slane %v1702_v38, 4  ;;  %v1244_v10 = vshll.u32 %v5924_v44, 16 }
  0xd1   : > { %v5904_v5 = vrot.slane %v1718_v8, 4  ;;  %v1700_v8 = vsel %vm5407_vm2, %v5827_v36, %v5829_v50  ;;  %v1220_v11 = vshll.u32 %v1145_v54, 16  ;;  %v1676_v53 = vsel %vm5407_vm2, %v1671_v51, %v1675_v47  ;;  %v5975_v38 = vld [vmem:[%s5396_s11 + $0x10] sm:$0xf] }
  0xd2   : > { %v5913_v43 = vrot.slane %v1203_v29, 4  ;;  %v1224_v36 = vshrl.u32 %v1145_v54, 16  ;;  %v5953_v40 = vrot.slane %v1179_v2, 4  ;;  %v1248_v22 = vshrl.u32 %v5924_v44, 16 }
  0xd3   : > { %1779 = vrot.lane.b32.xlu1 %v1628_v24, %s5304_s13  ;;  %v4725_v24 = vld [vmem:[%s5396_s11 + $0x68] sm:$0x1]  ;;  %v5961_v27 = vrot.slane %v1244_v10, 5  ;;  %v5963_v29 = vrot.slane %v1220_v11, 5  ;;  %v1230_v59 = vshll.u32 %v1146_v15, 16  ;;  %v1259_v47 = vshrl.u32 %v1150_v19, 16 }
  0xd4   : > { %1777 = vrot.lane.b32.xlu0 %v1618_v33, %s5304_s13  ;;  %1775 = vrot.lane.b32.xlu2 %v1604_v41, %s5304_s13  ;;  %v5907_v33 = vrot.slane %v1759_v62, 5  ;;  %v1752_v41 = vrot.slane %v1750_v60, 4  ;;  %v1769_v45 = vshll.u32 %v4725_v24, 16  ;;  %v1237_v62 = vrot.slane %v1235_v34, 4  ;;  %v1149_v11 = vld [vmem:[%s5396_s11 + $0x2c] sm:$0x1] }
  0xd5   : > { %v586_v7 = vpop.permute.xlu1 %585  ;;  %v1226_v34 = vrot.slane %v1224_v36, 4  ;;  %v1262_v44 = vshll.u32 %v1150_v19, 16  ;;  %v1724_v54 = vsel %vm5407_vm2, %v5904_v5, %v5898_v28  ;;  %v4751_v5 = vrot.slane %v5972_v35, 9 }
  0xd6   : > { %625 = vst.msk [vmem:[#allocation2 + $0x24] sm:$0xf] %vm615_vm8, %v586_v7  ;;  %v584_v12 = vpop.permute.xlu0 %583  ;;  %v849_v18 = vpop.permute.xlu2 %848  ;;  %v1766_v61 = vor.u32 %v1765_v37, %v5907_v33  ;;  %v1756_v6 = vor.u32 %v1755_v42, %v1752_v41  ;;  %v1707_v7 = vrot.slane %v1705_v56, 5  ;;  %v5947_v60 = vrot.slane %v1769_v45, 5 }
  0xd7   : > { %624 = vst.msk [vmem:[#allocation2 + $0x20] sm:$0xf] %vm615_vm8, %v584_v12  ;;  %v1144_v12 = vld [vmem:[%s5396_s11 + $0x18] sm:$0xf]  ;;  %v1209_v37 = vsel %vm5407_vm2, %v5913_v43, %v5910_v39  ;;  %v1741_v41 = vrot.slane %v1739_v49, 4  ;;  %v1738_v49 = vsel %vm5407_vm2, %v5902_v32, %v5862_v55  ;;  %v1887_v32 = vrot.slane %v5975_v38, 5 }
  0xd8   : > { %897 = vst.msk [vmem:[#allocation2] sm:$0xf] %vm896_vm9, %v849_v18  ;;  %v5950_v50 = vrot.slane %v1766_v61, 4  ;;  %v1708_v18 = vor.u32 %v1707_v7, %v1704_v0  ;;  %v1214_v31 = vshll.u32 %v1144_v12, 16  ;;  %v5984_v39 = vld [vmem:[%s5396_s11 + $0x1c] sm:$0xf] }
  0xd9   : > { %v5987_v43 = vld [vmem:[%s5396_s11 + $0x14] sm:$0x1]  ;;  %v1268_v61 = vshll.u32 %v1151_v4, 16  ;;  %v1152_v0 = vld [vmem:[%s5396_s11 + $0x38] sm:$0x1]  ;;  %v1264_v10 = vrot.slane %v1262_v44, 5 }
  0xda   : > { %v1709_v45 = vrot.slane %v1708_v18, 4  ;;  %v1890_v7 = vrot.slane %v5987_v43, 5  ;;  %v6139_v38 = vld [vmem:[%s5396_s11 + $0x54] sm:$0xf] }
  0xdb   : > { %1785 = vrot.lane.b32.xlu1 %v1666_v16, %s5304_s13  ;;  %v1241_v16 = vor.u32 %v1240_v63, %v1237_v62  ;;  %v1227_v62 = vor.u32 %v1226_v34, %v5963_v29  ;;  %v6004_v63 = vrot.slane %v1230_v59, 5  ;;  %v1156_v59 = vld [vmem:[%s5396_s11 + $0x48] sm:$0xf]  ;;  %v1747_v34 = vrot.slane %v1745_v3, 5  ;;  %v1155_v3 = vld [vmem:[%s5396_s11 + $0x44] sm:$0x1] }
  0xdc   : > { %1783 = vrot.lane.b32.xlu0 %v1652_v17, %s5304_s13  ;;  %1781 = vrot.lane.b32.xlu2 %v1642_v20, %s5304_s13  ;;  %v1211_v17 = vshrl.u32 %v1144_v12, 16  ;;  %v5957_v20 = vrot.slane %v1756_v6, 4  ;;  %v1714_v28 = vsel %vm5407_vm2, %v1709_v45, %v5856_v48  ;;  %v1894_v6 = vrot.slane %v5984_v39, 5 }
  0xdd   : > { %v592_v46 = vpop.permute.xlu1 %591  ;;  %v5981_v25 = vrot.slane %v1241_v16, 4  ;;  %v6022_v12 = vrot.slane %v1268_v61, 5  ;;  %v6025_v36 = vrot.slane %v1227_v62, 4  ;;  %v6030_v16 = vrot.slane %v1887_v32, 4 }
  0xde   : > { %628 = vst.msk [vmem:[#allocation2 + $0x30] sm:$0xf] %vm615_vm8, %v592_v46  ;;  %v590_v58 = vpop.permute.xlu0 %589  ;;  %v855_v1 = vpop.permute.xlu2 %854  ;;  %v1213_v51 = vrot.slane %v1211_v17, 4  ;;  %v1272_v46 = vshrl.u32 %v1151_v4, 16  ;;  %v6032_v17 = vrot.slane %v1248_v22, 4  ;;  %v1772_v22 = vsel %vm5407_vm2, %v5950_v50, %v5947_v60 }
  0xdf   : > { %627 = vst.msk [vmem:[#allocation2 + $0x2c] sm:$0xf] %vm615_vm8, %v590_v58  ;;  %v5930_v57 = vld [vmem:[#allocation2] sm:$0xf]  ;;  %v1216_v58 = vrot.slane %v1214_v31, 5  ;;  %v1247_v48 = vsel %vm5407_vm2, %v5981_v25, %v5961_v27  ;;  %v1199_v31 = vsel %vm5407_vm2, %v5915_v23, %v5878_v9  ;;  %v1185_v60 = vsel %vm5407_vm2, %v5953_v40, %v5955_v21 }
  0xe0   : > { %1370 = vst.msk [vmem:[#allocation2] sm:$0xf] %vm230_vm3, %v1175_v52  ;;  %v1274_v2 = vrot.slane %v1272_v46, 4  ;;  %v6042_v4 = vld [vmem:[%s5396_s11 + $0x10] sm:$0xf]  ;;  %v1762_v50 = vsel %vm5407_vm2, %v5957_v20, %v5907_v33 }
  0xe1   : > { %900 = vst.msk [vmem:[#allocation2 + $0xc] sm:$0xf] %vm896_vm9, %v855_v1  ;;  %v1742_v1 = vor.u32 %v1741_v41, %v5862_v55  ;;  %v1217_v55 = vor.u32 %v1216_v58, %v1213_v51  ;;  %v1154_v41 = vld [vmem:[%s5396_s11 + $0x40] sm:$0xf]  ;;  %v1251_v58 = vor.u32 %v6032_v17, %v5961_v27  ;;  %v1153_v21 = vld [vmem:[%s5396_s11 + $0x3c] sm:$0xf] }
  0xe2   : > { %v1292_v44 = vshll.u32 %v1154_v41, 16  ;;  %v1296_v13 = vshrl.u32 %v1154_v41, 16  ;;  %v2294_v41 = vshrl.u32 %v6042_v4, 16 }
  0xe3   : > { %1791 = vrot.lane.b32.xlu1 %v1700_v8, %s5304_s13  ;;  %v1261_v8 = vrot.slane %v1259_v47, 4  ;;  %v1743_v18 = vrot.slane %v1742_v1, 4  ;;  %v6053_v45 = vrot.slane %v1217_v55, 4  ;;  %v1310_v47 = vshll.u32 %v1156_v59, 16  ;;  %v6077_v1 = vld [vmem:[%s5396_s11 + $0x24] sm:$0xe] }
  0xe4   : > { %1789 = vrot.lane.b32.xlu0 %v1690_v14, %s5304_s13  ;;  %1787 = vrot.lane.b32.xlu2 %v1676_v53, %s5304_s13  ;;  %v1278_v14 = vshll.u32 %v1152_v0, 16  ;;  %v4836_v53 = vld [vmem:[%s5396_s11 + $0xc] sm:$0xf]  ;;  %v2290_v0 = vshll.u32 %v6042_v4, 16  ;;  %v1298_v55 = vrot.slane %v1296_v13, 4 }
  0xe5   : > { %v598_v24 = vpop.permute.xlu1 %597  ;;  %v2281_v25 = vshrl.u32 %v4836_v53, 16  ;;  %v2284_v51 = vshll.u32 %v4836_v53, 16  ;;  %v1748_v40 = vsel %vm5407_vm2, %v1743_v18, %v1747_v34  ;;  %v1160_v53 = vld [vmem:[%s5396_s11 + $0x58] sm:$0xf]  ;;  %v1895_v18 = vsel %vm5646_vm7, %v4751_v5, %v1894_v6  ;;  %v4731_v13 = vld [vmem:[%s5396_s11 + $0x20] sm:$0x1] }
  0xe6   : > { %631 = vst.msk [vmem:[#allocation2 + $0x3c] sm:$0xf] %vm615_vm8, %v598_v24  ;;  %v596_v42 = vpop.permute.xlu0 %595  ;;  %v861_v52 = vpop.permute.xlu2 %860  ;;  %v1275_v24 = vor.u32 %v1274_v2, %v6022_v12  ;;  %v1280_v46 = vrot.slane %v1278_v14, 5  ;;  %v1312_v2 = vrot.slane %v1310_v47, 5  ;;  %v1283_v14 = vshrl.u32 %v1153_v21, 16 }
  0xe7   : > { %630 = vst.msk [vmem:[#allocation2 + $0x38] sm:$0xf] %vm615_vm8, %v596_v42  ;;  %v1265_v42 = vor.u32 %v1264_v10, %v1261_v8  ;;  %v2283_v20 = vrot.slane %v2281_v25, 4  ;;  %v2286_v62 = vrot.slane %v2284_v51, 5  ;;  %v6084_v8 = vrot.slane %v1292_v44, 5 }
  0xe8   : > { %v5999_v56 = vld [vmem:[#allocation2 + $0x8] sm:$0xf0]  ;;  %903 = vst.msk [vmem:[#allocation2 + $0x18] sm:$0xf] %vm896_vm9, %v861_v52  ;;  %v1307_v52 = vshrl.u32 %v1156_v59, 16  ;;  %v6101_v34 = vrot.slane %v1251_v58, 4 }
  0xe9   : > { %1373 = vst.msk [vmem:[#allocation2 + $0xc] sm:$0xf] %vm230_vm3, %v1209_v37  ;;  %v1254_v37 = vshll.u32 %v1149_v11, 16  ;;  %v6073_v33 = vrot.slane %v1265_v42, 4  ;;  %v2287_v5 = vor.u32 %v2286_v62, %v2283_v20  ;;  %v1299_v51 = vor.u32 %v1298_v55, %v6084_v8 }
  0xea   : > { %v1309_v27 = vrot.slane %v1307_v52, 4  ;;  %v1161_v52 = vld [vmem:[%s5396_s11 + $0x5c] sm:$0x1]  ;;  %v1340_v47 = vshll.u32 %v1160_v53, 16 }
  0xeb   : > { %1797 = vrot.lane.b32.xlu1 %v1738_v49, %s5304_s13  ;;  %v4726_v49 = vld [vmem:[%s5396_s11 + $0xc] sm:$0xe]  ;;  %v6067_v61 = vrot.slane %v1254_v37, 5  ;;  %v1350_v62 = vshll.u32 %v1161_v52, 16 }
  0xec   : > { %1795 = vrot.lane.b32.xlu0 %v1724_v54, %s5304_s13  ;;  %1793 = vrot.lane.b32.xlu2 %v1714_v28, %s5304_s13  ;;  %v1276_v54 = vrot.slane %v1275_v24, 4  ;;  %v6080_v28 = vld [vmem:[%s5396_s11 + $0x4c] sm:$0xf]  ;;  %v4750_v10 = vrot.slane %v4726_v49, 9  ;;  %v1344_v24 = vshrl.u32 %v1160_v53, 16  ;;  %v1313_v42 = vor.u32 %v1312_v2, %v1309_v27 }
  0xed   : > { %v853_v15 = vpop.permute.xlu1 %852  ;;  %v1316_v25 = vshll.u32 %v6080_v28, 16 }
  0xee   : > { %899 = vst.msk [vmem:[#allocation2 + $0x8] sm:$0xf] %vm896_vm9, %v853_v15  ;;  %v851_v19 = vpop.permute.xlu0 %850  ;;  %v867_v23 = vpop.permute.xlu2 %866  ;;  %v1281_v59 = vsel %vm5407_vm2, %v1276_v54, %v1280_v46  ;;  %v1302_v46 = vshll.u32 %v1155_v3, 16  ;;  %v1888_v43 = vsel %vm5646_vm7, %v4750_v10, %v1887_v32  ;;  %v1346_v44 = vrot.slane %v1344_v24, 4 }
  0xef   : > { %898 = vst.msk [vmem:[#allocation2 + $0x4] sm:$0xf] %vm896_vm9, %v851_v19  ;;  %v6050_v9 = vld [vmem:[#allocation2 + $0x18] sm:$0xf]  ;;  %v1286_v19 = vshll.u32 %v1153_v21, 16  ;;  %v2288_v32 = vrot.slane %v2287_v5, 4  ;;  %v1257_v24 = vsel %vm5407_vm2, %v6101_v34, %v6067_v61 }
  0xf0   : > { %1376 = vst.msk [vmem:[#allocation2 + $0x18] sm:$0xf] %vm230_vm3, %v1247_v48  ;;  %v1314_v54 = vrot.slane %v1313_v42, 4  ;;  %v6145_v58 = vrot.slane %v1316_v25, 5  ;;  %v4879_v21 = vld [vmem:[%s5396_s11 + $0x1c] sm:$0xf] }
  0xf1   : > { %906 = vst.msk [vmem:[#allocation2 + $0x24] sm:$0xf] %vm896_vm9, %v867_v23  ;;  %v4752_v23 = vrot.slane %v6077_v1, 9  ;;  %v1896_v1 = vrot.slane %v1894_v6, 4  ;;  %v2674_v53 = vshrl.u32 %v4879_v21, 16  ;;  %v1352_v61 = vrot.slane %v1350_v62, 5 }
  0xf2   : > { %v1319_v6 = vsel %vm5407_vm2, %v1314_v54, %v6145_v58  ;;  %v4880_v25 = vld [vmem:[%s5396_s11 + $0x20] sm:$0x1] }
  0xf3   : > { %1803 = vrot.lane.b32.xlu1 %v1772_v22, %s5304_s13  ;;  %v6108_v22 = vld [vmem:[%s5396_s11 + $0x28] sm:$0xf] }
  0xf4   : > { %1801 = vrot.lane.b32.xlu0 %v1762_v50, %s5304_s13  ;;  %1799 = vrot.lane.b32.xlu2 %v1748_v40, %s5304_s13  ;;  %v1288_v50 = vrot.slane %v1286_v19, 5  ;;  %v1901_v49 = vrot.slane %v6108_v22, 5  ;;  %v6152_v40 = vrot.slane %v1340_v47, 5  ;;  %v2296_v19 = vrot.slane %v2294_v41, 4  ;;  %v5021_v47 = vld [vmem:[%s5396_s11 + $0x1c] sm:$0xf] }
  0xf5   : > { %v6086_v11 = vld [vmem:[#allocation2 + $0x8] sm:$0xf]  ;;  %v859_v48 = vpop.permute.xlu1 %858  ;;  %v3585_v62 = vshll.u32 %v5021_v47, 16 }
  0xf6   : > { %1372 = vst.msk [vmem:[#allocation2 + $0x8] sm:$0xf] %vm230_vm3, %v1199_v31  ;;  %v5145_v15 = vld [vmem:[#allocation2] sm:$0xf0]  ;;  %v857_v17 = vpop.permute.xlu0 %856  ;;  %v6103_v31 = vrot.slane %v2290_v0, 5  ;;  %v873_v35 = vpop.permute.xlu2 %872  ;;  %v1331_v0 = vshrl.u32 %v6139_v38, 16  ;;  %v1347_v3 = vor.u32 %v1346_v44, %v6152_v40 }
  0xf7   : > { %1371 = vst.msk [vmem:[#allocation2 + $0x4] sm:$0xf] %vm230_vm3, %v1185_v60  ;;  %v4653_v37 = vor.u32 %v5145_v15, %v5930_v57  ;;  %v1891_v57 = vsel %vm5646_vm7, %v6030_v16, %v1890_v7  ;;  %v1285_v60 = vrot.slane %v1283_v14, 4  ;;  %v1233_v7 = vsel %vm5407_vm2, %v6025_v36, %v6004_v63  ;;  %v4988_v44 = vld [vmem:[%s5396_s11 + $0xc] sm:$0xe] }
  0xf8   : > { %902 = vst.msk [vmem:[#allocation2 + $0x14] sm:$0xf] %vm896_vm9, %v859_v48  ;;  %v6119_v4 = vld [vmem:[#allocation2 + $0x20] sm:$0xf0]  ;;  %v1223_v16 = vsel %vm5407_vm2, %v6053_v45, %v5963_v29  ;;  %v1320_v63 = vshrl.u32 %v6080_v28, 16  ;;  %v6147_v29 = vrot.slane %v1299_v51, 4  ;;  %v2293_v39 = vsel %vm5407_vm2, %v2288_v32, %v6103_v31 }
  0xf9   : > { %901 = vst.msk [vmem:[#allocation2 + $0x10] sm:$0xf] %vm896_vm9, %v857_v17  ;;  %4686 = vmatmul.msk.bf16.vlgmr.msra.gmra.mxu0 %vm977_vm10, %v4653_v37  ;;  %v6149_v45 = vrot.slane %v1302_v46, 5  ;;  %v1897_v28 = vrot.slane %v4731_v13, 5  ;;  %v1289_v2 = vor.u32 %v1288_v50, %v1285_v60  ;;  %v6164_v48 = vld [vmem:[%s5396_s11 + $0x50] sm:$0x1]  ;;  %v1271_v15 = vsel %vm5407_vm2, %v6073_v33, %v6022_v12 }
  0xfa   : > { %1379 = vst.msk [vmem:[#allocation2 + $0x24] sm:$0xf] %vm230_vm3, %v1281_v59  ;;  %v2670_v14 = vshll.u32 %v4879_v21, 16  ;;  %v1902_v17 = vsel %vm5646_vm7, %v4752_v23, %v1901_v49  ;;  %v4838_v59 = vld [vmem:[%s5396_s11 + $0x14] sm:$0x1]  ;;  %v6193_v12 = vrot.slane %v1320_v63, 4  ;;  %v2297_v34 = vor.u32 %v2296_v19, %v6103_v31 }
  0xfb   : > { %1945 = vrot.lane.b32.xlu1 %v1895_v18, %s5305_s14  ;;  %909 = vst.msk [vmem:[#allocation2 + $0x30] sm:$0xf] %vm896_vm9, %v873_v35  ;;  %v1334_v18 = vshll.u32 %v6139_v38, 16  ;;  %v1898_v33 = vsel %vm5646_vm7, %v1896_v1, %v1897_v28  ;;  %v2300_v35 = vshll.u32 %v4838_v59, 16  ;;  %v6199_v41 = vrot.slane %v1289_v2, 4 }
  0xfc   : > { %1943 = vrot.lane.b32.xlu0 %v1891_v57, %s5305_s14  ;;  %1941 = vrot.lane.b32.xlu2 %v1888_v43, %s5305_s14  ;;  %v1348_v5 = vrot.slane %v1347_v3, 4  ;;  %v6203_v23 = vrot.slane %v1331_v0, 4  ;;  %v1326_v42 = vshll.u32 %v6164_v48, 16  ;;  %v6207_v57 = vrot.slane %v2670_v14, 5  ;;  %v5020_v31 = vld [vmem:[%s5396_s11 + $0x18] sm:$0xf] }
  0xfd   : > { %v865_v36 = vpop.permute.xlu1 %864  ;;  %v2676_v51 = vrot.slane %v2674_v53, 4  ;;  %v4863_v43 = vld [vmem:[%s5396_s11 + $0x1c] sm:$0xf]  ;;  %v4657_v38 = vor.u32 %v5999_v56, %v6086_v11  ;;  %v4862_v13 = vld [vmem:[%s5396_s11 + $0x18] sm:$0xf]  ;;  %v1336_v54 = vrot.slane %v1334_v18, 5  ;;  %v1305_v14 = vsel %vm5407_vm2, %v6147_v29, %v6149_v45 }
  0xfe   : > { %905 = vst.msk [vmem:[#allocation2 + $0x20] sm:$0xf] %vm896_vm9, %v865_v36  ;;  %v863_v20 = vpop.permute.xlu0 %862  ;;  %v879_v10 = vpop.permute.xlu2 %878  ;;  %v1353_v32 = vsel %vm5407_vm2, %v1348_v5, %v1352_v61  ;;  %v6226_v63 = vld [vmem:[%s5396_s11 + $0x10] sm:$0xf]  ;;  %v2680_v36 = vshll.u32 %v4880_v25, 16  ;;  %v3589_v0 = vshrl.u32 %v5021_v47, 16  ;;  %v1295_v5 = vsel %vm5407_vm2, %v6199_v41, %v6084_v8 }
  0xff   : > { %v6159_v27 = vld [vmem:[#allocation2 + $0x10] sm:$0xf0]  ;;  %904 = vst.msk [vmem:[#allocation2 + $0x1c] sm:$0xf] %vm896_vm9, %v863_v20  ;;  %v4878_v20 = vld [vmem:[%s5396_s11 + $0x18] sm:$0xf]  ;;  %v2677_v11 = vor.u32 %v2676_v51, %v6207_v57  ;;  %v1337_v53 = vor.u32 %v1336_v54, %v6203_v23 }
 0x100   : > { %1375 = vst.msk [vmem:[#allocation2 + $0x14] sm:$0xf] %vm230_vm3, %v1233_v7  ;;  %v6167_v55 = vld [vmem:[#allocation2 + $0x10] sm:$0xf]  ;;  %v2298_v7 = vrot.slane %v2297_v34, 4  ;;  %v2661_v1 = vshrl.u32 %v4878_v20, 16 }
 0x101   : > { %1374 = vst.msk [vmem:[#allocation2 + $0x10] sm:$0xf] %vm230_vm3, %v1223_v16  ;;  %v2302_v16 = vrot.slane %v2300_v35, 5  ;;  %v2664_v28 = vshll.u32 %v4878_v20, 16  ;;  %v3576_v2 = vshrl.u32 %v5020_v31, 16  ;;  %v3579_v3 = vshll.u32 %v5020_v31, 16 }
 0x102   : > { %v6190_v37 = vld [vmem:[#allocation2 + $0x30] sm:$0xf]  ;;  %912 = vst.msk [vmem:[#allocation2 + $0x3c] sm:$0xf] %vm896_vm9, %v879_v10  ;;  %v1323_v10 = vor.u32 %v6193_v12, %v6145_v58  ;;  %v3433_v58 = vrot.slane %v6226_v63, 5  ;;  %v6250_v18 = vrot.slane %v3585_v62, 5 }
 0x103   : > { %2472 = vrot.lane.b32.xlu1 %v2293_v39, %s5303_s12  ;;  %1382 = vst.msk [vmem:[#allocation2 + $0x30] sm:$0xf] %vm230_vm3, %v1319_v6  ;;  %v2303_v48 = vsel %vm5407_vm2, %v2298_v7, %v2302_v16  ;;  %v2663_v39 = vrot.slane %v2661_v1, 4  ;;  %v2666_v6 = vrot.slane %v2664_v28, 5  ;;  %v3591_v59 = vrot.slane %v3589_v0, 4 }
 0x104   : > { %1949 = vrot.lane.b32.xlu0 %v1902_v17, %s5305_s14  ;;  %1947 = vrot.lane.b32.xlu2 %v1898_v33, %s5305_s14  ;;  %v5022_v17 = vld [vmem:[%s5396_s11 + $0x20] sm:$0x1]  ;;  %v2678_v12 = vrot.slane %v2677_v11, 4  ;;  %v2682_v29 = vrot.slane %v2680_v36, 5  ;;  %v3578_v45 = vrot.slane %v3576_v2, 4  ;;  %v3581_v33 = vrot.slane %v3579_v3, 5 }
 0x105   : > { %v6209_v46 = vld [vmem:[#allocation2 + $0x20] sm:$0xf]  ;;  %v871_v52 = vpop.permute.xlu1 %870  ;;  %v2667_v19 = vor.u32 %v2666_v6, %v2663_v39  ;;  %v4839_v35 = vld [vmem:[%s5396_s11 + $0x18] sm:$0xf]  ;;  %v1324_v61 = vrot.slane %v1323_v10, 4  ;;  %v1328_v34 = vrot.slane %v1326_v42, 5  ;;  %v3592_v41 = vor.u32 %v3591_v59, %v6250_v18 }
 0x106   : > { %1378 = vst.msk [vmem:[#allocation2 + $0x20] sm:$0xf] %vm230_vm3, %v1271_v15  ;;  %v6215_v60 = vld [vmem:[#allocation2 + $0x18] sm:$0xf0]  ;;  %v869_v50 = vpop.permute.xlu0 %868  ;;  %v1498_v21 = vpop.permute.xlu2 %1497  ;;  %v5012_v15 = vrot.slane %v4988_v44, 9  ;;  %v3595_v47 = vshll.u32 %v5022_v17, 16  ;;  %v2683_v44 = vsel %vm5407_vm2, %v2678_v12, %v2682_v29  ;;  %v3582_v7 = vor.u32 %v3581_v33, %v3578_v45 }
 0x107   : > { %1377 = vst.msk [vmem:[#allocation2 + $0x1c] sm:$0xf] %vm230_vm3, %v1257_v24  ;;  %v2668_v25 = vrot.slane %v2667_v19, 4  ;;  %v2305_v42 = vshrl.u32 %v4839_v35, 16  ;;  %v3593_v54 = vrot.slane %v3592_v41, 4  ;;  %v3435_v11 = vrot.slane %v3433_v58, 4 }
 0x108   : > { %908 = vst.msk [vmem:[#allocation2 + $0x2c] sm:$0xf] %vm896_vm9, %v871_v52  ;;  %v1338_v52 = vrot.slane %v1337_v53, 4  ;;  %v3434_v8 = vsel %vm5646_vm7, %v5012_v15, %v3433_v58  ;;  %v3597_v63 = vrot.slane %v3595_v47, 5  ;;  %v4840_v36 = vld [vmem:[%s5396_s11 + $0x1c] sm:$0xf]  ;;  %v4661_v3 = vor.u32 %v6159_v27, %v6167_v55 }
 0x109   : > { %907 = vst.msk [vmem:[#allocation2 + $0x28] sm:$0xf] %vm896_vm9, %v869_v50  ;;  %4687 = vmatmul.msk.bf16.gmra.mxu0 %vm977_vm10, %v4657_v38  ;;  %v6232_v56 = vld [vmem:[#allocation2 + $0x38] sm:$0xf0]  ;;  %v2673_v16 = vsel %vm5407_vm2, %v2668_v25, %v6207_v57  ;;  %v3583_v0 = vrot.slane %v3582_v7, 4  ;;  %v2314_v6 = vshll.u32 %v4840_v36, 16 }
 0x10a   : > { %1385 = vst.msk [vmem:[#allocation2 + $0x3c] sm:$0xf] %vm230_vm3, %v1353_v32  ;;  %v1343_v38 = vsel %vm5407_vm2, %v1338_v52, %v6152_v40  ;;  %v4990_v32 = vld [vmem:[%s5396_s11 + $0x14] sm:$0x1]  ;;  %v5045_v40 = vld [vmem:[%s5396_s11 + $0x1c] sm:$0xf] }
 0x10b   : > { %2574 = vrot.lane.b32.xlu1 %v4863_v43, %s5304_s13  ;;  %1543 = vst.msk [vmem:[#allocation2 + $0x8] sm:$0xf] %vm514_vm4, %v1498_v21  ;;  %v2308_v43 = vshll.u32 %v4839_v35, 16  ;;  %v2307_v21 = vrot.slane %v2305_v42, 4  ;;  %v3436_v2 = vrot.slane %v4990_v32, 5  ;;  %v3881_v15 = vrot.slane %v5045_v40, 5 }
 0x10c   : > { %2572 = vrot.lane.b32.xlu0 %v4862_v13, %s5304_s13  ;;  %2474 = vrot.lane.b32.xlu2 %v2303_v48, %s5303_s12  ;;  %v1329_v13 = vsel %vm5407_vm2, %v1324_v61, %v1328_v34  ;;  %v3598_v48 = vsel %vm5407_vm2, %v3593_v54, %v3597_v63  ;;  %v5046_v53 = vld [vmem:[%s5396_s11 + $0x20] sm:$0x1]  ;;  %v2318_v27 = vshrl.u32 %v4840_v36, 16  ;;  %v5044_v58 = vld [vmem:[%s5396_s11 + $0x18] sm:$0xe]  ;;  %v2316_v59 = vrot.slane %v2314_v6, 5 }
 0x10d   : > { %v877_v24 = vpop.permute.xlu1 %876  ;;  %v2310_v20 = vrot.slane %v2308_v43, 5  ;;  %v3437_v55 = vsel %vm5646_vm7, %v3435_v11, %v3436_v2  ;;  %v5068_v12 = vrot.slane %v5044_v58, 9  ;;  %v4882_v45 = vld [vmem:[%s5396_s11 + $0x28] sm:$0xf]  ;;  %v4881_v61 = vld [vmem:[%s5396_s11 + $0x24] sm:$0xf] }
 0x10e   : > { %911 = vst.msk [vmem:[#allocation2 + $0x38] sm:$0xf] %vm896_vm9, %v877_v24  ;;  %v875_v23 = vpop.permute.xlu0 %874  ;;  %v1504_v31 = vpop.permute.xlu2 %1503  ;;  %v3884_v24 = vrot.slane %v5046_v53, 5  ;;  %v2320_v33 = vrot.slane %v2318_v27, 4  ;;  %v2694_v52 = vshll.u32 %v4882_v45, 16  ;;  %v2698_v47 = vshrl.u32 %v4882_v45, 16 }
 0x10f   : > { %v6259_v51 = vld [vmem:[#allocation2 + $0x28] sm:$0xf0]  ;;  %910 = vst.msk [vmem:[#allocation2 + $0x34] sm:$0xf] %vm896_vm9, %v875_v23  ;;  %v2311_v39 = vor.u32 %v2310_v20, %v2307_v21  ;;  %v3882_v25 = vsel %vm5646_vm7, %v5068_v12, %v3881_v15  ;;  %v2685_v41 = vshrl.u32 %v4881_v61, 16  ;;  %v2688_v42 = vshll.u32 %v4881_v61, 16 }
 0x110   : > { %1381 = vst.msk [vmem:[#allocation2 + $0x2c] sm:$0xf] %vm230_vm3, %v1305_v14  ;;  %v6263_v50 = vld [vmem:[#allocation2 + $0x28] sm:$0xf]  ;;  %v3588_v14 = vsel %vm5407_vm2, %v3583_v0, %v6250_v18  ;;  %v3883_v18 = vrot.slane %v3881_v15, 4  ;;  %v2696_v7 = vrot.slane %v2694_v52, 5  ;;  %v4665_v21 = vor.u32 %v6215_v60, %v6050_v9 }
 0x111   : > { %1380 = vst.msk [vmem:[#allocation2 + $0x28] sm:$0xf] %vm230_vm3, %v1295_v5  ;;  %v2312_v17 = vrot.slane %v2311_v39, 4  ;;  %v4841_v5 = vld [vmem:[%s5396_s11 + $0x20] sm:$0x1]  ;;  %v2687_v63 = vrot.slane %v2685_v41, 4 }
 0x112   : > { %1546 = vst.msk [vmem:[#allocation2 + $0x14] sm:$0xf] %vm514_vm4, %v1504_v31  ;;  %v3885_v23 = vsel %vm5646_vm7, %v3883_v18, %v3884_v24  ;;  %v2321_v31 = vor.u32 %v2320_v33, %v2316_v59  ;;  %v2690_v36 = vrot.slane %v2688_v42, 5  ;;  %v4734_v11 = vld [vmem:[%s5396_s11 + $0x2c] sm:$0x1]  ;;  %v1903_v9 = vrot.slane %v1901_v49, 4 }
 0x113   : > { %3487 = vrot.lane.b32.xlu1 %v3434_v8, %s5303_s12  ;;  %v2317_v34 = vsel %vm5407_vm2, %v2312_v17, %v2316_v59  ;;  %v2324_v8 = vshll.u32 %v4841_v5, 16  ;;  %v1904_v60 = vrot.slane %v4734_v11, 5  ;;  %v5024_v27 = vld [vmem:[%s5396_s11 + $0x28] sm:$0xf]  ;;  %v4992_v58 = vld [vmem:[%s5396_s11 + $0x1c] sm:$0xf]  ;;  %v4669_v42 = vor.u32 %v6119_v4, %v6209_v46 }
 0x114   : > { %2854 = vrot.lane.b32.xlu0 %v2683_v44, %s5305_s14  ;;  %2852 = vrot.lane.b32.xlu2 %v2673_v16, %s5305_s14  ;;  %v4883_v44 = vld [vmem:[%s5396_s11 + $0x2c] sm:$0x1]  ;;  %v2700_v16 = vrot.slane %v2698_v47, 4  ;;  %v2322_v32 = vrot.slane %v2321_v31, 4  ;;  %v4993_v24 = vld [vmem:[%s5396_s11 + $0x20] sm:$0x1] }
 0x115   : > { %v6284_v62 = vld [vmem:[#allocation2 + $0x38] sm:$0xf]  ;;  %v1496_v57 = vpop.permute.xlu1 %1495  ;;  %v2326_v54 = vrot.slane %v2324_v8, 5  ;;  %v1905_v49 = vsel %vm5646_vm7, %v1903_v9, %v1904_v60  ;;  %v3440_v12 = vrot.slane %v4992_v58, 5  ;;  %v3443_v61 = vrot.slane %v4993_v24, 5 }
 0x116   : > { %1384 = vst.msk [vmem:[#allocation2 + $0x38] sm:$0xf] %vm230_vm3, %v1343_v38  ;;  %v6289_v1 = vld [vmem:[#allocation2 + $0x30] sm:$0xf0]  ;;  %v1494_v28 = vpop.permute.xlu0 %1493  ;;  %v1510_v10 = vpop.permute.xlu2 %1509  ;;  %v5023_v38 = vld [vmem:[%s5396_s11 + $0x24] sm:$0xf]  ;;  %v2701_v2 = vor.u32 %v2700_v16, %v2696_v7 }
 0x117   : > { %1383 = vst.msk [vmem:[#allocation2 + $0x34] sm:$0xf] %vm230_vm3, %v1329_v13  ;;  %v3600_v0 = vshrl.u32 %v5023_v38, 16  ;;  %v3603_v40 = vshll.u32 %v5023_v38, 16  ;;  %v4991_v33 = vld [vmem:[%s5396_s11 + $0x18] sm:$0xe] }
 0x118   : > { %1542 = vst.msk [vmem:[#allocation2 + $0x4] sm:$0xf] %vm514_vm4, %v1496_v57  ;;  %v4865_v57 = vld [vmem:[%s5396_s11 + $0x28] sm:$0xf]  ;;  %v2702_v53 = vrot.slane %v2701_v2, 4  ;;  %v5013_v52 = vrot.slane %v4991_v33, 9 }
 0x119   : > { %1541 = vst.msk [vmem:[#allocation2] sm:$0xf] %vm514_vm4, %v1494_v28  ;;  %4688 = vmatmul.msk.bf16.gmra.mxu0 %vm977_vm10, %v4661_v3  ;;  %v4864_v28 = vld [vmem:[%s5396_s11 + $0x24] sm:$0xf]  ;;  %v2704_v3 = vshll.u32 %v4883_v44, 16  ;;  %v3602_v39 = vrot.slane %v3600_v0, 4 }
 0x11a   : > { %1549 = vst.msk [vmem:[#allocation2 + $0x20] sm:$0xf] %vm514_vm4, %v1510_v10  ;;  %v2327_v10 = vsel %vm5407_vm2, %v2322_v32, %v2326_v54  ;;  %v3605_v6 = vrot.slane %v3603_v40, 5  ;;  %v4843_v47 = vld [vmem:[%s5396_s11 + $0x28] sm:$0xf]  ;;  %v3441_v4 = vsel %vm5646_vm7, %v5013_v52, %v3440_v12 }
 0x11b   : > { %3769 = vrot.lane.b32.xlu1 %v3598_v48, %s5304_s13  ;;  %v2691_v48 = vor.u32 %v2690_v36, %v2687_v63  ;;  %v2706_v15 = vrot.slane %v2704_v3, 5  ;;  %v5049_v8 = vld [vmem:[%s5396_s11 + $0x2c] sm:$0x1]  ;;  %v2342_v32 = vshrl.u32 %v4843_v47, 16  ;;  %v5047_v63 = vld [vmem:[%s5396_s11 + $0x24] sm:$0xe] }
 0x11c   : > { %3767 = vrot.lane.b32.xlu0 %v3588_v14, %s5304_s13  ;;  %3489 = vrot.lane.b32.xlu2 %v3437_v55, %s5303_s12  ;;  %v3606_v59 = vor.u32 %v3605_v6, %v3602_v39  ;;  %v5025_v44 = vld [vmem:[%s5396_s11 + $0x2c] sm:$0x1]  ;;  %v5069_v40 = vrot.slane %v5047_v63, 9  ;;  %v4995_v63 = vld [vmem:[%s5396_s11 + $0x28] sm:$0xf] }
 0x11d   : > { %v1502_v19 = vpop.permute.xlu1 %1501  ;;  %v2692_v17 = vrot.slane %v2691_v48, 4  ;;  %v2707_v18 = vsel %vm5407_vm2, %v2702_v53, %v2706_v15  ;;  %v3619_v36 = vshll.u32 %v5025_v44, 16  ;;  %v2344_v11 = vrot.slane %v2342_v32, 4  ;;  %v4844_v3 = vld [vmem:[%s5396_s11 + $0x2c] sm:$0x1] }
 0x11e   : > { %1545 = vst.msk [vmem:[#allocation2 + $0x10] sm:$0xf] %vm514_vm4, %v1502_v19  ;;  %v1500_v29 = vpop.permute.xlu0 %1499  ;;  %v1516_v35 = vpop.permute.xlu2 %1515  ;;  %v3609_v19 = vshll.u32 %v5024_v27, 16  ;;  %v4884_v48 = vld [vmem:[%s5396_s11 + $0x30] sm:$0xf] }
 0x11f   : > { %1544 = vst.msk [vmem:[#allocation2 + $0xc] sm:$0xf] %vm514_vm4, %v1500_v29  ;;  %v3613_v29 = vshrl.u32 %v5024_v27, 16  ;;  %v2697_v45 = vsel %vm5407_vm2, %v2692_v17, %v2696_v7  ;;  %v4842_v7 = vld [vmem:[%s5396_s11 + $0x24] sm:$0xf]  ;;  %v3621_v39 = vrot.slane %v3619_v36, 5 }
 0x120   : > { %1552 = vst.msk [vmem:[#allocation2 + $0x2c] sm:$0xf] %vm514_vm4, %v1516_v35  ;;  %v3607_v35 = vrot.slane %v3606_v59, 4  ;;  %v3611_v5 = vrot.slane %v3609_v19, 5  ;;  %v2712_v59 = vshll.u32 %v4884_v48, 16 }
 0x121   : > { %v3615_v41 = vrot.slane %v3613_v29, 4  ;;  %v5026_v32 = vld [vmem:[%s5396_s11 + $0x30] sm:$0xf] }
 0x122   : > { %v3612_v16 = vsel %vm5407_vm2, %v3607_v35, %v3611_v5  ;;  %v4886_v35 = vld [vmem:[%s5396_s11 + $0x38] sm:$0x1] }
 0x123   : > { %2476 = vrot.lane.b32.xlu1 %v2317_v34, %s5303_s12  ;;  %v3616_v46 = vor.u32 %v3615_v41, %v3611_v5 }
 0x124   : > { %3937 = vrot.lane.b32.xlu0 %v3885_v23, %s5305_s14  ;;  %3935 = vrot.lane.b32.xlu2 %v3882_v25, %s5305_s14  ;;  %v3442_v23 = vrot.slane %v3440_v12, 4  ;;  %v5048_v25 = vld [vmem:[%s5396_s11 + $0x28] sm:$0xf] }
 0x125   : > { %v1508_v43 = vpop.permute.xlu1 %1507  ;;  %v3888_v38 = vrot.slane %v5048_v25, 5  ;;  %v3617_v60 = vrot.slane %v3616_v46, 4  ;;  %v4673_v25 = vor.u32 %v6259_v51, %v6263_v50 }
 0x126   : > { %1548 = vst.msk [vmem:[#allocation2 + $0x1c] sm:$0xf] %vm514_vm4, %v1508_v43  ;;  %v1506_v13 = vpop.permute.xlu0 %1505  ;;  %v1522_v20 = vpop.permute.xlu2 %1521  ;;  %v3444_v54 = vsel %vm5646_vm7, %v3442_v23, %v3443_v61  ;;  %v2714_v61 = vrot.slane %v2712_v59, 5 }
 0x127   : > { %1547 = vst.msk [vmem:[#allocation2 + $0x18] sm:$0xf] %vm514_vm4, %v1506_v13  ;;  %v2338_v13 = vshll.u32 %v4843_v47, 16  ;;  %v3890_v0 = vrot.slane %v3888_v38, 4  ;;  %v3889_v27 = vsel %vm5646_vm7, %v5069_v40, %v3888_v38  ;;  %v3622_v19 = vsel %vm5407_vm2, %v3617_v60, %v3621_v39  ;;  %v4866_v47 = vld [vmem:[%s5396_s11 + $0x30] sm:$0xf] }
 0x128   : > { %1555 = vst.msk [vmem:[#allocation2 + $0x38] sm:$0xf] %vm514_vm4, %v1522_v20  ;;  %v2332_v20 = vshll.u32 %v4842_v7, 16  ;;  %v5027_v38 = vld [vmem:[%s5396_s11 + $0x34] sm:$0xf]  ;;  %v3624_v40 = vshrl.u32 %v5026_v32, 16 }
 0x129   : > { %4689 = vmatmul.msk.bf16.gmra.mxu0 %vm977_vm10, %v4665_v21  ;;  %v2329_v21 = vshrl.u32 %v4842_v7, 16 }
 0x12b   : > { %2578 = vrot.lane.b32.xlu1 %v4865_v57, %s5304_s13  ;;  %v3891_v57 = vrot.slane %v5049_v8, 5  ;;  %v2331_v6 = vrot.slane %v2329_v21, 4  ;;  %v2728_v8 = vshll.u32 %v4886_v35, 16  ;;  %v3633_v21 = vshll.u32 %v5027_v38, 16 }
 0x12c   : > { %2576 = vrot.lane.b32.xlu0 %v4864_v28, %s5304_s13  ;;  %2478 = vrot.lane.b32.xlu2 %v2327_v10, %s5303_s12  ;;  %v2340_v28 = vrot.slane %v2338_v13, 5  ;;  %v4885_v10 = vld [vmem:[%s5396_s11 + $0x34] sm:$0xf] }
 0x12d   : > { %v1514_v14 = vpop.permute.xlu1 %1513  ;;  %v3892_v15 = vsel %vm5646_vm7, %v3890_v0, %v3891_v57  ;;  %v2722_v58 = vshrl.u32 %v4885_v10, 16  ;;  %v4737_v0 = vld [vmem:[%s5396_s11 + $0x38] sm:$0x1]  ;;  %v3635_v60 = vrot.slane %v3633_v21, 5 }
 0x12e   : > { %1551 = vst.msk [vmem:[#allocation2 + $0x28] sm:$0xf] %vm514_vm4, %v1514_v14  ;;  %v1512_v55 = vpop.permute.xlu0 %1511  ;;  %v1776_v22 = vpop.permute.xlu2 %1775  ;;  %v2334_v14 = vrot.slane %v2332_v20, 5  ;;  %v2345_v17 = vor.u32 %v2344_v11, %v2340_v28  ;;  %v3637_v20 = vshrl.u32 %v5027_v38, 16  ;;  %v4867_v11 = vld [vmem:[%s5396_s11 + $0x34] sm:$0xf] }
 0x12f   : > { %1550 = vst.msk [vmem:[#allocation2 + $0x24] sm:$0xf] %vm514_vm4, %v1512_v55  ;;  %v2718_v55 = vshll.u32 %v4885_v10, 16  ;;  %v2724_v12 = vrot.slane %v2722_v58, 4  ;;  %v4735_v10 = vld [vmem:[%s5396_s11 + $0x30] sm:$0xe] }
 0x130   : > { %1822 = vst.msk [vmem:[#allocation2 + $0x4] sm:$0xf] %vm615_vm8, %v1776_v22  ;;  %v2348_v22 = vshll.u32 %v4844_v3, 16  ;;  %v3447_v3 = vrot.slane %v4995_v63, 5  ;;  %v3639_v39 = vrot.slane %v3637_v20, 4  ;;  %v4753_v58 = vrot.slane %v4735_v10, 9 }
 0x131   : > { %v2720_v24 = vrot.slane %v2718_v55, 5  ;;  %v4888_v63 = vld [vmem:[%s5396_s11 + $0x40] sm:$0xf] }
 0x132   : > { %v2350_v33 = vrot.slane %v2348_v22, 5  ;;  %v4677_v22 = vor.u32 %v6289_v1, %v6190_v37  ;;  %v4996_v1 = vld [vmem:[%s5396_s11 + $0x2c] sm:$0x1] }
 0x133   : > { %1951 = vrot.lane.b32.xlu1 %v1905_v49, %s5305_s14  ;;  %v2709_v49 = vshrl.u32 %v4884_v48, 16 }
 0x134   : > { %2858 = vrot.lane.b32.xlu0 %v2707_v18, %s5305_s14  ;;  %2856 = vrot.lane.b32.xlu2 %v2697_v45, %s5305_s14  ;;  %v2335_v18 = vor.u32 %v2334_v14, %v2331_v6  ;;  %v2346_v45 = vrot.slane %v2345_v17, 4  ;;  %v5028_v14 = vld [vmem:[%s5396_s11 + $0x38] sm:$0x1]  ;;  %v5162_v17 = vld [vmem:[%s7557_s1 + $0x8] sm:$0xff] }
 0x135   : > { %v1520_v34 = vpop.permute.xlu1 %1519  ;;  %v2711_v5 = vrot.slane %v2709_v49, 4  ;;  %2101 = vmatpush.bf16.msra.mxu1 %v5162_v17 }
 0x136   : > { %1554 = vst.msk [vmem:[#allocation2 + $0x34] sm:$0xf] %vm514_vm4, %v1520_v34  ;;  %v1518_v31 = vpop.permute.xlu0 %1517  ;;  %v1782_v43 = vpop.permute.xlu2 %1781  ;;  %v2336_v23 = vrot.slane %v2335_v18, 4  ;;  %v2351_v41 = vsel %vm5407_vm2, %v2346_v45, %v2350_v33  ;;  %v3643_v18 = vshll.u32 %v5028_v14, 16 }
 0x137   : > { %1553 = vst.msk [vmem:[#allocation2 + $0x30] sm:$0xf] %vm514_vm4, %v1518_v31  ;;  %v2725_v31 = vor.u32 %v2724_v12, %v2720_v24 }
 0x138   : > { %1825 = vst.msk [vmem:[#allocation2 + $0x10] sm:$0xf] %vm615_vm8, %v1782_v43  ;;  %v2341_v51 = vsel %vm5407_vm2, %v2336_v23, %v2340_v28  ;;  %v2730_v43 = vrot.slane %v2728_v8, 5  ;;  %v3627_v28 = vshll.u32 %v5026_v32, 16  ;;  %v3645_v35 = vrot.slane %v3643_v18, 5 }
 0x139   : > { %4690 = vmatmul.msk.bf16.gmra.mxu0 %vm977_vm10, %v4669_v42  ;;  %v2715_v42 = vor.u32 %v2714_v61, %v2711_v5  ;;  %v2726_v50 = vrot.slane %v2725_v31, 4  ;;  %v5051_v31 = vld [vmem:[%s5396_s11 + $0x34] sm:$0xf]  ;;  %v3449_v8 = vrot.slane %v3447_v3, 4 }
 0x13b   : > { %3771 = vrot.lane.b32.xlu1 %v3612_v16, %s5304_s13  ;;  %v2716_v7 = vrot.slane %v2715_v42, 4  ;;  %v4736_v16 = vld [vmem:[%s5396_s11 + $0x34] sm:$0xf]  ;;  %v2731_v46 = vsel %vm5407_vm2, %v2726_v50, %v2730_v43 }
 0x13c   : > { %3493 = vrot.lane.b32.xlu0 %v3444_v54, %s5303_s12  ;;  %3491 = vrot.lane.b32.xlu2 %v3441_v4, %s5303_s12  ;;  %v4994_v54 = vld [vmem:[%s5396_s11 + $0x24] sm:$0xe]  ;;  %v1908_v36 = vrot.slane %v4736_v16, 5  ;;  %v3895_v16 = vrot.slane %v5051_v31, 5 }
 0x13d   : > { %v1774_v2 = vpop.permute.xlu1 %1773  ;;  %v2721_v57 = vsel %vm5407_vm2, %v2716_v7, %v2720_v24 }
 0x13e   : > { %1821 = vst.msk [vmem:[#allocation2] sm:$0xf] %vm615_vm8, %v1774_v2  ;;  %v1524_v9 = vpop.permute.xlu0 %1523  ;;  %v1788_v53 = vpop.permute.xlu2 %1787  ;;  %v5014_v2 = vrot.slane %v4994_v54, 9  ;;  %v1910_v48 = vrot.slane %v1908_v36, 4  ;;  %v1909_v37 = vsel %vm5646_vm7, %v4753_v58, %v1908_v36  ;;  %v5050_v54 = vld [vmem:[%s5396_s11 + $0x30] sm:$0xe] }
 0x13f   : > { %1556 = vst.msk [vmem:[#allocation2 + $0x3c] sm:$0xf] %vm514_vm4, %v1524_v9  ;;  %v1911_v9 = vrot.slane %v4737_v0, 5  ;;  %v3897_v21 = vrot.slane %v3895_v16, 4  ;;  %v5070_v0 = vrot.slane %v5050_v54, 9 }
 0x140   : > { %1828 = vst.msk [vmem:[#allocation2 + $0x1c] sm:$0xf] %vm615_vm8, %v1788_v53  ;;  %v3626_v53 = vrot.slane %v3624_v40, 4  ;;  %v3448_v49 = vsel %vm5646_vm7, %v5014_v2, %v3447_v3  ;;  %v4681_v3 = vor.u32 %v6232_v56, %v6284_v62  ;;  %v4889_v58 = vld [vmem:[%s5396_s11 + $0x44] sm:$0x1] }
 0x141   : > { %v3896_v56 = vsel %vm5646_vm7, %v5070_v0, %v3895_v16  ;;  %v4997_v0 = vld [vmem:[%s5396_s11 + $0x30] sm:$0xe] }
 0x143   : > { %3941 = vrot.lane.b32.xlu1 %v3892_v15, %s5305_s14  ;;  %v3629_v15 = vrot.slane %v3627_v28, 5  ;;  %v2742_v28 = vshll.u32 %v4888_v63, 16 }
 0x144   : > { %3939 = vrot.lane.b32.xlu0 %v3889_v27, %s5305_s14  ;;  %3773 = vrot.lane.b32.xlu2 %v3622_v19, %s5304_s13  ;;  %v4845_v27 = vld [vmem:[%s5396_s11 + $0x30] sm:$0xf]  ;;  %v3640_v19 = vor.u32 %v3639_v39, %v3635_v60 }
 0x145   : > { %v1780_v29 = vpop.permute.xlu1 %1779  ;;  %v2353_v24 = vshrl.u32 %v4845_v27, 16  ;;  %v2356_v12 = vshll.u32 %v4845_v27, 16  ;;  %v3630_v45 = vor.u32 %v3629_v15, %v3626_v53  ;;  %v6490_v27 = vrot.slane %v2742_v28, 5  ;;  %v5029_v28 = vld [vmem:[%s5396_s11 + $0x3c] sm:$0xf] }
 0x146   : > { %1824 = vst.msk [vmem:[#allocation2 + $0xc] sm:$0xf] %vm615_vm8, %v1780_v29  ;;  %v1778_v34 = vpop.permute.xlu0 %1777  ;;  %v1794_v52 = vpop.permute.xlu2 %1793  ;;  %v1912_v29 = vsel %vm5646_vm7, %v1910_v48, %v1911_v9  ;;  %v3641_v33 = vrot.slane %v3640_v19, 4  ;;  %v4847_v48 = vld [vmem:[%s5396_s11 + $0x38] sm:$0x1] }
 0x147   : > { %1823 = vst.msk [vmem:[#allocation2 + $0x8] sm:$0xf] %vm615_vm8, %v1778_v34  ;;  %v2355_v5 = vrot.slane %v2353_v24, 4  ;;  %v2358_v61 = vrot.slane %v2356_v12, 5  ;;  %v3631_v23 = vrot.slane %v3630_v45, 4  ;;  %v2372_v14 = vshll.u32 %v4847_v48, 16 }
 0x148   : > { %1831 = vst.msk [vmem:[#allocation2 + $0x28] sm:$0xf] %vm615_vm8, %v1794_v52  ;;  %v4846_v52 = vld [vmem:[%s5396_s11 + $0x34] sm:$0xf]  ;;  %v3646_v50 = vsel %vm5407_vm2, %v3641_v33, %v3645_v35  ;;  %v4887_v9 = vld [vmem:[%s5396_s11 + $0x3c] sm:$0xf] }
 0x149   : > { %4691 = vmatmul.msk.bf16.gmra.mxu0 %vm977_vm10, %v4673_v25  ;;  %v4820_v25 = vld [vmem:[%s5396_s11 + $0xc] sm:$0xf]  ;;  %v2359_v43 = vor.u32 %v2358_v61, %v2355_v5  ;;  %v3636_v7 = vsel %vm5407_vm2, %v3631_v23, %v3635_v60  ;;  %v2366_v38 = vshrl.u32 %v4846_v52, 16  ;;  %v2733_v53 = vshrl.u32 %v4887_v9, 16  ;;  %v5171_v45 = vld [vmem:[%s7557_s1 + $0x10] sm:$0xff] }
 0x14a   : > { %v2736_v15 = vshll.u32 %v4887_v9, 16  ;;  %v2752_v12 = vshll.u32 %v4889_v58, 16  ;;  %v6506_v33 = vld [vmem:[%s5396_s11 + $0x40] sm:$0xf]  ;;  %v4868_v35 = vld [vmem:[%s5396_s11 + $0x3c] sm:$0xf]  ;;  %3012 = vmatpush.bf16.msra.mxu2 %v5171_v45 }
 0x14b   : > { %2580 = vrot.lane.b32.xlu1 %v4866_v47, %s5304_s13  ;;  %v2368_v2 = vrot.slane %v2366_v38, 4  ;;  %v2735_v19 = vrot.slane %v2733_v53, 4  ;;  %v4964_v5 = vld [vmem:[%s5396_s11 + $0xc] sm:$0xf]  ;;  %v4822_v61 = vld [vmem:[%s5396_s11 + $0x18] sm:$0xf] }
 0x14c   : > { %2482 = vrot.lane.b32.xlu0 %v2351_v41, %s5303_s12  ;;  %2480 = vrot.lane.b32.xlu2 %v2341_v51, %s5303_s12  ;;  %v3450_v41 = vrot.slane %v4996_v1, 5  ;;  %v2738_v18 = vrot.slane %v2736_v15, 5  ;;  %v4738_v1 = vld [vmem:[%s5396_s11 + $0x3c] sm:$0xe]  ;;  %v6516_v23 = vld [vmem:[%s7558_s2] ss:$0 sm:$0xff] }
 0x14d   : > { %v1786_v44 = vpop.permute.xlu1 %1785  ;;  %v4754_v31 = vrot.slane %v4738_v1, 9  ;;  %v3163_v38 = vshll.u32 %v4964_v5, 16  ;;  %v5015_v53 = vrot.slane %v4997_v0, 9  ;;  %v4740_v15 = vld [vmem:[%s5396_s11 + $0x44] sm:$0x1] }
 0x14e   : > { %1827 = vst.msk [vmem:[#allocation2 + $0x18] sm:$0xf] %vm615_vm8, %v1786_v44  ;;  %v1784_v13 = vpop.permute.xlu0 %1783  ;;  %v1800_v4 = vpop.permute.xlu2 %1799  ;;  %v2362_v44 = vshll.u32 %v4846_v52, 16  ;;  %v3451_v32 = vsel %vm5646_vm7, %v3449_v8, %v3450_v41  ;;  %v2739_v52 = vor.u32 %v2738_v18, %v2735_v19  ;;  %v1915_v8 = vrot.slane %v6506_v33, 5  ;;  %v4849_v45 = vld [vmem:[%s5396_s11 + $0x40] sm:$0xf] }
 0x14f   : > { %1826 = vst.msk [vmem:[#allocation2 + $0x14] sm:$0xf] %vm615_vm8, %v1784_v13  ;;  %v5052_v13 = vld [vmem:[%s5396_s11 + $0x38] sm:$0x1]  ;;  %v3165_v9 = vrot.slane %v3163_v38, 5 }
 0x150   : > { %1834 = vst.msk [vmem:[#allocation2 + $0x34] sm:$0xf] %vm615_vm8, %v1800_v4  ;;  %v2360_v4 = vrot.slane %v2359_v43, 4  ;;  %v3898_v20 = vrot.slane %v5052_v13, 5  ;;  %v4965_v43 = vld [vmem:[%s5396_s11 + $0x10] sm:$0xf] }
 0x151   : > { %v5030_v13 = vld [vmem:[%s5396_s11 + $0x40] sm:$0xf]  ;;  %v5180_v38 = vld [vmem:[%s7557_s1 + $0x18] sm:$0xff] }
 0x152   : > { %4095 = vmatpush.bf16.msra.mxu3 %v5180_v38 }
 0x153   : > { %2862 = vrot.lane.b32.xlu1 %v2731_v46, %s5305_s14  ;;  %v2364_v46 = vrot.slane %v2362_v44, 5  ;;  %v3160_v44 = vshrl.u32 %v4964_v5, 16  ;;  %v5053_v5 = vld [vmem:[%s5396_s11 + $0x3c] sm:$0xe] }
 0x154   : > { %2860 = vrot.lane.b32.xlu0 %v2721_v57, %s5305_s14  ;;  %2582 = vrot.lane.b32.xlu2 %v4867_v11, %s5304_s13  ;;  %v4823_v57 = vld [vmem:[%s5396_s11 + $0x1c] sm:$0xf]  ;;  %v2746_v11 = vshrl.u32 %v4888_v63, 16 }
 0x155   : > { %v1792_v6 = vpop.permute.xlu1 %1791  ;;  %v2365_v60 = vsel %vm5407_vm2, %v2360_v4, %v2364_v46  ;;  %v2369_v62 = vor.u32 %v2368_v2, %v2364_v46  ;;  %v2740_v4 = vrot.slane %v2739_v52, 4  ;;  %v3162_v2 = vrot.slane %v3160_v44, 4 }
 0x156   : > { %1830 = vst.msk [vmem:[#allocation2 + $0x24] sm:$0xf] %vm615_vm8, %v1792_v6  ;;  %v1790_v55 = vpop.permute.xlu0 %1789  ;;  %v1942_v59 = vpop.permute.xlu2 %1941  ;;  %v3899_v6 = vsel %vm5646_vm7, %v3897_v21, %v3898_v20  ;;  %v1916_v21 = vsel %vm5646_vm7, %v4754_v31, %v1915_v8  ;;  %v2386_v44 = vshll.u32 %v4849_v45, 16 }
 0x157   : > { %1829 = vst.msk [vmem:[#allocation2 + $0x20] sm:$0xf] %vm615_vm8, %v1790_v55  ;;  %v2748_v55 = vrot.slane %v2746_v11, 4  ;;  %v3166_v18 = vor.u32 %v3165_v9, %v3162_v2  ;;  %v4850_v2 = vld [vmem:[%s5396_s11 + $0x44] sm:$0x1] }
 0x158   : > { %1989 = vst.msk [vmem:[#allocation2] sm:$0xf] %vm896_vm9, %v1942_v59  ;;  %v2374_v59 = vrot.slane %v2372_v14, 5 }
 0x159   : > { %4692 = vmatmul.msk.bf16.gmra.mxu0 %vm977_vm10, %v4677_v22  ;;  %v2749_v24 = vor.u32 %v2748_v55, %v6490_v27 }
 0x15b   : > { %3495 = vrot.lane.b32.xlu1 %v3448_v49, %s5303_s12  ;;  %v2370_v49 = vrot.slane %v2369_v62, 4  ;;  %v2750_v41 = vrot.slane %v2749_v24, 4  ;;  %v3651_v62 = vshll.u32 %v5029_v28, 16 }
 0x15c   : > { %1955 = vrot.lane.b32.xlu0 %v1912_v29, %s5305_s14  ;;  %1953 = vrot.lane.b32.xlu2 %v1909_v37, %s5305_s14  ;;  %v4869_v37 = vld [vmem:[%s5396_s11 + $0x40] sm:$0xf] }
 0x15d   : > { %v1798_v34 = vpop.permute.xlu1 %1797  ;;  %v3653_v52 = vrot.slane %v3651_v62, 5 }
 0x15e   : > { %1833 = vst.msk [vmem:[#allocation2 + $0x30] sm:$0xf] %vm615_vm8, %v1798_v34  ;;  %v1796_v47 = vpop.permute.xlu0 %1795  ;;  %v1948_v51 = vpop.permute.xlu2 %1947  ;;  %v4821_v34 = vld [vmem:[%s5396_s11 + $0x10] sm:$0xf] }
 0x15f   : > { %1832 = vst.msk [vmem:[#allocation2 + $0x2c] sm:$0xf] %vm615_vm8, %v1796_v47  ;;  %v6454_v42 = vld [vmem:[#allocation2] sm:$0xf] }
 0x160   : > { %2240 = vst.msk [vmem:[#allocation2] sm:$0xf] %vm230_vm3, %v4820_v25  ;;  %v2375_v25 = vsel %vm5407_vm2, %v2370_v49, %v2374_v59  ;;  %v6524_v47 = vld [vmem:[%s7559_s3] ss:$0 sm:$0xff]  ;;  %v4824_v49 = vld [vmem:[%s5396_s11 + $0x24] sm:$0xf] }
 0x161   : > { %1992 = vst.msk [vmem:[#allocation2 + $0xc] sm:$0xf] %vm896_vm9, %v1948_v51  ;;  %v2754_v51 = vrot.slane %v2752_v12, 5 }
 0x163   : > { %3777 = vrot.lane.b32.xlu1 %v3646_v50, %s5304_s13  ;;  %v6529_v50 = vld [vmem:[%s5396_s11 + $0x34] sm:$0xf]  ;;  %v2755_v20 = vsel %vm5407_vm2, %v2750_v41, %v2754_v51  ;;  %v6590_v51 = vld [vmem:[%s5396_s11 + $0x40] sm:$0xf] }
 0x164   : > { %3775 = vrot.lane.b32.xlu0 %v3636_v7, %s5304_s13  ;;  %3497 = vrot.lane.b32.xlu2 %v3451_v32, %s5303_s12  ;;  %v3454_v11 = vrot.slane %v6529_v50, 5  ;;  %v3902_v0 = vrot.slane %v6590_v51, 5 }
 0x165   : > { %v1804_v36 = vpop.permute.xlu1 %1803 }
 0x166   : > { %1836 = vst.msk [vmem:[#allocation2 + $0x3c] sm:$0xf] %vm615_vm8, %v1804_v36  ;;  %v1802_v40 = vpop.permute.xlu0 %1801  ;;  %v6475_v10 = vpop.permute.xlu2 %2474  ;;  %v3456_v55 = vrot.slane %v3454_v11, 4  ;;  %v3455_v41 = vsel %vm5646_vm7, %v5015_v53, %v3454_v11 }
 0x167   : > { %1835 = vst.msk [vmem:[#allocation2 + $0x38] sm:$0xf] %vm615_vm8, %v1802_v40 }
 0x168   : > { %v6481_v39 = vld [vmem:[#allocation2 + $0x8] sm:$0xf0] }
 0x169   : > { %4693 = vmatmul.msk.bf16.gmra.mxu0 %vm977_vm10, %v4681_v3  ;;  %2243 = vst.msk [vmem:[#allocation2 + $0xc] sm:$0xf] %vm230_vm3, %v4823_v57  ;;  %v4999_v57 = vld [vmem:[%s5396_s11 + $0x38] sm:$0x1]  ;;  %v3173_v3 = vshrl.u32 %v4965_v43, 16 }
 0x16a   : > { %v3457_v58 = vrot.slane %v4999_v57, 5  ;;  %v5071_v57 = vrot.slane %v5053_v5, 9  ;;  %v5055_v5 = vld [vmem:[%s5396_s11 + $0x44] sm:$0x1] }
 0x16b   : > { %2484 = vrot.lane.b32.xlu1 %v2365_v60, %s5303_s12  ;;  %v3657_v60 = vshll.u32 %v5030_v13, 16 }
 0x16c   : > { %3945 = vrot.lane.b32.xlu0 %v3899_v6, %s5305_s14  ;;  %3943 = vrot.lane.b32.xlu2 %v3896_v56, %s5305_s14  ;;  %v3661_v6 = vshrl.u32 %v5030_v13, 16  ;;  %v3648_v56 = vshrl.u32 %v5029_v28, 16  ;;  %v3458_v33 = vsel %vm5646_vm7, %v3456_v55, %v3457_v58 }
 0x16d   : > { %v1946_v17 = vpop.permute.xlu1 %1945  ;;  %v6573_v24 = vrot.slane %v3657_v60, 5 }
 0x16e   : > { %1991 = vst.msk [vmem:[#allocation2 + $0x8] sm:$0xf] %vm896_vm9, %v1946_v17  ;;  %v1944_v22 = vpop.permute.xlu0 %1943  ;;  %v6498_v29 = vpop.permute.xlu2 %2852  ;;  %v3663_v12 = vrot.slane %v3661_v6, 4 }
 0x16f   : > { %1990 = vst.msk [vmem:[#allocation2 + $0x4] sm:$0xf] %vm896_vm9, %v1944_v22  ;;  %v6568_v22 = vrot.slane %v3173_v3, 4 }
 0x173   : > { %2586 = vrot.lane.b32.xlu1 %v4869_v37, %s5304_s13  ;;  %v4848_v37 = vld [vmem:[%s5396_s11 + $0x3c] sm:$0xf] }
 0x174   : > { %2584 = vrot.lane.b32.xlu0 %v4868_v35, %s5304_s13  ;;  %2486 = vrot.lane.b32.xlu2 %v2375_v25, %s5303_s12  ;;  %v3650_v25 = vrot.slane %v3648_v56, 4  ;;  %v4890_v56 = vld [vmem:[%s5396_s11 + $0x48] sm:$0xf] }
 0x175   : > { %v6532_v7 = vld [vmem:[#allocation2 + $0x8] sm:$0xf]  ;;  %v2473_v16 = vpop.permute.xlu1 %2472 }
 0x176   : > { %2242 = vst.msk [vmem:[#allocation2 + $0x8] sm:$0xf] %vm230_vm3, %v4822_v61  ;;  %v5154_v32 = vld [vmem:[#allocation2] sm:$0xf0]  ;;  %v1950_v54 = vpop.permute.xlu0 %1949  ;;  %v1011_v63 = vpop.f32.mrf.mxu0  ;;  %v1917_v61 = vrot.slane %v1915_v8, 4 }
 0x177   : > { %2241 = vst.msk [vmem:[#allocation2 + $0x4] sm:$0xf] %vm230_vm3, %v4821_v34  ;;  %v1054_v46 = vmul.f32 %v6516_v23, %v1011_v63  ;;  %v4763_v36 = vor.u32 %v5154_v32, %v6454_v42  ;;  %v6550_v40 = vpop.permute.xlu2 %3489  ;;  %v3169_v42 = vshll.u32 %v4965_v43, 16  ;;  %v1918_v34 = vrot.slane %v4740_v15, 5  ;;  %v4966_v43 = vld [vmem:[%s5396_s11 + $0x14] sm:$0x1] }
 0x178   : > { %2521 = vst.msk [vmem:[#allocation2 + $0x4] sm:$0xf] %vm514_vm4, %v6475_v10  ;;  %v2745_v10 = vsel %vm5407_vm2, %v2740_v4, %v6490_v27  ;;  %v5031_v27 = vld [vmem:[%s5396_s11 + $0x44] sm:$0x1]  ;;  %v2377_v63 = vshrl.u32 %v4848_v37, 16  ;;  %v2380_v4 = vshll.u32 %v4848_v37, 16 }
 0x179   : > { %2520 = vst.msk [vmem:[#allocation2] sm:$0xf] %vm514_vm4, %v2473_v16  ;;  %v1073_v48 = vadd.f32 %v6524_v47, %v1054_v46  ;;  %4796 = vmatmul.msk.bf16.vlgmr.msra.gmra.mxu1 %vm977_vm10, %v4763_v36  ;;  %v6566_v17 = vrot.slane %v3169_v42, 5  ;;  %v3667_v8 = vshll.u32 %v5031_v27, 16  ;;  %v2390_v16 = vshrl.u32 %v4849_v45, 16 }
 0x17a   : > { %1993 = vst.msk [vmem:[#allocation2 + $0x10] sm:$0xf] %vm896_vm9, %v1950_v54  ;;  %v3664_v54 = vor.u32 %v3663_v12, %v6573_v24  ;;  %v3167_v46 = vrot.slane %v3166_v18, 4  ;;  %v1919_v36 = vsel %vm5646_vm7, %v1917_v61, %v1918_v34  ;;  %v3179_v11 = vshll.u32 %v4966_v43, 16 }
 0x17b   : > { %v1089_v14 = vmax.f32 %v1073_v48, 0.0  ;;  %1957 = vrot.lane.b32.xlu1 %v1916_v21, %s5305_s14  ;;  %v3654_v21 = vor.u32 %v3653_v52, %v3650_v25  ;;  %v3669_v28 = vrot.slane %v3667_v8, 5  ;;  %v6616_v42 = vrot.slane %v2386_v44, 5 }
 0x17c   : > { %2866 = vrot.lane.b32.xlu0 %v2755_v20, %s5305_s14  ;;  %2864 = vrot.lane.b32.xlu2 %v2745_v10, %s5305_s14  ;;  %v2392_v3 = vrot.slane %v2390_v16, 4  ;;  %v3665_v60 = vrot.slane %v3664_v54, 4  ;;  %v2379_v6 = vrot.slane %v2377_v63, 4  ;;  %v2382_v10 = vrot.slane %v2380_v4, 5 }
 0x17d   : > { %v1105_v59 = vpack.c.bf16 %v1089_v14, %v1089_v14  ;;  %v2575_v19 = vpop.permute.xlu1 %2574  ;;  %v3172_v62 = vsel %vm5407_vm2, %v3167_v46, %v6566_v17  ;;  %v3655_v15 = vrot.slane %v3654_v21, 4  ;;  %v2396_v27 = vshll.u32 %v4850_v2, 16  ;;  %v4742_v2 = vld [vmem:[%s5396_s11 + $0x4c] sm:$0xf] }
 0x17e   : > { %2621 = vst.msk [vmem:[#allocation2 + $0x4] sm:$0xf] %vm615_vm8, %v2575_v19  ;;  %v2573_v1 = vpop.permute.xlu0 %2572  ;;  %v1013_v35 = vpop.f32.mrf.mxu0  ;;  %v2393_v19 = vor.u32 %v2392_v3, %v6616_v42  ;;  %v2757_v18 = vshrl.u32 %v4890_v56, 16  ;;  %v2760_v12 = vshll.u32 %v4890_v56, 16  ;;  %v2383_v37 = vor.u32 %v2382_v10, %v2379_v6 }
 0x17f   : > { %1122 = vst.msk [vmem:[%s6582_s24] sm:$0xf] %vm1121_vm11, %v1105_v59  ;;  %v1055_v31 = vmul.f32 %v6516_v23, %v1013_v35  ;;  %v6592_v50 = vpop.permute.xlu2 %3935  ;;  %v2398_v34 = vrot.slane %v2396_v27, 5  ;;  %v3904_v44 = vrot.slane %v3902_v0, 4  ;;  %v3905_v16 = vrot.slane %v5055_v5, 5 }
 0x180   : > { %2620 = vst.msk [vmem:[#allocation2] sm:$0xf] %vm615_vm8, %v2573_v1  ;;  %v3660_v1 = vsel %vm5407_vm2, %v3655_v15, %v6573_v24  ;;  %v2394_v61 = vrot.slane %v2393_v19, 4  ;;  %v2759_v25 = vrot.slane %v2757_v18, 4  ;;  %v2762_v52 = vrot.slane %v2760_v12, 5 }
 0x181   : > { %v6601_v13 = vld [vmem:[#allocation2 + $0x10] sm:$0xf]  ;;  %2900 = vst.msk [vmem:[#allocation2] sm:$0xf] %vm896_vm9, %v6498_v29  ;;  %v1074_v32 = vadd.f32 %v6524_v47, %v1055_v31  ;;  %v3176_v29 = vor.u32 %v6568_v22, %v6566_v17  ;;  %v4767_v22 = vor.u32 %v6481_v39, %v6532_v7  ;;  %v3903_v17 = vsel %vm5646_vm7, %v5071_v57, %v3902_v0  ;;  %v4891_v24 = vld [vmem:[%s5396_s11 + $0x4c] sm:$0xf] }
 0x182   : > { %2244 = vst.msk [vmem:[#allocation2 + $0x10] sm:$0xf] %vm230_vm3, %v4824_v49  ;;  %v3670_v39 = vsel %vm5407_vm2, %v3665_v60, %v3669_v28  ;;  %v3181_v7 = vrot.slane %v3179_v11, 5  ;;  %v2384_v43 = vrot.slane %v2383_v37, 4  ;;  %v2399_v4 = vsel %vm5407_vm2, %v2394_v61, %v2398_v34  ;;  %v4892_v15 = vld [vmem:[%s5396_s11 + $0x50] sm:$0x1] }
 0x183   : > { %v1090_v20 = vmax.f32 %v1074_v32, 0.0  ;;  %3501 = vrot.lane.b32.xlu1 %v3458_v33, %s5303_s12  ;;  %v3177_v55 = vrot.slane %v3176_v29, 4  ;;  %v2763_v46 = vor.u32 %v2762_v52, %v2759_v25  ;;  %v2770_v29 = vshrl.u32 %v4891_v24, 16 }
 0x184   : > { %3499 = vrot.lane.b32.xlu0 %v3455_v41, %s5303_s12  ;;  %1959 = vrot.lane.b32.xlu2 %v1919_v36, %s5305_s14  ;;  %v2766_v36 = vshll.u32 %v4891_v24, 16  ;;  %v3906_v57 = vsel %vm5646_vm7, %v3904_v44, %v3905_v16 }
 0x185   : > { %v1106_v48 = vpack.c.bf16 %v1090_v20, %v1090_v20  ;;  %v3488_v9 = vpop.permute.xlu1 %3487  ;;  %v3182_v41 = vsel %vm5407_vm2, %v3177_v55, %v3181_v7  ;;  %v2389_v20 = vsel %vm5407_vm2, %v2384_v43, %v6616_v42  ;;  %v2764_v28 = vrot.slane %v2763_v46, 4 }
 0x186   : > { %v2855_v14 = vpop.permute.xlu0 %2854  ;;  %v1016_v53 = vpop.f32.mrf.mxu0  ;;  %v2768_v11 = vrot.slane %v2766_v36, 5  ;;  %v2772_v10 = vrot.slane %v2770_v29, 4  ;;  %v2776_v7 = vshll.u32 %v4892_v15, 16  ;;  %v5002_v29 = vld [vmem:[%s5396_s11 + $0x44] sm:$0x1] }
 0x187   : > { %1123 = vst.msk [vmem:[%s6582_s24 + $0x4] sm:$0xf] %vm1121_vm11, %v1106_v48  ;;  %v1056_v58 = vmul.f32 %v6516_v23, %v1016_v53  ;;  %v2479_v49 = vpop.permute.xlu2 %2478  ;;  %v5032_v48 = vld [vmem:[%s5396_s11 + $0x48] sm:$0xf]  ;;  %v4852_v15 = vld [vmem:[%s5396_s11 + $0x4c] sm:$0xf] }
 0x188   : > { %v4906_v59 = vld [vmem:[#allocation2] sm:$0xf]  ;;  %2901 = vst.msk [vmem:[#allocation2 + $0x4] sm:$0xf] %vm896_vm9, %v2855_v14  ;;  %v1922_v14 = vrot.slane %v4742_v2, 5  ;;  %v2769_v55 = vsel %vm5407_vm2, %v2764_v28, %v2768_v11  ;;  %v3675_v27 = vshll.u32 %v5032_v48, 16 }
 0x189   : > { %3367 = vst.msk [vmem:[#allocation2] sm:$0xf] %vm230_vm3, %v3172_v62  ;;  %v1075_v45 = vadd.f32 %v6524_v47, %v1056_v58  ;;  %4797 = vmatmul.msk.bf16.gmra.mxu1 %vm977_vm10, %v4767_v22  ;;  %v4871_v62 = vld [vmem:[%s5396_s11 + $0x4c] sm:$0xf]  ;;  %v4968_v58 = vld [vmem:[%s5396_s11 + $0x1c] sm:$0xf] }
 0x18a   : > { %3535 = vst.msk [vmem:[#allocation2] sm:$0xf] %vm514_vm4, %v3488_v9  ;;  %v3672_v22 = vshrl.u32 %v5032_v48, 16  ;;  %v3197_v19 = vshrl.u32 %v4968_v58, 16  ;;  %v3677_v25 = vrot.slane %v3675_v27, 5  ;;  %v2778_v16 = vrot.slane %v2776_v7, 5 }
 0x18b   : > { %v1091_v35 = vmax.f32 %v1075_v45, 0.0  ;;  %3947 = vrot.lane.b32.xlu1 %v3903_v17, %s5305_s14  ;;  %2523 = vst.msk [vmem:[#allocation2 + $0xc] sm:$0xf] %vm514_vm4, %v2479_v49  ;;  %v4741_v17 = vld [vmem:[%s5396_s11 + $0x48] sm:$0xe] }
 0x18c   : > { %3781 = vrot.lane.b32.xlu0 %v3670_v39, %s5304_s13  ;;  %3779 = vrot.lane.b32.xlu2 %v3660_v1, %s5304_s13  ;;  %v4870_v45 = vld [vmem:[%s5396_s11 + $0x48] sm:$0xf]  ;;  %v2773_v39 = vor.u32 %v2772_v10, %v2768_v11  ;;  %v1924_v1 = vrot.slane %v1922_v14, 4  ;;  %v4755_v61 = vrot.slane %v4741_v17, 9  ;;  %v3674_v34 = vrot.slane %v3672_v22, 4 }
 0x18d   : > { %v1107_v31 = vpack.c.bf16 %v1091_v35, %v1091_v35  ;;  %v3770_v51 = vpop.permute.xlu1 %3769  ;;  %v3193_v35 = vshll.u32 %v4968_v58, 16  ;;  %v4969_v28 = vld [vmem:[%s5396_s11 + $0x20] sm:$0x1]  ;;  %v6721_v48 = vld [vmem:[%s5396_s11 + $0x4c] sm:$0xf] }
 0x18e   : > { %v3768_v33 = vpop.permute.xlu0 %3767  ;;  %v1018_v8 = vpop.f32.mrf.mxu0  ;;  %v2774_v44 = vrot.slane %v2773_v39, 4  ;;  %v1923_v36 = vsel %vm5646_vm7, %v4755_v61, %v1922_v14  ;;  %v5056_v17 = vld [vmem:[%s5396_s11 + $0x48] sm:$0xe] }
 0x18f   : > { %1124 = vst.msk [vmem:[%s6582_s24 + $0x8] sm:$0xf] %vm1121_vm11, %v1107_v31  ;;  %v5163_v38 = vld [vmem:[#allocation2] sm:$0xf0]  ;;  %v1057_v32 = vmul.f32 %v6516_v23, %v1018_v8  ;;  %v6652_v54 = vpop.permute.xlu2 %2856  ;;  %v6698_v8 = vld [vmem:[%s5396_s11 + $0x40] sm:$0xf] }
 0x190   : > { %3368 = vst.msk [vmem:[#allocation2 + $0x4] sm:$0xf] %vm230_vm3, %v3182_v41  ;;  %v4907_v63 = vor.u32 %v5163_v38, %v4906_v59  ;;  %v4743_v59 = vld [vmem:[%s5396_s11 + $0x50] sm:$0x1]  ;;  %v5033_v41 = vld [vmem:[%s5396_s11 + $0x4c] sm:$0xf] }
 0x191   : > { %3536 = vst.msk [vmem:[#allocation2 + $0x4] sm:$0xf] %vm514_vm4, %v6550_v40  ;;  %v1076_v21 = vadd.f32 %v6524_v47, %v1057_v32  ;;  %v4967_v40 = vld [vmem:[%s5396_s11 + $0x18] sm:$0xf]  ;;  %v1925_v5 = vrot.slane %v4743_v59, 5  ;;  %v3909_v59 = vrot.slane %v6721_v48, 5 }
 0x192   : > { %3816 = vst.msk [vmem:[#allocation2 + $0x4] sm:$0xf] %vm615_vm8, %v3770_v51  ;;  %4940 = vmatmul.msk.bf16.vlgmr.msra.gmra.mxu2 %vm977_vm10, %v4907_v63  ;;  %v3184_v6 = vshrl.u32 %v4967_v40, 16  ;;  %v3199_v51 = vrot.slane %v3197_v19, 4  ;;  %v3195_v63 = vrot.slane %v3193_v35, 5  ;;  %v2414_v35 = vshrl.u32 %v4852_v15, 16 }
 0x193   : > { %3815 = vst.msk [vmem:[#allocation2] sm:$0xf] %vm615_vm8, %v3768_v33  ;;  %v1092_v0 = vmax.f32 %v1076_v21, 0.0  ;;  %2490 = vrot.lane.b32.xlu1 %v2399_v4, %s5303_s12  ;;  %v1926_v46 = vsel %vm5646_vm7, %v1924_v1, %v1925_v5  ;;  %v3678_v21 = vor.u32 %v3677_v25, %v3674_v34  ;;  %v4851_v39 = vld [vmem:[%s5396_s11 + $0x48] sm:$0xf]  ;;  %v2410_v1 = vshll.u32 %v4852_v15, 16 }
 0x194   : > { %3983 = vst.msk [vmem:[#allocation2] sm:$0xf] %vm896_vm9, %v6592_v50  ;;  %2488 = vrot.lane.b32.xlu0 %v2389_v20, %s5303_s12  ;;  %3949 = vrot.lane.b32.xlu2 %v3906_v57, %s5305_s14  ;;  %v3187_v50 = vshll.u32 %v4967_v40, 16  ;;  %v3186_v18 = vrot.slane %v3184_v6, 4  ;;  %v3681_v20 = vshll.u32 %v5033_v41, 16  ;;  %v3461_v40 = vrot.slane %v6698_v8, 5 }
 0x195   : > { %v1108_v42 = vpack.c.bf16 %v1092_v0, %v1092_v0  ;;  %v2477_v3 = vpop.permute.xlu1 %2476  ;;  %v3685_v0 = vshrl.u32 %v5033_v41, 16  ;;  %v3200_v11 = vor.u32 %v3199_v51, %v3195_v63  ;;  %v3464_v6 = vrot.slane %v5002_v29, 5  ;;  %v4825_v5 = vld [vmem:[%s5396_s11 + $0x28] sm:$0xf]  ;;  %v4893_v29 = vld [vmem:[%s5396_s11 + $0x54] sm:$0xf] }
 0x196   : > { %2522 = vst.msk [vmem:[#allocation2 + $0x8] sm:$0xf] %vm514_vm4, %v2477_v3  ;;  %v3938_v9 = vpop.permute.xlu0 %3937  ;;  %v1021_v60 = vpop.f32.mrf.mxu0  ;;  %v3189_v12 = vrot.slane %v3187_v50, 5  ;;  %v3203_v50 = vshll.u32 %v4969_v28, 16  ;;  %v2401_v51 = vshrl.u32 %v4851_v39, 16 }
 0x197   : > { %1125 = vst.msk [vmem:[%s6582_s24 + $0xc] sm:$0xf] %vm1121_vm11, %v1108_v42  ;;  %v1058_v56 = vmul.f32 %v6516_v23, %v1021_v60  ;;  %v6681_v53 = vpop.permute.xlu2 %3491  ;;  %v2779_v42 = vsel %vm5407_vm2, %v2774_v44, %v2778_v16  ;;  %v3683_v60 = vrot.slane %v3681_v20, 5  ;;  %v6725_v14 = vrot.slane %v3200_v11, 4  ;;  %v4853_v16 = vld [vmem:[%s5396_s11 + $0x50] sm:$0x1] }
 0x198   : > { %3984 = vst.msk [vmem:[#allocation2 + $0x4] sm:$0xf] %vm896_vm9, %v3938_v9  ;;  %v3190_v33 = vor.u32 %v3189_v12, %v3186_v18  ;;  %v3679_v9 = vrot.slane %v3678_v21, 4  ;;  %v3205_v25 = vrot.slane %v3203_v50, 5  ;;  %v5072_v44 = vrot.slane %v5056_v17, 9 }
 0x199   : > { %v1077_v49 = vadd.f32 %v6524_v47, %v1058_v56  ;;  %v2403_v11 = vrot.slane %v2401_v51, 4 }
 0x19a   : > { %v3191_v2 = vrot.slane %v3190_v33, 4  ;;  %v3911_v33 = vrot.slane %v3909_v59, 4  ;;  %v3206_v21 = vsel %vm5407_vm2, %v6725_v14, %v3205_v25  ;;  %v2784_v14 = vshll.u32 %v4893_v29, 16 }
 0x19b   : > { %v1093_v37 = vmax.f32 %v1077_v49, 0.0  ;;  %2868 = vrot.lane.b32.xlu1 %v2769_v55, %s5305_s14  ;;  %v3687_v55 = vrot.slane %v3685_v0, 4  ;;  %v5058_v49 = vld [vmem:[%s5396_s11 + $0x50] sm:$0x1] }
 0x19c   : > { %2590 = vrot.lane.b32.xlu0 %v4871_v62, %s5304_s13  ;;  %2588 = vrot.lane.b32.xlu2 %v4870_v45, %s5304_s13  ;;  %v3463_v62 = vrot.slane %v3461_v40, 4  ;;  %v3196_v58 = vsel %vm5407_vm2, %v3191_v2, %v3195_v63  ;;  %v5034_v45 = vld [vmem:[%s5396_s11 + $0x50] sm:$0x1]  ;;  %v3912_v8 = vrot.slane %v5058_v49, 5 }
 0x19d   : > { %v1109_v52 = vpack.c.bf16 %v1093_v37, %v1093_v37  ;;  %v2579_v31 = vpop.permute.xlu1 %2578  ;;  %v3684_v37 = vsel %vm5407_vm2, %v3679_v9, %v3683_v60  ;;  %v3691_v41 = vshll.u32 %v5034_v45, 16 }
 0x19e   : > { %2623 = vst.msk [vmem:[#allocation2 + $0xc] sm:$0xf] %vm615_vm8, %v2579_v31  ;;  %v2577_v43 = vpop.permute.xlu0 %2576  ;;  %v1023_v24 = vpop.f32.mrf.mxu0  ;;  %v3465_v34 = vsel %vm5646_vm7, %v3463_v62, %v3464_v6  ;;  %v3913_v48 = vsel %vm5646_vm7, %v3911_v33, %v3912_v8  ;;  %v2781_v62 = vshrl.u32 %v4893_v29, 16  ;;  %v4970_v33 = vld [vmem:[%s5396_s11 + $0x24] sm:$0xf] }
 0x19f   : > { %1126 = vst.msk [vmem:[%s6582_s24 + $0x10] sm:$0xf] %vm1121_vm11, %v1109_v52  ;;  %v1059_v38 = vmul.f32 %v6516_v23, %v1023_v24  ;;  %v5172_v32 = vld [vmem:[#allocation2] sm:$0xff]  ;;  %v6703_v4 = vpop.permute.xlu2 %3773  ;;  %v3688_v52 = vor.u32 %v3687_v55, %v3683_v60  ;;  %v3693_v28 = vrot.slane %v3691_v41, 5 }
 0x1a0   : > { %2622 = vst.msk [vmem:[#allocation2 + $0x8] sm:$0xf] %vm615_vm8, %v2577_v43  ;;  %5114 = vmatmul.msk.bf16.vlgmr.msra.gmra.mxu3 %vm977_vm10, %v5172_v32  ;;  %v2404_v43 = vshll.u32 %v4851_v39, 16  ;;  %v4894_v32 = vld [vmem:[%s5396_s11 + $0x58] sm:$0xf] }
 0x1a1   : > { %2902 = vst.msk [vmem:[#allocation2 + $0x8] sm:$0xf] %vm896_vm9, %v6652_v54  ;;  %v1078_v57 = vadd.f32 %v6524_v47, %v1059_v38  ;;  %v5000_v54 = vld [vmem:[%s5396_s11 + $0x3c] sm:$0xe]  ;;  %v6756_v38 = vrot.slane %v2410_v1, 5  ;;  %v3689_v20 = vrot.slane %v3688_v52, 4 }
 0x1a2   : > { %v5016_v19 = vrot.slane %v5000_v54, 9  ;;  %v2406_v2 = vrot.slane %v2404_v43, 5  ;;  %v3910_v54 = vsel %vm5646_vm7, %v5072_v44, %v3909_v59  ;;  %v2790_v6 = vshll.u32 %v4894_v32, 16 }
 0x1a3   : > { %v1094_v3 = vmax.f32 %v1078_v57, 0.0  ;;  %1963 = vrot.lane.b32.xlu1 %v1926_v46, %s5305_s14  ;;  %v2794_v50 = vshrl.u32 %v4894_v32, 16  ;;  %v3694_v15 = vsel %vm5407_vm2, %v3689_v20, %v3693_v28 }
 0x1a4   : > { %1961 = vrot.lane.b32.xlu0 %v1923_v36, %s5305_s14  ;;  %2870 = vrot.lane.b32.xlu2 %v2779_v42, %s5305_s14  ;;  %v3462_v31 = vsel %vm5646_vm7, %v5016_v19, %v3461_v40  ;;  %v2407_v55 = vor.u32 %v2406_v2, %v2403_v11  ;;  %v5003_v2 = vld [vmem:[%s5396_s11 + $0x48] sm:$0xe] }
 0x1a5   : > { %v1110_v10 = vpack.c.bf16 %v1094_v3, %v1094_v3  ;;  %v1952_v56 = vpop.permute.xlu1 %1951  ;;  %v2796_v49 = vrot.slane %v2794_v50, 4 }
 0x1a6   : > { %1994 = vst.msk [vmem:[#allocation2 + $0x14] sm:$0xf] %vm896_vm9, %v1952_v56  ;;  %v2859_v22 = vpop.permute.xlu0 %2858  ;;  %v1026_v27 = vpop.f32.mrf.mxu0  ;;  %v2420_v56 = vshll.u32 %v4853_v16, 16  ;;  %v5036_v16 = vld [vmem:[%s5396_s11 + $0x58] sm:$0xf] }
 0x1a7   : > { %1127 = vst.msk [vmem:[%s6582_s24 + $0x14] sm:$0xf] %vm1121_vm11, %v1110_v10  ;;  %v1060_v18 = vmul.f32 %v6516_v23, %v1026_v27  ;;  %v2481_v12 = vpop.permute.xlu2 %2480  ;;  %v6788_v27 = vrot.slane %v2790_v6, 5  ;;  %v4746_v6 = vld [vmem:[%s5396_s11 + $0x5c] sm:$0x1] }
 0x1a8   : > { %v4910_v7 = vld [vmem:[#allocation2 + $0x8] sm:$0xf]  ;;  %2903 = vst.msk [vmem:[#allocation2 + $0xc] sm:$0xf] %vm896_vm9, %v2859_v22  ;;  %v2422_v19 = vrot.slane %v2420_v56, 5 }
 0x1a9   : > { %3369 = vst.msk [vmem:[#allocation2 + $0x8] sm:$0xf] %vm230_vm3, %v3196_v58  ;;  %v1079_v61 = vadd.f32 %v6524_v47, %v1060_v18  ;;  %v4895_v18 = vld [vmem:[%s5396_s11 + $0x5c] sm:$0x1] }
 0x1aa   : > { %3537 = vst.msk [vmem:[#allocation2 + $0x8] sm:$0xf] %vm514_vm4, %v6681_v53  ;;  %v2416_v53 = vrot.slane %v2414_v35, 4 }
 0x1ab   : > { %v1095_v24 = vmax.f32 %v1079_v61, 0.0  ;;  %3783 = vrot.lane.b32.xlu1 %v3684_v37, %s5304_s13  ;;  %2524 = vst.msk [vmem:[#allocation2 + $0x10] sm:$0xf] %vm514_vm4, %v2481_v12  ;;  %v2783_v12 = vrot.slane %v2781_v62, 4  ;;  %v4971_v37 = vld [vmem:[%s5396_s11 + $0x28] sm:$0xf]  ;;  %v2797_v61 = vor.u32 %v2796_v49, %v6788_v27 }
 0x1ac   : > { %3505 = vrot.lane.b32.xlu0 %v3465_v34, %s5303_s12  ;;  %3503 = vrot.lane.b32.xlu2 %v3462_v31, %s5303_s12  ;;  %v2417_v60 = vor.u32 %v2416_v53, %v6756_v38  ;;  %v2800_v34 = vshll.u32 %v4895_v18, 16  ;;  %v3217_v41 = vshll.u32 %v4971_v37, 16  ;;  %v4873_v49 = vld [vmem:[%s5396_s11 + $0x58] sm:$0xf]  ;;  %v5017_v18 = vrot.slane %v5003_v2, 9 }
 0x1ad   : > { %v5156_v63 = vld [vmem:[#allocation2 + $0x10] sm:$0xf0]  ;;  %v1111_v46 = vpack.c.bf16 %v1095_v24, %v1095_v24  ;;  %v3772_v36 = vpop.permute.xlu1 %3771  ;;  %v3221_v24 = vshrl.u32 %v4971_v37, 16  ;;  %v2798_v8 = vrot.slane %v2797_v61, 4  ;;  %v1932_v37 = vrot.slane %v4746_v6, 5 }
 0x1ae   : > { %2245 = vst.msk [vmem:[#allocation2 + $0x14] sm:$0xf] %vm230_vm3, %v4825_v5  ;;  %v3494_v57 = vpop.permute.xlu0 %3493  ;;  %v1028_v0 = vpop.f32.mrf.mxu0  ;;  %v4771_v40 = vor.u32 %v5156_v63, %v6601_v13  ;;  %v2418_v22 = vrot.slane %v2417_v60, 4  ;;  %v4872_v5 = vld [vmem:[%s5396_s11 + $0x54] sm:$0xf]  ;;  %v2802_v44 = vrot.slane %v2800_v34, 5 }
 0x1af   : > { %1128 = vst.msk [vmem:[%s6582_s24 + $0x18] sm:$0xf] %vm1121_vm11, %v1111_v46  ;;  %v5164_v42 = vld [vmem:[#allocation2 + $0x8] sm:$0xf0]  ;;  %v1061_v3 = vmul.f32 %v6516_v23, %v1028_v0  ;;  %v6773_v9 = vpop.permute.xlu2 %2582  ;;  %v4826_v46 = vld [vmem:[%s5396_s11 + $0x30] sm:$0xf] }
 0x1b0   : > { %3817 = vst.msk [vmem:[#allocation2 + $0x8] sm:$0xf] %vm615_vm8, %v3772_v36  ;;  %4798 = vmatmul.msk.bf16.gmra.mxu1 %vm977_vm10, %v4771_v40  ;;  %v4911_v13 = vor.u32 %v5164_v42, %v4910_v7  ;;  %v2408_v7 = vrot.slane %v2407_v55, 4  ;;  %v2423_v52 = vsel %vm5407_vm2, %v2418_v22, %v2422_v19  ;;  %v4972_v36 = vld [vmem:[%s5396_s11 + $0x2c] sm:$0x1]  ;;  %v3211_v0 = vshll.u32 %v4970_v33, 16 }
 0x1b1   : > { %3370 = vst.msk [vmem:[#allocation2 + $0xc] sm:$0xf] %vm230_vm3, %v3206_v21  ;;  %v1080_v10 = vadd.f32 %v6524_v47, %v1061_v3  ;;  %v6817_v21 = vrot.slane %v3217_v41, 5  ;;  %v5035_v40 = vld [vmem:[%s5396_s11 + $0x54] sm:$0xf]  ;;  %v3223_v3 = vrot.slane %v3221_v24, 4  ;;  %v2803_v60 = vsel %vm5407_vm2, %v2798_v8, %v2802_v44 }
 0x1b2   : > { %3538 = vst.msk [vmem:[#allocation2 + $0xc] sm:$0xf] %vm514_vm4, %v3494_v57  ;;  %4941 = vmatmul.msk.bf16.gmra.mxu2 %vm977_vm10, %v4911_v13  ;;  %v2413_v51 = vsel %vm5407_vm2, %v2408_v7, %v6756_v38  ;;  %v6814_v38 = vld [vmem:[%s5396_s11 + $0x58] sm:$0xf]  ;;  %v3208_v57 = vshrl.u32 %v4970_v33, 16  ;;  %v3709_v13 = vshrl.u32 %v5036_v16, 16 }
 0x1b3   : > { %3818 = vst.msk [vmem:[#allocation2 + $0xc] sm:$0xf] %vm615_vm8, %v6703_v4  ;;  %v1096_v58 = vmax.f32 %v1080_v10, 0.0  ;;  %3953 = vrot.lane.b32.xlu1 %v3913_v48, %s5305_s14  ;;  %v2786_v4 = vrot.slane %v2784_v14, 5  ;;  %v6826_v42 = vld [vmem:[%s5396_s11 + $0x4c] sm:$0xf] }
 0x1b4   : > { %3951 = vrot.lane.b32.xlu0 %v3910_v54, %s5305_s14  ;;  %3785 = vrot.lane.b32.xlu2 %v3694_v15, %s5304_s13  ;;  %v3705_v54 = vshll.u32 %v5036_v16, 16  ;;  %v1929_v50 = vrot.slane %v6814_v38, 5  ;;  %v3227_v10 = vshll.u32 %v4972_v36, 16  ;;  %v3696_v15 = vshrl.u32 %v5035_v40, 16 }
 0x1b5   : > { %v1112_v59 = vpack.c.bf16 %v1096_v58, %v1096_v58  ;;  %v3942_v17 = vpop.permute.xlu1 %3941  ;;  %v2787_v31 = vor.u32 %v2786_v4, %v2783_v12  ;;  %v3699_v55 = vshll.u32 %v5035_v40, 16  ;;  %v3210_v58 = vrot.slane %v3208_v57, 4  ;;  %v4855_v40 = vld [vmem:[%s5396_s11 + $0x58] sm:$0xf] }
 0x1b6   : > { %3986 = vst.msk [vmem:[#allocation2 + $0xc] sm:$0xf] %vm896_vm9, %v3942_v17  ;;  %v3940_v45 = vpop.permute.xlu0 %3939  ;;  %v1031_v39 = vpop.f32.mrf.mxu0  ;;  %v3213_v22 = vrot.slane %v3211_v0, 5  ;;  %v6848_v17 = vrot.slane %v3705_v54, 5  ;;  %v3711_v19 = vrot.slane %v3709_v13, 4  ;;  %v3468_v12 = vrot.slane %v6826_v42, 5 }
 0x1b7   : > { %1129 = vst.msk [vmem:[%s6582_s24 + $0x1c] sm:$0xf] %vm1121_vm11, %v1112_v59  ;;  %v1062_v1 = vmul.f32 %v6516_v23, %v1031_v39  ;;  %v1954_v35 = vpop.permute.xlu2 %1953  ;;  %v2788_v63 = vrot.slane %v2787_v31, 4  ;;  %v3224_v59 = vor.u32 %v3223_v3, %v6817_v21  ;;  %v1931_v4 = vrot.slane %v1929_v50, 4  ;;  %v5005_v0 = vld [vmem:[%s5396_s11 + $0x50] sm:$0x1] }
 0x1b8   : > { %3985 = vst.msk [vmem:[#allocation2 + $0x8] sm:$0xf] %vm896_vm9, %v3940_v45  ;;  %v5037_v45 = vld [vmem:[%s5396_s11 + $0x5c] sm:$0x1]  ;;  %v3469_v8 = vsel %vm5646_vm7, %v5017_v18, %v3468_v12  ;;  %v5060_v13 = vld [vmem:[%s5396_s11 + $0x58] sm:$0xf] }
 0x1b9   : > { %v1081_v25 = vadd.f32 %v6524_v47, %v1062_v1  ;;  %1995 = vst.msk [vmem:[#allocation2 + $0x18] sm:$0xf] %vm896_vm9, %v1954_v35  ;;  %v2793_v62 = vsel %vm5407_vm2, %v2788_v63, %v6788_v27  ;;  %v4744_v27 = vld [vmem:[%s5396_s11 + $0x54] sm:$0xe]  ;;  %v3698_v1 = vrot.slane %v3696_v15, 4  ;;  %v3701_v35 = vrot.slane %v3699_v55, 5 }
 0x1ba   : > { %v4756_v31 = vrot.slane %v4744_v27, 9  ;;  %v3715_v24 = vshll.u32 %v5037_v45, 16  ;;  %v2438_v27 = vshrl.u32 %v4855_v40, 16  ;;  %v5059_v18 = vld [vmem:[%s5396_s11 + $0x54] sm:$0xe] }
 0x1bb   : > { %v1097_v43 = vmax.f32 %v1081_v25, 0.0  ;;  %2592 = vrot.lane.b32.xlu1 %v4872_v5, %s5304_s13  ;;  %v4854_v5 = vld [vmem:[%s5396_s11 + $0x54] sm:$0xf]  ;;  %v3229_v25 = vrot.slane %v3227_v10, 5  ;;  %v3702_v63 = vor.u32 %v3701_v35, %v3698_v1  ;;  %v3470_v10 = vrot.slane %v3468_v12, 4 }
 0x1bc   : > { %2494 = vrot.lane.b32.xlu0 %v2423_v52, %s5303_s12  ;;  %2492 = vrot.lane.b32.xlu2 %v2413_v51, %s5303_s12  ;;  %v3214_v52 = vor.u32 %v3213_v22, %v3210_v58  ;;  %v3225_v51 = vrot.slane %v3224_v59, 4  ;;  %v2425_v44 = vshrl.u32 %v4854_v5, 16  ;;  %v2428_v16 = vshll.u32 %v4854_v5, 16  ;;  %v4897_v5 = vld [vmem:[%s5396_s11 + $0x64] sm:$0xf] }
 0x1bd   : > { %v1113_v53 = vpack.c.bf16 %v1097_v43, %v1097_v43  ;;  %v2581_v32 = vpop.permute.xlu1 %2580  ;;  %v3712_v43 = vor.u32 %v3711_v19, %v6848_v17  ;;  %v1930_v38 = vsel %vm5646_vm7, %v4756_v31, %v1929_v50  ;;  %v3717_v57 = vrot.slane %v3715_v24, 5  ;;  %v5061_v19 = vld [vmem:[%s5396_s11 + $0x5c] sm:$0x1] }
 0x1be   : > { %2624 = vst.msk [vmem:[#allocation2 + $0x10] sm:$0xf] %vm615_vm8, %v2581_v32  ;;  %v2483_v20 = vpop.permute.xlu0 %2482  ;;  %v1033_v29 = vpop.f32.mrf.mxu0  ;;  %v1933_v32 = vsel %vm5646_vm7, %v1931_v4, %v1932_v37  ;;  %v3703_v54 = vrot.slane %v3702_v63, 4  ;;  %v3919_v45 = vrot.slane %v5061_v19, 5  ;;  %v5073_v37 = vrot.slane %v5059_v18, 9 }
 0x1bf   : > { %1130 = vst.msk [vmem:[%s6582_s24 + $0x20] sm:$0xf] %vm1121_vm11, %v1113_v53  ;;  %v1063_v28 = vmul.f32 %v6516_v23, %v1033_v29  ;;  %v5173_v11 = vld [vmem:[#allocation2 + $0x8] sm:$0xff]  ;;  %v6828_v48 = vpop.permute.xlu2 %3497  ;;  %v3713_v29 = vrot.slane %v3712_v43, 4  ;;  %v4856_v31 = vld [vmem:[%s5396_s11 + $0x5c] sm:$0x1] }
 0x1c0   : > { %2525 = vst.msk [vmem:[#allocation2 + $0x14] sm:$0xf] %vm514_vm4, %v2483_v20  ;;  %5115 = vmatmul.msk.bf16.gmra.mxu3 %vm977_vm10, %v5173_v11  ;;  %v6842_v14 = vld [vmem:[#allocation2 + $0x18] sm:$0xf]  ;;  %v3230_v20 = vsel %vm5407_vm2, %v3225_v51, %v3229_v25  ;;  %v2430_v11 = vrot.slane %v2428_v16, 5 }
 0x1c1   : > { %2625 = vst.msk [vmem:[#allocation2 + $0x14] sm:$0xf] %vm615_vm8, %v6773_v9  ;;  %v1082_v56 = vadd.f32 %v6524_v47, %v1063_v28  ;;  %v2427_v28 = vrot.slane %v2425_v44, 4  ;;  %v3718_v55 = vsel %vm5407_vm2, %v3713_v29, %v3717_v57  ;;  %v4827_v51 = vld [vmem:[%s5396_s11 + $0x34] sm:$0xf] }
 0x1c2   : > { %2246 = vst.msk [vmem:[#allocation2 + $0x18] sm:$0xf] %vm230_vm3, %v4826_v46  ;;  %v3215_v46 = vrot.slane %v3214_v52, 4  ;;  %v4973_v63 = vld [vmem:[%s5396_s11 + $0x30] sm:$0xf] }
 0x1c3   : > { %v1098_v9 = vmax.f32 %v1082_v56, 0.0  ;;  %2874 = vrot.lane.b32.xlu1 %v2803_v60, %s5305_s14  ;;  %v3471_v56 = vrot.slane %v5005_v0, 5  ;;  %v3232_v0 = vshrl.u32 %v4973_v63, 16 }
 0x1c4   : > { %2872 = vrot.lane.b32.xlu0 %v2793_v62, %s5305_s14  ;;  %2594 = vrot.lane.b32.xlu2 %v4873_v49, %s5304_s13  ;;  %v3220_v60 = vsel %vm5407_vm2, %v3215_v46, %v6817_v21  ;;  %v2431_v21 = vor.u32 %v2430_v11, %v2427_v28  ;;  %v2434_v49 = vshll.u32 %v4855_v40, 16  ;;  %v3235_v40 = vshll.u32 %v4973_v63, 16 }
 0x1c5   : > { %v1114_v39 = vpack.c.bf16 %v1098_v9, %v1098_v9  ;;  %v2863_v7 = vpop.permute.xlu1 %2862  ;;  %v3916_v9 = vrot.slane %v5060_v13, 5  ;;  %v4875_v13 = vld [vmem:[%s5396_s11 + $0x64] sm:$0xf] }
 0x1c6   : > { %2905 = vst.msk [vmem:[#allocation2 + $0x14] sm:$0xf] %vm896_vm9, %v2863_v7  ;;  %v2861_v61 = vpop.permute.xlu0 %2860  ;;  %v1036_v34 = vpop.f32.mrf.mxu0 }
 0x1c7   : > { %1131 = vst.msk [vmem:[%s6582_s24 + $0x24] sm:$0xf] %vm1121_vm11, %v1114_v39  ;;  %v1064_v41 = vmul.f32 %v6516_v23, %v1036_v34  ;;  %v6861_v33 = vpop.permute.xlu2 %3943  ;;  %v3918_v4 = vrot.slane %v3916_v9, 4  ;;  %v6912_v34 = vld [vmem:[%s7558_s2] ss:$0 sm:$0xff]  ;;  %v3917_v16 = vsel %vm5646_vm7, %v5073_v37, %v3916_v9 }
 0x1c8   : > { %2904 = vst.msk [vmem:[#allocation2 + $0x10] sm:$0xf] %vm896_vm9, %v2861_v61  ;;  %v2440_v61 = vrot.slane %v2438_v27, 4  ;;  %v4874_v9 = vld [vmem:[%s5396_s11 + $0x60] sm:$0xf] }
 0x1c9   : > { %v1083_v53 = vadd.f32 %v6524_v47, %v1064_v41  ;;  %v4896_v41 = vld [vmem:[%s5396_s11 + $0x60] sm:$0xf]  ;;  %v3920_v24 = vsel %vm5646_vm7, %v3918_v4, %v3919_v45 }
 0x1ca   : > { %v2808_v29 = vshll.u32 %v4896_v41, 16 }
 0x1cb   : > { %v1099_v36 = vmax.f32 %v1083_v53, 0.0  ;;  %3507 = vrot.lane.b32.xlu1 %v3469_v8, %s5303_s12  ;;  %v6930_v8 = vld [vmem:[%s7559_s3] ss:$0 sm:$0xff]  ;;  %v2814_v53 = vshll.u32 %v4897_v5, 16 }
 0x1cc   : > { %1967 = vrot.lane.b32.xlu0 %v1933_v32, %s5305_s14  ;;  %1965 = vrot.lane.b32.xlu2 %v1930_v38, %s5305_s14  ;;  %v2818_v32 = vshrl.u32 %v4897_v5, 16  ;;  %v5039_v5 = vld [vmem:[%s5396_s11 + $0x64] sm:$0xf] }
 0x1cd   : > { %v1115_v2 = vpack.c.bf16 %v1099_v36, %v1099_v36  ;;  %v5165_v42 = vld [vmem:[#allocation2 + $0x10] sm:$0xf0]  ;;  %v3496_v3 = vpop.permute.xlu1 %3495  ;;  %v2444_v36 = vshll.u32 %v4856_v31, 16  ;;  %v5008_v31 = vld [vmem:[%s5396_s11 + $0x5c] sm:$0x1] }
 0x1ce   : > { %3372 = vst.msk [vmem:[#allocation2 + $0x14] sm:$0xf] %vm230_vm3, %v3230_v20  ;;  %v1956_v6 = vpop.permute.xlu0 %1955  ;;  %v1038_v50 = vpop.f32.mrf.mxu0  ;;  %v2805_v20 = vshrl.u32 %v4896_v41, 16 }
 0x1cf   : > { %1132 = vst.msk [vmem:[%s6582_s24 + $0x28] sm:$0xf] %vm1121_vm11, %v1115_v2  ;;  %v4914_v62 = vld [vmem:[#allocation2 + $0x10] sm:$0xf]  ;;  %v1065_v15 = vmul.f32 %v6516_v23, %v1038_v50  ;;  %v2487_v58 = vpop.permute.xlu2 %2486  ;;  %v3708_v23 = vsel %vm5407_vm2, %v3703_v54, %v6848_v17  ;;  %v2436_v17 = vrot.slane %v2434_v49, 5 }
 0x1d0   : > { %3540 = vst.msk [vmem:[#allocation2 + $0x14] sm:$0xf] %vm514_vm4, %v6828_v48  ;;  %v4915_v22 = vor.u32 %v5165_v42, %v4914_v62  ;;  %v3472_v48 = vsel %vm5646_vm7, %v3470_v10, %v3471_v56  ;;  %v4898_v2 = vld [vmem:[%s5396_s11 + $0x68] sm:$0x1]  ;;  %v2820_v42 = vrot.slane %v2818_v32, 4  ;;  %v2807_v50 = vrot.slane %v2805_v20, 4 }
 0x1d1   : > { %3371 = vst.msk [vmem:[#allocation2 + $0x10] sm:$0xf] %vm230_vm3, %v3220_v60  ;;  %v1084_v59 = vadd.f32 %v6524_v47, %v1065_v15  ;;  %v2432_v47 = vrot.slane %v2431_v21, 4  ;;  %v2441_v38 = vor.u32 %v2440_v61, %v2436_v17  ;;  %v2810_v10 = vrot.slane %v2808_v29, 5  ;;  %v4747_v62 = vld [vmem:[%s5396_s11 + $0x60] sm:$0xe] }
 0x1d2   : > { %3539 = vst.msk [vmem:[#allocation2 + $0x10] sm:$0xf] %vm514_vm4, %v3496_v3  ;;  %4942 = vmatmul.msk.bf16.gmra.mxu2 %vm977_vm10, %v4915_v22  ;;  %v6953_v15 = vld [vmem:[%s5396_s11 + $0x64] sm:$0xf]  ;;  %v3234_v22 = vrot.slane %v3232_v0, 4  ;;  %v3237_v21 = vrot.slane %v3235_v40, 5 }
 0x1d3   : > { %1996 = vst.msk [vmem:[#allocation2 + $0x1c] sm:$0xf] %vm896_vm9, %v1956_v6  ;;  %v1100_v12 = vmax.f32 %v1084_v59, 0.0  ;;  %3789 = vrot.lane.b32.xlu1 %v3718_v55, %s5304_s13  ;;  %v2437_v43 = vsel %vm5407_vm2, %v2432_v47, %v2436_v17  ;;  %v2442_v60 = vrot.slane %v2441_v38, 4  ;;  %v2446_v6 = vrot.slane %v2444_v36, 5 }
 0x1d4   : > { %3787 = vrot.lane.b32.xlu0 %v3708_v23, %s5304_s13  ;;  %3509 = vrot.lane.b32.xlu2 %v3472_v48, %s5303_s12  ;;  %v2824_v23 = vshll.u32 %v4898_v2, 16  ;;  %v2811_v27 = vor.u32 %v2810_v10, %v2807_v50  ;;  %v4757_v18 = vrot.slane %v4747_v62, 9  ;;  %v6966_v47 = vld [vmem:[%s5396_s11 + $0x58] sm:$0xf]  ;;  %v3238_v45 = vor.u32 %v3237_v21, %v3234_v22  ;;  %v5038_v0 = vld [vmem:[%s5396_s11 + $0x60] sm:$0xf] }
 0x1d5   : > { %v1116_v39 = vpack.c.bf16 %v1100_v12, %v1100_v12  ;;  %v3778_v7 = vpop.permute.xlu1 %3777  ;;  %v2447_v19 = vsel %vm5407_vm2, %v2442_v60, %v2446_v6  ;;  %v1936_v12 = vrot.slane %v6953_v15, 5  ;;  %v3475_v41 = vrot.slane %v6966_v47, 5  ;;  %v4975_v32 = vld [vmem:[%s5396_s11 + $0x38] sm:$0x1]  ;;  %v5040_v60 = vld [vmem:[%s5396_s11 + $0x68] sm:$0x1] }
 0x1d6   : > { %3820 = vst.msk [vmem:[#allocation2 + $0x14] sm:$0xf] %vm615_vm8, %v3778_v7  ;;  %v3776_v1 = vpop.permute.xlu0 %3775  ;;  %v1041_v35 = vpop.f32.mrf.mxu0  ;;  %v3239_v38 = vrot.slane %v3238_v45, 4  ;;  %v3729_v36 = vshll.u32 %v5039_v5, 16  ;;  %v3733_v20 = vshrl.u32 %v5039_v5, 16  ;;  %v3478_v2 = vrot.slane %v5008_v31, 5 }
 0x1d7   : > { %1133 = vst.msk [vmem:[%s6582_s24 + $0x2c] sm:$0xf] %vm1121_vm11, %v1116_v39  ;;  %v1066_v25 = vmul.f32 %v6912_v34, %v1041_v35  ;;  %v6915_v52 = vpop.permute.xlu2 %2864  ;;  %v4829_v35 = vld [vmem:[%s5396_s11 + $0x40] sm:$0xf]  ;;  %v3477_v40 = vrot.slane %v3475_v41, 4 }
 0x1d8   : > { %3819 = vst.msk [vmem:[#allocation2 + $0x10] sm:$0xf] %vm615_vm8, %v3776_v1  ;;  %v2826_v1 = vrot.slane %v2824_v23, 5  ;;  %v7004_v6 = vrot.slane %v3729_v36, 5  ;;  %v3735_v50 = vrot.slane %v3733_v20, 4 }
 0x1d9   : > { %3987 = vst.msk [vmem:[#allocation2 + $0x10] sm:$0xf] %vm896_vm9, %v6861_v33  ;;  %v1085_v44 = vadd.f32 %v6930_v8, %v1066_v25  ;;  %v7021_v47 = vld [vmem:[%s5396_s11 + $0x64] sm:$0xf]  ;;  %v4828_v31 = vld [vmem:[%s5396_s11 + $0x3c] sm:$0xf] }
 0x1da   : > { %v5157_v46 = vld [vmem:[#allocation2 + $0x18] sm:$0xf0]  ;;  %v3736_v45 = vor.u32 %v3735_v50, %v7004_v6 }
 0x1db   : > { %2247 = vst.msk [vmem:[#allocation2 + $0x1c] sm:$0xf] %vm230_vm3, %v4827_v51  ;;  %v1101_v33 = vmax.f32 %v1085_v44, 0.0  ;;  %v4775_v57 = vor.u32 %v5157_v46, %v6842_v14  ;;  %2496 = vrot.lane.b32.xlu1 %v2437_v43, %s5303_s12  ;;  %v6944_v14 = vrot.slane %v2814_v53, 5  ;;  %v2812_v51 = vrot.slane %v2811_v27, 4 }
 0x1dc   : > { %3957 = vrot.lane.b32.xlu0 %v3920_v24, %s5305_s14  ;;  %2527 = vst.msk [vmem:[#allocation2 + $0x1c] sm:$0xf] %vm514_vm4, %v2487_v58  ;;  %3955 = vrot.lane.b32.xlu2 %v3917_v16, %s5305_s14  ;;  %v4974_v58 = vld [vmem:[%s5396_s11 + $0x34] sm:$0xf]  ;;  %v1937_v44 = vsel %vm5646_vm7, %v4757_v18, %v1936_v12 }
 0x1dd   : > { %v1117_v28 = vpack.c.bf16 %v1101_v33, %v1101_v33  ;;  %4799 = vmatmul.msk.bf16.gmra.mxu1 %vm977_vm10, %v4775_v57  ;;  %v2485_v11 = vpop.permute.xlu1 %2484  ;;  %v2821_v59 = vor.u32 %v2820_v42, %v6944_v14  ;;  %v3241_v17 = vshll.u32 %v4974_v58, 16  ;;  %v3245_v4 = vshrl.u32 %v4974_v58, 16  ;;  %v5006_v16 = vld [vmem:[%s5396_s11 + $0x54] sm:$0xe]  ;;  %v4857_v58 = vld [vmem:[%s5396_s11 + $0x60] sm:$0xf] }
 0x1de   : > { %2526 = vst.msk [vmem:[#allocation2 + $0x18] sm:$0xf] %vm514_vm4, %v2485_v11  ;;  %v3946_v3 = vpop.permute.xlu0 %3945  ;;  %v1043_v54 = vpop.f32.mrf.mxu0  ;;  %v3720_v11 = vshrl.u32 %v5038_v0, 16  ;;  %v3251_v42 = vshll.u32 %v4975_v32, 16  ;;  %v2452_v5 = vshll.u32 %v4857_v58, 16 }
 0x1df   : > { %1134 = vst.msk [vmem:[%s6582_s24 + $0x30] sm:$0xf] %vm1121_vm11, %v1117_v28  ;;  %v1067_v56 = vmul.f32 %v6912_v34, %v1043_v54  ;;  %v1960_v55 = vpop.permute.xlu2 %1959  ;;  %v2822_v37 = vrot.slane %v2821_v59, 4  ;;  %v3243_v63 = vrot.slane %v3241_v17, 5  ;;  %v3247_v46 = vrot.slane %v3245_v4, 4 }
 0x1e0   : > { %3988 = vst.msk [vmem:[#allocation2 + $0x14] sm:$0xf] %vm896_vm9, %v3946_v3  ;;  %v2817_v28 = vsel %vm5407_vm2, %v2812_v51, %v6944_v14  ;;  %v4749_v3 = vld [vmem:[%s5396_s11 + $0x68] sm:$0x1]  ;;  %v3723_v54 = vshll.u32 %v5038_v0, 16  ;;  %v3722_v23 = vrot.slane %v3720_v11, 4 }
 0x1e1   : > { %v1086_v49 = vadd.f32 %v6930_v8, %v1067_v56  ;;  %1998 = vst.msk [vmem:[#allocation2 + $0x24] sm:$0xf] %vm896_vm9, %v1960_v55  ;;  %v2827_v33 = vsel %vm5407_vm2, %v2822_v37, %v2826_v1  ;;  %v3248_v56 = vor.u32 %v3247_v46, %v3243_v63  ;;  %v3244_v62 = vsel %vm5407_vm2, %v3239_v38, %v3243_v63  ;;  %v4858_v55 = vld [vmem:[%s5396_s11 + $0x64] sm:$0xf]  ;;  %v4899_v0 = vld [vmem:[%s5396_s11 + $0x6c] sm:$0xf] }
 0x1e2   : > { %v1939_v59 = vrot.slane %v4749_v3, 5  ;;  %v3253_v18 = vrot.slane %v3251_v42, 5  ;;  %v3739_v17 = vshll.u32 %v5040_v60, 16  ;;  %v2829_v50 = vshrl.u32 %v4899_v0, 16 }
 0x1e3   : > { %v1102_v48 = vmax.f32 %v1086_v49, 0.0  ;;  %2598 = vrot.lane.b32.xlu1 %v4875_v13, %s5304_s13  ;;  %v5018_v13 = vrot.slane %v5006_v16, 9  ;;  %v5062_v49 = vld [vmem:[%s5396_s11 + $0x60] sm:$0xe]  ;;  %v3249_v1 = vrot.slane %v3248_v56, 4 }
 0x1e4   : > { %2596 = vrot.lane.b32.xlu0 %v4874_v9, %s5304_s13  ;;  %2498 = vrot.lane.b32.xlu2 %v2447_v19, %s5303_s12  ;;  %v1938_v9 = vrot.slane %v1936_v12, 4  ;;  %v3725_v19 = vrot.slane %v3723_v54, 5  ;;  %v4859_v16 = vld [vmem:[%s5396_s11 + $0x68] sm:$0x1] }
 0x1e5   : > { %v1118_v39 = vpack.c.bf16 %v1102_v48, %v1102_v48  ;;  %v2587_v7 = vpop.permute.xlu1 %2586  ;;  %v3479_v48 = vsel %vm5646_vm7, %v3477_v40, %v3478_v2  ;;  %v3476_v15 = vsel %vm5646_vm7, %v5018_v13, %v3475_v41  ;;  %v5074_v41 = vrot.slane %v5062_v49, 9 }
 0x1e6   : > { %2627 = vst.msk [vmem:[#allocation2 + $0x1c] sm:$0xf] %vm615_vm8, %v2587_v7  ;;  %v2585_v61 = vpop.permute.xlu0 %2584  ;;  %v1046_v25 = vpop.f32.mrf.mxu0  ;;  %v2462_v7 = vshrl.u32 %v4858_v55, 16  ;;  %v3254_v36 = vsel %vm5407_vm2, %v3249_v1, %v3253_v18  ;;  %v2468_v54 = vshll.u32 %v4859_v16, 16  ;;  %v4977_v16 = vld [vmem:[%s5396_s11 + $0x40] sm:$0xf] }
 0x1e7   : > { %1135 = vst.msk [vmem:[%s6582_s24 + $0x34] sm:$0xf] %vm1121_vm11, %v1118_v39  ;;  %v1068_v43 = vmul.f32 %v6912_v34, %v1046_v25  ;;  %v5174_v24 = vld [vmem:[#allocation2 + $0x10] sm:$0xff]  ;;  %v6983_v53 = vpop.permute.xlu2 %3779  ;;  %v2458_v39 = vshll.u32 %v4858_v55, 16  ;;  %v3726_v25 = vor.u32 %v3725_v19, %v3722_v23 }
 0x1e8   : > { %2626 = vst.msk [vmem:[#allocation2 + $0x18] sm:$0xf] %vm615_vm8, %v2585_v61  ;;  %5116 = vmatmul.msk.bf16.gmra.mxu3 %vm977_vm10, %v5174_v24  ;;  %v6993_v57 = vld [vmem:[#allocation2 + $0x20] sm:$0xf0]  ;;  %v1940_v61 = vsel %vm5646_vm7, %v1938_v9, %v1939_v59  ;;  %v3737_v24 = vrot.slane %v3736_v45, 4  ;;  %v2464_v63 = vrot.slane %v2462_v7, 4 }
 0x1e9   : > { %2906 = vst.msk [vmem:[#allocation2 + $0x18] sm:$0xf] %vm896_vm9, %v6915_v52  ;;  %v1087_v29 = vadd.f32 %v6930_v8, %v1068_v43  ;;  %v3923_v43 = vrot.slane %v7021_v47, 5  ;;  %v7038_v32 = vrot.slane %v2458_v39, 5  ;;  %v2470_v49 = vrot.slane %v2468_v54, 5 }
 0x1ea   : > { %2249 = vst.msk [vmem:[#allocation2 + $0x24] sm:$0xf] %vm230_vm3, %v4829_v35  ;;  %v2449_v35 = vshrl.u32 %v4857_v58, 16  ;;  %v2831_v9 = vrot.slane %v2829_v50, 4 }
 0x1eb   : > { %v1103_v52 = vmax.f32 %v1087_v29, 0.0  ;;  %1969 = vrot.lane.b32.xlu1 %v1937_v44, %s5305_s14  ;;  %v3741_v44 = vrot.slane %v3739_v17, 5  ;;  %v3924_v3 = vsel %vm5646_vm7, %v5074_v41, %v3923_v43  ;;  %v3925_v18 = vrot.slane %v3923_v43, 4  ;;  %v4976_v17 = vld [vmem:[%s5396_s11 + $0x3c] sm:$0xf] }
 0x1ec   : > { %2878 = vrot.lane.b32.xlu0 %v2827_v33, %s5305_s14  ;;  %2876 = vrot.lane.b32.xlu2 %v2817_v28, %s5305_s14  ;;  %v2451_v29 = vrot.slane %v2449_v35, 4  ;;  %v2454_v33 = vrot.slane %v2452_v5, 5  ;;  %v3256_v35 = vshrl.u32 %v4976_v17, 16 }
 0x1ed   : > { %v1119_v14 = vpack.c.bf16 %v1103_v52, %v1103_v52  ;;  %v1958_v10 = vpop.permute.xlu1 %1957  ;;  %v3727_v52 = vrot.slane %v3726_v25, 4  ;;  %v3742_v56 = vsel %vm5407_vm2, %v3737_v24, %v3741_v44 }
 0x1ee   : > { %1997 = vst.msk [vmem:[#allocation2 + $0x20] sm:$0xf] %vm896_vm9, %v1958_v10  ;;  %v2867_v22 = vpop.permute.xlu0 %2866  ;;  %v1048_v21 = vpop.f32.mrf.mxu0 }
 0x1ef   : > { %1136 = vst.msk [vmem:[%s6582_s24 + $0x38] sm:$0xf] %vm1121_vm11, %v1119_v14  ;;  %v1069_v27 = vmul.f32 %v6912_v34, %v1048_v21  ;;  %v7023_v4 = vpop.permute.xlu2 %3949  ;;  %v2832_v14 = vshll.u32 %v4899_v0, 16  ;;  %v3732_v55 = vsel %vm5407_vm2, %v3727_v52, %v7004_v6  ;;  %v5009_v0 = vld [vmem:[%s5396_s11 + $0x60] sm:$0xe] }
 0x1f0   : > { %2907 = vst.msk [vmem:[#allocation2 + $0x1c] sm:$0xf] %vm896_vm9, %v2867_v22  ;;  %v4918_v12 = vld [vmem:[#allocation2 + $0x18] sm:$0xf]  ;;  %v5064_v22 = vld [vmem:[%s5396_s11 + $0x68] sm:$0x1] }
 0x1f1   : > { %v1088_v37 = vadd.f32 %v6930_v8, %v1069_v27  ;;  %3373 = vst.msk [vmem:[#allocation2 + $0x18] sm:$0xf] %vm230_vm3, %v3244_v62  ;;  %v2455_v62 = vor.u32 %v2454_v33, %v2451_v29  ;;  %v2834_v59 = vrot.slane %v2832_v14, 5  ;;  %v3926_v47 = vrot.slane %v5064_v22, 5  ;;  %v4877_v33 = vld [vmem:[%s5396_s11 + $0x70] sm:$0xf] }
 0x1f2   : > { %v4876_v14 = vld [vmem:[%s5396_s11 + $0x6c] sm:$0xf] }
 0x1f3   : > { %v1104_v51 = vmax.f32 %v1088_v37, 0.0  ;;  %3513 = vrot.lane.b32.xlu1 %v3479_v48, %s5303_s12  ;;  %v2456_v27 = vrot.slane %v2455_v62, 4  ;;  %v4900_v48 = vld [vmem:[%s5396_s11 + $0x70] sm:$0xf]  ;;  %v2835_v39 = vor.u32 %v2834_v59, %v2831_v9  ;;  %v3927_v25 = vsel %vm5646_vm7, %v3925_v18, %v3926_v47  ;;  %v5043_v9 = vld [vmem:[%s5396_s11 + $0x74] sm:$0x1] }
 0x1f4   : > { %3511 = vrot.lane.b32.xlu0 %v3476_v15, %s5303_s12  ;;  %1971 = vrot.lane.b32.xlu2 %v1940_v61, %s5305_s14  ;;  %v2838_v7 = vshll.u32 %v4900_v48, 16  ;;  %v2842_v5 = vshrl.u32 %v4900_v48, 16  ;;  %v7089_v61 = vld [vmem:[%s5396_s11 + $0x64] sm:$0xf] }
 0x1f5   : > { %v4778_v46 = vld [vmem:[#allocation2 + $0x20] sm:$0xf]  ;;  %v1120_v38 = vpack.c.bf16 %v1104_v51, %v1104_v51  ;;  %v3502_v20 = vpop.permute.xlu1 %3501  ;;  %v2461_v1 = vsel %vm5407_vm2, %v2456_v27, %v7038_v32  ;;  %v3482_v44 = vrot.slane %v7089_v61, 5 }
 0x1f6   : > { %2248 = vst.msk [vmem:[#allocation2 + $0x20] sm:$0xf] %vm230_vm3, %v4828_v31  ;;  %v3500_v40 = vpop.permute.xlu0 %3499  ;;  %v2103_v28 = vpop.f32.mrf.mxu1  ;;  %v4779_v11 = vor.u32 %v6993_v57, %v4778_v46  ;;  %v2465_v57 = vor.u32 %v2464_v63, %v7038_v32  ;;  %v3259_v31 = vshll.u32 %v4976_v17, 16  ;;  %v2840_v41 = vrot.slane %v2838_v7, 5 }
 0x1f7   : > { %1137 = vst.msk [vmem:[%s6582_s24 + $0x3c] sm:$0xf] %vm1121_vm11, %v1120_v38  ;;  %v5166_v2 = vld [vmem:[#allocation2 + $0x18] sm:$0xf0]  ;;  %v2143_v42 = vmul.f32 %v6912_v34, %v2103_v28  ;;  %v7051_v13 = vpop.permute.xlu2 %2588  ;;  %v3258_v32 = vrot.slane %v3256_v35, 4 }
 0x1f8   : > { %3374 = vst.msk [vmem:[#allocation2 + $0x1c] sm:$0xf] %vm230_vm3, %v3254_v36  ;;  %4800 = vmatmul.msk.bf16.gmra.mxu1 %vm977_vm10, %v4779_v11  ;;  %v4919_v60 = vor.u32 %v5166_v2, %v4918_v12  ;;  %v2466_v21 = vrot.slane %v2465_v57, 4  ;;  %v3261_v38 = vrot.slane %v3259_v31, 5  ;;  %v5042_v36 = vld [vmem:[%s5396_s11 + $0x70] sm:$0xf] }
 0x1f9   : > { %3542 = vst.msk [vmem:[#allocation2 + $0x1c] sm:$0xf] %vm514_vm4, %v3502_v20  ;;  %v2159_v10 = vadd.f32 %v6930_v8, %v2143_v42  ;;  %v2844_v20 = vrot.slane %v2842_v5, 4  ;;  %v4901_v28 = vld [vmem:[%s5396_s11 + $0x74] sm:$0x1]  ;;  %v3753_v57 = vshll.u32 %v5042_v36, 16 }
 0x1fa   : > { %3541 = vst.msk [vmem:[#allocation2 + $0x18] sm:$0xf] %vm514_vm4, %v3500_v40  ;;  %4943 = vmatmul.msk.bf16.gmra.mxu2 %vm977_vm10, %v4919_v60  ;;  %v2471_v45 = vsel %vm5407_vm2, %v2466_v21, %v2470_v49  ;;  %v5041_v11 = vld [vmem:[%s5396_s11 + $0x6c] sm:$0xf]  ;;  %v5011_v42 = vld [vmem:[%s5396_s11 + $0x68] sm:$0x1]  ;;  %v3262_v22 = vor.u32 %v3261_v38, %v3258_v32 }
 0x1fb   : > { %3821 = vst.msk [vmem:[#allocation2 + $0x18] sm:$0xf] %vm615_vm8, %v6983_v53  ;;  %v2175_v58 = vmax.f32 %v2159_v10, 0.0  ;;  %3959 = vrot.lane.b32.xlu1 %v3924_v3, %s5305_s14  ;;  %v3269_v3 = vshrl.u32 %v4977_v16, 16  ;;  %v3265_v60 = vshll.u32 %v4977_v16, 16  ;;  %v3757_v50 = vshrl.u32 %v5042_v36, 16 }
 0x1fc   : > { %3793 = vrot.lane.b32.xlu0 %v3742_v56, %s5304_s13  ;;  %3791 = vrot.lane.b32.xlu2 %v3732_v55, %s5304_s13  ;;  %v2845_v10 = vor.u32 %v2844_v20, %v2840_v41  ;;  %v2848_v56 = vshll.u32 %v4901_v28, 16  ;;  %v3744_v62 = vshrl.u32 %v5041_v11, 16  ;;  %v3747_v55 = vshll.u32 %v5041_v11, 16 }
 0x1fd   : > { %v2191_v23 = vpack.c.bf16 %v2175_v58, %v2175_v58  ;;  %v3948_v19 = vpop.permute.xlu1 %3947  ;;  %v3484_v21 = vrot.slane %v3482_v44, 4  ;;  %v3485_v49 = vrot.slane %v5011_v42, 5  ;;  %v3271_v59 = vrot.slane %v3269_v3, 4 }
 0x1fe   : > { %3989 = vst.msk [vmem:[#allocation2 + $0x18] sm:$0xf] %vm896_vm9, %v3948_v19  ;;  %v3782_v53 = vpop.permute.xlu0 %3781  ;;  %v2105_v6 = vpop.f32.mrf.mxu1  ;;  %v3267_v27 = vrot.slane %v3265_v60, 5  ;;  %v7123_v48 = vrot.slane %v3753_v57, 5  ;;  %v2846_v17 = vrot.slane %v2845_v10, 4  ;;  %v3763_v5 = vshll.u32 %v5043_v9, 16 }
 0x1ff   : > { %4804 = vst.msk [vmem:[%s6582_s24 + $0x40] sm:$0xf] %vm1121_vm11, %v2191_v23  ;;  %v2144_v15 = vmul.f32 %v6912_v34, %v2105_v6  ;;  %v7077_v12 = vpop.permute.xlu2 %2870  ;;  %v4978_v6 = vld [vmem:[%s5396_s11 + $0x44] sm:$0x1]  ;;  %v3486_v35 = vsel %vm5646_vm7, %v3484_v21, %v3485_v49 }
 0x200   : > { %3822 = vst.msk [vmem:[#allocation2 + $0x1c] sm:$0xf] %vm615_vm8, %v3782_v53  ;;  %v3759_v53 = vrot.slane %v3757_v50, 4  ;;  %v3275_v31 = vshll.u32 %v4978_v6, 16  ;;  %v3765_v28 = vrot.slane %v3763_v5, 5 }
 0x201   : > { %3990 = vst.msk [vmem:[#allocation2 + $0x1c] sm:$0xf] %vm896_vm9, %v7023_v4  ;;  %v2160_v37 = vadd.f32 %v6930_v8, %v2144_v15  ;;  %v2836_v4 = vrot.slane %v2835_v39, 4  ;;  %v2850_v15 = vrot.slane %v2848_v56, 5  ;;  %v3749_v39 = vrot.slane %v3747_v55, 5 }
 0x202   : > { %v3277_v38 = vrot.slane %v3275_v31, 5  ;;  %v5067_v56 = vld [vmem:[%s5396_s11 + $0x74] sm:$0x1] }
 0x203   : > { %v2176_v51 = vmax.f32 %v2160_v37, 0.0  ;;  %2502 = vrot.lane.b32.xlu1 %v2471_v45, %s5303_s12  ;;  %v2841_v2 = vsel %vm5407_vm2, %v2836_v4, %v2840_v41  ;;  %v3746_v45 = vrot.slane %v3744_v62, 4  ;;  %v3263_v37 = vrot.slane %v3262_v22, 4  ;;  %v4831_v22 = vld [vmem:[%s5396_s11 + $0x4c] sm:$0xf] }
 0x204   : > { %2500 = vrot.lane.b32.xlu0 %v2461_v1, %s5303_s12  ;;  %3961 = vrot.lane.b32.xlu2 %v3927_v25, %s5305_s14  ;;  %v3272_v25 = vor.u32 %v3271_v59, %v3267_v27  ;;  %v3760_v41 = vor.u32 %v3759_v53, %v7123_v48  ;;  %v2851_v16 = vsel %vm5407_vm2, %v2846_v17, %v2850_v15  ;;  %v3933_v9 = vrot.slane %v5067_v56, 5  ;;  %v4830_v59 = vld [vmem:[%s5396_s11 + $0x48] sm:$0xf] }
 0x205   : > { %v2192_v43 = vpack.c.bf16 %v2176_v51, %v2176_v51  ;;  %v2491_v24 = vpop.permute.xlu1 %2490  ;;  %v3750_v32 = vor.u32 %v3749_v39, %v3746_v45 }
 0x206   : > { %2529 = vst.msk [vmem:[#allocation2 + $0x24] sm:$0xf] %vm514_vm4, %v2491_v24  ;;  %v2489_v63 = vpop.permute.xlu0 %2488  ;;  %v2108_v46 = vpop.f32.mrf.mxu1  ;;  %v5066_v24 = vld [vmem:[%s5396_s11 + $0x70] sm:$0xf] }
 0x207   : > { %4805 = vst.msk [vmem:[%s6582_s24 + $0x44] sm:$0xf] %vm1121_vm11, %v2192_v43  ;;  %v2145_v29 = vmul.f32 %v6912_v34, %v2108_v46  ;;  %v7105_v40 = vpop.permute.xlu2 %3503  ;;  %v5065_v43 = vld [vmem:[%s5396_s11 + $0x6c] sm:$0xe]  ;;  %v3930_v46 = vrot.slane %v5066_v24, 5 }
 0x208   : > { %2528 = vst.msk [vmem:[#allocation2 + $0x20] sm:$0xf] %vm514_vm4, %v2489_v63  ;;  %v5175_v52 = vld [vmem:[#allocation2 + $0x18] sm:$0xff]  ;;  %v5075_v61 = vrot.slane %v5065_v43, 9 }
 0x209   : > { %2628 = vst.msk [vmem:[#allocation2 + $0x20] sm:$0xf] %vm615_vm8, %v7051_v13  ;;  %v2161_v54 = vadd.f32 %v6930_v8, %v2145_v29  ;;  %5117 = vmatmul.msk.bf16.gmra.mxu3 %vm977_vm10, %v5175_v52  ;;  %v5019_v13 = vrot.slane %v5009_v0, 9  ;;  %v3761_v0 = vrot.slane %v3760_v41, 4  ;;  %v3932_v49 = vrot.slane %v3930_v46, 4 }
 0x20a   : > { %v3931_v60 = vsel %vm5646_vm7, %v5075_v61, %v3930_v46 }
 0x20b   : > { %v2177_v58 = vmax.f32 %v2161_v54, 0.0  ;;  %2880 = vrot.lane.b32.xlu1 %v2841_v2, %s5305_s14  ;;  %v3483_v4 = vsel %vm5646_vm7, %v5019_v13, %v3482_v44  ;;  %v3273_v44 = vrot.slane %v3272_v25, 4  ;;  %v3751_v2 = vrot.slane %v3750_v32, 4  ;;  %v4979_v25 = vld [vmem:[%s5396_s11 + $0x48] sm:$0xf] }
 0x20c   : > { %2602 = vrot.lane.b32.xlu0 %v4877_v33, %s5304_s13  ;;  %2600 = vrot.lane.b32.xlu2 %v4876_v14, %s5304_s13  ;;  %v3766_v14 = vsel %vm5407_vm2, %v3761_v0, %v3765_v28  ;;  %v4832_v32 = vld [vmem:[%s5396_s11 + $0x54] sm:$0xf]  ;;  %v3280_v46 = vshrl.u32 %v4979_v25, 16  ;;  %v4981_v28 = vld [vmem:[%s5396_s11 + $0x50] sm:$0x1] }
 0x20d   : > { %v2193_v23 = vpack.c.bf16 %v2177_v58, %v2177_v58  ;;  %v2869_v19 = vpop.permute.xlu1 %2868  ;;  %v3278_v57 = vsel %vm5407_vm2, %v3273_v44, %v3277_v38  ;;  %v3283_v44 = vshll.u32 %v4979_v25, 16 }
 0x20e   : > { %2908 = vst.msk [vmem:[#allocation2 + $0x20] sm:$0xf] %vm896_vm9, %v2869_v19  ;;  %v2591_v18 = vpop.permute.xlu0 %2590  ;;  %v2110_v47 = vpop.f32.mrf.mxu1 }
 0x20f   : > { %4806 = vst.msk [vmem:[%s6582_s24 + $0x48] sm:$0xf] %vm1121_vm11, %v2193_v23  ;;  %v2146_v7 = vmul.f32 %v6912_v34, %v2110_v47  ;;  %v7131_v1 = vpop.permute.xlu2 %3785 }
 0x210   : > { %2629 = vst.msk [vmem:[#allocation2 + $0x24] sm:$0xf] %vm615_vm8, %v2591_v18  ;;  %v3934_v18 = vsel %vm5646_vm7, %v3932_v49, %v3933_v9 }
 0x211   : > { %2909 = vst.msk [vmem:[#allocation2 + $0x24] sm:$0xf] %vm896_vm9, %v7077_v12  ;;  %v2162_v51 = vadd.f32 %v6930_v8, %v2146_v7  ;;  %v3268_v12 = vsel %vm5407_vm2, %v3263_v37, %v3267_v27 }
 0x213   : > { %v2178_v63 = vmax.f32 %v2162_v51, 0.0  ;;  %3517 = vrot.lane.b32.xlu1 %v3486_v35, %s5303_s12 }
 0x214   : > { %3515 = vrot.lane.b32.xlu0 %v3483_v4, %s5303_s12  ;;  %2882 = vrot.lane.b32.xlu2 %v2851_v16, %s5305_s14 }
 0x215   : > { %v2194_v36 = vpack.c.bf16 %v2178_v63, %v2178_v63  ;;  %v3014_v20 = vpop.f32.mrf.mxu2  ;;  %v4922_v29 = vld [vmem:[#allocation2 + $0x20] sm:$0xf]  ;;  %v1964_v33 = vpop.permute.xlu1 %1963 }
 0x216   : > { %v3054_v11 = vmul.f32 %v6912_v34, %v3014_v20  ;;  %3375 = vst.msk [vmem:[#allocation2 + $0x20] sm:$0xf] %vm230_vm3, %v3268_v12  ;;  %v1962_v52 = vpop.permute.xlu0 %1961 }
 0x217   : > { %4807 = vst.msk [vmem:[%s6582_s24 + $0x4c] sm:$0xf] %vm1121_vm11, %v2194_v36  ;;  %v2493_v42 = vpop.permute.xlu2 %2492 }
 0x218   : > { %v3070_v3 = vadd.f32 %v6930_v8, %v3054_v11  ;;  %3543 = vst.msk [vmem:[#allocation2 + $0x20] sm:$0xf] %vm514_vm4, %v7105_v40  ;;  %v5167_v54 = vld [vmem:[#allocation2 + $0x20] sm:$0xf0]  ;;  %v3756_v40 = vsel %vm5407_vm2, %v3751_v2, %v7123_v48  ;;  %v3285_v2 = vrot.slane %v3283_v44, 5 }
 0x219   : > { %2000 = vst.msk [vmem:[#allocation2 + $0x2c] sm:$0xf] %vm896_vm9, %v1964_v33  ;;  %v4923_v50 = vor.u32 %v5167_v54, %v4922_v29 }
 0x21a   : > { %v3086_v10 = vmax.f32 %v3070_v3, 0.0  ;;  %1999 = vst.msk [vmem:[#allocation2 + $0x28] sm:$0xf] %vm896_vm9, %v1962_v52  ;;  %v3282_v52 = vrot.slane %v3280_v46, 4 }
 0x21b   : > { %4944 = vmatmul.msk.bf16.gmra.mxu2 %vm977_vm10, %v4923_v50  ;;  %3963 = vrot.lane.b32.xlu1 %v3931_v60, %s5305_s14  ;;  %3376 = vst.msk [vmem:[#allocation2 + $0x24] sm:$0xf] %vm230_vm3, %v3278_v57  ;;  %v3299_v57 = vshll.u32 %v4981_v28, 16 }
 0x21c   : > { %v3102_v62 = vpack.c.bf16 %v3086_v10, %v3086_v10  ;;  %3797 = vrot.lane.b32.xlu0 %v3766_v14, %s5304_s13  ;;  %3795 = vrot.lane.b32.xlu2 %v3756_v40, %s5304_s13  ;;  %v3286_v56 = vor.u32 %v3285_v2, %v3282_v52 }
 0x21d   : > { %v3016_v55 = vpop.f32.mrf.mxu2  ;;  %v3784_v58 = vpop.permute.xlu1 %3783 }
 0x21e   : > { %4948 = vst.msk [vmem:[%s6582_s24 + $0x80] sm:$0xf] %vm1121_vm11, %v3102_v62  ;;  %v3055_v13 = vmul.f32 %v6912_v34, %v3016_v55  ;;  %v3506_v21 = vpop.permute.xlu0 %3505  ;;  %v3287_v9 = vrot.slane %v3286_v56, 4 }
 0x21f   : > { %3823 = vst.msk [vmem:[#allocation2 + $0x20] sm:$0xf] %vm615_vm8, %v3784_v58  ;;  %v2595_v23 = vpop.permute.xlu2 %2594 }
 0x220   : > { %v5159_v19 = vld [vmem:[#allocation2 + $0x28] sm:$0xf0]  ;;  %v3071_v27 = vadd.f32 %v6930_v8, %v3055_v13  ;;  %3544 = vst.msk [vmem:[#allocation2 + $0x24] sm:$0xf] %vm514_vm4, %v3506_v21  ;;  %v3301_v13 = vrot.slane %v3299_v57, 5 }
 0x221   : > { %2251 = vst.msk [vmem:[#allocation2 + $0x2c] sm:$0xf] %vm230_vm3, %v4831_v22  ;;  %v4782_v48 = vld [vmem:[#allocation2 + $0x28] sm:$0xf] }
 0x222   : > { %2250 = vst.msk [vmem:[#allocation2 + $0x28] sm:$0xf] %vm230_vm3, %v4830_v59  ;;  %v3087_v53 = vmax.f32 %v3071_v27, 0.0  ;;  %v4783_v6 = vor.u32 %v5159_v19, %v4782_v48 }
 0x223   : > { %3824 = vst.msk [vmem:[#allocation2 + $0x24] sm:$0xf] %vm615_vm8, %v7131_v1  ;;  %v4097_v17 = vpop.f32.mrf.mxu3  ;;  %v4980_v1 = vld [vmem:[%s5396_s11 + $0x4c] sm:$0xf] }
 0x224   : > { %v3103_v47 = vpack.c.bf16 %v3087_v53, %v3087_v53  ;;  %4801 = vmatmul.msk.bf16.gmra.mxu1 %vm977_vm10, %v4783_v6  ;;  %2530 = vst.msk [vmem:[#allocation2 + $0x28] sm:$0xf] %vm514_vm4, %v2493_v42  ;;  %v4137_v15 = vmul.f32 %v6912_v34, %v4097_v17  ;;  %3965 = vrot.lane.b32.xlu2 %v3934_v18, %s5305_s14  ;;  %v3289_v41 = vshll.u32 %v4980_v1, 16  ;;  %v3293_v43 = vshrl.u32 %v4980_v1, 16 }
 0x225   : > { %v3954_v45 = vpop.permute.xlu1 %3953 }
 0x226   : > { %4949 = vst.msk [vmem:[%s6582_s24 + $0x84] sm:$0xf] %vm1121_vm11, %v3103_v47  ;;  %v3952_v30 = vpop.permute.xlu0 %3951  ;;  %v4153_v39 = vadd.f32 %v6930_v8, %v4137_v15  ;;  %v3291_v29 = vrot.slane %v3289_v41, 5  ;;  %v3295_v33 = vrot.slane %v3293_v43, 4 }
 0x227   : > { %3992 = vst.msk [vmem:[#allocation2 + $0x24] sm:$0xf] %vm896_vm9, %v3954_v45  ;;  %v1966_v7 = vpop.permute.xlu2 %1965 }
 0x228   : > { %3991 = vst.msk [vmem:[#allocation2 + $0x20] sm:$0xf] %vm896_vm9, %v3952_v30  ;;  %v4169_v37 = vmax.f32 %v4153_v39, 0.0  ;;  %v3296_v60 = vor.u32 %v3295_v33, %v3291_v29  ;;  %v3292_v47 = vsel %vm5407_vm2, %v3287_v9, %v3291_v29  ;;  %v4983_v29 = vld [vmem:[%s5396_s11 + $0x58] sm:$0xf] }
 0x229   : > { %2001 = vst.msk [vmem:[#allocation2 + $0x30] sm:$0xf] %vm896_vm9, %v1966_v7  ;;  %v3313_v2 = vshll.u32 %v4983_v29, 16 }
 0x22a   : > { %v4185_v35 = vpack.c.bf16 %v4169_v37, %v4169_v37  ;;  %v3297_v22 = vrot.slane %v3296_v60, 4  ;;  %v4835_v60 = vld [vmem:[%s5396_s11 + $0x64] sm:$0xf] }
 0x22b   : > { %v4099_v5 = vpop.f32.mrf.mxu3 }
 0x22c   : > { %5122 = vst.msk [vmem:[%s6582_s24 + $0xc0] sm:$0xf] %vm1121_vm11, %v4185_v35  ;;  %v4138_v31 = vmul.f32 %v6912_v34, %v4099_v5  ;;  %v3302_v27 = vsel %vm5407_vm2, %v3297_v22, %v3301_v13  ;;  %v7279_v22 = vld [vmem:[%s7558_s2] ss:$0 sm:$0xff] }
 0x22d   : > { %v2593_v51 = vpop.permute.xlu1 %2592  ;;  %v2113_v4 = vpop.f32.mrf.mxu1 }
 0x22e   : > { %2630 = vst.msk [vmem:[#allocation2 + $0x28] sm:$0xf] %vm615_vm8, %v2593_v51  ;;  %v2495_v24 = vpop.permute.xlu0 %2494  ;;  %v2147_v16 = vmul.f32 %v6912_v34, %v2113_v4  ;;  %v4154_v63 = vadd.f32 %v6930_v8, %v4138_v31  ;;  %v4833_v51 = vld [vmem:[%s5396_s11 + $0x58] sm:$0xf] }
 0x22f   : > { %2531 = vst.msk [vmem:[#allocation2 + $0x2c] sm:$0xf] %vm514_vm4, %v2495_v24  ;;  %v5176_v12 = vld [vmem:[#allocation2 + $0x20] sm:$0xff]  ;;  %v3510_v61 = vpop.permute.xlu2 %3509  ;;  %v4982_v24 = vld [vmem:[%s5396_s11 + $0x54] sm:$0xf] }
 0x230   : > { %2631 = vst.msk [vmem:[#allocation2 + $0x2c] sm:$0xf] %vm615_vm8, %v2595_v23  ;;  %v2163_v38 = vadd.f32 %v6930_v8, %v2147_v16  ;;  %v7213_v36 = vld [vmem:[#allocation2 + $0x30] sm:$0xf]  ;;  %v4170_v20 = vmax.f32 %v4154_v63, 0.0  ;;  %5118 = vmatmul.msk.bf16.gmra.mxu3 %vm977_vm10, %v5176_v12  ;;  %v3304_v46 = vshrl.u32 %v4982_v24, 16 }
 0x231   : > { %2252 = vst.msk [vmem:[#allocation2 + $0x30] sm:$0xf] %vm230_vm3, %v4832_v32  ;;  %v3307_v44 = vshll.u32 %v4982_v24, 16 }
 0x232   : > { %v2179_v0 = vmax.f32 %v2163_v38, 0.0  ;;  %v4186_v11 = vpack.c.bf16 %v4170_v20, %v4170_v20  ;;  %v3306_v33 = vrot.slane %v3304_v46, 4 }
 0x234   : > { %v2195_v42 = vpack.c.bf16 %v2179_v0, %v2179_v0  ;;  %5123 = vst.msk [vmem:[%s6582_s24 + $0xc4] sm:$0xf] %vm1121_vm11, %v4186_v11  ;;  %v3309_v0 = vrot.slane %v3307_v44, 5 }
 0x235   : > { %v3019_v3 = vpop.f32.mrf.mxu2  ;;  %v2875_v54 = vpop.permute.xlu1 %2874 }
 0x236   : > { %4808 = vst.msk [vmem:[%s6582_s24 + $0x50] sm:$0xf] %vm1121_vm11, %v2195_v42  ;;  %v3056_v50 = vmul.f32 %v6912_v34, %v3019_v3  ;;  %v2873_v14 = vpop.permute.xlu0 %2872  ;;  %v2115_v10 = vpop.f32.mrf.mxu1  ;;  %v3317_v42 = vshrl.u32 %v4983_v29, 16  ;;  %v3310_v57 = vor.u32 %v3309_v0, %v3306_v33  ;;  %v4985_v29 = vld [vmem:[%s5396_s11 + $0x60] sm:$0xf] }
 0x237   : > { %2911 = vst.msk [vmem:[#allocation2 + $0x2c] sm:$0xf] %vm896_vm9, %v2875_v54  ;;  %v2148_v40 = vmul.f32 %v6912_v34, %v2115_v10  ;;  %v3956_v62 = vpop.permute.xlu2 %3955 }
 0x238   : > { %v3072_v55 = vadd.f32 %v6930_v8, %v3056_v50  ;;  %2910 = vst.msk [vmem:[#allocation2 + $0x28] sm:$0xf] %vm896_vm9, %v2873_v14 }
 0x239   : > { %v2164_v58 = vadd.f32 %v6930_v8, %v2148_v40  ;;  %v3315_v40 = vrot.slane %v3313_v2, 5  ;;  %v4986_v2 = vld [vmem:[%s5396_s11 + $0x64] sm:$0xf] }
 0x23a   : > { %v3088_v21 = vmax.f32 %v3072_v55, 0.0  ;;  %v4984_v55 = vld [vmem:[%s5396_s11 + $0x5c] sm:$0x1] }
 0x23b   : > { %v2180_v49 = vmax.f32 %v2164_v58, 0.0  ;;  %v3311_v58 = vrot.slane %v3310_v57, 4 }
 0x23c   : > { %v3104_v59 = vpack.c.bf16 %v3088_v21, %v3088_v21 }
 0x23d   : > { %v2196_v23 = vpack.c.bf16 %v2180_v49, %v2180_v49  ;;  %v3021_v19 = vpop.f32.mrf.mxu2  ;;  %v3508_v48 = vpop.permute.xlu1 %3507  ;;  %v7285_v49 = vld [vmem:[%s7559_s3] ss:$0 sm:$0xff] }
 0x23e   : > { %4950 = vst.msk [vmem:[%s6582_s24 + $0x88] sm:$0xf] %vm1121_vm11, %v3104_v59  ;;  %v3057_v53 = vmul.f32 %v6912_v34, %v3021_v19  ;;  %v5168_v6 = vld [vmem:[#allocation2 + $0x28] sm:$0xf0]  ;;  %v1968_v18 = vpop.permute.xlu0 %1967 }
 0x23f   : > { %4809 = vst.msk [vmem:[%s6582_s24 + $0x54] sm:$0xf] %vm1121_vm11, %v2196_v23  ;;  %v4926_v17 = vld [vmem:[#allocation2 + $0x28] sm:$0xf]  ;;  %v2499_v15 = vpop.permute.xlu2 %2498 }
 0x240   : > { %v3073_v45 = vadd.f32 %v6930_v8, %v3057_v53  ;;  %3378 = vst.msk [vmem:[#allocation2 + $0x2c] sm:$0xf] %vm230_vm3, %v3302_v27  ;;  %v4927_v30 = vor.u32 %v5168_v6, %v4926_v17  ;;  %v3323_v27 = vshll.u32 %v4984_v55, 16  ;;  %v3316_v6 = vsel %vm5407_vm2, %v3311_v58, %v3315_v40 }
 0x241   : > { %3546 = vst.msk [vmem:[#allocation2 + $0x2c] sm:$0xf] %vm514_vm4, %v3510_v61 }
 0x242   : > { %v3089_v39 = vmax.f32 %v3073_v45, 0.0  ;;  %3377 = vst.msk [vmem:[#allocation2 + $0x28] sm:$0xf] %vm230_vm3, %v3292_v47  ;;  %4945 = vmatmul.msk.bf16.gmra.mxu2 %vm977_vm10, %v4927_v30  ;;  %v3325_v30 = vrot.slane %v3323_v27, 5  ;;  %v4987_v27 = vld [vmem:[%s5396_s11 + $0x68] sm:$0x1] }
 0x243   : > { %3545 = vst.msk [vmem:[#allocation2 + $0x28] sm:$0xf] %vm514_vm4, %v3508_v48  ;;  %v4102_v37 = vpop.f32.mrf.mxu3 }
 0x244   : > { %v3105_v7 = vpack.c.bf16 %v3089_v39, %v3089_v39  ;;  %2002 = vst.msk [vmem:[#allocation2 + $0x34] sm:$0xf] %vm896_vm9, %v1968_v18  ;;  %v4139_v1 = vmul.f32 %v6912_v34, %v4102_v37 }
 0x245   : > { %v3790_v35 = vpop.permute.xlu1 %3789 }
 0x246   : > { %4951 = vst.msk [vmem:[%s6582_s24 + $0x8c] sm:$0xf] %vm1121_vm11, %v3105_v7  ;;  %v3788_v5 = vpop.permute.xlu0 %3787  ;;  %v4155_v25 = vadd.f32 %v6930_v8, %v4139_v1 }
 0x247   : > { %3826 = vst.msk [vmem:[#allocation2 + $0x2c] sm:$0xf] %vm615_vm8, %v3790_v35  ;;  %v2877_v31 = vpop.permute.xlu2 %2876  ;;  %v4834_v35 = vld [vmem:[%s5396_s11 + $0x60] sm:$0xf]  ;;  %s5139_s11 = sshll.u32 (%p5377_p5), %s5285_s17, 4 }
 0x248   : > { %3825 = vst.msk [vmem:[#allocation2 + $0x28] sm:$0xf] %vm615_vm8, %v3788_v5  ;;  %v4171_v4 = vmax.f32 %v4155_v25, 0.0  ;;  %s4227_s9 = sadd.s32 (%p5377_p5), %s5140_s8, %s5139_s11 }
 0x249   : > { %3993 = vst.msk [vmem:[#allocation2 + $0x28] sm:$0xf] %vm896_vm9, %v3956_v62  ;;  %s5141_s10 = sshll.u32 (%p5377_p5), %s4227_s9, 2 }
 0x24a   : > { %v4187_v43 = vpack.c.bf16 %v4171_v4, %v4171_v4  ;;  %s7471_s25 = scalar_lea.vmem (%p5377_p5), %s7560_s4, %s5141_s10 }
 0x24b   : > { %v5160_v41 = vld [vmem:[#allocation2 + $0x30] sm:$0xf0]  ;;  %v4104_v32 = vpop.f32.mrf.mxu3 }
 0x24c   : > { %2253 = vst.msk [vmem:[#allocation2 + $0x34] sm:$0xf] %vm230_vm3, %v4833_v51  ;;  %v4787_v16 = vor.u32 %v5160_v41, %v7213_v36  ;;  %v4140_v63 = vmul.f32 %v6912_v34, %v4104_v32 }
 0x24d   : > { %5124 = vst.msk [vmem:[%s6582_s24 + $0xc8] sm:$0xf] %vm1121_vm11, %v4187_v43  ;;  %v2497_v12 = vpop.permute.xlu1 %2496 }
 0x24e   : > { %4802 = vmatmul.msk.bf16.gmra.mxu1 %vm977_vm10, %v4787_v16  ;;  %2533 = vst.msk [vmem:[#allocation2 + $0x34] sm:$0xf] %vm514_vm4, %v2499_v15  ;;  %v3958_v61 = vpop.permute.xlu0 %3957  ;;  %v4156_v38 = vadd.f32 %v6930_v8, %v4140_v63 }
 0x24f   : > { %2532 = vst.msk [vmem:[#allocation2 + $0x30] sm:$0xf] %vm514_vm4, %v2497_v12  ;;  %v1972_v36 = vpop.permute.xlu2 %1971 }
 0x250   : > { %3994 = vst.msk [vmem:[#allocation2 + $0x2c] sm:$0xf] %vm896_vm9, %v3958_v61  ;;  %v4172_v20 = vmax.f32 %v4156_v38, 0.0 }
 0x251   : > { %2004 = vst.msk [vmem:[#allocation2 + $0x3c] sm:$0xf] %vm896_vm9, %v1972_v36 }
 0x252   : > { %v4188_v28 = vpack.c.bf16 %v4172_v20, %v4172_v20 }
 0x254   : > { %5125 = vst.msk [vmem:[%s6582_s24 + $0xcc] sm:$0xf] %vm1121_vm11, %v4188_v28 }
 0x255   : > { %v3024_v11 = vpop.f32.mrf.mxu2  ;;  %v2599_v52 = vpop.permute.xlu1 %2598 }
 0x256   : > { %v3058_v3 = vmul.f32 %v6912_v34, %v3024_v11  ;;  %2633 = vst.msk [vmem:[#allocation2 + $0x34] sm:$0xf] %vm615_vm8, %v2599_v52  ;;  %v2597_v54 = vpop.permute.xlu0 %2596  ;;  %v3319_v34 = vrot.slane %v3317_v42, 4  ;;  %v3328_v42 = vshrl.u32 %v4985_v29, 16 }
 0x257   : > { %2632 = vst.msk [vmem:[#allocation2 + $0x30] sm:$0xf] %vm615_vm8, %v2597_v54  ;;  %v5177_v50 = vld [vmem:[#allocation2 + $0x28] sm:$0xff]  ;;  %v3792_v13 = vpop.permute.xlu2 %3791 }
 0x258   : > { %v3074_v14 = vadd.f32 %v6930_v8, %v3058_v3  ;;  %2912 = vst.msk [vmem:[#allocation2 + $0x30] sm:$0xf] %vm896_vm9, %v2877_v31  ;;  %v5161_v10 = vld [vmem:[#allocation2 + $0x38] sm:$0xf0]  ;;  %5119 = vmatmul.msk.bf16.gmra.mxu3 %vm977_vm10, %v5177_v50  ;;  %v3320_v19 = vor.u32 %v3319_v34, %v3315_v40  ;;  %v3331_v3 = vshll.u32 %v4985_v29, 16  ;;  %v3341_v40 = vshrl.u32 %v4986_v2, 16 }
 0x259   : > { %2255 = vst.msk [vmem:[#allocation2 + $0x3c] sm:$0xf] %vm230_vm3, %v4835_v60 }
 0x25a   : > { %v3090_v56 = vmax.f32 %v3074_v14, 0.0  ;;  %v2118_v62 = vpop.f32.mrf.mxu1  ;;  %v3321_v45 = vrot.slane %v3320_v19, 4  ;;  %v3333_v55 = vrot.slane %v3331_v3, 5 }
 0x25b   : > { %v2149_v8 = vmul.f32 %v7279_v22, %v2118_v62  ;;  %v3330_v62 = vrot.slane %v3328_v42, 4 }
 0x25c   : > { %v3106_v21 = vpack.c.bf16 %v3090_v56, %v3090_v56  ;;  %v3326_v25 = vsel %vm5407_vm2, %v3321_v45, %v3325_v30 }
 0x25d   : > { %v2165_v9 = vadd.f32 %v7285_v49, %v2149_v8  ;;  %v3026_v59 = vpop.f32.mrf.mxu2  ;;  %v1970_v23 = vpop.permute.xlu1 %1969  ;;  %v3334_v19 = vor.u32 %v3333_v55, %v3330_v62 }
 0x25e   : > { %4952 = vst.msk [vmem:[%s6582_s24 + $0x90] sm:$0xf] %vm1121_vm11, %v3106_v21  ;;  %v3059_v48 = vmul.f32 %v7279_v22, %v3026_v59  ;;  %v2879_v53 = vpop.permute.xlu0 %2878 }
 0x25f   : > { %v2181_v18 = vmax.f32 %v2165_v9, 0.0  ;;  %2003 = vst.msk [vmem:[#allocation2 + $0x38] sm:$0xf] %vm896_vm9, %v1970_v23  ;;  %v4930_v17 = vld [vmem:[#allocation2 + $0x30] sm:$0xf]  ;;  %v3962_v51 = vpop.permute.xlu2 %3961  ;;  %v3343_v9 = vrot.slane %v3341_v40, 4 }
 0x260   : > { %v3075_v47 = vadd.f32 %v7285_v49, %v3059_v48  ;;  %2913 = vst.msk [vmem:[#allocation2 + $0x34] sm:$0xf] %vm896_vm9, %v2879_v53  ;;  %v3335_v30 = vrot.slane %v3334_v19, 4 }
 0x261   : > { %v2197_v15 = vpack.c.bf16 %v2181_v18, %v2181_v18  ;;  %3379 = vst.msk [vmem:[#allocation2 + $0x30] sm:$0xf] %vm230_vm3, %v3316_v6 }
 0x262   : > { %v3091_v39 = vmax.f32 %v3075_v47, 0.0  ;;  %v2120_v7 = vpop.f32.mrf.mxu1 }
 0x263   : > { %4810 = vst.msk [vmem:[%s6582_s24 + $0x58] sm:$0xf] %vm1121_vm11, %v2197_v15  ;;  %v2150_v37 = vmul.f32 %v7279_v22, %v2120_v7  ;;  %v3347_v15 = vshll.u32 %v4987_v27, 16 }
 0x264   : > { %v3107_v1 = vpack.c.bf16 %v3091_v39, %v3091_v39 }
 0x265   : > { %v2166_v5 = vadd.f32 %v7285_v49, %v2150_v37  ;;  %v3514_v31 = vpop.permute.xlu1 %3513 }
 0x266   : > { %4953 = vst.msk [vmem:[%s6582_s24 + $0x94] sm:$0xf] %vm1121_vm11, %v3107_v1  ;;  %v4790_v4 = vld [vmem:[#allocation2 + $0x38] sm:$0xf]  ;;  %v3512_v41 = vpop.permute.xlu0 %3511 }
 0x267   : > { %2254 = vst.msk [vmem:[#allocation2 + $0x38] sm:$0xf] %vm230_vm3, %v4834_v35  ;;  %v2182_v43 = vmax.f32 %v2166_v5, 0.0  ;;  %v5169_v24 = vld [vmem:[#allocation2 + $0x30] sm:$0xf0]  ;;  %v4791_v16 = vor.u32 %v5161_v10, %v4790_v4  ;;  %v2601_v36 = vpop.permute.xlu2 %2600  ;;  %v3337_v10 = vshll.u32 %v4986_v2, 16 }
 0x268   : > { %3380 = vst.msk [vmem:[#allocation2 + $0x34] sm:$0xf] %vm230_vm3, %v3326_v25  ;;  %v4931_v32 = vor.u32 %v5169_v24, %v4930_v17  ;;  %v3349_v5 = vrot.slane %v3347_v15, 5 }
 0x269   : > { %v2198_v63 = vpack.c.bf16 %v2182_v43, %v2182_v43  ;;  %3548 = vst.msk [vmem:[#allocation2 + $0x34] sm:$0xf] %vm514_vm4, %v3514_v31  ;;  %4803 = vmatmul.msk.bf16.gmra.mxu1 %vm977_vm10, %v4791_v16  ;;  %v3339_v21 = vrot.slane %v3337_v10, 5 }
 0x26a   : > { %3547 = vst.msk [vmem:[#allocation2 + $0x30] sm:$0xf] %vm514_vm4, %v3512_v41  ;;  %4946 = vmatmul.msk.bf16.gmra.mxu2 %vm977_vm10, %v4931_v32 }
 0x26b   : > { %4811 = vst.msk [vmem:[%s6582_s24 + $0x5c] sm:$0xf] %vm1121_vm11, %v2198_v63  ;;  %v4107_v12 = vpop.f32.mrf.mxu3  ;;  %v3344_v17 = vor.u32 %v3343_v9, %v3339_v21 }
 0x26c   : > { %3827 = vst.msk [vmem:[#allocation2 + $0x30] sm:$0xf] %vm615_vm8, %v3792_v13  ;;  %v4141_v61 = vmul.f32 %v7279_v22, %v4107_v12 }
 0x26d   : > { %v3960_v46 = vpop.permute.xlu1 %3959  ;;  %v3345_v35 = vrot.slane %v3344_v17, 4 }
 0x26e   : > { %3995 = vst.msk [vmem:[#allocation2 + $0x30] sm:$0xf] %vm896_vm9, %v3960_v46  ;;  %v3794_v44 = vpop.permute.xlu0 %3793  ;;  %v4157_v38 = vadd.f32 %v7285_v49, %v4141_v61 }
 0x26f   : > { %3828 = vst.msk [vmem:[#allocation2 + $0x34] sm:$0xf] %vm615_vm8, %v3794_v44  ;;  %v2883_v56 = vpop.permute.xlu2 %2882  ;;  %v3350_v32 = vsel %vm5407_vm2, %v3345_v35, %v3349_v5 }
 0x270   : > { %3996 = vst.msk [vmem:[#allocation2 + $0x34] sm:$0xf] %vm896_vm9, %v3962_v51  ;;  %v4173_v20 = vmax.f32 %v4157_v38, 0.0  ;;  %v3340_v51 = vsel %vm5407_vm2, %v3335_v30, %v3339_v21 }
 0x272   : > { %v4189_v33 = vpack.c.bf16 %v4173_v20, %v4173_v20 }
 0x273   : > { %v4109_v0 = vpop.f32.mrf.mxu3 }
 0x274   : > { %5126 = vst.msk [vmem:[%s6582_s24 + $0xd0] sm:$0xf] %vm1121_vm11, %v4189_v33  ;;  %v4142_v28 = vmul.f32 %v7279_v22, %v4109_v0 }
 0x275   : > { %v2503_v11 = vpop.permute.xlu1 %2502  ;;  %v2123_v52 = vpop.f32.mrf.mxu1 }
 0x276   : > { %2535 = vst.msk [vmem:[#allocation2 + $0x3c] sm:$0xf] %vm514_vm4, %v2503_v11  ;;  %v2501_v54 = vpop.permute.xlu0 %2500  ;;  %v2151_v60 = vmul.f32 %v7279_v22, %v2123_v52  ;;  %v4158_v57 = vadd.f32 %v7285_v49, %v4142_v28 }
 0x277   : > { %2534 = vst.msk [vmem:[#allocation2 + $0x38] sm:$0xf] %vm514_vm4, %v2501_v54  ;;  %v5178_v50 = vld [vmem:[#allocation2 + $0x30] sm:$0xff]  ;;  %v3796_v37 = vpop.permute.xlu2 %3795 }
 0x278   : > { %v2167_v14 = vadd.f32 %v7285_v49, %v2151_v60  ;;  %2634 = vst.msk [vmem:[#allocation2 + $0x38] sm:$0xf] %vm615_vm8, %v2601_v36  ;;  %v4174_v34 = vmax.f32 %v4158_v57, 0.0  ;;  %5120 = vmatmul.msk.bf16.gmra.mxu3 %vm977_vm10, %v5178_v50 }
 0x27a   : > { %v2183_v58 = vmax.f32 %v2167_v14, 0.0  ;;  %v4190_v8 = vpack.c.bf16 %v4174_v34, %v4174_v34 }
 0x27c   : > { %v2199_v13 = vpack.c.bf16 %v2183_v58, %v2183_v58  ;;  %5127 = vst.msk [vmem:[%s6582_s24 + $0xd4] sm:$0xf] %vm1121_vm11, %v4190_v8 }
 0x27d   : > { %v3029_v59 = vpop.f32.mrf.mxu2  ;;  %v2881_v23 = vpop.permute.xlu1 %2880 }
 0x27e   : > { %4812 = vst.msk [vmem:[%s6582_s24 + $0x60] sm:$0xf] %vm1121_vm11, %v2199_v13  ;;  %v3060_v48 = vmul.f32 %v7279_v22, %v3029_v59  ;;  %v2603_v53 = vpop.permute.xlu0 %2602  ;;  %v2125_v6 = vpop.f32.mrf.mxu1 }
 0x27f   : > { %2914 = vst.msk [vmem:[#allocation2 + $0x38] sm:$0xf] %vm896_vm9, %v2881_v23  ;;  %v2152_v18 = vmul.f32 %v7279_v22, %v2125_v6  ;;  %v3966_v38 = vpop.permute.xlu2 %3965 }
 0x280   : > { %v3076_v47 = vadd.f32 %v7285_v49, %v3060_v48  ;;  %2635 = vst.msk [vmem:[#allocation2 + $0x3c] sm:$0xf] %vm615_vm8, %v2603_v53 }
 0x281   : > { %v2168_v45 = vadd.f32 %v7285_v49, %v2152_v18  ;;  %2915 = vst.msk [vmem:[#allocation2 + $0x3c] sm:$0xf] %vm896_vm9, %v2883_v56 }
 0x282   : > { %v3092_v39 = vmax.f32 %v3076_v47, 0.0 }
 0x283   : > { %v2184_v7 = vmax.f32 %v2168_v45, 0.0 }
 0x284   : > { %v3108_v1 = vpack.c.bf16 %v3092_v39, %v3092_v39 }
 0x285   : > { %v2200_v25 = vpack.c.bf16 %v2184_v7, %v2184_v7  ;;  %v3031_v31 = vpop.f32.mrf.mxu2  ;;  %v3518_v4 = vpop.permute.xlu1 %3517 }
 0x286   : > { %4954 = vst.msk [vmem:[%s6582_s24 + $0x98] sm:$0xf] %vm1121_vm11, %v3108_v1  ;;  %v3061_v41 = vmul.f32 %v7279_v22, %v3031_v31  ;;  %v3516_v43 = vpop.permute.xlu0 %3515  ;;  %v4934_v24 = vld [vmem:[#allocation2 + $0x38] sm:$0xf] }
 0x287   : > { %4813 = vst.msk [vmem:[%s6582_s24 + $0x64] sm:$0xf] %vm1121_vm11, %v2200_v25 }
 0x288   : > { %v3077_v16 = vadd.f32 %v7285_v49, %v3061_v41  ;;  %3381 = vst.msk [vmem:[#allocation2 + $0x38] sm:$0xf] %vm230_vm3, %v3340_v51  ;;  %v5170_v63 = vld [vmem:[#allocation2 + $0x38] sm:$0xf0] }
 0x289   : > { %3549 = vst.msk [vmem:[#allocation2 + $0x38] sm:$0xf] %vm514_vm4, %v3516_v43  ;;  %v4935_v12 = vor.u32 %v5170_v63, %v4934_v24 }
 0x28a   : > { %v3093_v61 = vmax.f32 %v3077_v16, 0.0  ;;  %3829 = vst.msk [vmem:[#allocation2 + $0x38] sm:$0xf] %vm615_vm8, %v3796_v37 }
 0x28b   : > { %3382 = vst.msk [vmem:[#allocation2 + $0x3c] sm:$0xf] %vm230_vm3, %v3350_v32  ;;  %4947 = vmatmul.msk.bf16.gmra.mxu2 %vm977_vm10, %v4935_v12 }
 0x28c   : > { %v3109_v46 = vpack.c.bf16 %v3093_v61, %v3093_v61  ;;  %3550 = vst.msk [vmem:[#allocation2 + $0x3c] sm:$0xf] %vm514_vm4, %v3518_v4  ;;  %v4112_v44 = vpop.f32.mrf.mxu3 }
 0x28d   : > { %v4143_v26 = vmul.f32 %v7279_v22, %v4112_v44  ;;  %v3964_v20 = vpop.permute.xlu1 %3963 }
 0x28e   : > { %4955 = vst.msk [vmem:[%s6582_s24 + $0x9c] sm:$0xf] %vm1121_vm11, %v3109_v46  ;;  %v3798_v36 = vpop.permute.xlu0 %3797 }
 0x28f   : > { %3830 = vst.msk [vmem:[#allocation2 + $0x3c] sm:$0xf] %vm615_vm8, %v3798_v36  ;;  %v4159_v29 = vadd.f32 %v7285_v49, %v4143_v26 }
 0x290   : > { %3998 = vst.msk [vmem:[#allocation2 + $0x3c] sm:$0xf] %vm896_vm9, %v3966_v38 }
 0x291   : > { %3997 = vst.msk [vmem:[#allocation2 + $0x38] sm:$0xf] %vm896_vm9, %v3964_v20  ;;  %v4175_v33 = vmax.f32 %v4159_v29, 0.0 }
 0x293   : > { %v4191_v0 = vpack.c.bf16 %v4175_v33, %v4175_v33 }
 0x294   : > { %v4114_v28 = vpop.f32.mrf.mxu3 }
 0x295   : > { %5128 = vst.msk [vmem:[%s6582_s24 + $0xd8] sm:$0xf] %vm1121_vm11, %v4191_v0  ;;  %v4144_v11 = vmul.f32 %v7279_v22, %v4114_v28 }
 0x297   : > { %v4160_v52 = vadd.f32 %v7285_v49, %v4144_v11 }
 0x298   : > { %v5179_v2 = vld [vmem:[#allocation2 + $0x38] sm:$0xff] }
 0x299   : > { %v4176_v42 = vmax.f32 %v4160_v52, 0.0  ;;  %5121 = vmatmul.msk.bf16.gmra.mxu3 %vm977_vm10, %v5179_v2 }
 0x29b   : > { %v4192_v3 = vpack.c.bf16 %v4176_v42, %v4176_v42 }
 0x29d   : > { %5129 = vst.msk [vmem:[%s6582_s24 + $0xdc] sm:$0xf] %vm1121_vm11, %v4192_v3 }
 0x29e   : > { %v3034_v54 = vpop.f32.mrf.mxu2 }
 0x29f   : > { %v3062_v60 = vmul.f32 %v7279_v22, %v3034_v54 }
 0x2a1   : > { %v3078_v57 = vadd.f32 %v7285_v49, %v3062_v60  ;;  %v2128_v50 = vpop.f32.mrf.mxu1 }
 0x2a2   : > { %v2153_v14 = vmul.f32 %v7279_v22, %v2128_v50 }
 0x2a3   : > { %v3094_v10 = vmax.f32 %v3078_v57, 0.0 }
 0x2a4   : > { %v2169_v40 = vadd.f32 %v7285_v49, %v2153_v14 }
 0x2a5   : > { %v3110_v34 = vpack.c.bf16 %v3094_v10, %v3094_v10 }
 0x2a6   : > { %v2185_v56 = vmax.f32 %v2169_v40, 0.0  ;;  %v3036_v62 = vpop.f32.mrf.mxu2 }
 0x2a7   : > { %4956 = vst.msk [vmem:[%s6582_s24 + $0xa0] sm:$0xf] %vm1121_vm11, %v3110_v34  ;;  %v3063_v55 = vmul.f32 %v7279_v22, %v3036_v62 }
 0x2a8   : > { %v2201_v58 = vpack.c.bf16 %v2185_v56, %v2185_v56 }
 0x2a9   : > { %v3079_v8 = vadd.f32 %v7285_v49, %v3063_v55  ;;  %v2130_v13 = vpop.f32.mrf.mxu1 }
 0x2aa   : > { %4814 = vst.msk [vmem:[%s6582_s24 + $0x68] sm:$0xf] %vm1121_vm11, %v2201_v58  ;;  %v2154_v21 = vmul.f32 %v7279_v22, %v2130_v13 }
 0x2ab   : > { %v3095_v9 = vmax.f32 %v3079_v8, 0.0 }
 0x2ac   : > { %v2170_v59 = vadd.f32 %v7285_v49, %v2154_v21 }
 0x2ad   : > { %v3111_v23 = vpack.c.bf16 %v3095_v9, %v3095_v9 }
 0x2ae   : > { %v2186_v19 = vmax.f32 %v2170_v59, 0.0 }
 0x2af   : > { %4957 = vst.msk [vmem:[%s6582_s24 + $0xa4] sm:$0xf] %vm1121_vm11, %v3111_v23 }
 0x2b0   : > { %v2202_v27 = vpack.c.bf16 %v2186_v19, %v2186_v19 }
 0x2b2   : > { %4815 = vst.msk [vmem:[%s6582_s24 + $0x6c] sm:$0xf] %vm1121_vm11, %v2202_v27 }
 0x2b3   : > { %v4117_v48 = vpop.f32.mrf.mxu3 }
 0x2b4   : > { %v4145_v53 = vmul.f32 %v7279_v22, %v4117_v48 }
 0x2b6   : > { %v4161_v6 = vadd.f32 %v7285_v49, %v4145_v53 }
 0x2b8   : > { %v4177_v18 = vmax.f32 %v4161_v6, 0.0 }
 0x2ba   : > { %v4193_v47 = vpack.c.bf16 %v4177_v18, %v4177_v18 }
 0x2bb   : > { %v4119_v17 = vpop.f32.mrf.mxu3 }
 0x2bc   : > { %5130 = vst.msk [vmem:[%s6582_s24 + $0xe0] sm:$0xf] %vm1121_vm11, %v4193_v47  ;;  %v4146_v15 = vmul.f32 %v7279_v22, %v4119_v17 }
 0x2be   : > { %v4162_v45 = vadd.f32 %v7285_v49, %v4146_v15 }
 0x2c0   : > { %v4178_v30 = vmax.f32 %v4162_v45, 0.0 }
 0x2c2   : > { %v4194_v39 = vpack.c.bf16 %v4178_v30, %v4178_v30 }
 0x2c4   : > { %5131 = vst.msk [vmem:[%s6582_s24 + $0xe4] sm:$0xf] %vm1121_vm11, %v4194_v39 }
 0x2c5   : > { %v3039_v7 = vpop.f32.mrf.mxu2 }
 0x2c6   : > { %v3064_v37 = vmul.f32 %v7279_v22, %v3039_v7 }
 0x2c8   : > { %v3080_v1 = vadd.f32 %v7285_v49, %v3064_v37 }
 0x2ca   : > { %v3096_v35 = vmax.f32 %v3080_v1, 0.0 }
 0x2cb   : > { %v2133_v5 = vpop.f32.mrf.mxu1 }
 0x2cc   : > { %v3112_v25 = vpack.c.bf16 %v3096_v35, %v3096_v35  ;;  %v2155_v31 = vmul.f32 %v7279_v22, %v2133_v5 }
 0x2cd   : > { %v3041_v51 = vpop.f32.mrf.mxu2 }
 0x2ce   : > { %4958 = vst.msk [vmem:[%s6582_s24 + $0xa8] sm:$0xf] %vm1121_vm11, %v3112_v25  ;;  %v2171_v4 = vadd.f32 %v7285_v49, %v2155_v31  ;;  %v3065_v41 = vmul.f32 %v7279_v22, %v3041_v51 }
 0x2d0   : > { %v2187_v43 = vmax.f32 %v2171_v4, 0.0  ;;  %v3081_v24 = vadd.f32 %v7285_v49, %v3065_v41 }
 0x2d2   : > { %v2203_v16 = vpack.c.bf16 %v2187_v43, %v2187_v43  ;;  %v3097_v32 = vmax.f32 %v3081_v24, 0.0 }
 0x2d3   : > { %v2135_v63 = vpop.f32.mrf.mxu1 }
 0x2d4   : > { %4816 = vst.msk [vmem:[%s6582_s24 + $0x70] sm:$0xf] %vm1121_vm11, %v2203_v16  ;;  %v3113_v12 = vpack.c.bf16 %v3097_v32, %v3097_v32  ;;  %v2156_v61 = vmul.f32 %v7279_v22, %v2135_v63 }
 0x2d6   : > { %4959 = vst.msk [vmem:[%s6582_s24 + $0xac] sm:$0xf] %vm1121_vm11, %v3113_v12  ;;  %v2172_v46 = vadd.f32 %v7285_v49, %v2156_v61 }
 0x2d8   : > { %v2188_v44 = vmax.f32 %v2172_v46, 0.0 }
 0x2da   : > { %v2204_v38 = vpack.c.bf16 %v2188_v44, %v2188_v44  ;;  %v4254_v44 = vld [vmem:[%s6582_s24 + $0x10] sm:$0xff] (%p5377_p5)  }
 0x2db   : > { %v4122_v26 = vpop.f32.mrf.mxu3  ;;  %4255 = vst [vmem:[%s7471_s25 + $0x10] sm:$0xff] (%p5377_p5), %v4254_v44  }
 0x2dc   : > { %4817 = vst.msk [vmem:[%s6582_s24 + $0x74] sm:$0xf] %vm1121_vm11, %v2204_v38  ;;  %v4147_v36 = vmul.f32 %v7279_v22, %v4122_v26  ;;  %v4258_v38 = vld [vmem:[%s6582_s24 + $0x18] sm:$0xff] (%p5377_p5)   ;;  %v4262_v26 = vld [vmem:[%s6582_s24 + $0x20] sm:$0xff] (%p5377_p5)  }
 0x2dd   : > { %4259 = vst [vmem:[%s7471_s25 + $0x18] sm:$0xff] (%p5377_p5), %v4258_v38  }
 0x2de   : > { %v4163_v20 = vadd.f32 %v7285_v49, %v4147_v36  ;;  %v4266_v36 = vld [vmem:[%s6582_s24 + $0x28] sm:$0xff] (%p5377_p5)   ;;  %4263 = vst [vmem:[%s7471_s25 + $0x20] sm:$0xff] (%p5377_p5), %v4262_v26  }
 0x2df   : > { %4267 = vst [vmem:[%s7471_s25 + $0x28] sm:$0xff] (%p5377_p5), %v4266_v36  }
 0x2e0   : > { %v4179_v29 = vmax.f32 %v4163_v20, 0.0  ;;  %v4270_v20 = vld [vmem:[%s6582_s24 + $0x30] sm:$0xff] (%p5377_p5)  }
 0x2e1   : > { %4271 = vst [vmem:[%s7471_s25 + $0x30] sm:$0xff] (%p5377_p5), %v4270_v20  }
 0x2e2   : > { %v4195_v33 = vpack.c.bf16 %v4179_v29, %v4179_v29  ;;  %v4274_v29 = vld [vmem:[%s6582_s24 + $0x38] sm:$0xff] (%p5377_p5)  }
 0x2e3   : > { %v4124_v0 = vpop.f32.mrf.mxu3  ;;  %4275 = vst [vmem:[%s7471_s25 + $0x38] sm:$0xff] (%p5377_p5), %v4274_v29  }
 0x2e4   : > { %5132 = vst.msk [vmem:[%s6582_s24 + $0xe8] sm:$0xf] %vm1121_vm11, %v4195_v33  ;;  %v4148_v28 = vmul.f32 %v7279_v22, %v4124_v0  ;;  %v4278_v33 = vld [vmem:[%s6582_s24 + $0x40] sm:$0xff] (%p5377_p5)   ;;  %v4282_v0 = vld [vmem:[%s6582_s24 + $0x48] sm:$0xff] (%p5377_p5)  }
 0x2e5   : > { %4279 = vst [vmem:[%s7471_s25 + $0x80] sm:$0xff] (%p5377_p5), %v4278_v33  }
 0x2e6   : > { %v2138_v11 = vpop.f32.mrf.mxu1  ;;  %v4164_v52 = vadd.f32 %v7285_v49, %v4148_v28  ;;  %v4286_v28 = vld [vmem:[%s6582_s24 + $0x50] sm:$0xff] (%p5377_p5)   ;;  %4283 = vst [vmem:[%s7471_s25 + $0x88] sm:$0xff] (%p5377_p5), %v4282_v0  }
 0x2e7   : > { %v2157_v2 = vmul.f32 %v7279_v22, %v2138_v11  ;;  %v4290_v11 = vld [vmem:[%s6582_s24 + $0x58] sm:$0xff] (%p5377_p5)   ;;  %4287 = vst [vmem:[%s7471_s25 + $0x90] sm:$0xff] (%p5377_p5), %v4286_v28  }
 0x2e8   : > { %v4180_v42 = vmax.f32 %v4164_v52, 0.0  ;;  %v4294_v52 = vld [vmem:[%s6582_s24 + $0x60] sm:$0xff] (%p5377_p5)   ;;  %4291 = vst [vmem:[%s7471_s25 + $0x98] sm:$0xff] (%p5377_p5), %v4290_v11  }
 0x2e9   : > { %v2173_v3 = vadd.f32 %v7285_v49, %v2157_v2  ;;  %v4298_v2 = vld [vmem:[%s6582_s24 + $0x68] sm:$0xff] (%p5377_p5)   ;;  %4295 = vst [vmem:[%s7471_s25 + $0xa0] sm:$0xff] (%p5377_p5), %v4294_v52  }
 0x2ea   : > { %v4196_v54 = vpack.c.bf16 %v4180_v42, %v4180_v42  ;;  %v4302_v42 = vld [vmem:[%s6582_s24 + $0x70] sm:$0xff] (%p5377_p5)   ;;  %4299 = vst [vmem:[%s7471_s25 + $0xa8] sm:$0xff] (%p5377_p5), %v4298_v2  }
 0x2eb   : > { %v2189_v60 = vmax.f32 %v2173_v3, 0.0  ;;  %4303 = vst [vmem:[%s7471_s25 + $0xb0] sm:$0xff] (%p5377_p5), %v4302_v42  }
 0x2ec   : > { %5133 = vst.msk [vmem:[%s6582_s24 + $0xec] sm:$0xf] %vm1121_vm11, %v4196_v54  ;;  %v4310_v54 = vld [vmem:[%s6582_s24 + $0x80] sm:$0xff] (%p5377_p5)  }
 0x2ed   : > { %v2205_v57 = vpack.c.bf16 %v2189_v60, %v2189_v60  ;;  %v3044_v50 = vpop.f32.mrf.mxu2  ;;  %v4314_v60 = vld [vmem:[%s6582_s24 + $0x88] sm:$0xff] (%p5377_p5)   ;;  %4311 = vst [vmem:[%s7471_s25 + $0x100] sm:$0xff] (%p5377_p5), %v4310_v54  }
 0x2ee   : > { %v3066_v14 = vmul.f32 %v7279_v22, %v3044_v50  ;;  %v2140_v10 = vpop.f32.mrf.mxu1  ;;  %v4322_v50 = vld [vmem:[%s6582_s24 + $0x98] sm:$0xff] (%p5377_p5)   ;;  %4315 = vst [vmem:[%s7471_s25 + $0x108] sm:$0xff] (%p5377_p5), %v4314_v60  }
 0x2ef   : > { %4818 = vst.msk [vmem:[%s6582_s24 + $0x78] sm:$0xf] %vm1121_vm11, %v2205_v57  ;;  %v2158_v40 = vmul.f32 %v7279_v22, %v2140_v10  ;;  %v4318_v57 = vld [vmem:[%s6582_s24 + $0x90] sm:$0xff] (%p5377_p5)   ;;  %v4330_v10 = vld [vmem:[%s6582_s24 + $0xa8] sm:$0xff] (%p5377_p5)  }
 0x2f0   : > { %v3082_v34 = vadd.f32 %v7285_v49, %v3066_v14  ;;  %v4326_v14 = vld [vmem:[%s6582_s24 + $0xa0] sm:$0xff] (%p5377_p5)   ;;  %4319 = vst [vmem:[%s7471_s25 + $0x110] sm:$0xff] (%p5377_p5), %v4318_v57  }
 0x2f1   : > { %v2174_v56 = vadd.f32 %v7285_v49, %v2158_v40  ;;  %4323 = vst [vmem:[%s7471_s25 + $0x118] sm:$0xff] (%p5377_p5), %v4322_v50  }
 0x2f2   : > { %v3098_v62 = vmax.f32 %v3082_v34, 0.0  ;;  %4327 = vst [vmem:[%s7471_s25 + $0x120] sm:$0xff] (%p5377_p5), %v4326_v14  }
 0x2f3   : > { %v2190_v55 = vmax.f32 %v2174_v56, 0.0  ;;  %4331 = vst [vmem:[%s7471_s25 + $0x128] sm:$0xff] (%p5377_p5), %v4330_v10   ;;  %v4342_v56 = vld [vmem:[%s6582_s24 + $0xc0] sm:$0xff] (%p5377_p5)  }
 0x2f4   : > { %v3114_v58 = vpack.c.bf16 %v3098_v62, %v3098_v62  ;;  %v4346_v62 = vld [vmem:[%s6582_s24 + $0xc8] sm:$0xff] (%p5377_p5)   ;;  %4343 = vst [vmem:[%s7471_s25 + $0x180] sm:$0xff] (%p5377_p5), %v4342_v56  }
 0x2f5   : > { %v2206_v8 = vpack.c.bf16 %v2190_v55, %v2190_v55  ;;  %v3046_v13 = vpop.f32.mrf.mxu2  ;;  %v4350_v55 = vld [vmem:[%s6582_s24 + $0xd0] sm:$0xff] (%p5377_p5)   ;;  %4347 = vst [vmem:[%s7471_s25 + $0x188] sm:$0xff] (%p5377_p5), %v4346_v62  }
 0x2f6   : > { %4960 = vst.msk [vmem:[%s6582_s24 + $0xb0] sm:$0xf] %vm1121_vm11, %v3114_v58  ;;  %v3067_v21 = vmul.f32 %v7279_v22, %v3046_v13  ;;  %v4354_v58 = vld [vmem:[%s6582_s24 + $0xd8] sm:$0xff] (%p5377_p5)   ;;  %v4362_v13 = vld [vmem:[%s6582_s24 + $0xe8] sm:$0xff] (%p5377_p5)  }
 0x2f7   : > { %4819 = vst.msk [vmem:[%s6582_s24 + $0x7c] sm:$0xf] %vm1121_vm11, %v2206_v8  ;;  %v4358_v8 = vld [vmem:[%s6582_s24 + $0xe0] sm:$0xff] (%p5377_p5)  }
 0x2f8   : > { %v3083_v9 = vadd.f32 %v7285_v49, %v3067_v21  ;;  %4351 = vst [vmem:[%s7471_s25 + $0x190] sm:$0xff] (%p5377_p5), %v4350_v55  }
 0x2f9   : > { %4355 = vst [vmem:[%s7471_s25 + $0x198] sm:$0xff] (%p5377_p5), %v4354_v58  }
 0x2fa   : > { %v3099_v59 = vmax.f32 %v3083_v9, 0.0  ;;  %4359 = vst [vmem:[%s7471_s25 + $0x1a0] sm:$0xff] (%p5377_p5), %v4358_v8  }
 0x2fb   : > { %v4127_v19 = vpop.f32.mrf.mxu3  ;;  %4363 = vst [vmem:[%s7471_s25 + $0x1a8] sm:$0xff] (%p5377_p5), %v4362_v13  }
 0x2fc   : > { %v3115_v23 = vpack.c.bf16 %v3099_v59, %v3099_v59  ;;  %v4149_v27 = vmul.f32 %v7279_v22, %v4127_v19 }
 0x2fe   : > { %4961 = vst.msk [vmem:[%s6582_s24 + $0xb4] sm:$0xf] %vm1121_vm11, %v3115_v23  ;;  %v4165_v48 = vadd.f32 %v7285_v49, %v4149_v27  ;;  %v4306_v3 = vld [vmem:[%s6582_s24 + $0x78] sm:$0xff] (%p5377_p5)  }
 0x2ff   : > { %4307 = vst [vmem:[%s7471_s25 + $0xb8] sm:$0xff] (%p5377_p5), %v4306_v3  }
 0x300   : > { %v4181_v53 = vmax.f32 %v4165_v48, 0.0 }
 0x302   : > { %v4197_v6 = vpack.c.bf16 %v4181_v53, %v4181_v53 }
 0x303   : > { %v4129_v18 = vpop.f32.mrf.mxu3 }
 0x304   : > { %5134 = vst.msk [vmem:[%s6582_s24 + $0xf0] sm:$0xf] %vm1121_vm11, %v4197_v6  ;;  %v4150_v47 = vmul.f32 %v7279_v22, %v4129_v18 }
 0x305   : > { %v4334_v40 = vld [vmem:[%s6582_s24 + $0xb0] sm:$0xff] (%p5377_p5)  }
 0x306   : > { %v4166_v17 = vadd.f32 %v7285_v49, %v4150_v47  ;;  %4335 = vst [vmem:[%s7471_s25 + $0x130] sm:$0xff] (%p5377_p5), %v4334_v40  }
 0x308   : > { %v4182_v15 = vmax.f32 %v4166_v17, 0.0 }
 0x30a   : > { %v4198_v45 = vpack.c.bf16 %v4182_v15, %v4182_v15 }
 0x30c   : > { %5135 = vst.msk [vmem:[%s6582_s24 + $0xf4] sm:$0xf] %vm1121_vm11, %v4198_v45 }
 0x30e   : > { %v3049_v30 = vpop.f32.mrf.mxu2 }
 0x30f   : > { %v3068_v39 = vmul.f32 %v7279_v22, %v3049_v30 }
 0x311   : > { %v3084_v7 = vadd.f32 %v7285_v49, %v3068_v39 }
 0x313   : > { %v3100_v37 = vmax.f32 %v3084_v7, 0.0  ;;  %v4366_v21 = vld [vmem:[%s6582_s24 + $0xf0] sm:$0xff] (%p5377_p5)  }
 0x314   : > { %4367 = vst [vmem:[%s7471_s25 + $0x1b0] sm:$0xff] (%p5377_p5), %v4366_v21  }
 0x315   : > { %v3116_v1 = vpack.c.bf16 %v3100_v37, %v3100_v37 }
 0x316   : > { %v3051_v35 = vpop.f32.mrf.mxu2 }
 0x317   : > { %4962 = vst.msk [vmem:[%s6582_s24 + $0xb8] sm:$0xf] %vm1121_vm11, %v3116_v1  ;;  %v3069_v5 = vmul.f32 %v7279_v22, %v3051_v35 }
 0x319   : > { %v3085_v25 = vadd.f32 %v7285_v49, %v3069_v5 }
 0x31b   : > { %v3101_v31 = vmax.f32 %v3085_v25, 0.0 }
 0x31c   : > { %v4132_v4 = vpop.f32.mrf.mxu3 }
 0x31d   : > { %v3117_v51 = vpack.c.bf16 %v3101_v31, %v3101_v31  ;;  %v4151_v41 = vmul.f32 %v7279_v22, %v4132_v4 }
 0x31f   : > { %4963 = vst.msk [vmem:[%s6582_s24 + $0xbc] sm:$0xf] %vm1121_vm11, %v3117_v51  ;;  %v4167_v43 = vadd.f32 %v7285_v49, %v4151_v41 }
 0x321   : > { %v4183_v24 = vmax.f32 %v4167_v43, 0.0 }
 0x323   : > { %v4199_v16 = vpack.c.bf16 %v4183_v24, %v4183_v24 }
 0x324   : > { %v4134_v32 = vpop.f32.mrf.mxu3 }
 0x325   : > { %5136 = vst.msk [vmem:[%s6582_s24 + $0xf8] sm:$0xf] %vm1121_vm11, %v4199_v16  ;;  %v4152_v63 = vmul.f32 %v7279_v22, %v4134_v32  ;;  %v4246_v22 = vld [vmem:[%s6582_s24] sm:$0xff] (%p5377_p5)  }
 0x326   : > { %4247 = vst [vmem:[%s7471_s25] sm:$0xff] (%p5377_p5), %v4246_v22   ;;  %v4338_v34 = vld [vmem:[%s6582_s24 + $0xb8] sm:$0xff] (%p5377_p5)  }
 0x327   : > { %v4168_v12 = vadd.f32 %v7285_v49, %v4152_v63  ;;  %v4250_v49 = vld [vmem:[%s6582_s24 + $0x8] sm:$0xff] (%p5377_p5)   ;;  %4339 = vst [vmem:[%s7471_s25 + $0x138] sm:$0xff] (%p5377_p5), %v4338_v34  }
 0x328   : > { %4251 = vst [vmem:[%s7471_s25 + $0x8] sm:$0xff] (%p5377_p5), %v4250_v49  }
 0x329   : > { %v4184_v61 = vmax.f32 %v4168_v12, 0.0  ;;  %4224 = sbr.rel (!%p5377_p5) target bundleno = 822 (0x336), region = 40 }
 0x32b   : > { %v4200_v46 = vpack.c.bf16 %v4184_v61, %v4184_v61 }
 0x32d   : > { %5137 = vst.msk [vmem:[%s6582_s24 + $0xfc] sm:$0xf] %vm1121_vm11, %v4200_v46 }
 0x334   : > { %v4370_v9 = vld [vmem:[%s6582_s24 + $0xf8] sm:$0xff]  }
 0x335   : > { %4371 = vst [vmem:[%s7471_s25 + $0x1b8] sm:$0xff] %v4370_v9  }
 0x336 PF: > { %s14_s21 = sadd.s32 1, %s5301_s21   ;;  %s7566_s15 = smov %s5281_s16 }
 0x337   : > { %p11_p10 = scmp.ge.s32.totalorder %s14_s21, 6   ;;  %s7567_s16 = smov %s5388_s30 }
 0x338   : > { %s7568_s17 = smov %s5293_s19  ;;  %s7569_s18 = smov %s5297_s20 }
 0x339   : > { %s7570_s19 = smov %s7573_s22  ;;  %s7571_s20 = smov %s7577_s23 }
 0x33a   :  { %13 = sbr.rel (!%p11_p10) target bundleno = 4 (0x4), region = 116 }

// kernel: up_conv_forward.2
= control target key start
LH: loop header
LB: loop body
LE: loop exit
PB: predicated region body
PF: predicated region fallthrough
CT: control target
= control target key end

     0   :  { %s5086_s15 = smov 0   ;;  %s5088_s16 = smov 0   ;;  %s7203_s0 = inlined_call_operand.vmem [shape: bf16[2,18,18,4], index: 0, kind: input, shape index: {}]   ;;  %s7204_s1 = inlined_call_operand.vmem [shape: bf16[4,16,8], index: 1, kind: input, shape index: {}]   ;;  %s7205_s2 = inlined_call_operand.vmem [shape: f32[1,8], index: 2, kind: input, shape index: {}]   ;;  %s7206_s3 = inlined_call_operand.vmem [shape: f32[2,1,8], index: 3, kind: output, shape index: {0}]   ;;  %s7207_s4 = inlined_call_operand.vmem [shape: f32[2,1,8], index: 4, kind: output, shape index: {1}]  }
   0x1   :  { %s5090_s17 = smov 0   ;;  %s5092_s18 = smov 0  }
   0x2   :  { %s5094_s19 = smov 0  }
   0x3 LB: > { %s24_s20 = sadd.s32 1, %s5047_s17  ;;  %s27_s21 = sadd.s32 1, %s5051_s18  ;;  %s5055_s19 = sphi %s5094_s19, %s15_s19   ;;  %s5051_s18 = sphi %s5092_s18, %s7215_s18   ;;  %s5047_s17 = sphi %s5090_s17, %s7214_s17   ;;  %s5043_s16 = sphi %s5088_s16, %s7213_s16   ;;  %s5039_s15 = sphi %s5086_s15, %s7212_s15  }
   0x4   : > { %p25_p0 = scmp.ge.s32.totalorder %s24_s20, 2  ;;  %p4442_p1 = scmp.ge.s32.totalorder %s5055_s19, 1 }
   0x5   : > { %p177_p2 = scmp.lt.s32.totalorder %s5055_s19, 5 }
   0x6   : > { %s7217_s20 = smov (%p25_p0, %s24_s20), 0  ;;  %s7219_s21 = smov (!%p25_p0, %s27_s21), %s5051_s18 }
   0x7   : > { %p178_p3 = pnand %p4442_p1, %p177_p2  ;;  %p29_p4 = scmp.ge.s32.totalorder %s7219_s21, 2 }
   0x8   : > { %p204_p5 = scmp.lt.s32.totalorder (!%p178_p3), %s5043_s16, 1  ;;  %p4445_p6 = scmp.ne.s32.totalorder (!%p178_p3), %s5039_s15, 0 }
   0x9   : > { %s7221_s21 = smov (%p29_p4, %s7219_s21), 0  ;;  %181 = sbr.rel (%p178_p3) target bundleno = 828 (0x33c), region = 32 }
   0xe   : > { %s7223_s16 = smov (!%p204_p5, %s5043_s16), 1  ;;  %220 = sbr.rel (%p4445_p6) target bundleno = 22 (0x16), region = 36 }
   0xf   : > { %s4969_s22 = smul.u32 216, %s7223_s16  ;;  %s5121_s25 = scalar_lea.vmem %s7206_s3, %s7223_s16 }
  0x10   : > { %s5126_s28 = scalar_lea.vmem %s7207_s4, %s7223_s16 }
  0x11   : > { %s208_s5 = scalar_lea.vmem %s7203_s0, %s4969_s22 }
  0x13   : > { %vm221_vm0 = vcmask 57344   ;;  %v5057_v0 = vmov 0.0  }
  0x14   : > { %222 = vst.msk [vmem:[%s5121_s25] sm:$0x1] %vm221_vm0, %v5057_v0 }
  0x15   : > { %223 = vst.msk [vmem:[%s5126_s28] sm:$0x1] %vm221_vm0, %v5057_v0 }
  0x16 PF: > { %s4932_s6 = smul.u32 96, %s5039_s15  ;;  %vm285_vm1 = vsmask.f32 3328  ;;  %vm286_vm2 = vsmask.f32 7440  ;;  %s5058_s8 = smov 4  }
  0x17   : > { %vm5146_vm3 = vmor %vm285_vm1, %vm286_vm2  ;;  %s5059_s9 = smov 8   ;;  %vm244_vm4 = vcmask 27648   ;;  %s5060_s10 = smov 12   ;;  %vm528_vm5 = vcmask 60448   ;;  %vm1473_vm6 = vcmask 1042432   ;;  %vm1474_vm7 = vcmask 1046532  }
  0x18   : > { %s5135_s7 = scalar_lea.vmem %s208_s5, %s4932_s6  ;;  %vm5385_vm8 = vmor %vm1473_vm6, %vm1474_vm7  ;;  %vm629_vm9 = vcmask 93248   ;;  %vm910_vm10 = vcmask 126048   ;;  %vm991_vm11 = vcmask 130048   ;;  %vm1084_vm12 = vcmask 64512  }
  0x19   : > { %v264_v1 = vld [vmem:[%s5135_s7 + $0xc] sm:$0xf]  ;;  %v265_v2 = vld [vmem:[%s5135_s7 + $0x10] sm:$0xf]  ;;  %v261_v3 = vld [vmem:[%s5135_s7] sm:$0xf] }
  0x1a   : > { %v313_v4 = vshrl.u32 %v264_v1, 16  ;;  %v316_v5 = vshll.u32 %v264_v1, 16  ;;  %v322_v6 = vshll.u32 %v265_v2, 16  ;;  %v326_v7 = vshrl.u32 %v265_v2, 16  ;;  %v262_v8 = vld [vmem:[%s5135_s7 + $0x4] sm:$0xf] }
  0x1b   : > { %v289_v9 = vshrl.u32 %v261_v3, 16  ;;  %v292_v10 = vshll.u32 %v261_v3, 16  ;;  %v298_v11 = vshll.u32 %v262_v8, 16  ;;  %v302_v12 = vshrl.u32 %v262_v8, 16  ;;  %v266_v13 = vld [vmem:[%s5135_s7 + $0x14] sm:$0x1] }
  0x1c   : > { %v315_v14 = vrot.slane %v313_v4, 4  ;;  %v318_v15 = vrot.slane %v316_v5, 5  ;;  %v324_v16 = vrot.slane %v322_v6, 5  ;;  %v328_v17 = vrot.slane %v326_v7, 4  ;;  %v263_v18 = vld [vmem:[%s5135_s7 + $0x8] sm:$0x1] }
  0x1d   : > { %v291_v19 = vrot.slane %v289_v9, 4  ;;  %v294_v20 = vrot.slane %v292_v10, 5  ;;  %v304_v21 = vrot.slane %v302_v12, 4  ;;  %v271_v22 = vld [vmem:[%s5135_s7 + $0x28] sm:$0xf]  ;;  %v300_v24 = vrot.slane %v298_v11, 5 }
  0x1e   : > { %v319_v23 = vor.u32 %v318_v15, %v315_v14  ;;  %v329_v25 = vor.u32 %v328_v17, %v324_v16  ;;  %v332_v26 = vshll.u32 %v266_v13, 16  ;;  %v370_v29 = vshll.u32 %v271_v22, 16  ;;  %v270_v31 = vld [vmem:[%s5135_s7 + $0x24] sm:$0xf]  ;;  %v267_v36 = vld [vmem:[%s5135_s7 + $0x18] sm:$0xf] }
  0x1f   : > { %v295_v28 = vor.u32 %v294_v20, %v291_v19  ;;  %v374_v30 = vshrl.u32 %v271_v22, 16  ;;  %v305_v33 = vor.u32 %v304_v21, %v300_v24  ;;  %v308_v34 = vshll.u32 %v263_v18, 16  ;;  %v268_v41 = vld [vmem:[%s5135_s7 + $0x1c] sm:$0xf]  ;;  %v272_v43 = vld [vmem:[%s5135_s7 + $0x2c] sm:$0x1] }
  0x20   : > { %v320_v32 = vrot.slane %v319_v23, 4  ;;  %v330_v38 = vrot.slane %v329_v25, 4  ;;  %v334_v39 = vrot.slane %v332_v26, 5  ;;  %v361_v40 = vshrl.u32 %v270_v31, 16  ;;  %v276_v51 = vld [vmem:[%s5135_s7 + $0x3c] sm:$0xf] }
  0x21   : > { %v296_v35 = vrot.slane %v295_v28, 4  ;;  %v5159_v44 = vrot.slane %v370_v29, 5  ;;  %v376_v45 = vrot.slane %v374_v30, 4  ;;  %v364_v46 = vshll.u32 %v270_v31, 16  ;;  %v274_v59 = vld [vmem:[%s5135_s7 + $0x34] sm:$0xf] }
  0x22   : > { %v325_v37 = vsel %vm5146_vm3, %v320_v32, %v324_v16  ;;  %v306_v47 = vrot.slane %v305_v33, 4  ;;  %v310_v48 = vrot.slane %v308_v34, 5  ;;  %v337_v49 = vshrl.u32 %v267_v36, 16  ;;  %v269_v7 = vld [vmem:[%s5135_s7 + $0x20] sm:$0x1] }
  0x23   : > { %484 = vrot.lane.b32.xlu1 %v325_v37, %s5058_s8  ;;  %v301_v42 = vsel %vm5146_vm3, %v296_v35, %v300_v24  ;;  %v340_v50 = vshll.u32 %v267_v36, 16  ;;  %v363_v52 = vrot.slane %v361_v40, 4  ;;  %v366_v53 = vrot.slane %v364_v46, 5  ;;  %v277_v11 = vld [vmem:[%s5135_s7 + $0x40] sm:$0xf] }
  0x24   : > { %480 = vrot.lane.b32.xlu0 %v301_v42, %s5058_s8  ;;  %v346_v54 = vshll.u32 %v268_v41, 16  ;;  %v350_v55 = vshrl.u32 %v268_v41, 16  ;;  %v380_v56 = vshll.u32 %v272_v43, 16  ;;  %v339_v57 = vrot.slane %v337_v49, 4  ;;  %v275_v16 = vld [vmem:[%s5135_s7 + $0x38] sm:$0x1] }
  0x25   : > { %v342_v58 = vrot.slane %v340_v50, 5  ;;  %v377_v60 = vor.u32 %v376_v45, %v5159_v44  ;;  %v409_v62 = vshrl.u32 %v276_v51, 16  ;;  %v412_v63 = vshll.u32 %v276_v51, 16  ;;  %v280_v21 = vld [vmem:[%s5135_s7 + $0x4c] sm:$0xf] }
  0x26   : > { %v352_v61 = vrot.slane %v350_v55, 4  ;;  %v335_v0 = vsel %vm5146_vm3, %v330_v38, %v334_v39  ;;  %v348_v2 = vrot.slane %v346_v54, 5  ;;  %v311_v3 = vsel %vm5146_vm3, %v306_v47, %v310_v48  ;;  %v273_v22 = vld [vmem:[%s5135_s7 + $0x30] sm:$0xf]  ;;  %v279_v25 = vld [vmem:[%s5135_s7 + $0x48] sm:$0xf] }
  0x27   : > { %v343_v1 = vor.u32 %v342_v58, %v339_v57  ;;  %v367_v4 = vor.u32 %v366_v53, %v363_v52  ;;  %v394_v5 = vshll.u32 %v274_v59, 16  ;;  %v398_v6 = vshrl.u32 %v274_v59, 16  ;;  %v281_v49 = vld [vmem:[%s5135_s7 + $0x50] sm:$0x1]  ;;  %v283_v53 = vld [vmem:[%s5135_s7 + $0x58] sm:$0xf] }
  0x28   : > { %v382_v8 = vrot.slane %v380_v56, 5  ;;  %v378_v10 = vrot.slane %v377_v60, 4  ;;  %v411_v12 = vrot.slane %v409_v62, 4  ;;  %v414_v13 = vrot.slane %v412_v63, 5  ;;  %v278_v54 = vld [vmem:[%s5135_s7 + $0x44] sm:$0x1] }
  0x29   : > { %v344_v9 = vrot.slane %v343_v1, 4  ;;  %v353_v14 = vor.u32 %v352_v61, %v348_v2  ;;  %v396_v17 = vrot.slane %v394_v5, 5  ;;  %v400_v18 = vrot.slane %v398_v6, 4  ;;  %v282_v57 = vld [vmem:[%s5135_s7 + $0x54] sm:$0xf] }
  0x2a   : > { %v356_v19 = vshll.u32 %v269_v7, 16  ;;  %v368_v20 = vrot.slane %v367_v4, 4  ;;  %v383_v26 = vsel %vm5146_vm3, %v378_v10, %v382_v8  ;;  %v415_v28 = vor.u32 %v414_v13, %v411_v12 }
  0x2b   : > { %486 = vrot.lane.b32.xlu1 %v335_v0, %s5058_s8  ;;  %v349_v15 = vsel %vm5146_vm3, %v344_v9, %v348_v2  ;;  %v354_v23 = vrot.slane %v353_v14, 4  ;;  %v418_v29 = vshll.u32 %v277_v11, 16  ;;  %v404_v30 = vshll.u32 %v275_v16, 16 }
  0x2c   : > { %482 = vrot.lane.b32.xlu0 %v311_v3, %s5058_s8  ;;  %488 = vrot.lane.b32.xlu2 %v349_v15, %s5058_s8  ;;  %v358_v24 = vrot.slane %v356_v19, 5  ;;  %v401_v31 = vor.u32 %v400_v18, %v396_v17  ;;  %v442_v32 = vshll.u32 %v280_v21, 16  ;;  %v446_v33 = vshrl.u32 %v280_v21, 16 }
  0x2d   : > { %v385_v34 = vshrl.u32 %v273_v22, 16  ;;  %v373_v35 = vsel %vm5146_vm3, %v368_v20, %v5159_v44  ;;  %v433_v36 = vshrl.u32 %v279_v25, 16  ;;  %v436_v37 = vshll.u32 %v279_v25, 16  ;;  %v4450_v25 = vld [vmem:[%s5135_s7 + $0xc] sm:$0xf] }
  0x2e   : > { %v388_v38 = vshll.u32 %v273_v22, 16  ;;  %v422_v39 = vshrl.u32 %v277_v11, 16  ;;  %v359_v40 = vsel %vm5146_vm3, %v354_v23, %v358_v24  ;;  %v416_v42 = vrot.slane %v415_v28, 4  ;;  %v284_v11 = vld [vmem:[%s5135_s7 + $0x5c] sm:$0x1] }
  0x2f   : > { %v387_v41 = vrot.slane %v385_v34, 4  ;;  %v420_v43 = vrot.slane %v418_v29, 5  ;;  %v402_v44 = vrot.slane %v401_v31, 4  ;;  %v406_v46 = vrot.slane %v404_v30, 5  ;;  %v4453_v29 = vld [vmem:[%s5135_s7 + $0x1c] sm:$0xf] }
  0x30   : > { %v390_v45 = vrot.slane %v388_v38, 5  ;;  %v444_v47 = vrot.slane %v442_v32, 5  ;;  %v448_v48 = vrot.slane %v446_v33, 4  ;;  %v435_v50 = vrot.slane %v433_v36, 4  ;;  %v4452_v30 = vld [vmem:[%s5135_s7 + $0x18] sm:$0xf] }
  0x31   : > { %v438_v51 = vrot.slane %v436_v37, 5  ;;  %v424_v55 = vrot.slane %v422_v39, 4  ;;  %v421_v58 = vsel %vm5146_vm3, %v416_v42, %v420_v43  ;;  %v407_v59 = vsel %vm5146_vm3, %v402_v44, %v406_v46  ;;  %v4451_v31 = vld [vmem:[%s5135_s7 + $0x10] sm:$0xf]  ;;  %v4455_v33 = vld [vmem:[%s5135_s7 + $0x28] sm:$0xf] }
  0x32   : > { %v391_v52 = vor.u32 %v390_v45, %v387_v41  ;;  %v449_v60 = vor.u32 %v448_v48, %v444_v47  ;;  %v452_v61 = vshll.u32 %v281_v49, 16  ;;  %v466_v63 = vshll.u32 %v283_v53, 16  ;;  %v4456_v32 = vld [vmem:[%s5135_s7 + $0x30] sm:$0xf]  ;;  %v4454_v34 = vld [vmem:[%s5135_s7 + $0x24] sm:$0xf] }
  0x33   : > { %494 = vrot.lane.b32.xlu1 %v383_v26, %s5058_s8  ;;  %v439_v62 = vor.u32 %v438_v51, %v435_v50  ;;  %v470_v0 = vshrl.u32 %v283_v53, 16  ;;  %v428_v1 = vshll.u32 %v278_v54, 16  ;;  %v425_v3 = vor.u32 %v424_v55, %v420_v43  ;;  %v4458_v36 = vld [vmem:[%s5135_s7 + $0x3c] sm:$0xf]  ;;  %v4457_v37 = vld [vmem:[%s5135_s7 + $0x34] sm:$0xf] }
  0x34   : > { %492 = vrot.lane.b32.xlu0 %v373_v35, %s5058_s8  ;;  %490 = vrot.lane.b32.xlu2 %v359_v40, %s5058_s8  ;;  %v392_v56 = vrot.slane %v391_v52, 4  ;;  %v457_v4 = vshrl.u32 %v282_v57, 16  ;;  %v460_v5 = vshll.u32 %v282_v57, 16  ;;  %v450_v6 = vrot.slane %v449_v60, 4  ;;  %v4459_v35 = vld [vmem:[%s5135_s7 + $0x40] sm:$0xf] }
  0x35   : > { %v454_v7 = vrot.slane %v452_v61, 5  ;;  %v440_v8 = vrot.slane %v439_v62, 4  ;;  %v468_v9 = vrot.slane %v466_v63, 5  ;;  %v472_v10 = vrot.slane %v470_v0, 4  ;;  %v4469_v38 = vld [vmem:[%s5135_s7 + $0x18] sm:$0xf] }
  0x36   : > { %v397_v2 = vsel %vm5146_vm3, %v392_v56, %v396_v17  ;;  %v426_v12 = vrot.slane %v425_v3, 4  ;;  %v430_v13 = vrot.slane %v428_v1, 5  ;;  %v459_v14 = vrot.slane %v457_v4, 4  ;;  %v4467_v39 = vld [vmem:[%s5135_s7 + $0x10] sm:$0xf] }
  0x37   : > { %v462_v15 = vrot.slane %v460_v5, 5  ;;  %v455_v16 = vsel %vm5146_vm3, %v450_v6, %v454_v7  ;;  %v445_v17 = vsel %vm5146_vm3, %v440_v8, %v444_v47  ;;  %v473_v18 = vor.u32 %v472_v10, %v468_v9  ;;  %v4466_v45 = vld [vmem:[%s5135_s7 + $0xc] sm:$0xf]  ;;  %v4462_v44 = vld [vmem:[%s5135_s7 + $0x54] sm:$0xf] }
  0x38   : > { %v476_v19 = vshll.u32 %v284_v11, 16  ;;  %v431_v20 = vsel %vm5146_vm3, %v426_v12, %v430_v13  ;;  %v695_v40 = vshrl.u32 %v4469_v38, 16  ;;  %v698_v41 = vshll.u32 %v4469_v38, 16  ;;  %v4461_v46 = vld [vmem:[%s5135_s7 + $0x4c] sm:$0xf] }
  0x39   : > { %v463_v21 = vor.u32 %v462_v15, %v459_v14  ;;  %v474_v22 = vrot.slane %v473_v18, 4  ;;  %v680_v42 = vshll.u32 %v4467_v39, 16  ;;  %v684_v43 = vshrl.u32 %v4467_v39, 16  ;;  %v4460_v47 = vld [vmem:[%s5135_s7 + $0x48] sm:$0xf] }
  0x3a   : > { %v478_v23 = vrot.slane %v476_v19, 5  ;;  %v697_v48 = vrot.slane %v695_v40, 4  ;;  %v700_v49 = vrot.slane %v698_v41, 5  ;;  %v4470_v52 = vld [vmem:[%s5135_s7 + $0x1c] sm:$0xf]  ;;  %v671_v54 = vshrl.u32 %v4466_v45, 16 }
  0x3b   : > { %500 = vrot.lane.b32.xlu1 %v421_v58, %s5058_s8  ;;  %v464_v24 = vrot.slane %v463_v21, 4  ;;  %v5245_v50 = vrot.slane %v680_v42, 5  ;;  %v686_v51 = vrot.slane %v684_v43, 4  ;;  %v4468_v53 = vld [vmem:[%s5135_s7 + $0x14] sm:$0x1]  ;;  %v674_v55 = vshll.u32 %v4466_v45, 16 }
  0x3c   : > { %498 = vrot.lane.b32.xlu0 %v407_v59, %s5058_s8  ;;  %496 = vrot.lane.b32.xlu2 %v397_v2, %s5058_s8  ;;  %v479_v26 = vsel %vm5146_vm3, %v474_v22, %v478_v23  ;;  %v4473_v56 = vld [vmem:[%s5135_s7 + $0x28] sm:$0xf]  ;;  %v4472_v57 = vld [vmem:[%s5135_s7 + $0x24] sm:$0xf]  ;;  %v701_v58 = vor.u32 %v700_v49, %v697_v48  ;;  %v704_v59 = vshll.u32 %v4470_v52, 16  ;;  %v690_v61 = vshll.u32 %v4468_v53, 16 }
  0x3d   : > { %v469_v28 = vsel %vm5146_vm3, %v464_v24, %v468_v9  ;;  %v687_v60 = vor.u32 %v686_v51, %v5245_v50  ;;  %v728_v62 = vshll.u32 %v4473_v56, 16  ;;  %v732_v63 = vshrl.u32 %v4473_v56, 16  ;;  %v4465_v2 = vld [vmem:[%s5135_s7 + $0x64] sm:$0xf]  ;;  %v4474_v3 = vld [vmem:[%s5135_s7 + $0x2c] sm:$0x1] }
  0x3e   : > { %v673_v0 = vrot.slane %v671_v54, 4  ;;  %v676_v1 = vrot.slane %v674_v55, 5  ;;  %v719_v4 = vshrl.u32 %v4472_v57, 16  ;;  %v722_v5 = vshll.u32 %v4472_v57, 16  ;;  %v4464_v6 = vld [vmem:[%s5135_s7 + $0x60] sm:$0xf] }
  0x3f   : > { %v708_v7 = vshrl.u32 %v4470_v52, 16  ;;  %v4478_v8 = vld [vmem:[%s5135_s7 + $0x3c] sm:$0xf]  ;;  %v702_v9 = vrot.slane %v701_v58, 4  ;;  %v5259_v10 = vrot.slane %v704_v59, 5  ;;  %v688_v11 = vrot.slane %v687_v60, 4 }
  0x40   : > { %v692_v12 = vrot.slane %v690_v61, 5  ;;  %v4476_v13 = vld [vmem:[%s5135_s7 + $0x34] sm:$0xf]  ;;  %v4463_v14 = vld [vmem:[%s5135_s7 + $0x58] sm:$0xf]  ;;  %v5263_v15 = vrot.slane %v728_v62, 5  ;;  %v677_v18 = vor.u32 %v676_v1, %v673_v0 }
  0x41   : > { %v721_v19 = vrot.slane %v719_v4, 4  ;;  %v767_v21 = vshrl.u32 %v4478_v8, 16  ;;  %v770_v22 = vshll.u32 %v4478_v8, 16  ;;  %v752_v23 = vshll.u32 %v4476_v13, 16  ;;  %v232_v24 = vld [vmem:[%s5135_s7 + $0x18] sm:$0xf] }
  0x42   : > { %249 = vst.msk [vmem:[#allocation2 + $0x10] sm:$0xf] %vm244_vm4, %v232_v24  ;;  %v4477_v38 = vld [vmem:[%s5135_s7 + $0x38] sm:$0x1]  ;;  %v4482_v54 = vld [vmem:[%s5135_s7 + $0x4c] sm:$0xf] }
  0x43   : > { %506 = vrot.lane.b32.xlu1 %v455_v16, %s5058_s8  ;;  %v734_v16 = vrot.slane %v732_v63, 4  ;;  %v769_v42 = vrot.slane %v767_v21, 4  ;;  %v772_v43 = vrot.slane %v770_v22, 5  ;;  %v5286_v45 = vrot.slane %v752_v23, 5  ;;  %v4481_v55 = vld [vmem:[%s5135_s7 + $0x48] sm:$0xf] }
  0x44   : > { %504 = vrot.lane.b32.xlu0 %v445_v17, %s5058_s8  ;;  %502 = vrot.lane.b32.xlu2 %v431_v20, %s5058_s8  ;;  %v738_v17 = vshll.u32 %v4474_v3, 16  ;;  %v724_v20 = vrot.slane %v722_v5, 5  ;;  %v762_v53 = vshll.u32 %v4477_v38, 16  ;;  %v233_v57 = vld [vmem:[%s5135_s7 + $0x1c] sm:$0xf]  ;;  %v800_v0 = vshll.u32 %v4482_v54, 16 }
  0x45   : > { %v773_v58 = vor.u32 %v772_v43, %v769_v42  ;;  %250 = vst.msk [vmem:[#allocation2 + $0x14] sm:$0xf] %vm244_vm4, %v233_v57  ;;  %v231_v59 = vld [vmem:[%s5135_s7 + $0x10] sm:$0xf]  ;;  %v229_v60 = vld [vmem:[%s5135_s7 + $0x4] sm:$0xf] }
  0x46   : > { %v740_v41 = vrot.slane %v738_v17, 5  ;;  %248 = vst.msk [vmem:[#allocation2 + $0xc] sm:$0xf] %vm244_vm4, %v231_v59  ;;  %v804_v1 = vshrl.u32 %v4482_v54, 16  ;;  %v794_v3 = vshll.u32 %v4481_v55, 16  ;;  %vm4340_vm13 = vcmask 57344  }
  0x47   : > { %246 = vst.msk [vmem:[#allocation2 + $0x4] sm:$0xf] %vm244_vm4, %v229_v60  ;;  %v4483_v5 = vld [vmem:[%s5135_s7 + $0x50] sm:$0x1]  ;;  %v4485_v21 = vld [vmem:[%s5135_s7 + $0x58] sm:$0xf] }
  0x48   : > { %v810_v17 = vshll.u32 %v4483_v5, 16  ;;  %v236_v22 = vld [vmem:[%s5135_s7 + $0x30] sm:$0xf]  ;;  %v235_v23 = vld [vmem:[%s5135_s7 + $0x28] sm:$0xf] }
  0x49   : > { %253 = vst.msk [vmem:[#allocation2 + $0x20] sm:$0xf] %vm244_vm4, %v236_v22  ;;  %v234_v24 = vld [vmem:[%s5135_s7 + $0x24] sm:$0xf]  ;;  %v238_v54 = vld [vmem:[%s5135_s7 + $0x3c] sm:$0xf] }
  0x4a   : > { %252 = vst.msk [vmem:[#allocation2 + $0x1c] sm:$0xf] %vm244_vm4, %v235_v23  ;;  %v812_v38 = vrot.slane %v810_v17, 5  ;;  %v1427_v22 = vld [vmem:[%s5135_s7 + $0x8] sm:$0x1] }
  0x4b   : > { %581 = vrot.lane.b32.xlu1 %v4450_v25, %s5059_s9  ;;  %v4475_v25 = vld [vmem:[%s5135_s7 + $0x30] sm:$0xf]  ;;  %251 = vst.msk [vmem:[#allocation2 + $0x18] sm:$0xf] %vm244_vm4, %v234_v24  ;;  %v1425_v23 = vld [vmem:[%s5135_s7] sm:$0xe] }
  0x4c   : > { %510 = vrot.lane.b32.xlu0 %v479_v26, %s5058_s8  ;;  %508 = vrot.lane.b32.xlu2 %v469_v28, %s5058_s8  ;;  %v230_v26 = vld [vmem:[%s5135_s7 + $0xc] sm:$0xf]  ;;  %v228_v28 = vld [vmem:[%s5135_s7] sm:$0xf]  ;;  %v743_v39 = vshrl.u32 %v4475_v25, 16  ;;  %v746_v40 = vshll.u32 %v4475_v25, 16 }
  0x4d   : > { %247 = vst.msk [vmem:[#allocation2 + $0x8] sm:$0xf] %vm244_vm4, %v230_v26 }
  0x4e   : > { %245 = vst.msk [vmem:[#allocation2] sm:$0xf] %vm244_vm4, %v228_v28  ;;  %v745_v56 = vrot.slane %v743_v39, 4 }
  0x4f   : > { %255 = vst.msk [vmem:[#allocation2 + $0x28] sm:$0xf] %vm244_vm4, %v238_v54 }
  0x53   : > { %587 = vrot.lane.b32.xlu1 %v4453_v29, %s5059_s9  ;;  %v678_v29 = vrot.slane %v677_v18, 4  ;;  %v796_v18 = vrot.slane %v794_v3, 5 }
  0x54   : > { %585 = vrot.lane.b32.xlu0 %v4452_v30, %s5059_s9  ;;  %583 = vrot.lane.b32.xlu2 %v4451_v31, %s5059_s9  ;;  %v756_v30 = vshrl.u32 %v4476_v13, 16  ;;  %v710_v31 = vrot.slane %v708_v7, 4 }
  0x5b   : > { %593 = vrot.lane.b32.xlu1 %v4456_v32, %s5059_s9  ;;  %v735_v32 = vor.u32 %v734_v16, %v5263_v15  ;;  %v806_v16 = vrot.slane %v804_v1, 4 }
  0x5c   : > { %591 = vrot.lane.b32.xlu0 %v4455_v33, %s5059_s9  ;;  %589 = vrot.lane.b32.xlu2 %v4454_v34, %s5059_s9  ;;  %v725_v33 = vor.u32 %v724_v20, %v721_v19  ;;  %v4471_v34 = vld [vmem:[%s5135_s7 + $0x20] sm:$0x1] }
  0x5d   : > { %v714_v48 = vshll.u32 %v4471_v34, 16  ;;  %v736_v49 = vrot.slane %v735_v32, 4  ;;  %v4487_v19 = vld [vmem:[%s5135_s7 + $0x60] sm:$0xf]  ;;  %v4480_v32 = vld [vmem:[%s5135_s7 + $0x44] sm:$0x1] }
  0x5e   : > { %v726_v51 = vrot.slane %v725_v33, 4  ;;  %v839_v25 = vshrl.u32 %v4487_v19, 16  ;;  %v842_v26 = vshll.u32 %v4487_v19, 16  ;;  %v4484_v33 = vld [vmem:[%s5135_s7 + $0x54] sm:$0xf] }
  0x5f   : > { %v716_v63 = vrot.slane %v714_v48, 5  ;;  %v741_v4 = vsel %vm5146_vm3, %v736_v49, %v740_v41  ;;  %v786_v41 = vshll.u32 %v4480_v32, 16  ;;  %v815_v42 = vshrl.u32 %v4484_v33, 16 }
  0x60   : > { %v731_v7 = vsel %vm5146_vm3, %v726_v51, %v5263_v15  ;;  %v818_v43 = vshll.u32 %v4484_v33, 16  ;;  %v841_v48 = vrot.slane %v839_v25, 4  ;;  %v844_v49 = vrot.slane %v842_v26, 5  ;;  %v4486_v51 = vld [vmem:[%s5135_s7 + $0x5c] sm:$0x1] }
  0x61   : > { %v817_v57 = vrot.slane %v815_v42, 4  ;;  %v834_v1 = vshll.u32 %v4486_v51, 16  ;;  %v4534_v32 = vrot.slane %v1425_v23, 9  ;;  %v1429_v33 = vld [vmem:[%s5135_s7 + $0x10] sm:$0xf] }
  0x62   : > { %v1432_v42 = vld [vmem:[%s5135_s7 + $0x1c] sm:$0xf]  ;;  %v1445_v23 = vld [vmem:[%s5135_s7 + $0x50] sm:$0x1] }
  0x63   : > { %599 = vrot.lane.b32.xlu1 %v4459_v35, %s5059_s9  ;;  %v707_v35 = vsel %vm5146_vm3, %v702_v9, %v5259_v10 }
  0x64   : > { %597 = vrot.lane.b32.xlu0 %v4458_v36, %s5059_s9  ;;  %595 = vrot.lane.b32.xlu2 %v4457_v37, %s5059_s9  ;;  %v693_v36 = vsel %vm5146_vm3, %v688_v11, %v692_v12  ;;  %v5283_v37 = vld [vmem:[%s5135_s7 + $0x40] sm:$0xf]  ;;  %v774_v11 = vrot.slane %v773_v58, 4  ;;  %v820_v58 = vrot.slane %v818_v43, 5  ;;  %v1485_v43 = vrot.slane %v1429_v33, 5 }
  0x65   : > { %v776_v52 = vshll.u32 %v5283_v37, 16  ;;  %v780_v9 = vshrl.u32 %v5283_v37, 16  ;;  %v1523_v33 = vrot.slane %v1445_v23, 5 }
  0x67   : > { %v778_v8 = vrot.slane %v776_v52, 5  ;;  %v782_v28 = vrot.slane %v780_v9, 4 }
  0x69   : > { %v779_v34 = vsel %vm5146_vm3, %v774_v11, %v778_v8  ;;  %v1426_v11 = vld [vmem:[%s5135_s7 + $0x4] sm:$0xf] }
  0x6b   : > { %605 = vrot.lane.b32.xlu1 %v4462_v44, %s5059_s9  ;;  %v683_v44 = vsel %vm5146_vm3, %v678_v29, %v5245_v50  ;;  %v748_v50 = vrot.slane %v746_v40, 5  ;;  %v783_v40 = vor.u32 %v782_v28, %v778_v8 }
  0x6c   : > { %603 = vrot.lane.b32.xlu0 %v4461_v46, %s5059_s9  ;;  %601 = vrot.lane.b32.xlu2 %v4460_v47, %s5059_s9  ;;  %v758_v46 = vrot.slane %v756_v30, 4  ;;  %v711_v47 = vor.u32 %v710_v31, %v5259_v10  ;;  %v764_v10 = vrot.slane %v762_v53, 5 }
  0x6e   : > { %v759_v61 = vor.u32 %v758_v46, %v5286_v45  ;;  %v712_v62 = vrot.slane %v711_v47, 4  ;;  %v4488_v47 = vld [vmem:[%s5135_s7 + $0x64] sm:$0xf] }
  0x70   : > { %v760_v12 = vrot.slane %v759_v61, 4  ;;  %v717_v13 = vsel %vm5146_vm3, %v712_v62, %v716_v63  ;;  %v845_v61 = vor.u32 %v844_v49, %v841_v48  ;;  %v848_v62 = vshll.u32 %v4488_v47, 16 }
  0x71   : > { %v1492_v49 = vrot.slane %v1432_v42, 5 }
  0x72   : > { %v765_v37 = vsel %vm5146_vm3, %v760_v12, %v764_v10  ;;  %v846_v5 = vrot.slane %v845_v61, 4  ;;  %v836_v10 = vrot.slane %v834_v1, 5 }
  0x73   : > { %611 = vrot.lane.b32.xlu1 %v4465_v2, %s5059_s9  ;;  %v791_v2 = vshrl.u32 %v4481_v55, 16  ;;  %v237_v55 = vld [vmem:[%s5135_s7 + $0x34] sm:$0xf] }
  0x74   : > { %609 = vrot.lane.b32.xlu0 %v4464_v6, %s5059_s9  ;;  %607 = vrot.lane.b32.xlu2 %v4463_v14, %s5059_s9  ;;  %v749_v6 = vor.u32 %v748_v50, %v745_v56  ;;  %v5314_v14 = vrot.slane %v800_v0, 5  ;;  %v784_v56 = vrot.slane %v783_v40, 4  ;;  %v788_v50 = vrot.slane %v786_v41, 5  ;;  %254 = vst.msk [vmem:[#allocation2 + $0x24] sm:$0xf] %vm244_vm4, %v237_v55 }
  0x75   : > { %v793_v15 = vrot.slane %v791_v2, 4  ;;  %v852_v2 = vshrl.u32 %v4488_v47, 16  ;;  %v1431_v40 = vld [vmem:[%s5135_s7 + $0x18] sm:$0xe]  ;;  %v1428_v47 = vld [vmem:[%s5135_s7 + $0xc] sm:$0xe] }
  0x76   : > { %v750_v20 = vrot.slane %v749_v6, 4  ;;  %v807_v29 = vor.u32 %v806_v16, %v5314_v14  ;;  %v789_v3 = vsel %vm5146_vm3, %v784_v56, %v788_v50  ;;  %v850_v6 = vrot.slane %v848_v62, 5  ;;  %v241_v16 = vld [vmem:[%s5135_s7 + $0x4c] sm:$0xf]  ;;  %v1433_v62 = vld [vmem:[%s5135_s7 + $0x20] sm:$0x1] }
  0x77   : > { %v797_v30 = vor.u32 %v796_v18, %v793_v15  ;;  %v4489_v15 = vld [vmem:[%s5135_s7 + $0x68] sm:$0x1]  ;;  %258 = vst.msk [vmem:[#allocation2 + $0x34] sm:$0xf] %vm244_vm4, %v241_v16  ;;  %v4536_v48 = vrot.slane %v1431_v40, 9  ;;  %v4535_v55 = vrot.slane %v1428_v47, 9 }
  0x78   : > { %v755_v39 = vsel %vm5146_vm3, %v750_v20, %v5286_v45  ;;  %v239_v45 = vld [vmem:[%s5135_s7 + $0x40] sm:$0xf]  ;;  %v240_v18 = vld [vmem:[%s5135_s7 + $0x48] sm:$0xf]  ;;  %v851_v19 = vsel %vm5146_vm3, %v846_v5, %v850_v6  ;;  %v1478_v20 = vrot.slane %v1426_v11, 5  ;;  %v858_v26 = vshll.u32 %v4489_v15, 16 }
  0x79   : > { %v798_v46 = vrot.slane %v797_v30, 4  ;;  %256 = vst.msk [vmem:[#allocation2 + $0x2c] sm:$0xf] %vm244_vm4, %v239_v45  ;;  %v1435_v45 = vld [vmem:[%s5135_s7 + $0x28] sm:$0xf]  ;;  %v1493_v50 = vsel %vm5385_vm8, %v4536_v48, %v1492_v49  ;;  %v1486_v61 = vsel %vm5385_vm8, %v4535_v55, %v1485_v43  ;;  %v1494_v5 = vrot.slane %v1492_v49, 4 }
  0x7a   : > { %257 = vst.msk [vmem:[#allocation2 + $0x30] sm:$0xf] %vm244_vm4, %v240_v18  ;;  %v1480_v28 = vrot.slane %v1478_v20, 4  ;;  %v1479_v41 = vsel %vm5385_vm8, %v4534_v32, %v1478_v20  ;;  %v1439_v16 = vld [vmem:[%s5135_s7 + $0x38] sm:$0x1] }
  0x7b   : > { %866 = vrot.lane.b32.xlu1 %v707_v35, %s5060_s10  ;;  %v824_v35 = vshll.u32 %v4485_v21, 16  ;;  %v803_v63 = vsel %vm5146_vm3, %v798_v46, %v5314_v14  ;;  %v854_v14 = vrot.slane %v852_v2, 4  ;;  %v1437_v18 = vld [vmem:[%s5135_s7 + $0x30] sm:$0xe] }
  0x7c   : > { %864 = vrot.lane.b32.xlu0 %v693_v36, %s5060_s10  ;;  %862 = vrot.lane.b32.xlu2 %v683_v44, %s5060_s10  ;;  %v828_v36 = vshrl.u32 %v4485_v21, 16  ;;  %v808_v44 = vrot.slane %v807_v29, 4  ;;  %v1481_v29 = vrot.slane %v1427_v22, 5  ;;  %v4551_v47 = vld [vmem:[%s5135_s7 + $0x30] sm:$0xf] }
  0x7d   : > { %v5342_v52 = vrot.slane %v824_v35, 5  ;;  %v855_v25 = vor.u32 %v854_v14, %v850_v6  ;;  %v1495_v6 = vrot.slane %v1433_v62, 5  ;;  %v1693_v62 = vshrl.u32 %v4551_v47, 16 }
  0x7e   : > { %v830_v53 = vrot.slane %v828_v36, 4  ;;  %v813_v60 = vsel %vm5146_vm3, %v808_v44, %v812_v38  ;;  %v860_v36 = vrot.slane %v858_v26, 5  ;;  %v1430_v44 = vld [vmem:[%s5135_s7 + $0x14] sm:$0x1]  ;;  %v1509_v26 = vrot.slane %v1439_v16, 5 }
  0x7f   : > { %v856_v35 = vrot.slane %v855_v25, 4  ;;  %v4547_v16 = vld [vmem:[%s5135_s7 + $0x20] sm:$0x1] }
  0x80   : > { %v831_v0 = vor.u32 %v830_v53, %v5342_v52  ;;  %v1488_v53 = vrot.slane %v1430_v44, 5  ;;  %v4545_v44 = vld [vmem:[%s5135_s7 + $0x18] sm:$0xf] }
  0x81   : > { %v861_v46 = vsel %vm5146_vm3, %v856_v35, %v860_v36 }
  0x82   : > { %v832_v9 = vrot.slane %v831_v0, 4 }
  0x83   : > { %872 = vrot.lane.b32.xlu1 %v741_v4, %s5060_s10  ;;  %v821_v4 = vor.u32 %v820_v58, %v817_v57  ;;  %v1499_v57 = vrot.slane %v1435_v45, 5 }
  0x84   : > { %870 = vrot.lane.b32.xlu0 %v731_v7, %s5060_s10  ;;  %868 = vrot.lane.b32.xlu2 %v717_v13, %s5060_s10  ;;  %v242_v7 = vld [vmem:[%s5135_s7 + $0x54] sm:$0xf]  ;;  %v837_v21 = vsel %vm5146_vm3, %v832_v9, %v836_v10  ;;  %v5432_v9 = vld [vmem:[%s5135_s7 + $0x4c] sm:$0xf] }
  0x85   : > { %259 = vst.msk [vmem:[#allocation2 + $0x38] sm:$0xf] %vm244_vm4, %v242_v7  ;;  %v822_v13 = vrot.slane %v821_v4, 4  ;;  %v1438_v4 = vld [vmem:[%s5135_s7 + $0x34] sm:$0xf]  ;;  %v1520_v15 = vrot.slane %v5432_v9, 5 }
  0x86   : > { %v489_v31 = vpop.permute.xlu2 %488  ;;  %v4542_v10 = vld [vmem:[%s5135_s7 + $0xc] sm:$0xf]  ;;  %v1506_v14 = vrot.slane %v1438_v4, 5  ;;  %v1446_v9 = vld [vmem:[%s5135_s7 + $0x54] sm:$0xe] }
  0x87   : > { %533 = vst.msk [vmem:[#allocation2 + $0x10] sm:$0xf] %vm528_vm5, %v489_v31  ;;  %v827_v24 = vsel %vm5146_vm3, %v822_v13, %v5342_v52  ;;  %v1487_v52 = vrot.slane %v1485_v43, 4  ;;  %v1441_v13 = vld [vmem:[%s5135_s7 + $0x40] sm:$0xf]  ;;  %v1624_v20 = vshll.u32 %v4542_v10, 16 }
  0x88   : > { %v1513_v22 = vrot.slane %v1441_v13, 5  ;;  %v1508_v25 = vrot.slane %v1506_v14, 4  ;;  %v1522_v32 = vrot.slane %v1520_v15, 4 }
  0x89   : > { %v1489_v58 = vsel %vm5385_vm8, %v1487_v52, %v1488_v53  ;;  %v1626_v36 = vrot.slane %v1624_v20, 5  ;;  %v1442_v52 = vld [vmem:[%s5135_s7 + $0x44] sm:$0x1]  ;;  %v4549_v53 = vld [vmem:[%s5135_s7 + $0x28] sm:$0xf] }
  0x8a   : > { %v1510_v40 = vsel %vm5385_vm8, %v1508_v25, %v1509_v26  ;;  %v1524_v48 = vsel %vm5385_vm8, %v1522_v32, %v1523_v33  ;;  %v4554_v20 = vld [vmem:[%s5135_s7 + $0x3c] sm:$0xf]  ;;  %v4544_v32 = vld [vmem:[%s5135_s7 + $0x14] sm:$0x1] }
  0x8b   : > { %878 = vrot.lane.b32.xlu1 %v779_v34, %s5060_s10  ;;  %v1717_v33 = vshrl.u32 %v4554_v20, 16 }
  0x8c   : > { %876 = vrot.lane.b32.xlu0 %v765_v37, %s5060_s10  ;;  %874 = vrot.lane.b32.xlu2 %v755_v39, %s5060_s10  ;;  %v243_v37 = vld [vmem:[%s5135_s7 + $0x58] sm:$0xf]  ;;  %v1482_v39 = vsel %vm5385_vm8, %v1480_v28, %v1481_v29  ;;  %v4538_v29 = vrot.slane %v1437_v18, 9 }
  0x8d   : > { %260 = vst.msk [vmem:[#allocation2 + $0x3c] sm:$0xf] %vm244_vm4, %v243_v37 }
  0x8e   : > { %v491_v59 = vpop.permute.xlu2 %490 }
  0x8f   : > { %534 = vst.msk [vmem:[#allocation2 + $0x14] sm:$0xf] %vm528_vm5, %v491_v59  ;;  %v1436_v59 = vld [vmem:[%s5135_s7 + $0x2c] sm:$0x1] }
  0x90   : > { %v1502_v0 = vrot.slane %v1436_v59, 5 }
  0x93   : > { %884 = vrot.lane.b32.xlu1 %v813_v60, %s5060_s10  ;;  %v1434_v60 = vld [vmem:[%s5135_s7 + $0x24] sm:$0xe] }
  0x94   : > { %882 = vrot.lane.b32.xlu0 %v803_v63, %s5060_s10  ;;  %880 = vrot.lane.b32.xlu2 %v789_v3, %s5060_s10  ;;  %v1501_v63 = vrot.slane %v1499_v57, 4  ;;  %v4537_v2 = vrot.slane %v1434_v60, 9 }
  0x95   : > { %v485_v8 = vpop.permute.xlu1 %484 }
  0x96   : > { %531 = vst.msk [vmem:[#allocation2 + $0x8] sm:$0xf] %vm528_vm5, %v485_v8  ;;  %v481_v12 = vpop.permute.xlu0 %480  ;;  %v497_v17 = vpop.permute.xlu2 %496  ;;  %v1503_v8 = vsel %vm5385_vm8, %v1501_v63, %v1502_v0  ;;  %v1500_v11 = vsel %vm5385_vm8, %v4537_v2, %v1499_v57  ;;  %v1515_v0 = vrot.slane %v1513_v22, 4  ;;  %v1696_v2 = vshll.u32 %v4551_v47, 16 }
  0x97   : > { %529 = vst.msk [vmem:[#allocation2] sm:$0xf] %vm528_vm5, %v481_v12  ;;  %v1440_v12 = vld [vmem:[%s5135_s7 + $0x3c] sm:$0xe] }
  0x98   : > { %537 = vst.msk [vmem:[#allocation2 + $0x20] sm:$0xf] %vm528_vm5, %v497_v17  ;;  %v1496_v17 = vsel %vm5385_vm8, %v1494_v5, %v1495_v6  ;;  %v1682_v6 = vshrl.u32 %v4549_v53, 16  ;;  %v1698_v23 = vrot.slane %v1696_v2, 5 }
  0x9b   : > { %890 = vrot.lane.b32.xlu1 %v851_v19, %s5060_s10  ;;  %v1621_v19 = vshrl.u32 %v4542_v10, 16 }
  0x9c   : > { %888 = vrot.lane.b32.xlu0 %v837_v21, %s5060_s10  ;;  %886 = vrot.lane.b32.xlu2 %v827_v24, %s5060_s10  ;;  %v4539_v21 = vrot.slane %v1440_v12, 9 }
  0x9d   : > { %v487_v30 = vpop.permute.xlu1 %486  ;;  %v1623_v35 = vrot.slane %v1621_v19, 4  ;;  %v1695_v19 = vrot.slane %v1693_v62, 4 }
  0x9e   : > { %532 = vst.msk [vmem:[#allocation2 + $0xc] sm:$0xf] %vm528_vm5, %v487_v30  ;;  %v483_v34 = vpop.permute.xlu0 %482  ;;  %v503_v38 = vpop.permute.xlu2 %502  ;;  %v4546_v30 = vld [vmem:[%s5135_s7 + $0x1c] sm:$0xf]  ;;  %v1514_v37 = vsel %vm5385_vm8, %v4539_v21, %v1513_v22  ;;  %v5498_v22 = vld [vmem:[%s5135_s7 + $0x34] sm:$0xf] }
  0x9f   : > { %530 = vst.msk [vmem:[#allocation2 + $0x4] sm:$0xf] %vm528_vm5, %v483_v34  ;;  %v1654_v42 = vshll.u32 %v4546_v30, 16  ;;  %v1658_v43 = vshrl.u32 %v4546_v30, 16  ;;  %v1664_v30 = vshll.u32 %v4547_v16, 16 }
  0xa0   : > { %540 = vst.msk [vmem:[#allocation2 + $0x2c] sm:$0xf] %vm528_vm5, %v503_v38  ;;  %v1443_v38 = vld [vmem:[%s5135_s7 + $0x48] sm:$0xe] }
  0xa1   : > { %v4540_v49 = vrot.slane %v1443_v38, 9  ;;  %v5477_v59 = vrot.slane %v1654_v42, 5  ;;  %v1660_v60 = vrot.slane %v1658_v43, 4 }
  0xa3   : > { %1534 = vrot.lane.b32.xlu1 %v1482_v39, %s5058_s8  ;;  %v4543_v39 = vld [vmem:[%s5135_s7 + $0x10] sm:$0xf] }
  0xa4   : > { %1532 = vrot.lane.b32.xlu0 %v1479_v41, %s5058_s8  ;;  %892 = vrot.lane.b32.xlu2 %v861_v46, %s5060_s10  ;;  %v5461_v41 = vld [vmem:[%s5135_s7 + $0x58] sm:$0xf]  ;;  %v1507_v46 = vsel %vm5385_vm8, %v4538_v29, %v1506_v14  ;;  %v1630_v45 = vshll.u32 %v4543_v39, 16  ;;  %v1521_v14 = vsel %vm5385_vm8, %v4540_v49, %v1520_v15  ;;  %v1684_v15 = vrot.slane %v1682_v6, 4 }
  0xa5   : > { %v495_v51 = vpop.permute.xlu1 %494  ;;  %v1527_v55 = vrot.slane %v5461_v41, 5  ;;  %v4558_v41 = vld [vmem:[%s5135_s7 + $0x4c] sm:$0xf] }
  0xa6   : > { %536 = vst.msk [vmem:[#allocation2 + $0x1c] sm:$0xf] %vm528_vm5, %v495_v51  ;;  %v493_v54 = vpop.permute.xlu0 %492  ;;  %v509_v56 = vpop.permute.xlu2 %508  ;;  %v1627_v51 = vor.u32 %v1626_v36, %v1623_v35  ;;  %v5483_v10 = vrot.slane %v1630_v45, 5 }
  0xa7   : > { %535 = vst.msk [vmem:[#allocation2 + $0x18] sm:$0xf] %vm528_vm5, %v493_v54  ;;  %v1634_v54 = vshrl.u32 %v4543_v39, 16  ;;  %v1702_v39 = vshll.u32 %v5498_v22, 16 }
  0xa8   : > { %543 = vst.msk [vmem:[#allocation2 + $0x38] sm:$0xf] %vm528_vm5, %v509_v56  ;;  %v1645_v56 = vshrl.u32 %v4545_v44, 16  ;;  %v5481_v4 = vrot.slane %v1627_v51, 4 }
  0xa9   : > { %v1636_v26 = vrot.slane %v1634_v54, 4  ;;  %v1666_v54 = vrot.slane %v1664_v30, 5  ;;  %v5535_v2 = vrot.slane %v1702_v39, 5 }
  0xaa   : > { %v1647_v13 = vrot.slane %v1645_v56, 4  ;;  %v1633_v36 = vsel %vm5146_vm3, %v5481_v4, %v5483_v10  ;;  %v4560_v4 = vld [vmem:[%s5135_s7 + $0x54] sm:$0xf] }
  0xab   : > { %1540 = vrot.lane.b32.xlu1 %v1493_v50, %s5058_s8  ;;  %v4555_v50 = vld [vmem:[%s5135_s7 + $0x40] sm:$0xf] }
  0xac   : > { %1538 = vrot.lane.b32.xlu0 %v1489_v58, %s5058_s8  ;;  %1536 = vrot.lane.b32.xlu2 %v1486_v61, %s5058_s8  ;;  %v1448_v58 = vld [vmem:[%s5135_s7 + $0x5c] sm:$0x1]  ;;  %v1648_v61 = vshll.u32 %v4545_v44, 16  ;;  %v4541_v44 = vrot.slane %v1446_v9, 9 }
  0xad   : > { %v501_v1 = vpop.permute.xlu1 %500  ;;  %v1530_v12 = vrot.slane %v1448_v58, 5 }
  0xae   : > { %539 = vst.msk [vmem:[#allocation2 + $0x28] sm:$0xf] %vm528_vm5, %v501_v1  ;;  %v499_v3 = vpop.permute.xlu0 %498  ;;  %v584_v7 = vpop.permute.xlu2 %583  ;;  %v1516_v1 = vrot.slane %v1442_v52, 5  ;;  %v1650_v18 = vrot.slane %v1648_v61, 5  ;;  %v1637_v52 = vor.u32 %v1636_v26, %v5483_v10  ;;  %v1177_v61 = vld [vmem:[%s5135_s7] sm:$0xf] }
  0xaf   : > { %538 = vst.msk [vmem:[#allocation2 + $0x24] sm:$0xf] %vm528_vm5, %v499_v3  ;;  %v1678_v3 = vshll.u32 %v4549_v53, 16  ;;  %v1640_v53 = vshll.u32 %v4544_v32, 16  ;;  %v1181_v26 = vld [vmem:[%s5135_s7 + $0x10] sm:$0xf] }
  0xb0   : > { %631 = vst.msk [vmem:[#allocation2 + $0x4] sm:$0xf] %vm629_vm9, %v584_v7  ;;  %v1726_v7 = vshll.u32 %v4555_v50, 16  ;;  %v1517_v21 = vsel %vm5385_vm8, %v1515_v0, %v1516_v1  ;;  %v1651_v38 = vor.u32 %v1650_v18, %v1647_v13  ;;  %v1528_v0 = vsel %vm5385_vm8, %v4541_v44, %v1527_v55 }
  0xb1   : > { %v5501_v25 = vrot.slane %v1678_v3, 5  ;;  %v1638_v6 = vrot.slane %v1637_v52, 4  ;;  %v1768_v18 = vshll.u32 %v4560_v4, 16 }
  0xb2   : > { %v1652_v58 = vrot.slane %v1651_v38, 4 }
  0xb3   : > { %1546 = vrot.lane.b32.xlu1 %v1503_v8, %s5058_s8  ;;  %v1730_v8 = vshrl.u32 %v4555_v50, 16  ;;  %v1685_v51 = vor.u32 %v1684_v15, %v5501_v25  ;;  %v1719_v50 = vrot.slane %v1717_v33, 4  ;;  %v1770_v39 = vrot.slane %v1768_v18, 5  ;;  %v4562_v18 = vld [vmem:[%s5135_s7 + $0x5c] sm:$0x1] }
  0xb4   : > { %1544 = vrot.lane.b32.xlu0 %v1500_v11, %s5058_s8  ;;  %1542 = vrot.lane.b32.xlu2 %v1496_v17, %s5058_s8  ;;  %v1529_v11 = vrot.slane %v1527_v55, 4  ;;  %v1661_v17 = vor.u32 %v1660_v60, %v5477_v59  ;;  %v1706_v60 = vshrl.u32 %v5498_v22, 16  ;;  %v1657_v9 = vsel %vm5146_vm3, %v1652_v58, %v5477_v59  ;;  %v4559_v59 = vld [vmem:[%s5135_s7 + $0x50] sm:$0x1] }
  0xb5   : > { %v507_v24 = vpop.permute.xlu1 %506  ;;  %v1732_v29 = vrot.slane %v1730_v8, 4  ;;  %v1760_v58 = vshll.u32 %v4559_v59, 16 }
  0xb6   : > { %542 = vst.msk [vmem:[#allocation2 + $0x34] sm:$0xf] %vm528_vm5, %v507_v24  ;;  %v505_v28 = vpop.permute.xlu0 %504  ;;  %v590_v34 = vpop.permute.xlu2 %589  ;;  %v4550_v24 = vld [vmem:[%s5135_s7 + $0x2c] sm:$0x1]  ;;  %v1531_v43 = vsel %vm5385_vm8, %v1529_v11, %v1530_v12  ;;  %v1202_v11 = vshrl.u32 %v1177_v61, 16  ;;  %v1205_v12 = vshll.u32 %v1177_v61, 16 }
  0xb7   : > { %541 = vst.msk [vmem:[#allocation2 + $0x30] sm:$0xf] %vm528_vm5, %v505_v28  ;;  %v5505_v28 = vrot.slane %v1726_v7, 5  ;;  %v1688_v47 = vshll.u32 %v4550_v24, 16  ;;  %v1642_v7 = vrot.slane %v1640_v53, 5  ;;  %v1708_v61 = vrot.slane %v1706_v60, 4 }
  0xb8   : > { %634 = vst.msk [vmem:[#allocation2 + $0x10] sm:$0xf] %vm629_vm9, %v590_v34  ;;  %v1720_v34 = vshll.u32 %v4554_v20, 16  ;;  %v5552_v20 = vld [vmem:[%s5135_s7 + $0x4] sm:$0xf]  ;;  %v1204_v32 = vrot.slane %v1202_v11, 4 }
  0xb9   : > { %v1733_v45 = vor.u32 %v1732_v29, %v5505_v28  ;;  %v5537_v3 = vrot.slane %v1688_v47, 5  ;;  %v1180_v29 = vld [vmem:[%s5135_s7 + $0xc] sm:$0xf]  ;;  %v1643_v30 = vsel %vm5146_vm3, %v1638_v6, %v1642_v7  ;;  %v1207_v33 = vrot.slane %v1205_v12, 5  ;;  %v4553_v11 = vld [vmem:[%s5135_s7 + $0x38] sm:$0x1] }
  0xba   : > { %v1211_v44 = vshll.u32 %v5552_v20, 16  ;;  %v4557_v12 = vld [vmem:[%s5135_s7 + $0x48] sm:$0xf] }
  0xbb   : > { %1552 = vrot.lane.b32.xlu1 %v1514_v37, %s5058_s8  ;;  %v5514_v37 = vrot.slane %v1661_v17, 4  ;;  %v5543_v8 = vrot.slane %v1733_v45, 4  ;;  %v1765_v17 = vshrl.u32 %v4560_v4, 16 }
  0xbc   : > { %1550 = vrot.lane.b32.xlu0 %v1510_v40, %s5058_s8  ;;  %1548 = vrot.lane.b32.xlu2 %v1507_v46, %s5058_s8  ;;  %v4556_v40 = vld [vmem:[%s5135_s7 + $0x44] sm:$0x1]  ;;  %v1699_v46 = vor.u32 %v1698_v23, %v1695_v19  ;;  %v1754_v23 = vshrl.u32 %v4558_v41, 16 }
  0xbd   : > { %v582_v57 = vpop.permute.xlu1 %581  ;;  %v1736_v56 = vshll.u32 %v4556_v40, 16  ;;  %v1667_v24 = vsel %vm5146_vm3, %v5514_v37, %v1666_v54  ;;  %v4561_v37 = vld [vmem:[%s5135_s7 + $0x58] sm:$0xf]  ;;  %v1767_v38 = vrot.slane %v1765_v17, 4  ;;  %v1235_v40 = vshll.u32 %v1181_v26, 16  ;;  %v4941_v54 = vld [vmem:[%s7204_s1] sm:$0xff] }
  0xbe   : > { %630 = vst.msk [vmem:[#allocation2] sm:$0xf] %vm629_vm9, %v582_v57  ;;  %v511_v63 = vpop.permute.xlu0 %510  ;;  %v596_v5 = vpop.permute.xlu2 %595  ;;  %v1722_v57 = vrot.slane %v1720_v34, 5  ;;  %v5533_v1 = vrot.slane %v1699_v46, 4  ;;  %v1239_v34 = vshrl.u32 %v1181_v26, 16  ;;  %v1215_v46 = vshrl.u32 %v5552_v20, 16  ;;  %1023 = vmatpush.bf16.msra.mxu0 %v4941_v54 }
  0xbf   : > { %544 = vst.msk [vmem:[#allocation2 + $0x3c] sm:$0xf] %vm528_vm5, %v511_v63  ;;  %v5547_v55 = vrot.slane %v1736_v56, 5  ;;  %v1774_v52 = vshll.u32 %v4561_v37, 16  ;;  %v1778_v53 = vshrl.u32 %v4561_v37, 16  ;;  %v1709_v17 = vor.u32 %v1708_v61, %v5535_v2 }
  0xc0   : > { %637 = vst.msk [vmem:[#allocation2 + $0x1c] sm:$0xf] %vm629_vm9, %v596_v5  ;;  %v5541_v5 = vrot.slane %v1685_v51, 4  ;;  %v1723_v10 = vor.u32 %v1722_v57, %v1719_v50  ;;  %v1208_v51 = vor.u32 %v1207_v33, %v1204_v32  ;;  %v1241_v45 = vrot.slane %v1239_v34, 4  ;;  %v1186_v20 = vld [vmem:[%s5135_s7 + $0x24] sm:$0xf] }
  0xc1   : > { %v1771_v57 = vor.u32 %v1770_v39, %v1767_v38  ;;  %v1705_v7 = vsel %vm5146_vm3, %v5533_v1, %v5535_v2  ;;  %v1739_v60 = vsel %vm5146_vm3, %v5543_v8, %v5547_v55  ;;  %v5605_v1 = vrot.slane %v1774_v52, 5  ;;  %v1179_v2 = vld [vmem:[%s5135_s7 + $0x8] sm:$0x1]  ;;  %v5631_v34 = vld [vmem:[%s5135_s7 + $0x14] sm:$0x1] }
  0xc2   : > { %v1691_v22 = vsel %vm5146_vm3, %v5541_v5, %v5537_v3  ;;  %v1784_v33 = vshll.u32 %v4562_v18, 16  ;;  %v1274_v37 = vshrl.u32 %v1186_v20, 16  ;;  %v1277_v38 = vshll.u32 %v1186_v20, 16  ;;  %v1190_v55 = vld [vmem:[%s5135_s7 + $0x34] sm:$0xf] }
  0xc3   : > { %1558 = vrot.lane.b32.xlu1 %v1524_v48, %s5058_s8  ;;  %v4548_v48 = vld [vmem:[%s5135_s7 + $0x24] sm:$0xf] }
  0xc4   : > { %1556 = vrot.lane.b32.xlu0 %v1521_v14, %s5058_s8  ;;  %1554 = vrot.lane.b32.xlu2 %v1517_v21, %s5058_s8  ;;  %v1669_v62 = vshrl.u32 %v4548_v48, 16  ;;  %v1672_v63 = vshll.u32 %v4548_v48, 16  ;;  %v1750_v21 = vshll.u32 %v4558_v41, 16  ;;  %v1756_v48 = vrot.slane %v1754_v23, 4 }
  0xc5   : > { %v588_v35 = vpop.permute.xlu1 %587  ;;  %v1712_v23 = vshll.u32 %v4553_v11, 16  ;;  %v1276_v61 = vrot.slane %v1274_v37, 4  ;;  %v1183_v11 = vld [vmem:[%s5135_s7 + $0x18] sm:$0xf] }
  0xc6   : > { %633 = vst.msk [vmem:[#allocation2 + $0xc] sm:$0xf] %vm629_vm9, %v588_v35  ;;  %v586_v42 = vpop.permute.xlu0 %585  ;;  %v602_v49 = vpop.permute.xlu2 %601  ;;  %v1671_v14 = vrot.slane %v1669_v62, 4  ;;  %v1674_v16 = vrot.slane %v1672_v63, 5  ;;  %v5566_v35 = vrot.slane %v1723_v10, 4  ;;  %v5573_v47 = vrot.slane %v1750_v21, 5 }
  0xc7   : > { %632 = vst.msk [vmem:[#allocation2 + $0x8] sm:$0xf] %vm629_vm9, %v586_v42  ;;  %v1226_v42 = vshrl.u32 %v1180_v29, 16  ;;  %v5584_v63 = vrot.slane %v1235_v40, 5  ;;  %v5616_v21 = vrot.slane %v1771_v57, 4  ;;  %v1710_v40 = vrot.slane %v1709_v17, 4 }
  0xc8   : > { %640 = vst.msk [vmem:[#allocation2 + $0x28] sm:$0xf] %vm629_vm9, %v602_v49  ;;  %v1182_v49 = vld [vmem:[%s5135_s7 + $0x14] sm:$0x1]  ;;  %v1757_v10 = vor.u32 %v1756_v48, %v5573_v47 }
  0xc9   : > { %v1228_v4 = vrot.slane %v1226_v42, 4  ;;  %v1242_v3 = vor.u32 %v1241_v45, %v5584_v63  ;;  %v1729_v45 = vsel %vm5146_vm3, %v5566_v35, %v5505_v28  ;;  %v5660_v35 = vrot.slane %v1784_v33, 5 }
  0xca   : > { %v5622_v26 = vrot.slane %v1757_v10, 4  ;;  %v1185_v10 = vld [vmem:[%s5135_s7 + $0x20] sm:$0x1]  ;;  %v1777_v18 = vsel %vm5146_vm3, %v5616_v21, %v5605_v1 }
  0xcb   : > { %1812 = vrot.lane.b32.xlu1 %v1633_v36, %s5059_s9  ;;  %v1675_v36 = vor.u32 %v1674_v16, %v1671_v14  ;;  %v5602_v14 = vrot.slane %v1211_v44, 5  ;;  %v5611_v16 = vrot.slane %v1760_v58, 5  ;;  %v5628_v32 = vrot.slane %v1242_v3, 4  ;;  %v1184_v44 = vld [vmem:[%s5135_s7 + $0x1c] sm:$0xf] }
  0xcc   : > { %1562 = vrot.lane.b32.xlu0 %v1531_v43, %s5058_s8  ;;  %1560 = vrot.lane.b32.xlu2 %v1528_v0, %s5058_s8  ;;  %v1229_v43 = vshll.u32 %v1180_v29, 16  ;;  %v1245_v0 = vshll.u32 %v1182_v49, 16  ;;  %v1221_v49 = vshll.u32 %v1179_v2, 16  ;;  %v4662_v2 = vld [vmem:[%s5135_s7 + $0x14] sm:$0x1] }
  0xcd   : > { %v594_v13 = vpop.permute.xlu1 %593  ;;  %v1676_v50 = vrot.slane %v1675_v36, 4  ;;  %v5634_v36 = vld [vmem:[%s5135_s7 + $0x28] sm:$0xf] }
  0xce   : > { %636 = vst.msk [vmem:[#allocation2 + $0x18] sm:$0xf] %vm629_vm9, %v594_v13  ;;  %v592_v19 = vpop.permute.xlu0 %591  ;;  %v608_v15 = vpop.permute.xlu2 %607  ;;  %v1231_v6 = vrot.slane %v1229_v43, 5  ;;  %v1209_v13 = vrot.slane %v1208_v51, 4  ;;  %v1714_v51 = vrot.slane %v1712_v23, 5  ;;  %v1283_v58 = vshll.u32 %v5634_v36, 16 }
  0xcf   : > { %635 = vst.msk [vmem:[#allocation2 + $0x14] sm:$0xf] %vm629_vm9, %v592_v19  ;;  %v1681_v5 = vsel %vm5146_vm3, %v1676_v50, %v5501_v25  ;;  %v1780_v19 = vrot.slane %v1778_v53, 4  ;;  %v5624_v25 = vrot.slane %v1245_v0, 5  ;;  %v1259_v0 = vshll.u32 %v1184_v44, 16 }
  0xd0   : > { %643 = vst.msk [vmem:[#allocation2 + $0x34] sm:$0xf] %vm629_vm9, %v608_v15  ;;  %v1744_v15 = vshll.u32 %v4557_v12, 16  ;;  %v1232_v29 = vor.u32 %v1231_v6, %v1228_v4  ;;  %v1214_v59 = vsel %vm5146_vm3, %v1209_v13, %v5602_v14  ;;  %v1263_v4 = vshrl.u32 %v1184_v44, 16 }
  0xd1   : > { %v1781_v42 = vor.u32 %v1780_v19, %v5605_v1  ;;  %v5681_v3 = vrot.slane %v1283_v58, 5  ;;  %v5689_v20 = vrot.slane %v1259_v0, 5  ;;  %v1763_v1 = vsel %vm5146_vm3, %v5622_v26, %v5611_v16 }
  0xd2   : > { %v1746_v53 = vrot.slane %v1744_v15, 5  ;;  %v5652_v50 = vrot.slane %v1232_v29, 4  ;;  %v1265_v8 = vrot.slane %v1263_v4, 4  ;;  %v1250_v15 = vshrl.u32 %v1183_v11, 16 }
  0xd3   : > { %1818 = vrot.lane.b32.xlu1 %v1667_v24, %s5059_s9  ;;  %v5619_v24 = vld [vmem:[%s5135_s7 + $0x10] sm:$0xf]  ;;  %v5658_v28 = vrot.slane %v1781_v42, 4  ;;  %v1253_v29 = vshll.u32 %v1183_v11, 16  ;;  %v1248_v21 = vsel %vm5146_vm3, %v5628_v32, %v5624_v25  ;;  %v2366_v32 = vshll.u32 %v4662_v2, 16 }
  0xd4   : > { %1816 = vrot.lane.b32.xlu0 %v1657_v9, %s5059_s9  ;;  %1814 = vrot.lane.b32.xlu2 %v1643_v30, %s5059_s9  ;;  %v1741_v9 = vshrl.u32 %v4557_v12, 16  ;;  %v1217_v30 = vrot.slane %v1215_v46, 4  ;;  %v1926_v43 = vrot.slane %v5619_v24, 5  ;;  %v4661_v46 = vld [vmem:[%s5135_s7 + $0x10] sm:$0xf]  ;;  %v1238_v16 = vsel %vm5146_vm3, %v5652_v50, %v5584_v63 }
  0xd5   : > { %v600_v56 = vpop.permute.xlu1 %599  ;;  %v2356_v13 = vshll.u32 %v4661_v46, 16  ;;  %v2360_v17 = vshrl.u32 %v4661_v46, 16  ;;  %v1266_v25 = vor.u32 %v1265_v8, %v5689_v20  ;;  %v1188_v11 = vld [vmem:[%s5135_s7 + $0x2c] sm:$0x1]  ;;  %v1193_v24 = vld [vmem:[%s5135_s7 + $0x40] sm:$0xf] }
  0xd6   : > { %639 = vst.msk [vmem:[#allocation2 + $0x24] sm:$0xf] %vm629_vm9, %v600_v56  ;;  %v598_v62 = vpop.permute.xlu0 %597  ;;  %v863_v41 = vpop.permute.xlu2 %862  ;;  %v1743_v52 = vrot.slane %v1741_v9, 4  ;;  %v1218_v57 = vor.u32 %v1217_v30, %v5602_v14  ;;  %v5664_v6 = vrot.slane %v1926_v43, 4  ;;  %v1269_v9 = vshll.u32 %v1185_v10, 16 }
  0xd7   : > { %638 = vst.msk [vmem:[#allocation2 + $0x20] sm:$0xf] %vm629_vm9, %v598_v62  ;;  %v1279_v62 = vrot.slane %v1277_v38, 5  ;;  %v1311_v30 = vshrl.u32 %v1190_v55, 16  ;;  %v5704_v37 = vrot.slane %v2356_v13, 5  ;;  %v5739_v10 = vrot.slane %v2366_v32, 5 }
  0xd8   : > { %911 = vst.msk [vmem:[#allocation2] sm:$0xf] %vm910_vm10, %v863_v41  ;;  %v1715_v41 = vsel %vm5146_vm3, %v1710_v40, %v1714_v51  ;;  %v1747_v12 = vor.u32 %v1746_v53, %v1743_v52  ;;  %v5679_v14 = vrot.slane %v1218_v57, 4  ;;  %v4703_v38 = vld [vmem:[%s5135_s7 + $0x1c] sm:$0xf]  ;;  %v1307_v40 = vshll.u32 %v1190_v55, 16 }
  0xd9   : > { %v1280_v19 = vor.u32 %v1279_v62, %v1276_v61  ;;  %v1255_v51 = vrot.slane %v1253_v29, 5  ;;  %v1313_v52 = vrot.slane %v1311_v30, 4  ;;  %v1787_v53 = vsel %vm5146_vm3, %v5658_v28, %v5660_v35  ;;  %v4566_v57 = vld [vmem:[%s5135_s7 + $0xc] sm:$0xe]  ;;  %v4702_v28 = vld [vmem:[%s5135_s7 + $0x18] sm:$0xf] }
  0xda   : > { %v2736_v58 = vshll.u32 %v4703_v38, 16  ;;  %v2740_v61 = vshrl.u32 %v4703_v38, 16  ;;  %v5730_v0 = vrot.slane %v1307_v40, 5  ;;  %v5737_v35 = vrot.slane %v1266_v25, 4  ;;  %v4704_v55 = vld [vmem:[%s5135_s7 + $0x20] sm:$0x1] }
  0xdb   : > { %1824 = vrot.lane.b32.xlu1 %v1705_v7, %s5059_s9  ;;  %v1929_v7 = vrot.slane %v5631_v34, 5  ;;  %v1281_v26 = vrot.slane %v1280_v19, 4  ;;  %v4590_v8 = vrot.slane %v4566_v57, 9  ;;  %v2730_v29 = vshll.u32 %v4702_v28, 16  ;;  %v4660_v2 = vld [vmem:[%s5135_s7 + $0xc] sm:$0xf] }
  0xdc   : > { %1822 = vrot.lane.b32.xlu0 %v1691_v22, %s5059_s9  ;;  %1820 = vrot.lane.b32.xlu2 %v1681_v5, %s5059_s9  ;;  %v5667_v22 = vrot.slane %v1221_v49, 5  ;;  %v1287_v5 = vshrl.u32 %v5634_v36, 16  ;;  %v1748_v36 = vrot.slane %v1747_v12, 4  ;;  %v1252_v49 = vrot.slane %v1250_v15, 4  ;;  %v1192_v57 = vld [vmem:[%s5135_s7 + $0x3c] sm:$0xf] }
  0xdd   : > { %v606_v39 = vpop.permute.xlu1 %605  ;;  %v2742_v15 = vrot.slane %v2740_v61, 4  ;;  %v1930_v30 = vsel %vm5385_vm8, %v5664_v6, %v1929_v7  ;;  %v1293_v38 = vshll.u32 %v1188_v11, 16  ;;  %v2732_v25 = vrot.slane %v2730_v29, 5  ;;  %v4686_v11 = vld [vmem:[%s5135_s7 + $0x18] sm:$0xf] }
  0xde   : > { %642 = vst.msk [vmem:[#allocation2 + $0x30] sm:$0xf] %vm629_vm9, %v606_v39  ;;  %v604_v48 = vpop.permute.xlu0 %603  ;;  %v869_v56 = vpop.permute.xlu2 %868  ;;  %v1289_v12 = vrot.slane %v1287_v5, 4  ;;  %v2727_v5 = vshrl.u32 %v4702_v28, 16 }
  0xdf   : > { %641 = vst.msk [vmem:[#allocation2 + $0x2c] sm:$0xf] %vm629_vm9, %v604_v48  ;;  %v5650_v54 = vld [vmem:[#allocation2] sm:$0xf]  ;;  %v5717_v48 = vrot.slane %v1269_v9, 5  ;;  %v5747_v9 = vrot.slane %v2736_v58, 5 }
  0xe0   : > { %1409 = vst.msk [vmem:[#allocation2] sm:$0xf] %vm244_vm4, %v1214_v59  ;;  %v2362_v59 = vrot.slane %v2360_v17, 4  ;;  %v1256_v17 = vor.u32 %v1255_v51, %v1252_v49  ;;  %v1290_v34 = vor.u32 %v1289_v12, %v5681_v3  ;;  %v5780_v49 = vrot.slane %v1293_v38, 5 }
  0xe1   : > { %914 = vst.msk [vmem:[#allocation2 + $0xc] sm:$0xf] %vm910_vm10, %v869_v56  ;;  %v1191_v56 = vld [vmem:[%s5135_s7 + $0x38] sm:$0x1]  ;;  %v2350_v58 = vshll.u32 %v4660_v2, 16  ;;  %v1325_v38 = vshll.u32 %v1192_v57, 16 }
  0xe2   : > { %v2363_v62 = vor.u32 %v2362_v59, %v5704_v37  ;;  %v1317_v19 = vshll.u32 %v1191_v56, 16  ;;  %v5767_v59 = vld [vmem:[%s5135_s7 + $0x4c] sm:$0xf]  ;;  %v5769_v40 = vrot.slane %v1256_v17, 4 }
  0xe3   : > { %1830 = vrot.lane.b32.xlu1 %v1739_v60, %s5059_s9  ;;  %v1189_v60 = vld [vmem:[%s5135_s7 + $0x30] sm:$0xf]  ;;  %v1355_v51 = vshll.u32 %v5767_v59, 16  ;;  %v1359_v50 = vshrl.u32 %v5767_v59, 16 }
  0xe4   : > { %1828 = vrot.lane.b32.xlu0 %v1729_v45, %s5059_s9  ;;  %1826 = vrot.lane.b32.xlu2 %v1715_v41, %s5059_s9  ;;  %v1298_v42 = vshrl.u32 %v1189_v60, 16  ;;  %v1301_v44 = vshll.u32 %v1189_v60, 16  ;;  %v1753_v45 = vsel %vm5146_vm3, %v1748_v36, %v5573_v47  ;;  %v1286_v47 = vsel %vm5146_vm3, %v1281_v26, %v5681_v3  ;;  %v1195_v60 = vld [vmem:[%s5135_s7 + $0x48] sm:$0xf] }
  0xe5   : > { %v612_v23 = vpop.permute.xlu1 %611  ;;  %v1346_v6 = vshrl.u32 %v1195_v60, 16  ;;  %v1349_v7 = vshll.u32 %v1195_v60, 16  ;;  %v2743_v3 = vor.u32 %v2742_v15, %v5747_v9  ;;  %v2729_v26 = vrot.slane %v2727_v5, 4  ;;  %v5812_v60 = vld [vmem:[%s5135_s7 + $0x44] sm:$0x1] }
  0xe6   : > { %645 = vst.msk [vmem:[#allocation2 + $0x3c] sm:$0xf] %vm629_vm9, %v612_v23  ;;  %v610_v33 = vpop.permute.xlu0 %609  ;;  %v875_v39 = vpop.permute.xlu2 %874  ;;  %v1300_v4 = vrot.slane %v1298_v42, 4  ;;  %v1303_v41 = vrot.slane %v1301_v44, 5  ;;  %v1319_v42 = vrot.slane %v1317_v19, 5  ;;  %v1927_v44 = vsel %vm5385_vm8, %v4590_v8, %v1926_v43 }
  0xe7   : > { %644 = vst.msk [vmem:[#allocation2 + $0x38] sm:$0xf] %vm629_vm9, %v610_v33  ;;  %v5785_v43 = vrot.slane %v1290_v34, 4  ;;  %v1351_v56 = vrot.slane %v1349_v7, 5  ;;  %v2733_v17 = vor.u32 %v2732_v25, %v2729_v26  ;;  %v5807_v63 = vrot.slane %v1355_v51, 5 }
  0xe8   : > { %v5708_v46 = vld [vmem:[#allocation2 + $0x8] sm:$0xf0]  ;;  %917 = vst.msk [vmem:[#allocation2 + $0x18] sm:$0xf] %vm910_vm10, %v875_v39  ;;  %v1304_v36 = vor.u32 %v1303_v41, %v1300_v4  ;;  %v1224_v39 = vsel %vm5146_vm3, %v5679_v14, %v5667_v22  ;;  %v2746_v22 = vshll.u32 %v4704_v55, 16  ;;  %v1331_v8 = vshll.u32 %v1193_v24, 16 }
  0xe9   : > { %1412 = vst.msk [vmem:[#allocation2 + $0xc] sm:$0xf] %vm244_vm4, %v1248_v21  ;;  %v1199_v41 = vld [vmem:[%s5135_s7 + $0x58] sm:$0xf]  ;;  %v1322_v15 = vshrl.u32 %v1192_v57, 16 }
  0xea   : > { %v5778_v32 = vrot.slane %v1304_v36, 4  ;;  %v1383_v36 = vshrl.u32 %v1199_v41, 16  ;;  %v5830_v34 = vld [vmem:[%s5135_s7 + $0x1c] sm:$0xf] }
  0xeb   : > { %1836 = vrot.lane.b32.xlu1 %v1777_v18, %s5059_s9  ;;  %v1314_v18 = vor.u32 %v1313_v52, %v5730_v0  ;;  %v2347_v52 = vshrl.u32 %v4660_v2, 16  ;;  %v5823_v2 = vld [vmem:[%s5135_s7 + $0xc] sm:$0xe]  ;;  %v1200_v7 = vld [vmem:[%s5135_s7 + $0x5c] sm:$0x1]  ;;  %v1933_v26 = vrot.slane %v5830_v34, 5 }
  0xec   : > { %1834 = vrot.lane.b32.xlu0 %v1763_v1, %s5059_s9  ;;  %1832 = vrot.lane.b32.xlu2 %v1753_v45, %s5059_s9  ;;  %v5758_v1 = vrot.slane %v2363_v62, 4  ;;  %v1348_v45 = vrot.slane %v1346_v6, 4  ;;  %v5791_v62 = vrot.slane %v2746_v22, 5  ;;  %v2734_v6 = vrot.slane %v2733_v17, 4  ;;  %v4829_v51 = vld [vmem:[%s5135_s7 + $0x1c] sm:$0xf] }
  0xed   : > { %v867_v13 = vpop.permute.xlu1 %866  ;;  %v1315_v14 = vrot.slane %v1314_v18, 4  ;;  %v2349_v4 = vrot.slane %v2347_v52, 4  ;;  %v2352_v18 = vrot.slane %v2350_v58, 5  ;;  %v5844_v22 = vrot.slane %v1331_v8, 5 }
  0xee   : > { %913 = vst.msk [vmem:[#allocation2 + $0x8] sm:$0xf] %vm910_vm10, %v867_v13  ;;  %v865_v23 = vpop.permute.xlu0 %864  ;;  %v881_v21 = vpop.permute.xlu2 %880  ;;  %v5803_v13 = vrot.slane %v2743_v3, 4  ;;  %v1352_v55 = vor.u32 %v1351_v56, %v1348_v45  ;;  %v5855_v3 = vrot.slane %v1322_v15, 4  ;;  %v4820_v52 = vrot.slane %v5823_v2, 9 }
  0xef   : > { %912 = vst.msk [vmem:[#allocation2 + $0x4] sm:$0xf] %vm910_vm10, %v865_v23  ;;  %v5756_v33 = vld [vmem:[#allocation2 + $0x18] sm:$0xf]  ;;  %v1320_v12 = vsel %vm5146_vm3, %v1315_v14, %v1319_v42  ;;  %v1335_v23 = vshrl.u32 %v1193_v24, 16  ;;  %v2353_v5 = vor.u32 %v2352_v18, %v2349_v4  ;;  %v1385_v42 = vrot.slane %v1383_v36, 4 }
  0xf0   : > { %1415 = vst.msk [vmem:[#allocation2 + $0x18] sm:$0xf] %vm244_vm4, %v1286_v47  ;;  %v1389_v56 = vshll.u32 %v1200_v7, 16  ;;  %v1198_v4 = vld [vmem:[%s5135_s7 + $0x54] sm:$0xf]  ;;  %v3678_v17 = vshll.u32 %v4829_v51, 16  ;;  %v2739_v18 = vsel %vm5146_vm3, %v2734_v6, %v5747_v9 }
  0xf1   : > { %920 = vst.msk [vmem:[#allocation2 + $0x24] sm:$0xf] %vm910_vm10, %v881_v21  ;;  %v1379_v21 = vshll.u32 %v1199_v41, 16  ;;  %v5853_v14 = vrot.slane %v1335_v23, 4  ;;  %v1370_v15 = vshrl.u32 %v1198_v4, 16 }
  0xf2   : > { %v5906_v2 = vrot.slane %v3678_v17, 5  ;;  %v4569_v36 = vld [vmem:[%s5135_s7 + $0x18] sm:$0xe] }
  0xf3   : > { %1838 = vrot.lane.b32.xlu1 %v1787_v53, %s5059_s9  ;;  %v5859_v25 = vrot.slane %v1379_v21, 5 }
  0xf4   : > { %1982 = vrot.lane.b32.xlu0 %v1930_v30, %s5060_s10  ;;  %1980 = vrot.lane.b32.xlu2 %v1927_v44, %s5060_s10  ;;  %v5826_v30 = vld [vmem:[%s5135_s7 + $0x10] sm:$0xf]  ;;  %v1353_v44 = vrot.slane %v1352_v55, 4  ;;  %v1391_v55 = vrot.slane %v1389_v56, 5 }
  0xf5   : > { %v5788_v61 = vld [vmem:[#allocation2 + $0x8] sm:$0xf]  ;;  %v873_v53 = vpop.permute.xlu1 %872  ;;  %v3526_v45 = vrot.slane %v5826_v30, 5  ;;  %v1386_v58 = vor.u32 %v1385_v42, %v5859_v25  ;;  %v4663_v42 = vld [vmem:[%s5135_s7 + $0x18] sm:$0xf] }
  0xf6   : > { %1411 = vst.msk [vmem:[#allocation2 + $0x8] sm:$0xf] %vm244_vm4, %v1238_v16  ;;  %v4933_v28 = vld [vmem:[#allocation2] sm:$0xf0]  ;;  %v871_v47 = vpop.permute.xlu0 %870  ;;  %v887_v16 = vpop.permute.xlu2 %886  ;;  %v2371_v56 = vshrl.u32 %v4663_v42, 16 }
  0xf7   : > { %1410 = vst.msk [vmem:[#allocation2 + $0x4] sm:$0xf] %vm244_vm4, %v1224_v39  ;;  %v4493_v19 = vor.u32 %v4933_v28, %v5650_v54  ;;  %v2369_v54 = vsel %vm5146_vm3, %v5758_v1, %v5739_v10  ;;  %v2354_v39 = vrot.slane %v2353_v5, 4  ;;  %v1272_v10 = vsel %vm5146_vm3, %v5737_v35, %v5717_v48 }
  0xf8   : > { %916 = vst.msk [vmem:[#allocation2 + $0x14] sm:$0xf] %vm910_vm10, %v873_v53  ;;  %v5820_v29 = vld [vmem:[#allocation2 + $0x20] sm:$0xf0]  ;;  %v1262_v1 = vsel %vm5146_vm3, %v5769_v40, %v5689_v20  ;;  %v1341_v48 = vshll.u32 %v5812_v60, 16  ;;  %v2749_v28 = vsel %vm5146_vm3, %v5803_v13, %v5791_v62  ;;  %v1310_v13 = vsel %vm5146_vm3, %v5778_v32, %v5730_v0 }
  0xf9   : > { %915 = vst.msk [vmem:[#allocation2 + $0x10] sm:$0xf] %vm910_vm10, %v871_v47  ;;  %4526 = vmatmul.msk.bf16.vlgmr.msra.gmra.mxu0 %vm991_vm11, %v4493_v19  ;;  %v2359_v35 = vsel %vm5146_vm3, %v2354_v39, %v5704_v37  ;;  %v5851_v20 = vld [vmem:[%s5135_s7 + $0x20] sm:$0x1]  ;;  %v5863_v37 = vrot.slane %v1325_v38, 5  ;;  %v1358_v47 = vsel %vm5146_vm3, %v1353_v44, %v5807_v63  ;;  %v1935_v19 = vrot.slane %v1933_v26, 4 }
  0xfa   : > { %1418 = vst.msk [vmem:[#allocation2 + $0x24] sm:$0xf] %vm244_vm4, %v1320_v12  ;;  %v4687_v12 = vld [vmem:[%s5135_s7 + $0x1c] sm:$0xf]  ;;  %v4828_v62 = vld [vmem:[%s5135_s7 + $0x18] sm:$0xf]  ;;  %v1296_v0 = vsel %vm5146_vm3, %v5785_v43, %v5780_v49  ;;  %v1338_v39 = vor.u32 %v5853_v14, %v5844_v22 }
  0xfb   : > { %2638 = vrot.lane.b32.xlu1 %v4686_v11, %s5059_s9  ;;  %923 = vst.msk [vmem:[#allocation2 + $0x30] sm:$0xf] %vm910_vm10, %v887_v16  ;;  %v1936_v11 = vrot.slane %v5851_v20, 5  ;;  %v3682_v16 = vshrl.u32 %v4829_v51, 16  ;;  %v3669_v23 = vshrl.u32 %v4828_v62, 16  ;;  %v1387_v9 = vrot.slane %v1386_v58, 4 }
  0xfc   : > { %2540 = vrot.lane.b32.xlu0 %v2369_v54, %s5058_s8  ;;  %2538 = vrot.lane.b32.xlu2 %v2359_v35, %s5058_s8  ;;  %v1373_v5 = vshll.u32 %v1198_v4, 16  ;;  %v3672_v54 = vshll.u32 %v4828_v62, 16  ;;  %v4830_v32 = vld [vmem:[%s5135_s7 + $0x20] sm:$0x1]  ;;  %v1328_v43 = vor.u32 %v5863_v37, %v5855_v3  ;;  %v4497_v35 = vor.u32 %v5708_v46, %v5788_v61 }
  0xfd   : > { %v879_v40 = vpop.permute.xlu1 %878  ;;  %v3684_v21 = vrot.slane %v3682_v16, 4  ;;  %v3671_v6 = vrot.slane %v3669_v23, 4  ;;  %v3527_v20 = vsel %vm5385_vm8, %v4820_v52, %v3526_v45  ;;  %v1392_v14 = vsel %vm5146_vm3, %v1387_v9, %v1391_v55  ;;  %v4853_v55 = vld [vmem:[%s5135_s7 + $0x1c] sm:$0xf] }
  0xfe   : > { %919 = vst.msk [vmem:[#allocation2 + $0x20] sm:$0xf] %vm910_vm10, %v879_v40  ;;  %v877_v24 = vpop.permute.xlu0 %876  ;;  %v893_v53 = vpop.permute.xlu2 %892  ;;  %v3674_v7 = vrot.slane %v3672_v54, 5  ;;  %v4591_v40 = vrot.slane %v4569_v36, 9  ;;  %v1372_v51 = vrot.slane %v1370_v15, 4  ;;  %v1361_v3 = vrot.slane %v1359_v50, 4 }
  0xff   : > { %v5867_v57 = vld [vmem:[#allocation2 + $0x10] sm:$0xf0]  ;;  %918 = vst.msk [vmem:[#allocation2 + $0x1c] sm:$0xf] %vm910_vm10, %v877_v24  ;;  %v1375_v24 = vrot.slane %v1373_v5, 5  ;;  %v3685_v46 = vor.u32 %v3684_v21, %v5906_v2  ;;  %v3688_v61 = vshll.u32 %v4830_v32, 16  ;;  %v1937_v59 = vsel %vm5385_vm8, %v1935_v19, %v1936_v11 }
 0x100   : > { %1414 = vst.msk [vmem:[#allocation2 + $0x14] sm:$0xf] %vm244_vm4, %v1272_v10  ;;  %v5873_v41 = vld [vmem:[#allocation2 + $0x10] sm:$0xf]  ;;  %v2374_v58 = vshll.u32 %v4663_v42, 16  ;;  %v1339_v52 = vrot.slane %v1338_v39, 4  ;;  %v3675_v4 = vor.u32 %v3674_v7, %v3671_v6  ;;  %v1934_v60 = vsel %vm5385_vm8, %v4591_v40, %v1933_v26 }
 0x101   : > { %1413 = vst.msk [vmem:[#allocation2 + $0x10] sm:$0xf] %vm244_vm4, %v1262_v1  ;;  %v1197_v1 = vld [vmem:[%s5135_s7 + $0x50] sm:$0x1]  ;;  %v4798_v11 = vld [vmem:[%s5135_s7 + $0x14] sm:$0x1] }
 0x102   : > { %v5895_v8 = vld [vmem:[#allocation2 + $0x30] sm:$0xf]  ;;  %926 = vst.msk [vmem:[#allocation2 + $0x3c] sm:$0xf] %vm910_vm10, %v893_v53  ;;  %v1343_v53 = vrot.slane %v1341_v48, 5  ;;  %v1376_v48 = vor.u32 %v1375_v24, %v1372_v51  ;;  %v3686_v17 = vrot.slane %v3685_v46, 4 }
 0x103   : > { %2920 = vrot.lane.b32.xlu1 %v2749_v28, %s5060_s10  ;;  %1421 = vst.msk [vmem:[#allocation2 + $0x30] sm:$0xf] %vm244_vm4, %v1358_v47  ;;  %v1329_v28 = vrot.slane %v1328_v43, 4  ;;  %v1365_v47 = vshll.u32 %v1197_v1, 16  ;;  %v2373_v19 = vrot.slane %v2371_v56, 4  ;;  %v2376_v16 = vrot.slane %v2374_v58, 5 }
 0x104   : > { %2918 = vrot.lane.b32.xlu0 %v2739_v18, %s5060_s10  ;;  %2640 = vrot.lane.b32.xlu2 %v4687_v12, %s5059_s9  ;;  %v1362_v12 = vor.u32 %v1361_v3, %v5807_v63  ;;  %v3690_v18 = vrot.slane %v3688_v61, 5  ;;  %v1344_v34 = vsel %vm5146_vm3, %v1339_v52, %v1343_v53  ;;  %v3676_v26 = vrot.slane %v3675_v4, 4  ;;  %v4854_v6 = vld [vmem:[%s5135_s7 + $0x20] sm:$0x1]  ;;  %v4852_v42 = vld [vmem:[%s5135_s7 + $0x18] sm:$0xe] }
 0x105   : > { %v5909_v38 = vld [vmem:[#allocation2 + $0x20] sm:$0xf]  ;;  %v885_v10 = vpop.permute.xlu1 %884  ;;  %v1334_v63 = vsel %vm5146_vm3, %v1329_v28, %v5844_v22  ;;  %v1367_v23 = vrot.slane %v1365_v47, 5  ;;  %v3528_v15 = vrot.slane %v3526_v45, 4  ;;  %v3529_v5 = vrot.slane %v4798_v11, 5 }
 0x106   : > { %1417 = vst.msk [vmem:[#allocation2 + $0x20] sm:$0xf] %vm244_vm4, %v1310_v13  ;;  %v5917_v49 = vld [vmem:[#allocation2 + $0x18] sm:$0xf0]  ;;  %v883_v44 = vpop.permute.xlu0 %882  ;;  %v1537_v37 = vpop.permute.xlu2 %1536  ;;  %v1363_v32 = vrot.slane %v1362_v12, 4  ;;  %v3691_v36 = vsel %vm5146_vm3, %v3686_v17, %v3690_v18  ;;  %v2377_v39 = vor.u32 %v2376_v16, %v2373_v19  ;;  %v3974_v45 = vrot.slane %v4853_v55, 5 }
 0x107   : > { %1416 = vst.msk [vmem:[#allocation2 + $0x1c] sm:$0xf] %vm244_vm4, %v1296_v0  ;;  %v4664_v13 = vld [vmem:[%s5135_s7 + $0x1c] sm:$0xf]  ;;  %v1377_v0 = vrot.slane %v1376_v48, 4  ;;  %v3530_v7 = vsel %vm5385_vm8, %v3528_v15, %v3529_v5  ;;  %v3977_v51 = vrot.slane %v4854_v6, 5  ;;  %v4501_v61 = vor.u32 %v5867_v57, %v5873_v41 }
 0x108   : > { %922 = vst.msk [vmem:[#allocation2 + $0x2c] sm:$0xf] %vm910_vm10, %v885_v10  ;;  %v2380_v30 = vshll.u32 %v4664_v13, 16  ;;  %v3681_v10 = vsel %vm5146_vm3, %v3676_v26, %v5906_v2  ;;  %v2384_v1 = vshrl.u32 %v4664_v13, 16  ;;  %v2378_v2 = vrot.slane %v2377_v39, 4 }
 0x109   : > { %921 = vst.msk [vmem:[#allocation2 + $0x28] sm:$0xf] %vm910_vm10, %v883_v44  ;;  %4527 = vmatmul.msk.bf16.gmra.mxu0 %vm991_vm11, %v4497_v35  ;;  %v5940_v50 = vld [vmem:[#allocation2 + $0x38] sm:$0xf0]  ;;  %v1382_v43 = vsel %vm5146_vm3, %v1377_v0, %v5859_v25  ;;  %v1368_v44 = vsel %vm5146_vm3, %v1363_v32, %v1367_v23  ;;  %v4876_v24 = vrot.slane %v4852_v42, 9  ;;  %v4505_v42 = vor.u32 %v5917_v49, %v5756_v33 }
 0x10a   : > { %1424 = vst.msk [vmem:[#allocation2 + $0x3c] sm:$0xf] %vm244_vm4, %v1392_v14  ;;  %v2382_v35 = vrot.slane %v2380_v30, 5  ;;  %v4706_v25 = vld [vmem:[%s5135_s7 + $0x28] sm:$0xf]  ;;  %v2386_v46 = vrot.slane %v2384_v1, 4 }
 0x10b   : > { %3580 = vrot.lane.b32.xlu1 %v3527_v20, %s5058_s8  ;;  %1582 = vst.msk [vmem:[#allocation2 + $0x8] sm:$0xf] %vm528_vm5, %v1537_v37  ;;  %v3976_v20 = vrot.slane %v3974_v45, 4  ;;  %v4665_v58 = vld [vmem:[%s5135_s7 + $0x20] sm:$0x1]  ;;  %v3975_v4 = vsel %vm5385_vm8, %v4876_v24, %v3974_v45  ;;  %v2760_v57 = vshll.u32 %v4706_v25, 16 }
 0x10c   : > { %1986 = vrot.lane.b32.xlu0 %v1937_v59, %s5060_s10  ;;  %1984 = vrot.lane.b32.xlu2 %v1934_v60, %s5060_s10  ;;  %v4705_v52 = vld [vmem:[%s5135_s7 + $0x24] sm:$0xf]  ;;  %v2383_v53 = vsel %vm5146_vm3, %v2378_v2, %v2382_v35  ;;  %v2764_v41 = vshrl.u32 %v4706_v25, 16  ;;  %v2387_v28 = vor.u32 %v2386_v46, %v2382_v35  ;;  %v2390_v47 = vshll.u32 %v4665_v58, 16  ;;  %v4707_v11 = vld [vmem:[%s5135_s7 + $0x2c] sm:$0x1] }
 0x10d   : > { %v891_v62 = vpop.permute.xlu1 %890  ;;  %v3978_v59 = vsel %vm5385_vm8, %v3976_v20, %v3977_v51  ;;  %v2751_v60 = vshrl.u32 %v4705_v52, 16  ;;  %v2754_v48 = vshll.u32 %v4705_v52, 16  ;;  %v2762_v17 = vrot.slane %v2760_v57, 5  ;;  %v4689_v55 = vld [vmem:[%s5135_s7 + $0x28] sm:$0xf] }
 0x10e   : > { %925 = vst.msk [vmem:[#allocation2 + $0x38] sm:$0xf] %vm910_vm10, %v891_v62  ;;  %v889_v9 = vpop.permute.xlu0 %888  ;;  %v1543_v21 = vpop.permute.xlu2 %1542  ;;  %v2766_v18 = vrot.slane %v2764_v41, 4  ;;  %v2388_v16 = vrot.slane %v2387_v28, 4  ;;  %v4572_v23 = vld [vmem:[%s5135_s7 + $0x24] sm:$0xe] }
 0x10f   : > { %v5963_v54 = vld [vmem:[#allocation2 + $0x28] sm:$0xf0]  ;;  %924 = vst.msk [vmem:[#allocation2 + $0x34] sm:$0xf] %vm910_vm10, %v889_v9  ;;  %v2753_v62 = vrot.slane %v2751_v60, 4  ;;  %v2756_v26 = vrot.slane %v2754_v48, 5 }
 0x110   : > { %1420 = vst.msk [vmem:[#allocation2 + $0x2c] sm:$0xf] %vm244_vm4, %v1344_v34  ;;  %v5967_v22 = vld [vmem:[#allocation2 + $0x28] sm:$0xf]  ;;  %v2392_v34 = vrot.slane %v2390_v47, 5  ;;  %v2767_v15 = vor.u32 %v2766_v18, %v2762_v17  ;;  %v2770_v5 = vshll.u32 %v4707_v11, 16 }
 0x111   : > { %1419 = vst.msk [vmem:[#allocation2 + $0x28] sm:$0xf] %vm244_vm4, %v1334_v63  ;;  %v4688_v63 = vld [vmem:[%s5135_s7 + $0x24] sm:$0xf]  ;;  %v4573_v9 = vld [vmem:[%s5135_s7 + $0x28] sm:$0xf]  ;;  %v2757_v32 = vor.u32 %v2756_v26, %v2753_v62 }
 0x112   : > { %1585 = vst.msk [vmem:[#allocation2 + $0x14] sm:$0xf] %vm528_vm5, %v1543_v21  ;;  %v2393_v0 = vsel %vm5146_vm3, %v2388_v16, %v2392_v34  ;;  %v4592_v21 = vrot.slane %v4572_v23, 9  ;;  %v2768_v30 = vrot.slane %v2767_v15, 4  ;;  %v2772_v45 = vrot.slane %v2770_v5, 5 }
 0x113   : > { %3862 = vrot.lane.b32.xlu1 %v3691_v36, %s5059_s9  ;;  %v1940_v36 = vrot.slane %v4573_v9, 5  ;;  %v2758_v6 = vrot.slane %v2757_v32, 4  ;;  %v4799_v51 = vld [vmem:[%s5135_s7 + $0x18] sm:$0xe]  ;;  %v4574_v46 = vld [vmem:[%s5135_s7 + $0x2c] sm:$0x1] }
 0x114   : > { %3860 = vrot.lane.b32.xlu0 %v3681_v10, %s5059_s9  ;;  %3582 = vrot.lane.b32.xlu2 %v3530_v7, %s5058_s8  ;;  %v4800_v10 = vld [vmem:[%s5135_s7 + $0x1c] sm:$0xf]  ;;  %v4832_v7 = vld [vmem:[%s5135_s7 + $0x28] sm:$0xf]  ;;  %v2773_v20 = vsel %vm5146_vm3, %v2768_v30, %v2772_v45  ;;  %v4821_v58 = vrot.slane %v4799_v51, 9  ;;  %v1943_v60 = vrot.slane %v4574_v46, 5 }
 0x115   : > { %v5987_v40 = vld [vmem:[#allocation2 + $0x38] sm:$0xf]  ;;  %v1535_v14 = vpop.permute.xlu1 %1534  ;;  %v1941_v2 = vsel %vm5385_vm8, %v4592_v21, %v1940_v36  ;;  %v3533_v35 = vrot.slane %v4800_v10, 5  ;;  %v3702_v24 = vshll.u32 %v4832_v7, 16  ;;  %v3706_v33 = vshrl.u32 %v4832_v7, 16 }
 0x116   : > { %1423 = vst.msk [vmem:[#allocation2 + $0x38] sm:$0xf] %vm244_vm4, %v1382_v43  ;;  %v5992_v3 = vld [vmem:[#allocation2 + $0x30] sm:$0xf0]  ;;  %v1533_v37 = vpop.permute.xlu0 %1532  ;;  %v1549_v56 = vpop.permute.xlu2 %1548  ;;  %v2763_v49 = vsel %vm5146_vm3, %v2758_v6, %v2762_v17  ;;  %v4833_v52 = vld [vmem:[%s5135_s7 + $0x2c] sm:$0x1] }
 0x117   : > { %1422 = vst.msk [vmem:[#allocation2 + $0x34] sm:$0xf] %vm244_vm4, %v1368_v44  ;;  %v4831_v44 = vld [vmem:[%s5135_s7 + $0x24] sm:$0xf]  ;;  %v4667_v57 = vld [vmem:[%s5135_s7 + $0x28] sm:$0xf] }
 0x118   : > { %1581 = vst.msk [vmem:[#allocation2 + $0x4] sm:$0xf] %vm528_vm5, %v1535_v14  ;;  %v4801_v14 = vld [vmem:[%s5135_s7 + $0x20] sm:$0x1]  ;;  %v3693_v25 = vshrl.u32 %v4831_v44, 16  ;;  %v1942_v47 = vrot.slane %v1940_v36, 4 }
 0x119   : > { %1580 = vst.msk [vmem:[#allocation2] sm:$0xf] %vm528_vm5, %v1533_v37  ;;  %4528 = vmatmul.msk.bf16.gmra.mxu0 %vm991_vm11, %v4501_v61  ;;  %v3696_v37 = vshll.u32 %v4831_v44, 16  ;;  %v3535_v61 = vrot.slane %v3533_v35, 4  ;;  %v4666_v41 = vld [vmem:[%s5135_s7 + $0x24] sm:$0xf] }
 0x11a   : > { %1588 = vst.msk [vmem:[#allocation2 + $0x20] sm:$0xf] %vm528_vm5, %v1549_v56  ;;  %v3536_v56 = vrot.slane %v4801_v14, 5  ;;  %v3695_v48 = vrot.slane %v3693_v25, 4  ;;  %v4855_v11 = vld [vmem:[%s5135_s7 + $0x24] sm:$0xe]  ;;  %v1944_v23 = vsel %vm5385_vm8, %v1942_v47, %v1943_v60 }
 0x11b   : > { %2542 = vrot.lane.b32.xlu1 %v2383_v53, %s5058_s8  ;;  %v4856_v16 = vld [vmem:[%s5135_s7 + $0x28] sm:$0xf]  ;;  %v2404_v34 = vshll.u32 %v4667_v57, 16  ;;  %v2408_v62 = vshrl.u32 %v4667_v57, 16  ;;  %v4877_v15 = vrot.slane %v4855_v11, 9 }
 0x11c   : > { %4030 = vrot.lane.b32.xlu0 %v3978_v59, %s5060_s10  ;;  %4028 = vrot.lane.b32.xlu2 %v3975_v4, %s5060_s10  ;;  %v6047_v59 = vrot.slane %v3702_v24, 5  ;;  %v3708_v4 = vrot.slane %v3706_v33, 4  ;;  %v3537_v18 = vsel %vm5385_vm8, %v3535_v61, %v3536_v56  ;;  %v3981_v5 = vrot.slane %v4856_v16, 5  ;;  %v4709_v56 = vld [vmem:[%s5135_s7 + $0x34] sm:$0xf] }
 0x11d   : > { %v1541_v12 = vpop.permute.xlu1 %1540  ;;  %v2406_v32 = vrot.slane %v2404_v34, 5  ;;  %v2410_v21 = vrot.slane %v2408_v62, 4  ;;  %v2788_v47 = vshrl.u32 %v4709_v56, 16  ;;  %v4513_v34 = vor.u32 %v5963_v54, %v5967_v22 }
 0x11e   : > { %1584 = vst.msk [vmem:[#allocation2 + $0x10] sm:$0xf] %vm528_vm5, %v1541_v12  ;;  %v1539_v19 = vpop.permute.xlu0 %1538  ;;  %v1555_v13 = vpop.permute.xlu2 %1554  ;;  %v3698_v12 = vrot.slane %v3696_v37, 5  ;;  %v3709_v26 = vor.u32 %v3708_v4, %v6047_v59 }
 0x11f   : > { %1583 = vst.msk [vmem:[#allocation2 + $0xc] sm:$0xf] %vm528_vm5, %v1539_v19  ;;  %v3534_v19 = vsel %vm5385_vm8, %v4821_v58, %v3533_v35  ;;  %v2790_v16 = vrot.slane %v2788_v47, 4 }
 0x120   : > { %1591 = vst.msk [vmem:[#allocation2 + $0x2c] sm:$0xf] %vm528_vm5, %v1555_v13  ;;  %v3712_v13 = vshll.u32 %v4833_v52, 16  ;;  %v3699_v9 = vor.u32 %v3698_v12, %v3695_v48  ;;  %v3983_v52 = vrot.slane %v3981_v5, 4 }
 0x122   : > { %v3714_v30 = vrot.slane %v3712_v13, 5  ;;  %v3700_v7 = vrot.slane %v3699_v9, 4  ;;  %v4691_v9 = vld [vmem:[%s5135_s7 + $0x34] sm:$0xf] }
 0x123   : > { %2644 = vrot.lane.b32.xlu1 %v4689_v55, %s5059_s9  ;;  %v2395_v55 = vshrl.u32 %v4666_v41, 16 }
 0x124   : > { %2642 = vrot.lane.b32.xlu0 %v4688_v63, %s5059_s9  ;;  %2544 = vrot.lane.b32.xlu2 %v2393_v0, %s5058_s8  ;;  %v2398_v63 = vshll.u32 %v4666_v41, 16  ;;  %v4668_v0 = vld [vmem:[%s5135_s7 + $0x2c] sm:$0x1]  ;;  %v2784_v41 = vshll.u32 %v4709_v56, 16 }
 0x125   : > { %v1547_v39 = vpop.permute.xlu1 %1546  ;;  %v2397_v45 = vrot.slane %v2395_v55, 4  ;;  %v2414_v35 = vshll.u32 %v4668_v0, 16  ;;  %v4690_v0 = vld [vmem:[%s5135_s7 + $0x30] sm:$0xf] }
 0x126   : > { %1587 = vst.msk [vmem:[#allocation2 + $0x1c] sm:$0xf] %vm528_vm5, %v1547_v39  ;;  %v1545_v1 = vpop.permute.xlu0 %1544  ;;  %v1561_v43 = vpop.permute.xlu2 %1560  ;;  %v3710_v39 = vrot.slane %v3709_v26, 4  ;;  %v2400_v10 = vrot.slane %v2398_v63, 5  ;;  %v2786_v12 = vrot.slane %v2784_v41, 5  ;;  %v4517_v41 = vor.u32 %v5992_v3, %v5895_v8 }
 0x127   : > { %1586 = vst.msk [vmem:[#allocation2 + $0x18] sm:$0xf] %vm528_vm5, %v1545_v1  ;;  %v4708_v1 = vld [vmem:[%s5135_s7 + $0x30] sm:$0xf]  ;;  %v4710_v26 = vld [vmem:[%s5135_s7 + $0x38] sm:$0x1] }
 0x128   : > { %1594 = vst.msk [vmem:[#allocation2 + $0x38] sm:$0xf] %vm528_vm5, %v1561_v43  ;;  %v3982_v43 = vsel %vm5385_vm8, %v4877_v15, %v3981_v5  ;;  %v2778_v14 = vshll.u32 %v4708_v1, 16  ;;  %v3715_v51 = vsel %vm5146_vm3, %v3710_v39, %v3714_v30  ;;  %v2401_v24 = vor.u32 %v2400_v10, %v2397_v45  ;;  %v4577_v15 = vld [vmem:[%s5135_s7 + $0x38] sm:$0x1] }
 0x129   : > { %4529 = vmatmul.msk.bf16.gmra.mxu0 %vm991_vm11, %v4505_v42  ;;  %v4509_v42 = vor.u32 %v5820_v29, %v5909_v38  ;;  %v3705_v29 = vsel %vm5146_vm3, %v3700_v7, %v6047_v59  ;;  %v4857_v38 = vld [vmem:[%s5135_s7 + $0x2c] sm:$0x1]  ;;  %v4575_v5 = vld [vmem:[%s5135_s7 + $0x30] sm:$0xe]  ;;  %v2794_v54 = vshll.u32 %v4710_v26, 16 }
 0x12a   : > { %v2780_v37 = vrot.slane %v2778_v14, 5  ;;  %v2402_v61 = vrot.slane %v2401_v24, 4  ;;  %v4593_v45 = vrot.slane %v4575_v5, 9  ;;  %v4835_v10 = vld [vmem:[%s5135_s7 + $0x34] sm:$0xf] }
 0x12b   : > { %1988 = vrot.lane.b32.xlu1 %v1941_v2, %s5060_s10  ;;  %v2411_v2 = vor.u32 %v2410_v21, %v2406_v32  ;;  %v1950_v21 = vrot.slane %v4577_v15, 5  ;;  %v3730_v24 = vshrl.u32 %v4835_v10, 16  ;;  %v4671_v5 = vld [vmem:[%s5135_s7 + $0x38] sm:$0x1] }
 0x12c   : > { %2924 = vrot.lane.b32.xlu0 %v2773_v20, %s5060_s10  ;;  %2922 = vrot.lane.b32.xlu2 %v2763_v49, %s5060_s10  ;;  %v2775_v20 = vshrl.u32 %v4708_v1, 16  ;;  %v2416_v49 = vrot.slane %v2414_v35, 5  ;;  %v4803_v1 = vld [vmem:[%s5135_s7 + $0x28] sm:$0xf] }
 0x12d   : > { %v1553_v53 = vpop.permute.xlu1 %1552  ;;  %v2412_v33 = vrot.slane %v2411_v2, 4  ;;  %v3540_v14 = vrot.slane %v4803_v1, 5 }
 0x12e   : > { %1590 = vst.msk [vmem:[#allocation2 + $0x28] sm:$0xf] %vm528_vm5, %v1553_v53  ;;  %v1551_v28 = vpop.permute.xlu0 %1550  ;;  %v1815_v17 = vpop.permute.xlu2 %1814  ;;  %v2777_v25 = vrot.slane %v2775_v20, 4  ;;  %v3984_v53 = vrot.slane %v4857_v38, 5  ;;  %v3726_v20 = vshll.u32 %v4835_v10, 16 }
 0x12f   : > { %1589 = vst.msk [vmem:[#allocation2 + $0x24] sm:$0xf] %vm528_vm5, %v1551_v28  ;;  %v2417_v4 = vsel %vm5146_vm3, %v2412_v33, %v2416_v49  ;;  %v2407_v28 = vsel %vm5146_vm3, %v2402_v61, %v2406_v32  ;;  %v2791_v32 = vor.u32 %v2790_v16, %v2786_v12  ;;  %v4802_v33 = vld [vmem:[%s5135_s7 + $0x24] sm:$0xe] }
 0x130   : > { %1861 = vst.msk [vmem:[#allocation2 + $0x4] sm:$0xf] %vm629_vm9, %v1815_v17  ;;  %v2781_v57 = vor.u32 %v2780_v37, %v2777_v25  ;;  %v3985_v60 = vsel %vm5385_vm8, %v3983_v52, %v3984_v53  ;;  %v4576_v17 = vld [vmem:[%s5135_s7 + $0x34] sm:$0xf]  ;;  %v3728_v25 = vrot.slane %v3726_v20, 5  ;;  %v3542_v37 = vrot.slane %v3540_v14, 4 }
 0x131   : > { %v1947_v55 = vrot.slane %v4576_v17, 5  ;;  %v2792_v7 = vrot.slane %v2791_v32, 4  ;;  %v4822_v52 = vrot.slane %v4802_v33, 9  ;;  %v4670_v53 = vld [vmem:[%s5135_s7 + $0x34] sm:$0xf] }
 0x132   : > { %v2782_v48 = vrot.slane %v2781_v57, 4  ;;  %v3732_v57 = vrot.slane %v3730_v24, 4  ;;  %v2428_v3 = vshll.u32 %v4670_v53, 16  ;;  %v4713_v24 = vld [vmem:[%s5135_s7 + $0x44] sm:$0x1] }
 0x133   : > { %3586 = vrot.lane.b32.xlu1 %v3537_v18, %s5058_s8  ;;  %v4834_v18 = vld [vmem:[%s5135_s7 + $0x30] sm:$0xf]  ;;  %v1949_v22 = vrot.slane %v1947_v55, 4  ;;  %v3541_v8 = vsel %vm5385_vm8, %v4822_v52, %v3540_v14 }
 0x134   : > { %3584 = vrot.lane.b32.xlu0 %v3534_v19, %s5058_s8  ;;  %1990 = vrot.lane.b32.xlu2 %v1944_v23, %s5060_s10  ;;  %v2787_v13 = vsel %vm5146_vm3, %v2782_v48, %v2786_v12  ;;  %v3717_v63 = vshrl.u32 %v4834_v18, 16  ;;  %v3720_v23 = vshll.u32 %v4834_v18, 16  ;;  %v4860_v12 = vld [vmem:[%s5135_s7 + $0x38] sm:$0x1]  ;;  %v4858_v18 = vld [vmem:[%s5135_s7 + $0x30] sm:$0xe]  ;;  %v3733_v16 = vor.u32 %v3732_v57, %v3728_v25 }
 0x135   : > { %v1559_v36 = vpop.permute.xlu1 %1558  ;;  %v1951_v2 = vsel %vm5385_vm8, %v1949_v22, %v1950_v21 }
 0x136   : > { %1593 = vst.msk [vmem:[#allocation2 + $0x34] sm:$0xf] %vm528_vm5, %v1559_v36  ;;  %v1557_v6 = vpop.permute.xlu0 %1556  ;;  %v1821_v44 = vpop.permute.xlu2 %1820  ;;  %v3719_v36 = vrot.slane %v3717_v63, 4  ;;  %v3722_v39 = vrot.slane %v3720_v23, 5  ;;  %v4878_v63 = vrot.slane %v4858_v18, 9  ;;  %v3734_v21 = vrot.slane %v3733_v16, 4 }
 0x137   : > { %1592 = vst.msk [vmem:[#allocation2 + $0x30] sm:$0xf] %vm528_vm5, %v1557_v6  ;;  %v4712_v23 = vld [vmem:[%s5135_s7 + $0x40] sm:$0xf] }
 0x138   : > { %1864 = vst.msk [vmem:[#allocation2 + $0x10] sm:$0xf] %vm629_vm9, %v1821_v44  ;;  %v4950_v44 = vld [vmem:[%s7204_s1 + $0x8] sm:$0xff]  ;;  %v3723_v35 = vor.u32 %v3722_v39, %v3719_v36  ;;  %v2808_v10 = vshll.u32 %v4712_v23, 16  ;;  %v2812_v1 = vshrl.u32 %v4712_v23, 16 }
 0x139   : > { %4530 = vmatmul.msk.bf16.gmra.mxu0 %vm991_vm11, %v4509_v42  ;;  %v2796_v42 = vrot.slane %v2794_v54, 5  ;;  %2140 = vmatpush.bf16.msra.mxu1 %v4950_v44  ;;  %v4711_v54 = vld [vmem:[%s5135_s7 + $0x3c] sm:$0xf] }
 0x13a   : > { %v3724_v49 = vrot.slane %v3723_v35, 4  ;;  %v2799_v44 = vshrl.u32 %v4711_v54, 16  ;;  %v6177_v14 = vrot.slane %v2808_v10, 5 }
 0x13b   : > { %4032 = vrot.lane.b32.xlu1 %v3982_v43, %s5060_s10  ;;  %v2797_v38 = vsel %vm5146_vm3, %v2792_v7, %v2796_v42 }
 0x13c   : > { %3866 = vrot.lane.b32.xlu0 %v3715_v51, %s5059_s9  ;;  %3864 = vrot.lane.b32.xlu2 %v3705_v29, %s5059_s9  ;;  %v1948_v51 = vsel %vm5385_vm8, %v4593_v45, %v1947_v55  ;;  %v4804_v29 = vld [vmem:[%s5135_s7 + $0x2c] sm:$0x1]  ;;  %v3729_v48 = vsel %vm5146_vm3, %v3724_v49, %v3728_v25  ;;  %v3991_v55 = vrot.slane %v4860_v12, 5  ;;  %v2801_v49 = vrot.slane %v2799_v44, 4  ;;  %v4578_v44 = vld [vmem:[%s5135_s7 + $0x3c] sm:$0xe] }
 0x13d   : > { %v1813_v46 = vpop.permute.xlu1 %1812  ;;  %v3543_v56 = vrot.slane %v4804_v29, 5 }
 0x13e   : > { %1860 = vst.msk [vmem:[#allocation2] sm:$0xf] %vm629_vm9, %v1813_v46  ;;  %v1563_v58 = vpop.permute.xlu0 %1562  ;;  %v1827_v59 = vpop.permute.xlu2 %1826  ;;  %v4644_v46 = vld [vmem:[%s5135_s7 + $0xc] sm:$0xf] }
 0x13f   : > { %1595 = vst.msk [vmem:[#allocation2 + $0x3c] sm:$0xf] %vm528_vm5, %v1563_v58  ;;  %v4859_v58 = vld [vmem:[%s5135_s7 + $0x34] sm:$0xf]  ;;  %v3544_v17 = vsel %vm5385_vm8, %v3542_v37, %v3543_v56 }
 0x140   : > { %1867 = vst.msk [vmem:[#allocation2 + $0x1c] sm:$0xf] %vm629_vm9, %v1827_v59 }
 0x143   : > { %2548 = vrot.lane.b32.xlu1 %v2417_v4, %s5058_s8  ;;  %v4836_v4 = vld [vmem:[%s5135_s7 + $0x38] sm:$0x1] }
 0x144   : > { %2546 = vrot.lane.b32.xlu0 %v2407_v28, %s5058_s8  ;;  %4034 = vrot.lane.b32.xlu2 %v3985_v60, %s5060_s10  ;;  %v4669_v60 = vld [vmem:[%s5135_s7 + $0x30] sm:$0xf] }
 0x145   : > { %v1819_v11 = vpop.permute.xlu1 %1818  ;;  %v2422_v26 = vshll.u32 %v4669_v60, 16 }
 0x146   : > { %1863 = vst.msk [vmem:[#allocation2 + $0xc] sm:$0xf] %vm629_vm9, %v1819_v11  ;;  %v1817_v19 = vpop.permute.xlu0 %1816  ;;  %v1833_v62 = vpop.permute.xlu2 %1832  ;;  %v3988_v11 = vrot.slane %v4859_v58, 5  ;;  %v2818_v58 = vshll.u32 %v4713_v24, 16 }
 0x147   : > { %1862 = vst.msk [vmem:[#allocation2 + $0x8] sm:$0xf] %vm629_vm9, %v1817_v19  ;;  %v2432_v19 = vshrl.u32 %v4670_v53, 16  ;;  %v4692_v53 = vld [vmem:[%s5135_s7 + $0x3c] sm:$0xf] }
 0x148   : > { %1870 = vst.msk [vmem:[#allocation2 + $0x28] sm:$0xf] %vm629_vm9, %v1833_v62  ;;  %v2419_v62 = vshrl.u32 %v4669_v60, 16  ;;  %v3989_v7 = vsel %vm5385_vm8, %v4878_v63, %v3988_v11  ;;  %v2820_v60 = vrot.slane %v2818_v58, 5  ;;  %v4837_v63 = vld [vmem:[%s5135_s7 + $0x3c] sm:$0xf] }
 0x149   : > { %4531 = vmatmul.msk.bf16.gmra.mxu0 %vm991_vm11, %v4513_v34  ;;  %v3736_v34 = vshll.u32 %v4836_v4, 16  ;;  %v2434_v32 = vrot.slane %v2432_v19, 4  ;;  %v4646_v19 = vld [vmem:[%s5135_s7 + $0x18] sm:$0xf]  ;;  %v3744_v10 = vshll.u32 %v4837_v63, 16 }
 0x14a   : > { %v2421_v39 = vrot.slane %v2419_v62, 4 }
 0x14b   : > { %2926 = vrot.lane.b32.xlu1 %v2787_v13, %s5060_s10  ;;  %v3990_v13 = vrot.slane %v3988_v11, 4  ;;  %v3738_v36 = vrot.slane %v3736_v34, 5  ;;  %v4645_v11 = vld [vmem:[%s5135_s7 + $0x10] sm:$0xf]  ;;  %v4838_v34 = vld [vmem:[%s5135_s7 + $0x40] sm:$0xf] }
 0x14c   : > { %2648 = vrot.lane.b32.xlu0 %v4691_v9, %s5059_s9  ;;  %2646 = vrot.lane.b32.xlu2 %v4690_v0, %s5059_s9  ;;  %v4959_v9 = vld [vmem:[%s7204_s1 + $0x10] sm:$0xff]  ;;  %v2430_v0 = vrot.slane %v2428_v3, 5 }
 0x14d   : > { %v1825_v30 = vpop.permute.xlu1 %1824  ;;  %3078 = vmatpush.bf16.msra.mxu2 %v4959_v9  ;;  %v3739_v35 = vsel %vm5146_vm3, %v3734_v21, %v3738_v36  ;;  %v3750_v21 = vshll.u32 %v4838_v34, 16  ;;  %v3754_v36 = vshrl.u32 %v4838_v34, 16 }
 0x14e   : > { %1866 = vst.msk [vmem:[#allocation2 + $0x18] sm:$0xf] %vm629_vm9, %v1825_v30  ;;  %v1823_v6 = vpop.permute.xlu0 %1822  ;;  %v1981_v43 = vpop.permute.xlu2 %1980  ;;  %v2424_v30 = vrot.slane %v2422_v26, 5  ;;  %v2435_v42 = vor.u32 %v2434_v32, %v2430_v0 }
 0x14f   : > { %1865 = vst.msk [vmem:[#allocation2 + $0x14] sm:$0xf] %vm629_vm9, %v1823_v6  ;;  %v3992_v6 = vsel %vm5385_vm8, %v3990_v13, %v3991_v55  ;;  %v4805_v13 = vld [vmem:[%s5135_s7 + $0x30] sm:$0xe]  ;;  %v6209_v55 = vld [vmem:[%s5135_s7 + $0x34] sm:$0xf] }
 0x150   : > { %2028 = vst.msk [vmem:[#allocation2] sm:$0xf] %vm910_vm10, %v1981_v43  ;;  %v2438_v43 = vshll.u32 %v4671_v5, 16  ;;  %v2425_v20 = vor.u32 %v2424_v30, %v2421_v39  ;;  %v3741_v30 = vshrl.u32 %v4837_v63, 16 }
 0x152   : > { %v2440_v33 = vrot.slane %v2438_v43, 5 }
 0x153   : > { %1994 = vrot.lane.b32.xlu1 %v1951_v2, %s5060_s10  ;;  %v2802_v2 = vshll.u32 %v4711_v54, 16 }
 0x154   : > { %1992 = vrot.lane.b32.xlu0 %v1948_v51, %s5060_s10  ;;  %2928 = vrot.lane.b32.xlu2 %v2797_v38, %s5060_s10  ;;  %v2814_v51 = vrot.slane %v2812_v1, 4  ;;  %v2436_v38 = vrot.slane %v2435_v42, 4  ;;  %v4580_v1 = vld [vmem:[%s5135_s7 + $0x44] sm:$0x1] }
 0x155   : > { %v1831_v61 = vpop.permute.xlu1 %1830  ;;  %v2804_v25 = vrot.slane %v2802_v2, 5  ;;  %v1957_v24 = vrot.slane %v4580_v1, 5 }
 0x156   : > { %1869 = vst.msk [vmem:[#allocation2 + $0x24] sm:$0xf] %vm629_vm9, %v1831_v61  ;;  %v1829_v59 = vpop.permute.xlu0 %1828  ;;  %v2539_v47 = vpop.permute.xlu2 %2538  ;;  %v4521_v61 = vor.u32 %v5940_v50, %v5987_v40  ;;  %v2815_v56 = vor.u32 %v2814_v51, %v6177_v14  ;;  %v2441_v4 = vsel %vm5146_vm3, %v2436_v38, %v2440_v33  ;;  %v6197_v40 = vld [vmem:[%s5135_s7 + $0x40] sm:$0xf]  ;;  %v3743_v38 = vrot.slane %v3741_v30, 4 }
 0x157   : > { %1868 = vst.msk [vmem:[#allocation2 + $0x20] sm:$0xf] %vm629_vm9, %v1829_v59  ;;  %v6143_v28 = vld [vmem:[#allocation2] sm:$0xf]  ;;  %v4773_v59 = vld [vmem:[%s5135_s7 + $0x10] sm:$0xf]  ;;  %v2805_v57 = vor.u32 %v2804_v25, %v2801_v49 }
 0x158   : > { %2306 = vst.msk [vmem:[#allocation2] sm:$0xf] %vm244_vm4, %v4644_v46  ;;  %v2426_v46 = vrot.slane %v2425_v20, 4  ;;  %v3266_v12 = vshrl.u32 %v4773_v59, 16  ;;  %v1954_v16 = vrot.slane %v6197_v40, 5  ;;  %v6241_v20 = vrot.slane %v3750_v21, 5 }
 0x159   : > { %4532 = vmatmul.msk.bf16.gmra.mxu0 %vm991_vm11, %v4517_v41  ;;  %2586 = vst.msk [vmem:[#allocation2] sm:$0xf] %vm528_vm5, %v2539_v47  ;;  %v4772_v41 = vld [vmem:[%s5135_s7 + $0xc] sm:$0xf]  ;;  %v2816_v47 = vrot.slane %v2815_v56, 4  ;;  %v2806_v3 = vrot.slane %v2805_v57, 4 }
 0x15a   : > { %v2431_v50 = vsel %vm5146_vm3, %v2426_v46, %v2430_v0  ;;  %v3256_v18 = vshll.u32 %v4772_v41, 16  ;;  %v3268_v0 = vrot.slane %v3266_v12, 4  ;;  %v1956_v2 = vrot.slane %v1954_v16, 4  ;;  %v4672_v49 = vld [vmem:[%s5135_s7 + $0x3c] sm:$0xf] }
 0x15b   : > { %3868 = vrot.lane.b32.xlu1 %v3729_v48, %s5059_s9  ;;  %v3262_v48 = vshll.u32 %v4773_v59, 16  ;;  %v2821_v9 = vsel %vm5146_vm3, %v2816_v47, %v2820_v60  ;;  %v3746_v33 = vrot.slane %v3744_v10, 5  ;;  %v4968_v25 = vld [vmem:[%s7204_s1 + $0x18] sm:$0xff]  ;;  %v6253_v56 = vld [vmem:[%s7205_s2] ss:$0 sm:$0xff] }
 0x15c   : > { %3590 = vrot.lane.b32.xlu0 %v3544_v17, %s5058_s8  ;;  %3588 = vrot.lane.b32.xlu2 %v3541_v8, %s5058_s8  ;;  %v3253_v17 = vshrl.u32 %v4772_v41, 16  ;;  %v2443_v41 = vshrl.u32 %v4672_v49, 16  ;;  %v1958_v47 = vsel %vm5385_vm8, %v1956_v2, %v1957_v24 }
 0x15d   : > { %v1837_v15 = vpop.permute.xlu1 %1836  ;;  %v6217_v5 = vrot.slane %v3262_v48, 5  ;;  %4188 = vmatpush.bf16.msra.mxu3 %v4968_v25  ;;  %v3747_v48 = vor.u32 %v3746_v33, %v3743_v38 }
 0x15e   : > { %1872 = vst.msk [vmem:[#allocation2 + $0x30] sm:$0xf] %vm629_vm9, %v1837_v15  ;;  %v1835_v22 = vpop.permute.xlu0 %1834  ;;  %v6168_v45 = vpop.permute.xlu2 %2640  ;;  %v4774_v15 = vld [vmem:[%s5135_s7 + $0x14] sm:$0x1]  ;;  %v3255_v54 = vrot.slane %v3253_v17, 4  ;;  %v2445_v34 = vrot.slane %v2443_v41, 4 }
 0x15f   : > { %1871 = vst.msk [vmem:[#allocation2 + $0x2c] sm:$0xf] %vm629_vm9, %v1835_v22  ;;  %v3258_v22 = vrot.slane %v3256_v18, 5  ;;  %v3269_v42 = vor.u32 %v3268_v0, %v6217_v5  ;;  %v3272_v43 = vshll.u32 %v4774_v15, 16 }
 0x163   : > { %4038 = vrot.lane.b32.xlu1 %v3992_v6, %s5060_s10  ;;  %v4693_v6 = vld [vmem:[%s5135_s7 + $0x40] sm:$0xf] }
 0x164   : > { %4036 = vrot.lane.b32.xlu0 %v3989_v7, %s5060_s10  ;;  %3870 = vrot.lane.b32.xlu2 %v3739_v35, %s5059_s9  ;;  %v4823_v7 = vrot.slane %v4805_v13, 9  ;;  %v4839_v35 = vld [vmem:[%s5135_s7 + $0x44] sm:$0x1] }
 0x165   : > { %v1839_v29 = vpop.permute.xlu1 %1838  ;;  %v3760_v57 = vshll.u32 %v4839_v35, 16 }
 0x166   : > { %1873 = vst.msk [vmem:[#allocation2 + $0x34] sm:$0xf] %vm629_vm9, %v1839_v29  ;;  %v1983_v37 = vpop.permute.xlu0 %1982  ;;  %v1985_v52 = vpop.permute.xlu2 %1984  ;;  %v3259_v29 = vor.u32 %v3258_v22, %v3255_v54 }
 0x167   : > { %2029 = vst.msk [vmem:[#allocation2 + $0x4] sm:$0xf] %vm910_vm10, %v1983_v37 }
 0x168   : > { %2030 = vst.msk [vmem:[#allocation2 + $0x8] sm:$0xf] %vm910_vm10, %v1985_v52  ;;  %v3270_v52 = vrot.slane %v3269_v42, 4  ;;  %v3260_v60 = vrot.slane %v3259_v29, 4 }
 0x169   : > { %4533 = vmatmul.msk.bf16.gmra.mxu0 %vm991_vm11, %v4521_v61  ;;  %v4594_v61 = vrot.slane %v4578_v44, 9 }
 0x16b   : > { %2650 = vrot.lane.b32.xlu1 %v4692_v53, %s5059_s9  ;;  %v3274_v53 = vrot.slane %v3272_v43, 5  ;;  %v1955_v12 = vsel %vm5385_vm8, %v4594_v61, %v1954_v16  ;;  %v3265_v16 = vsel %vm5146_vm3, %v3260_v60, %v6217_v5  ;;  %v4861_v43 = vld [vmem:[%s5135_s7 + $0x3c] sm:$0xe] }
 0x16c   : > { %2552 = vrot.lane.b32.xlu0 %v2441_v4, %s5058_s8  ;;  %2550 = vrot.lane.b32.xlu2 %v2431_v50, %s5058_s8  ;;  %v2446_v50 = vshll.u32 %v4672_v49, 16  ;;  %v4879_v33 = vrot.slane %v4861_v43, 9  ;;  %v4715_v49 = vld [vmem:[%s5135_s7 + $0x4c] sm:$0xf] }
 0x16d   : > { %v2639_v8 = vpop.permute.xlu1 %2638  ;;  %v3275_v18 = vsel %vm5146_vm3, %v3270_v52, %v3274_v53  ;;  %v4674_v52 = vld [vmem:[%s5135_s7 + $0x44] sm:$0x1]  ;;  %v2836_v41 = vshrl.u32 %v4715_v49, 16 }
 0x16e   : > { %v4942_v62 = vld [vmem:[#allocation2] sm:$0xf0]  ;;  %2686 = vst.msk [vmem:[#allocation2] sm:$0xf] %vm629_vm9, %v2639_v8  ;;  %v2541_v26 = vpop.permute.xlu0 %2540  ;;  %v6219_v32 = vpop.permute.xlu2 %3582  ;;  %v4807_v8 = vld [vmem:[%s5135_s7 + $0x38] sm:$0x1] }
 0x16f   : > { %2307 = vst.msk [vmem:[#allocation2 + $0x4] sm:$0xf] %vm244_vm4, %v4645_v11  ;;  %v4603_v23 = vor.u32 %v4942_v62, %v6143_v28  ;;  %v2811_v28 = vsel %vm5146_vm3, %v2806_v3, %v6177_v14  ;;  %v6228_v39 = vld [vmem:[#allocation2 + $0x8] sm:$0xf]  ;;  %v3756_v14 = vrot.slane %v3754_v36, 4  ;;  %v2448_v62 = vrot.slane %v2446_v50, 5 }
 0x170   : > { %2587 = vst.msk [vmem:[#allocation2 + $0x4] sm:$0xf] %vm528_vm5, %v2541_v26  ;;  %v4673_v11 = vld [vmem:[%s5135_s7 + $0x40] sm:$0xf]  ;;  %v3550_v54 = vrot.slane %v4807_v8, 5  ;;  %v2462_v8 = vshll.u32 %v4674_v52, 16 }
 0x171   : > { %2687 = vst.msk [vmem:[#allocation2 + $0x4] sm:$0xf] %vm629_vm9, %v6168_v45  ;;  %4636 = vmatmul.msk.bf16.vlgmr.msra.gmra.mxu1 %vm991_vm11, %v4603_v23  ;;  %v3547_v45 = vrot.slane %v6209_v55, 5  ;;  %v3757_v4 = vor.u32 %v3756_v14, %v6241_v20  ;;  %v6274_v26 = vld [vmem:[%s5135_s7 + $0x40] sm:$0xf]  ;;  %v3748_v55 = vrot.slane %v3747_v48, 4  ;;  %v2449_v10 = vor.u32 %v2448_v62, %v2445_v34 }
 0x172   : > { %2308 = vst.msk [vmem:[#allocation2 + $0x8] sm:$0xf] %vm244_vm4, %v4646_v19  ;;  %v3762_v19 = vrot.slane %v3760_v57, 5  ;;  %v2452_v63 = vshll.u32 %v4673_v11, 16  ;;  %v3995_v36 = vrot.slane %v6274_v26, 5  ;;  %v2456_v1 = vshrl.u32 %v4673_v11, 16 }
 0x173   : > { %2932 = vrot.lane.b32.xlu1 %v2821_v9, %s5060_s10  ;;  %v3548_v58 = vsel %vm5385_vm8, %v4823_v7, %v3547_v45  ;;  %v3758_v3 = vrot.slane %v3757_v4, 4  ;;  %v3549_v0 = vrot.slane %v3547_v45, 4  ;;  %v3753_v42 = vsel %vm5146_vm3, %v3748_v55, %v6241_v20  ;;  %v4714_v50 = vld [vmem:[%s5135_s7 + $0x48] sm:$0xf]  ;;  %v4716_v34 = vld [vmem:[%s5135_s7 + $0x50] sm:$0x1] }
 0x174   : > { %2930 = vrot.lane.b32.xlu0 %v2811_v28, %s5060_s10  ;;  %2652 = vrot.lane.b32.xlu2 %v4693_v6, %s5059_s9  ;;  %v4863_v6 = vld [vmem:[%s5135_s7 + $0x44] sm:$0x1]  ;;  %v3997_v24 = vrot.slane %v3995_v36, 4  ;;  %v2450_v20 = vrot.slane %v2449_v10, 4  ;;  %v2832_v57 = vshll.u32 %v4715_v49, 16  ;;  %v3996_v48 = vsel %vm5385_vm8, %v4879_v33, %v3995_v36 }
 0x175   : > { %v2921_v51 = vpop.permute.xlu1 %2920  ;;  %v3763_v30 = vsel %vm5146_vm3, %v3758_v3, %v3762_v19  ;;  %v3551_v2 = vsel %vm5385_vm8, %v3549_v0, %v3550_v54  ;;  %v3998_v38 = vrot.slane %v4863_v6, 5  ;;  %v4775_v3 = vld [vmem:[%s5135_s7 + $0x18] sm:$0xf]  ;;  %v2823_v62 = vshrl.u32 %v4714_v50, 16  ;;  %v4581_v10 = vld [vmem:[%s5135_s7 + $0x48] sm:$0xe] }
 0x176   : > { %2967 = vst.msk [vmem:[#allocation2 + $0x4] sm:$0xf] %vm910_vm10, %v2921_v51  ;;  %v2919_v37 = vpop.permute.xlu0 %2918  ;;  %v1025_v46 = vpop.f32.mrf.mxu0  ;;  %v2454_v51 = vrot.slane %v2452_v63, 5  ;;  %v2826_v26 = vshll.u32 %v4714_v50, 16  ;;  %v3280_v63 = vshll.u32 %v4775_v3, 16 }
 0x177   : > { %2966 = vst.msk [vmem:[#allocation2] sm:$0xf] %vm910_vm10, %v2919_v37  ;;  %v6257_v59 = vpop.permute.xlu2 %4028  ;;  %v1068_v17 = vsub.f32 %v1025_v46, %v6253_v56  ;;  %v2458_v37 = vrot.slane %v2456_v1, 4  ;;  %v4647_v46 = vld [vmem:[%s5135_s7 + $0x1c] sm:$0xf]  ;;  %v3999_v60 = vsel %vm5385_vm8, %v3997_v24, %v3998_v38  ;;  %v2825_v36 = vrot.slane %v2823_v62, 4 }
 0x178   : > { %v6342_v1 = vld [vmem:[%s5135_s7 + $0x4c] sm:$0xf]  ;;  %v3282_v43 = vrot.slane %v3280_v63, 5 }
 0x179   : > { %v1123_v22 = vmul.f32 %v1068_v17, %v1068_v17  ;;  %v1085_v7 = vsel %vm1084_vm12, %v1068_v17, 0.0  ;;  %v1961_v33 = vrot.slane %v6342_v1, 5 }
 0x17b   : > { %3592 = vrot.lane.b32.xlu1 %v3548_v58, %s5058_s8  ;;  %v1139_v35 = vsel %vm1084_vm12, %v1123_v22, 0.0  ;;  %v4695_v22 = vld [vmem:[%s5135_s7 + $0x4c] sm:$0xf] }
 0x17c   : > { %1998 = vrot.lane.b32.xlu0 %v1958_v47, %s5060_s10  ;;  %1996 = vrot.lane.b32.xlu2 %v1955_v12, %s5060_s10  ;;  %v2455_v47 = vsel %vm5146_vm3, %v2450_v20, %v2454_v51 }
 0x17d   : > { %v4951_v40 = vld [vmem:[#allocation2] sm:$0xf0]  ;;  %v3581_v13 = vpop.permute.xlu1 %3580 }
 0x17e   : > { %3461 = vst.msk [vmem:[#allocation2 + $0x4] sm:$0xf] %vm244_vm4, %v3275_v18  ;;  %v4730_v23 = vld [vmem:[#allocation2] sm:$0xf]  ;;  %v1987_v9 = vpop.permute.xlu0 %1986  ;;  %v1027_v15 = vpop.f32.mrf.mxu0  ;;  %v2459_v18 = vor.u32 %v2458_v37, %v2454_v51  ;;  %v4595_v51 = vrot.slane %v4581_v10, 9 }
 0x17f   : > { %3629 = vst.msk [vmem:[#allocation2 + $0x4] sm:$0xf] %vm528_vm5, %v6219_v32  ;;  %v1069_v5 = vsub.f32 %v1027_v15, %v6253_v56  ;;  %v4731_v21 = vor.u32 %v4951_v40, %v4730_v23  ;;  %v2545_v28 = vpop.permute.xlu2 %2544  ;;  %v4776_v15 = vld [vmem:[%s5135_s7 + $0x1c] sm:$0xf] }
 0x180   : > { %3460 = vst.msk [vmem:[#allocation2] sm:$0xf] %vm244_vm4, %v3265_v16  ;;  %v6330_v16 = vrot.slane %v2832_v57, 5 }
 0x181   : > { %3628 = vst.msk [vmem:[#allocation2] sm:$0xf] %vm528_vm5, %v3581_v13  ;;  %v1086_v32 = vsel %vm1084_vm12, %v1069_v5, 0.0  ;;  %v1124_v45 = vmul.f32 %v1069_v5, %v1069_v5  ;;  %4764 = vmatmul.msk.bf16.vlgmr.msra.gmra.mxu2 %vm991_vm11, %v4731_v21  ;;  %v2838_v13 = vrot.slane %v2836_v41, 4  ;;  %v2460_v5 = vrot.slane %v2459_v18, 4 }
 0x182   : > { %2031 = vst.msk [vmem:[#allocation2 + $0xc] sm:$0xf] %vm910_vm10, %v1987_v9  ;;  %v1087_v44 = vadd.f32 %v1086_v32, %v1085_v7  ;;  %v2842_v9 = vshll.u32 %v4716_v34, 16  ;;  %v2464_v21 = vrot.slane %v2462_v8, 5  ;;  %v3286_v32 = vshll.u32 %v4776_v15, 16 }
 0x183   : > { %v1140_v14 = vsel %vm1084_vm12, %v1124_v45, 0.0  ;;  %3874 = vrot.lane.b32.xlu1 %v3763_v30, %s5059_s9  ;;  %v2839_v6 = vor.u32 %v2838_v13, %v6330_v16  ;;  %v3290_v45 = vshrl.u32 %v4776_v15, 16  ;;  %v4777_v41 = vld [vmem:[%s5135_s7 + $0x20] sm:$0x1]  ;;  %v4808_v8 = vld [vmem:[%s5135_s7 + $0x3c] sm:$0xe] }
 0x184   : > { %v1141_v29 = vadd.f32 %v1140_v14, %v1139_v35  ;;  %3872 = vrot.lane.b32.xlu0 %v3753_v42, %s5059_s9  ;;  %3594 = vrot.lane.b32.xlu2 %v3551_v2, %s5058_s8  ;;  %v4694_v35 = vld [vmem:[%s5135_s7 + $0x48] sm:$0xf]  ;;  %v2465_v24 = vsel %vm5146_vm3, %v2460_v5, %v2464_v21  ;;  %v4824_v21 = vrot.slane %v4808_v8, 9 }
 0x185   : > { %v3863_v25 = vpop.permute.xlu1 %3862  ;;  %v2840_v49 = vrot.slane %v2839_v6, 4 }
 0x186   : > { %3909 = vst.msk [vmem:[#allocation2 + $0x4] sm:$0xf] %vm629_vm9, %v3863_v25  ;;  %v3861_v61 = vpop.permute.xlu0 %3860  ;;  %v1030_v58 = vpop.f32.mrf.mxu0  ;;  %v2844_v25 = vrot.slane %v2842_v9, 5 }
 0x187   : > { %3908 = vst.msk [vmem:[#allocation2] sm:$0xf] %vm629_vm9, %v3861_v61  ;;  %v1070_v53 = vsub.f32 %v1030_v58, %v6253_v56  ;;  %v6311_v4 = vpop.permute.xlu2 %2922  ;;  %v3292_v61 = vrot.slane %v3290_v45, 4 }
 0x188   : > { %4076 = vst.msk [vmem:[#allocation2] sm:$0xf] %vm910_vm10, %v6257_v59  ;;  %v2845_v18 = vsel %vm5146_vm3, %v2840_v49, %v2844_v25 }
 0x189   : > { %v4943_v12 = vld [vmem:[#allocation2 + $0x8] sm:$0xf0]  ;;  %v1088_v11 = vsel %vm1084_vm12, %v1070_v53, 0.0  ;;  %v1125_v17 = vmul.f32 %v1070_v53, %v1070_v53  ;;  %v4649_v53 = vld [vmem:[%s5135_s7 + $0x28] sm:$0xf] }
 0x18a   : > { %2309 = vst.msk [vmem:[#allocation2 + $0xc] sm:$0xf] %vm244_vm4, %v4647_v46  ;;  %v1089_v19 = vadd.f32 %v1088_v11, %v1087_v44  ;;  %v4607_v59 = vor.u32 %v4943_v12, %v6228_v39  ;;  %v3277_v39 = vshrl.u32 %v4775_v3, 16  ;;  %v6357_v46 = vrot.slane %v3286_v32, 5  ;;  %v4841_v11 = vld [vmem:[%s5135_s7 + $0x4c] sm:$0xf] }
 0x18b   : > { %v1142_v40 = vsel %vm1084_vm12, %v1125_v17, 0.0  ;;  %2554 = vrot.lane.b32.xlu1 %v2455_v47, %s5058_s8  ;;  %2589 = vst.msk [vmem:[#allocation2 + $0xc] sm:$0xf] %vm528_vm5, %v2545_v28  ;;  %v2828_v28 = vrot.slane %v2826_v26, 5  ;;  %v4675_v32 = vld [vmem:[%s5135_s7 + $0x48] sm:$0xf] }
 0x18c   : > { %v1143_v55 = vadd.f32 %v1142_v40, %v1141_v29  ;;  %4637 = vmatmul.msk.bf16.gmra.mxu1 %vm991_vm11, %v4607_v59  ;;  %4042 = vrot.lane.b32.xlu0 %v3999_v60, %s5060_s10  ;;  %v3279_v42 = vrot.slane %v3277_v39, 4  ;;  %v6351_v29 = vld [vmem:[%s5135_s7 + $0x40] sm:$0xf]  ;;  %v1962_v59 = vsel %vm5385_vm8, %v4595_v51, %v1961_v33  ;;  %v3293_v62 = vor.u32 %v3292_v61, %v6357_v46 }
 0x18d   : > { %v2543_v23 = vpop.permute.xlu1 %2542  ;;  %4040 = vrot.lane.b32.xlu2 %v3996_v48, %s5060_s10  ;;  %v2829_v20 = vor.u32 %v2828_v28, %v2825_v36  ;;  %v3554_v57 = vrot.slane %v6351_v29, 5  ;;  %v4810_v48 = vld [vmem:[%s5135_s7 + $0x44] sm:$0x1]  ;;  %v4842_v28 = vld [vmem:[%s5135_s7 + $0x50] sm:$0x1]  ;;  %v2467_v25 = vshrl.u32 %v4675_v32, 16 }
 0x18e   : > { %2588 = vst.msk [vmem:[#allocation2 + $0x8] sm:$0xf] %vm528_vm5, %v2543_v23  ;;  %v4031_v0 = vpop.permute.xlu0 %4030  ;;  %v1032_v54 = vpop.f32.mrf.mxu0  ;;  %v3283_v58 = vor.u32 %v3282_v43, %v3279_v42  ;;  %v4864_v42 = vld [vmem:[%s5135_s7 + $0x48] sm:$0xe]  ;;  %v1963_v43 = vrot.slane %v1961_v33, 4  ;;  %v2470_v61 = vshll.u32 %v4675_v32, 16 }
 0x18f   : > { %4077 = vst.msk [vmem:[#allocation2 + $0x4] sm:$0xf] %vm910_vm10, %v4031_v0  ;;  %v1071_v30 = vsub.f32 %v1032_v54, %v6253_v56  ;;  %v1991_v7 = vpop.permute.xlu2 %1990  ;;  %v2830_v12 = vrot.slane %v2829_v20, 4  ;;  %v3556_v0 = vrot.slane %v3554_v57, 4  ;;  %v3557_v54 = vrot.slane %v4810_v48, 5 }
 0x190   : > { %2033 = vst.msk [vmem:[#allocation2 + $0x14] sm:$0xf] %vm910_vm10, %v1991_v7  ;;  %v3284_v26 = vrot.slane %v3283_v58, 4  ;;  %v4676_v7 = vld [vmem:[%s5135_s7 + $0x4c] sm:$0xf]  ;;  %v2472_v8 = vrot.slane %v2470_v61, 5 }
 0x191   : > { %v1090_v44 = vsel %vm1084_vm12, %v1071_v30, 0.0  ;;  %v1126_v2 = vmul.f32 %v1071_v30, %v1071_v30  ;;  %v2835_v63 = vsel %vm5146_vm3, %v2830_v12, %v6330_v16  ;;  %v3294_v16 = vrot.slane %v3293_v62, 4 }
 0x192   : > { %v1091_v14 = vadd.f32 %v1090_v44, %v1089_v19  ;;  %v4840_v19 = vld [vmem:[%s5135_s7 + $0x48] sm:$0xf]  ;;  %v3289_v10 = vsel %vm5146_vm3, %v3284_v26, %v6357_v46  ;;  %v2476_v49 = vshll.u32 %v4676_v7, 16  ;;  %v2480_v33 = vshrl.u32 %v4676_v7, 16  ;;  %v4778_v7 = vld [vmem:[%s5135_s7 + $0x24] sm:$0xf] }
 0x193   : > { %v1144_v38 = vsel %vm1084_vm12, %v1126_v2, 0.0  ;;  %2656 = vrot.lane.b32.xlu1 %v4695_v22, %s5059_s9  ;;  %v3765_v23 = vshrl.u32 %v4840_v19, 16  ;;  %v3768_v9 = vshll.u32 %v4840_v19, 16  ;;  %v4583_v22 = vld [vmem:[%s5135_s7 + $0x50] sm:$0x1]  ;;  %v2469_v12 = vrot.slane %v2467_v25, 4 }
 0x194   : > { %v1145_v37 = vadd.f32 %v1144_v38, %v1143_v55  ;;  %2654 = vrot.lane.b32.xlu0 %v4694_v35, %s5059_s9  ;;  %v3774_v55 = vshll.u32 %v4841_v11, 16  ;;  %v1964_v44 = vrot.slane %v4583_v22, 5  ;;  %v3784_v38 = vshll.u32 %v4842_v28, 16  ;;  %v4717_v19 = vld [vmem:[%s5135_s7 + $0x54] sm:$0xf] }
 0x195   : > { %v2645_v52 = vpop.permute.xlu1 %2644  ;;  %2556 = vrot.lane.b32.xlu2 %v2465_v24, %s5058_s8  ;;  %v3767_v2 = vrot.slane %v3765_v23, 4  ;;  %v3770_v35 = vrot.slane %v3768_v9, 5  ;;  %v6412_v24 = vld [vmem:[%s5135_s7 + $0x4c] sm:$0xf]  ;;  %v2482_v48 = vrot.slane %v2480_v33, 4  ;;  %v2847_v23 = vshrl.u32 %v4717_v19, 16 }
 0x196   : > { %2689 = vst.msk [vmem:[#allocation2 + $0xc] sm:$0xf] %vm629_vm9, %v2645_v52  ;;  %v2643_v50 = vpop.permute.xlu0 %2642  ;;  %v1035_v47 = vpop.f32.mrf.mxu0  ;;  %v4960_v60 = vld [vmem:[#allocation2] sm:$0xff]  ;;  %v6402_v1 = vrot.slane %v3774_v55, 5  ;;  %v1965_v58 = vsel %vm5385_vm8, %v1963_v43, %v1964_v44  ;;  %v4002_v29 = vrot.slane %v6412_v24, 5  ;;  %v2850_v9 = vshll.u32 %v4717_v19, 16 }
 0x197   : > { %2688 = vst.msk [vmem:[#allocation2 + $0x8] sm:$0xf] %vm629_vm9, %v2643_v50  ;;  %v1072_v17 = vsub.f32 %v1035_v47, %v6253_v56  ;;  %v6371_v3 = vpop.permute.xlu2 %3864  ;;  %4922 = vmatmul.msk.bf16.vlgmr.msra.gmra.mxu3 %vm991_vm11, %v4960_v60  ;;  %v6379_v34 = vld [vmem:[#allocation2 + $0x10] sm:$0xf0]  ;;  %v3296_v56 = vshll.u32 %v4777_v41, 16  ;;  %v3771_v52 = vor.u32 %v3770_v35, %v3767_v2  ;;  %v4880_v50 = vrot.slane %v4864_v42, 9 }
 0x198   : > { %2968 = vst.msk [vmem:[#allocation2 + $0x8] sm:$0xf] %vm910_vm10, %v6311_v4  ;;  %v3778_v4 = vshrl.u32 %v4841_v11, 16  ;;  %v4677_v47 = vld [vmem:[%s5135_s7 + $0x50] sm:$0x1]  ;;  %v2478_v60 = vrot.slane %v2476_v49, 5 }
 0x199   : > { %v1092_v40 = vsel %vm1084_vm12, %v1072_v17, 0.0  ;;  %v1127_v13 = vmul.f32 %v1072_v17, %v1072_v17  ;;  %2311 = vst.msk [vmem:[#allocation2 + $0x14] sm:$0xf] %vm244_vm4, %v4649_v53  ;;  %v3298_v36 = vrot.slane %v3296_v56, 5  ;;  %v4648_v53 = vld [vmem:[%s5135_s7 + $0x24] sm:$0xf] }
 0x19a   : > { %v6384_v39 = vadd.f32 %v1092_v40, %v1091_v14  ;;  %v3780_v6 = vrot.slane %v3778_v4, 4  ;;  %v3558_v14 = vsel %vm5385_vm8, %v3556_v0, %v3557_v54  ;;  %v3772_v26 = vrot.slane %v3771_v52, 4  ;;  %v4866_v54 = vld [vmem:[%s5135_s7 + $0x50] sm:$0x1]  ;;  %v4585_v49 = vld [vmem:[%s5135_s7 + $0x58] sm:$0xf] }
 0x19b   : > { %v1146_v15 = vsel %vm1084_vm12, %v1127_v13, 0.0  ;;  %2000 = vrot.lane.b32.xlu1 %v1962_v59, %s5060_s10  ;;  %v3299_v41 = vsel %vm5146_vm3, %v3294_v16, %v3298_v36  ;;  %v4003_v13 = vsel %vm5385_vm8, %v4880_v50, %v4002_v29  ;;  %v2483_v4 = vor.u32 %v2482_v48, %v2478_v60  ;;  %v4843_v25 = vld [vmem:[%s5135_s7 + $0x54] sm:$0xf]  ;;  %v4719_v50 = vld [vmem:[%s5135_s7 + $0x5c] sm:$0x1] }
 0x19c   : > { %v6394_v5 = vadd.f32 %v1146_v15, %v1145_v37  ;;  %2936 = vrot.lane.b32.xlu0 %v2845_v18, %s5060_s10  ;;  %v3555_v37 = vsel %vm5385_vm8, %v4824_v21, %v3554_v57  ;;  %v3781_v46 = vor.u32 %v3780_v6, %v6402_v1  ;;  %v3786_v57 = vrot.slane %v3784_v38, 5  ;;  %v4697_v48 = vld [vmem:[%s5135_s7 + $0x58] sm:$0xf] }
 0x19d   : > { %v1989_v30 = vpop.permute.xlu1 %1988  ;;  %2934 = vrot.lane.b32.xlu2 %v2835_v63, %s5060_s10  ;;  %v2486_v63 = vshll.u32 %v4677_v47, 16  ;;  %v2473_v15 = vor.u32 %v2472_v8, %v2469_v12  ;;  %v3777_v0 = vsel %vm5146_vm3, %v3772_v26, %v6402_v1  ;;  %v2484_v22 = vrot.slane %v2483_v4, 4  ;;  %v4586_v12 = vld [vmem:[%s5135_s7 + $0x5c] sm:$0x1] }
 0x19e   : > { %2032 = vst.msk [vmem:[#allocation2 + $0x10] sm:$0xf] %vm910_vm10, %v1989_v30  ;;  %v2925_v45 = vpop.permute.xlu0 %2924  ;;  %v3782_v18 = vrot.slane %v3781_v46, 4  ;;  %v2849_v16 = vrot.slane %v2847_v23, 4  ;;  %v2852_v36 = vrot.slane %v2850_v9, 5  ;;  %v4004_v6 = vrot.slane %v4002_v29, 4 }
 0x19f   : > { %2969 = vst.msk [vmem:[#allocation2 + $0xc] sm:$0xf] %vm910_vm10, %v2925_v45  ;;  %v4734_v51 = vld [vmem:[#allocation2 + $0x8] sm:$0xf]  ;;  %v6414_v20 = vpop.permute.xlu2 %4034  ;;  %v2488_v21 = vrot.slane %v2486_v63, 5  ;;  %v2474_v30 = vrot.slane %v2473_v15, 4 }
 0x1a0   : > { %3462 = vst.msk [vmem:[#allocation2 + $0x8] sm:$0xf] %vm244_vm4, %v3289_v10  ;;  %v4718_v10 = vld [vmem:[%s5135_s7 + $0x58] sm:$0xf]  ;;  %v4005_v1 = vrot.slane %v4866_v54, 5  ;;  %v2853_v42 = vor.u32 %v2852_v36, %v2849_v16  ;;  %v3301_v2 = vshrl.u32 %v4778_v7, 16 }
 0x1a1   : > { %v2489_v45 = vsel %vm5146_vm3, %v2484_v22, %v2488_v21  ;;  %v2856_v43 = vshll.u32 %v4718_v10, 16  ;;  %v2479_v44 = vsel %vm5146_vm3, %v2474_v30, %v2478_v60  ;;  %v2860_v35 = vshrl.u32 %v4718_v10, 16  ;;  %v4779_v46 = vld [vmem:[%s5135_s7 + $0x28] sm:$0xf]  ;;  %v4844_v9 = vld [vmem:[%s5135_s7 + $0x58] sm:$0xf] }
 0x1a2   : > { %v2854_v24 = vrot.slane %v2853_v42, 4  ;;  %v3303_v33 = vrot.slane %v3301_v2, 4  ;;  %v3789_v47 = vshrl.u32 %v4843_v25, 16  ;;  %v3792_v60 = vshll.u32 %v4843_v25, 16  ;;  %v4812_v15 = vld [vmem:[%s5135_s7 + $0x4c] sm:$0xf] }
 0x1a3   : > { %3598 = vrot.lane.b32.xlu1 %v3558_v14, %s5058_s8  ;;  %v4006_v14 = vsel %vm5385_vm8, %v4004_v6, %v4005_v1  ;;  %v2866_v19 = vshll.u32 %v4719_v50, 16  ;;  %v1971_v26 = vrot.slane %v4586_v12, 5  ;;  %v3798_v10 = vshll.u32 %v4844_v9, 16  ;;  %v4813_v6 = vld [vmem:[%s5135_s7 + $0x50] sm:$0x1] }
 0x1a4   : > { %3596 = vrot.lane.b32.xlu0 %v3555_v37, %s5058_s8  ;;  %v3561_v1 = vrot.slane %v4812_v15, 5  ;;  %v4811_v42 = vld [vmem:[%s5135_s7 + $0x48] sm:$0xe] }
 0x1a5   : > { %v4610_v11 = vld [vmem:[#allocation2 + $0x10] sm:$0xf]  ;;  %v3587_v17 = vpop.permute.xlu1 %3586  ;;  %2002 = vrot.lane.b32.xlu2 %v1965_v58, %s5060_s10  ;;  %v2862_v58 = vrot.slane %v2860_v35, 4  ;;  %v2868_v54 = vrot.slane %v2866_v19, 5  ;;  %v3800_v35 = vrot.slane %v3798_v10, 5 }
 0x1a6   : > { %2310 = vst.msk [vmem:[#allocation2 + $0x10] sm:$0xf] %vm244_vm4, %v4648_v53  ;;  %v4952_v59 = vld [vmem:[#allocation2 + $0x8] sm:$0xf0]  ;;  %v3585_v62 = vpop.permute.xlu0 %3584  ;;  %v4611_v56 = vor.u32 %v6379_v34, %v4610_v11  ;;  %v3787_v34 = vsel %vm5146_vm3, %v3782_v18, %v3786_v57  ;;  %v3314_v53 = vshrl.u32 %v4779_v46, 16  ;;  %v1968_v57 = vrot.slane %v4585_v49, 5 }
 0x1a7   : > { %3463 = vst.msk [vmem:[#allocation2 + $0xc] sm:$0xf] %vm244_vm4, %v3299_v41  ;;  %v4735_v40 = vor.u32 %v4952_v59, %v4734_v51  ;;  %v2647_v55 = vpop.permute.xlu2 %2646  ;;  %v3304_v51 = vshll.u32 %v4778_v7, 16  ;;  %v3310_v11 = vshll.u32 %v4779_v46, 16  ;;  %v4696_v18 = vld [vmem:[%s5135_s7 + $0x54] sm:$0xf] }
 0x1a8   : > { %3631 = vst.msk [vmem:[#allocation2 + $0xc] sm:$0xf] %vm528_vm5, %v3587_v17  ;;  %4638 = vmatmul.msk.bf16.gmra.mxu1 %vm991_vm11, %v4611_v56  ;;  %v4584_v17 = vld [vmem:[%s5135_s7 + $0x54] sm:$0xe]  ;;  %v1970_v56 = vrot.slane %v1968_v57, 4  ;;  %v3802_v7 = vshrl.u32 %v4844_v9, 16 }
 0x1a9   : > { %3630 = vst.msk [vmem:[#allocation2 + $0x8] sm:$0xf] %vm528_vm5, %v3585_v62  ;;  %4765 = vmatmul.msk.bf16.gmra.mxu2 %vm991_vm11, %v4735_v40  ;;  %v3306_v61 = vrot.slane %v3304_v51, 5  ;;  %v3316_v62 = vrot.slane %v3314_v53, 4  ;;  %v3791_v40 = vrot.slane %v3789_v47, 4  ;;  %v4596_v63 = vrot.slane %v4584_v17, 9 }
 0x1aa   : > { %3910 = vst.msk [vmem:[#allocation2 + $0x8] sm:$0xf] %vm629_vm9, %v6371_v3  ;;  %v3312_v23 = vrot.slane %v3310_v11, 5  ;;  %v6511_v51 = vld [vmem:[%s5135_s7 + $0x58] sm:$0xf]  ;;  %v3804_v46 = vrot.slane %v3802_v7, 4 }
 0x1ab   : > { %4044 = vrot.lane.b32.xlu1 %v4003_v13, %s5060_s10  ;;  %v3307_v59 = vor.u32 %v3306_v61, %v3303_v33  ;;  %v3794_v13 = vrot.slane %v3792_v60, 5  ;;  %v4679_v49 = vld [vmem:[%s5135_s7 + $0x58] sm:$0xf]  ;;  %v4825_v33 = vrot.slane %v4811_v42, 9  ;;  %v4678_v53 = vld [vmem:[%s5135_s7 + $0x54] sm:$0xf] }
 0x1ac   : > { %3878 = vrot.lane.b32.xlu0 %v3787_v34, %s5059_s9  ;;  %v3317_v16 = vor.u32 %v3316_v62, %v3312_v23  ;;  %v4009_v47 = vrot.slane %v6511_v51, 5  ;;  %v4867_v60 = vld [vmem:[%s5135_s7 + $0x54] sm:$0xe]  ;;  %v2504_v12 = vshrl.u32 %v4679_v49, 16  ;;  %v3805_v17 = vor.u32 %v3804_v46, %v3800_v35  ;;  %v4650_v62 = vld [vmem:[%s5135_s7 + $0x30] sm:$0xf] }
 0x1ad   : > { %v4033_v28 = vpop.permute.xlu1 %4032  ;;  %3876 = vrot.lane.b32.xlu2 %v3777_v0, %s5059_s9  ;;  %v3308_v22 = vrot.slane %v3307_v59, 4  ;;  %v3795_v30 = vor.u32 %v3794_v13, %v3791_v40  ;;  %v3562_v11 = vsel %vm5385_vm8, %v4825_v33, %v3561_v1  ;;  %v2494_v19 = vshll.u32 %v4678_v53, 16  ;;  %v4651_v59 = vld [vmem:[%s5135_s7 + $0x34] sm:$0xf]  ;;  %v4721_v13 = vld [vmem:[%s5135_s7 + $0x64] sm:$0xf] }
 0x1ae   : > { %4078 = vst.msk [vmem:[#allocation2 + $0x8] sm:$0xf] %vm910_vm10, %v4033_v28  ;;  %v3867_v3 = vpop.permute.xlu0 %3866  ;;  %v1972_v28 = vsel %vm5385_vm8, %v1970_v56, %v1971_v26  ;;  %v4011_v56 = vrot.slane %v4009_v47, 4  ;;  %v4881_v40 = vrot.slane %v4867_v60, 9  ;;  %v4720_v9 = vld [vmem:[%s5135_s7 + $0x60] sm:$0xf] }
 0x1af   : > { %3911 = vst.msk [vmem:[#allocation2 + $0xc] sm:$0xf] %vm629_vm9, %v3867_v3  ;;  %v6457_v32 = vpop.permute.xlu2 %2928  ;;  %v1969_v3 = vsel %vm5385_vm8, %v4596_v63, %v1968_v57  ;;  %v3796_v2 = vrot.slane %v3795_v30, 4  ;;  %v4869_v57 = vld [vmem:[%s5135_s7 + $0x5c] sm:$0x1]  ;;  %v3806_v15 = vrot.slane %v3805_v17, 4 }
 0x1b0   : > { %4079 = vst.msk [vmem:[#allocation2 + $0xc] sm:$0xf] %vm910_vm10, %v6414_v20  ;;  %v2858_v20 = vrot.slane %v2856_v43, 5  ;;  %v3318_v43 = vrot.slane %v3317_v16, 4  ;;  %v4012_v26 = vrot.slane %v4869_v57, 5  ;;  %v2884_v30 = vshrl.u32 %v4721_v13, 16 }
 0x1b1   : > { %v4564_v33 = vld [vmem:[%s5135_s7 + $0x64] sm:$0xf]  ;;  %v4781_v60 = vld [vmem:[%s5135_s7 + $0x30] sm:$0xf] }
 0x1b2   : > { %v2859_v29 = vsel %vm5146_vm3, %v2854_v24, %v2858_v20  ;;  %v2863_v8 = vor.u32 %v2862_v58, %v2858_v20  ;;  %v1798_v57 = vshll.u32 %v4564_v33, 16 }
 0x1b3   : > { %2560 = vrot.lane.b32.xlu1 %v2489_v45, %s5058_s8 }
 0x1b4   : > { %2558 = vrot.lane.b32.xlu0 %v2479_v44, %s5058_s8  ;;  %v2864_v0 = vrot.slane %v2863_v8, 4  ;;  %v2491_v8 = vshrl.u32 %v4678_v53, 16  ;;  %v4782_v53 = vld [vmem:[%s5135_s7 + $0x34] sm:$0xf] }
 0x1b5   : > { %v2549_v38 = vpop.permute.xlu1 %2548  ;;  %4046 = vrot.lane.b32.xlu2 %v4006_v14, %s5060_s10  ;;  %v3564_v14 = vrot.slane %v4813_v6, 5  ;;  %v2871_v6 = vshrl.u32 %v4720_v9, 16  ;;  %v3334_v17 = vshll.u32 %v4782_v53, 16 }
 0x1b6   : > { %2591 = vst.msk [vmem:[#allocation2 + $0x14] sm:$0xf] %vm528_vm5, %v2549_v38  ;;  %v2547_v37 = vpop.permute.xlu0 %2546  ;;  %v2869_v45 = vsel %vm5146_vm3, %v2864_v0, %v2868_v54  ;;  %v3563_v38 = vrot.slane %v3561_v1, 4  ;;  %v2493_v54 = vrot.slane %v2491_v8, 4  ;;  %v2874_v1 = vshll.u32 %v4720_v9, 16 }
 0x1b7   : > { %2590 = vst.msk [vmem:[#allocation2 + $0x10] sm:$0xf] %vm528_vm5, %v2547_v37  ;;  %v4961_v52 = vld [vmem:[#allocation2 + $0x8] sm:$0xff]  ;;  %v6475_v41 = vpop.permute.xlu2 %3588  ;;  %v4845_v37 = vld [vmem:[%s5135_s7 + $0x5c] sm:$0x1]  ;;  %v2873_v51 = vrot.slane %v2871_v6, 4 }
 0x1b8   : > { %2690 = vst.msk [vmem:[#allocation2 + $0x10] sm:$0xf] %vm629_vm9, %v2647_v55  ;;  %4923 = vmatmul.msk.bf16.gmra.mxu3 %vm991_vm11, %v4961_v52  ;;  %v4780_v55 = vld [vmem:[%s5135_s7 + $0x2c] sm:$0x1] }
 0x1b9   : > { %v3320_v36 = vshll.u32 %v4780_v55, 16 }
 0x1bb   : > { %2938 = vrot.lane.b32.xlu1 %v2859_v29, %s5060_s10  ;;  %v3322_v44 = vrot.slane %v3320_v36, 5  ;;  %v3801_v29 = vsel %vm5146_vm3, %v3796_v2, %v3800_v35  ;;  %v4722_v2 = vld [vmem:[%s5135_s7 + $0x68] sm:$0x1] }
 0x1bc   : > { %2660 = vrot.lane.b32.xlu0 %v4697_v48, %s5059_s9  ;;  %v2500_v48 = vshll.u32 %v4679_v49, 16  ;;  %v2890_v46 = vshll.u32 %v4722_v2, 16  ;;  %v4815_v2 = vld [vmem:[%s5135_s7 + $0x58] sm:$0xf] }
 0x1bd   : > { %v2927_v4 = vpop.permute.xlu1 %2926  ;;  %2658 = vrot.lane.b32.xlu2 %v4696_v18, %s5059_s9  ;;  %v3323_v58 = vsel %vm5146_vm3, %v3318_v43, %v3322_v44  ;;  %v3808_v18 = vshll.u32 %v4845_v37, 16  ;;  %v4698_v37 = vld [vmem:[%s5135_s7 + $0x60] sm:$0xf] }
 0x1be   : > { %2970 = vst.msk [vmem:[#allocation2 + $0x10] sm:$0xf] %vm910_vm10, %v2927_v4  ;;  %v2649_v34 = vpop.permute.xlu0 %2648  ;;  %v4680_v4 = vld [vmem:[%s5135_s7 + $0x5c] sm:$0x1]  ;;  %v6541_v63 = vrot.slane %v2500_v48, 5 }
 0x1bf   : > { %2691 = vst.msk [vmem:[#allocation2 + $0x14] sm:$0xf] %vm629_vm9, %v2649_v34  ;;  %v6494_v21 = vpop.permute.xlu2 %3870  ;;  %v3810_v0 = vrot.slane %v3808_v18, 5  ;;  %v3338_v18 = vshrl.u32 %v4782_v53, 16 }
 0x1c0   : > { %2971 = vst.msk [vmem:[#allocation2 + $0x14] sm:$0xf] %vm910_vm10, %v6457_v32  ;;  %v3313_v32 = vsel %vm5146_vm3, %v3308_v22, %v3312_v23  ;;  %v2506_v23 = vrot.slane %v2504_v12, 4  ;;  %v2496_v22 = vrot.slane %v2494_v19, 5  ;;  %v2892_v19 = vrot.slane %v2890_v46, 5 }
 0x1c1   : > { %v3811_v43 = vsel %vm5146_vm3, %v3806_v15, %v3810_v0  ;;  %v4783_v15 = vld [vmem:[%s5135_s7 + $0x38] sm:$0x1]  ;;  %v6592_v0 = vrot.slane %v3334_v17, 5  ;;  %v4846_v46 = vld [vmem:[%s5135_s7 + $0x60] sm:$0xf] }
 0x1c2   : > { %v2507_v42 = vor.u32 %v2506_v23, %v6541_v63  ;;  %v2497_v44 = vor.u32 %v2496_v22, %v2493_v54  ;;  %v3340_v54 = vrot.slane %v3338_v18, 4 }
 0x1c3   : > { %2006 = vrot.lane.b32.xlu1 %v1972_v28, %s5060_s10  ;;  %v2880_v28 = vshll.u32 %v4721_v13, 16  ;;  %v3325_v13 = vshrl.u32 %v4781_v60, 16 }
 0x1c4   : > { %2004 = vrot.lane.b32.xlu0 %v1969_v3, %s5060_s10  ;;  %v4013_v3 = vsel %vm5385_vm8, %v4011_v56, %v4012_v26  ;;  %v4652_v56 = vld [vmem:[%s5135_s7 + $0x3c] sm:$0xf]  ;;  %v6586_v26 = vrot.slane %v1798_v57, 5 }
 0x1c5   : > { %v4738_v24 = vld [vmem:[#allocation2 + $0x10] sm:$0xf]  ;;  %v1995_v20 = vpop.permute.xlu1 %1994  ;;  %2940 = vrot.lane.b32.xlu2 %v2869_v45, %s5060_s10  ;;  %v4010_v45 = vsel %vm5385_vm8, %v4881_v40, %v4009_v47  ;;  %v6565_v35 = vrot.slane %v2880_v28, 5  ;;  %v1802_v47 = vshrl.u32 %v4564_v33, 16 }
 0x1c6   : > { %3464 = vst.msk [vmem:[#allocation2 + $0x10] sm:$0xf] %vm244_vm4, %v3313_v32  ;;  %v1993_v25 = vpop.permute.xlu0 %1992  ;;  %v2510_v32 = vshll.u32 %v4680_v4, 16 }
 0x1c7   : > { %3632 = vst.msk [vmem:[#allocation2 + $0x10] sm:$0xf] %vm528_vm5, %v6475_v41  ;;  %v4953_v61 = vld [vmem:[#allocation2 + $0x10] sm:$0xf0]  ;;  %v2551_v52 = vpop.permute.xlu2 %2550  ;;  %v3565_v41 = vsel %vm5385_vm8, %v3563_v38, %v3564_v14  ;;  %v2886_v14 = vrot.slane %v2884_v30, 4  ;;  %v1804_v40 = vrot.slane %v1802_v47, 4 }
 0x1c8   : > { %2035 = vst.msk [vmem:[#allocation2 + $0x1c] sm:$0xf] %vm910_vm10, %v1995_v20  ;;  %v4739_v50 = vor.u32 %v4953_v61, %v4738_v24  ;;  %v2508_v20 = vrot.slane %v2507_v42, 4  ;;  %v2512_v38 = vrot.slane %v2510_v32, 5  ;;  %v4587_v30 = vld [vmem:[%s5135_s7 + $0x60] sm:$0xe]  ;;  %v3341_v32 = vor.u32 %v3340_v54, %v6592_v0 }
 0x1c9   : > { %2034 = vst.msk [vmem:[#allocation2 + $0x18] sm:$0xf] %vm910_vm10, %v1993_v25  ;;  %v2498_v25 = vrot.slane %v2497_v44, 4  ;;  %v1805_v6 = vor.u32 %v1804_v40, %v6586_v26  ;;  %v4682_v47 = vld [vmem:[%s5135_s7 + $0x64] sm:$0xf] }
 0x1ca   : > { %4766 = vmatmul.msk.bf16.gmra.mxu2 %vm991_vm11, %v4739_v50  ;;  %3465 = vst.msk [vmem:[#allocation2 + $0x14] sm:$0xf] %vm244_vm4, %v3323_v58  ;;  %v2887_v58 = vor.u32 %v2886_v14, %v6565_v35  ;;  %v4563_v50 = vld [vmem:[%s5135_s7 + $0x60] sm:$0xf]  ;;  %v3342_v33 = vrot.slane %v3341_v32, 4 }
 0x1cb   : > { %3880 = vrot.lane.b32.xlu1 %v3801_v29, %s5059_s9  ;;  %v2513_v29 = vsel %vm5146_vm3, %v2508_v20, %v2512_v38  ;;  %v1789_v48 = vshrl.u32 %v4563_v50, 16  ;;  %v1792_v12 = vshll.u32 %v4563_v50, 16  ;;  %v1806_v14 = vrot.slane %v1805_v6, 4 }
 0x1cc   : > { %3602 = vrot.lane.b32.xlu0 %v3565_v41, %s5058_s8  ;;  %v2503_v41 = vsel %vm5146_vm3, %v2498_v25, %v6541_v63  ;;  %v2888_v8 = vrot.slane %v2887_v58, 4  ;;  %v3568_v25 = vrot.slane %v4815_v2, 5  ;;  %v4816_v58 = vld [vmem:[%s5135_s7 + $0x5c] sm:$0x1] }
 0x1cd   : > { %v3869_v55 = vpop.permute.xlu1 %3868  ;;  %3600 = vrot.lane.b32.xlu2 %v3562_v11, %s5058_s8  ;;  %v4565_v11 = vld [vmem:[%s5135_s7 + $0x68] sm:$0x1]  ;;  %v1791_v9 = vrot.slane %v1789_v48, 4  ;;  %v3813_v48 = vshrl.u32 %v4846_v46, 16  ;;  %v3571_v18 = vrot.slane %v4816_v58, 5 }
 0x1ce   : > { %3912 = vst.msk [vmem:[#allocation2 + $0x10] sm:$0xf] %vm629_vm9, %v3869_v55  ;;  %v3591_v34 = vpop.permute.xlu0 %3590  ;;  %v3328_v55 = vshll.u32 %v4781_v60, 16  ;;  %v1808_v23 = vshll.u32 %v4565_v11, 16  ;;  %v4589_v60 = vld [vmem:[%s5135_s7 + $0x68] sm:$0x1] }
 0x1cf   : > { %v4945_v16 = vld [vmem:[#allocation2 + $0x18] sm:$0xf0]  ;;  %3633 = vst.msk [vmem:[#allocation2 + $0x14] sm:$0xf] %vm528_vm5, %v3591_v34  ;;  %v6547_v36 = vpop.permute.xlu2 %2652  ;;  %v1794_v34 = vrot.slane %v1792_v12, 5  ;;  %v3816_v12 = vshll.u32 %v4846_v46, 16 }
 0x1d0   : > { %2313 = vst.msk [vmem:[#allocation2 + $0x1c] sm:$0xf] %vm244_vm4, %v4651_v59  ;;  %v4614_v10 = vld [vmem:[#allocation2 + $0x18] sm:$0xf]  ;;  %v3570_v17 = vrot.slane %v3568_v25, 4 }
 0x1d1   : > { %2312 = vst.msk [vmem:[#allocation2 + $0x18] sm:$0xf] %vm244_vm4, %v4650_v62  ;;  %v4615_v7 = vor.u32 %v4945_v16, %v4614_v10  ;;  %v2893_v16 = vsel %vm5146_vm3, %v2888_v8, %v2892_v19  ;;  %v1795_v42 = vor.u32 %v1794_v34, %v1791_v9  ;;  %v4848_v19 = vld [vmem:[%s5135_s7 + $0x68] sm:$0x1]  ;;  %v3818_v54 = vrot.slane %v3816_v12, 5 }
 0x1d2   : > { %3913 = vst.msk [vmem:[#allocation2 + $0x14] sm:$0xf] %vm629_vm9, %v6494_v21  ;;  %v2876_v21 = vrot.slane %v2874_v1, 5  ;;  %v3327_v1 = vrot.slane %v3325_v13, 4  ;;  %v4784_v12 = vld [vmem:[%s5135_s7 + $0x3c] sm:$0xf] }
 0x1d3   : > { %4639 = vmatmul.msk.bf16.gmra.mxu1 %vm991_vm11, %v4615_v7  ;;  %4050 = vrot.lane.b32.xlu1 %v4013_v3, %s5060_s10  ;;  %2592 = vst.msk [vmem:[#allocation2 + $0x18] sm:$0xf] %vm528_vm5, %v2551_v52  ;;  %v4588_v3 = vld [vmem:[%s5135_s7 + $0x64] sm:$0xf]  ;;  %v3344_v7 = vshll.u32 %v4783_v15, 16  ;;  %v3815_v15 = vrot.slane %v3813_v48, 4 }
 0x1d4   : > { %4048 = vrot.lane.b32.xlu0 %v4010_v45, %s5060_s10  ;;  %v2877_v52 = vor.u32 %v2876_v21, %v2873_v51  ;;  %v4699_v45 = vld [vmem:[%s5135_s7 + $0x64] sm:$0xf]  ;;  %v1975_v44 = vrot.slane %v4588_v3, 5  ;;  %v1810_v51 = vrot.slane %v1808_v23, 5  ;;  %v1978_v23 = vrot.slane %v4589_v60, 5 }
 0x1d5   : > { %v4039_v24 = vpop.permute.xlu1 %4038  ;;  %3882 = vrot.lane.b32.xlu2 %v3811_v43, %s5059_s9  ;;  %v4597_v43 = vrot.slane %v4587_v30, 9  ;;  %v3346_v38 = vrot.slane %v3344_v7, 5  ;;  %v3572_v3 = vsel %vm5385_vm8, %v3570_v17, %v3571_v18  ;;  %v3819_v2 = vor.u32 %v3818_v54, %v3815_v15 }
 0x1d6   : > { %4081 = vst.msk [vmem:[#allocation2 + $0x14] sm:$0xf] %vm910_vm10, %v4039_v24  ;;  %v4037_v49 = vpop.permute.xlu0 %4036  ;;  %v2878_v59 = vrot.slane %v2877_v52, 4  ;;  %v4847_v24 = vld [vmem:[%s5135_s7 + $0x64] sm:$0xf]  ;;  %v3352_v15 = vshll.u32 %v4784_v12, 16 }
 0x1d7   : > { %4080 = vst.msk [vmem:[#allocation2 + $0x10] sm:$0xf] %vm910_vm10, %v4037_v49  ;;  %v1997_v61 = vpop.permute.xlu2 %1996  ;;  %v1796_v49 = vrot.slane %v1795_v42, 4  ;;  %v4814_v52 = vld [vmem:[%s5135_s7 + $0x54] sm:$0xe]  ;;  %v3822_v53 = vshll.u32 %v4847_v24, 16  ;;  %v3347_v11 = vsel %vm5146_vm3, %v3342_v33, %v3346_v38 }
 0x1d8   : > { %2036 = vst.msk [vmem:[#allocation2 + $0x20] sm:$0xf] %vm910_vm10, %v1997_v61  ;;  %v2883_v10 = vsel %vm5146_vm3, %v2878_v59, %v6565_v35  ;;  %v1976_v61 = vsel %vm5385_vm8, %v4597_v43, %v1975_v44  ;;  %v3826_v50 = vshrl.u32 %v4847_v24, 16  ;;  %v4826_v8 = vrot.slane %v4814_v52, 9  ;;  %v4683_v43 = vld [vmem:[%s5135_s7 + $0x68] sm:$0x1] }
 0x1d9   : > { %v6638_v59 = vrot.slane %v3822_v53, 5  ;;  %v4723_v38 = vld [vmem:[%s5135_s7 + $0x6c] sm:$0xf]  ;;  %v3820_v52 = vrot.slane %v3819_v2, 4  ;;  %v4653_v53 = vld [vmem:[%s5135_s7 + $0x40] sm:$0xf] }
 0x1da   : > { %v3569_v6 = vsel %vm5385_vm8, %v4826_v8, %v3568_v25  ;;  %v2534_v25 = vshll.u32 %v4683_v43, 16  ;;  %v2898_v48 = vshll.u32 %v4723_v38, 16 }
 0x1db   : > { %2662 = vrot.lane.b32.xlu1 %v4698_v37, %s5059_s9 }
 0x1dc   : > { %2564 = vrot.lane.b32.xlu0 %v2513_v29, %s5058_s8  ;;  %v1811_v29 = vsel %vm5146_vm3, %v1806_v14, %v1810_v51  ;;  %v6670_v14 = vld [vmem:[%s7205_s2] ss:$0 sm:$0xff]  ;;  %v2536_v8 = vrot.slane %v2534_v25, 5 }
 0x1dd   : > { %v2651_v62 = vpop.permute.xlu1 %2650  ;;  %2562 = vrot.lane.b32.xlu2 %v2503_v41, %s5058_s8  ;;  %v1801_v41 = vsel %vm5146_vm3, %v1796_v49, %v6586_v26  ;;  %v2528_v26 = vshrl.u32 %v4682_v47, 16 }
 0x1de   : > { %2692 = vst.msk [vmem:[#allocation2 + $0x18] sm:$0xf] %vm629_vm9, %v2651_v62  ;;  %v2553_v4 = vpop.permute.xlu0 %2552  ;;  %v4962_v63 = vld [vmem:[#allocation2 + $0x10] sm:$0xff]  ;;  %v3828_v62 = vrot.slane %v3826_v50, 4 }
 0x1df   : > { %2593 = vst.msk [vmem:[#allocation2 + $0x1c] sm:$0xf] %vm528_vm5, %v2553_v4  ;;  %v6594_v22 = vpop.permute.xlu2 %3594  ;;  %4924 = vmatmul.msk.bf16.gmra.mxu3 %vm991_vm11, %v4962_v63  ;;  %v6601_v28 = vld [vmem:[#allocation2 + $0x20] sm:$0xf]  ;;  %v1977_v63 = vrot.slane %v1975_v44, 4 }
 0x1e0   : > { %2693 = vst.msk [vmem:[#allocation2 + $0x1c] sm:$0xf] %vm629_vm9, %v6547_v36  ;;  %v3330_v36 = vrot.slane %v3328_v55, 5  ;;  %v4681_v4 = vld [vmem:[%s5135_s7 + $0x60] sm:$0xf]  ;;  %v3829_v7 = vor.u32 %v3828_v62, %v6638_v59 }
 0x1e1   : > { %2314 = vst.msk [vmem:[#allocation2 + $0x20] sm:$0xf] %vm244_vm4, %v4652_v56  ;;  %v2524_v56 = vshll.u32 %v4682_v47, 16  ;;  %v2515_v42 = vshrl.u32 %v4681_v4, 16  ;;  %v2518_v32 = vshll.u32 %v4681_v4, 16  ;;  %v1979_v44 = vsel %vm5385_vm8, %v1977_v63, %v1978_v23 }
 0x1e2   : > { %v3331_v21 = vor.u32 %v3330_v36, %v3327_v1  ;;  %v4870_v1 = vld [vmem:[%s5135_s7 + $0x60] sm:$0xe]  ;;  %v6655_v36 = vld [vmem:[%s5135_s7 + $0x64] sm:$0xf]  ;;  %v3830_v24 = vrot.slane %v3829_v7, 4  ;;  %v3349_v63 = vshrl.u32 %v4784_v12, 16 }
 0x1e3   : > { %2944 = vrot.lane.b32.xlu1 %v2893_v16, %s5060_s10  ;;  %v2517_v46 = vrot.slane %v2515_v42, 4  ;;  %v4872_v4 = vld [vmem:[%s5135_s7 + $0x68] sm:$0x1] }
 0x1e4   : > { %2942 = vrot.lane.b32.xlu0 %v2883_v10, %s5060_s10  ;;  %v3332_v57 = vrot.slane %v3331_v21, 4  ;;  %v4016_v21 = vrot.slane %v6655_v36, 5  ;;  %v3351_v7 = vrot.slane %v3349_v63, 4  ;;  %v4700_v63 = vld [vmem:[%s5135_s7 + $0x6c] sm:$0xf] }
 0x1e5   : > { %v2933_v35 = vpop.permute.xlu1 %2932  ;;  %2664 = vrot.lane.b32.xlu2 %v4699_v45, %s5059_s9  ;;  %v2530_v45 = vrot.slane %v2528_v26, 4  ;;  %v3825_v26 = vsel %vm5146_vm3, %v3820_v52, %v6638_v59  ;;  %v4785_v59 = vld [vmem:[%s5135_s7 + $0x40] sm:$0xf] }
 0x1e6   : > { %2973 = vst.msk [vmem:[#allocation2 + $0x1c] sm:$0xf] %vm910_vm10, %v2933_v35  ;;  %v2931_v20 = vpop.permute.xlu0 %2930  ;;  %v3337_v13 = vsel %vm5146_vm3, %v3332_v57, %v6592_v0  ;;  %v3832_v0 = vshll.u32 %v4848_v19, 16  ;;  %v4882_v35 = vrot.slane %v4870_v1, 9  ;;  %v2895_v57 = vshrl.u32 %v4723_v38, 16 }
 0x1e7   : > { %2972 = vst.msk [vmem:[#allocation2 + $0x18] sm:$0xf] %vm910_vm10, %v2931_v20  ;;  %v6619_v37 = vpop.permute.xlu2 %4040  ;;  %v3358_v1 = vshll.u32 %v4785_v59, 16  ;;  %v3362_v36 = vshrl.u32 %v4785_v59, 16 }
 0x1e8   : > { %v3834_v20 = vrot.slane %v3832_v0, 5  ;;  %v4017_v60 = vsel %vm5385_vm8, %v4882_v35, %v4016_v21  ;;  %v6721_v35 = vld [vmem:[%s5135_s7 + $0x64] sm:$0xf] }
 0x1e9   : > { %v3575_v52 = vrot.slane %v6721_v35, 5 }
 0x1ea   : > { %v3835_v17 = vsel %vm5146_vm3, %v3830_v24, %v3834_v20  ;;  %v6727_v24 = vrot.slane %v3358_v1, 5  ;;  %v3364_v20 = vrot.slane %v3362_v36, 4 }
 0x1eb   : > { %2008 = vrot.lane.b32.xlu1 %v1976_v61, %s5060_s10  ;;  %v2520_v61 = vrot.slane %v2518_v32, 5 }
 0x1ec   : > { %1842 = vrot.lane.b32.xlu0 %v1811_v29, %s5059_s9 }
 0x1ed   : > { %v4954_v40 = vld [vmem:[#allocation2 + $0x18] sm:$0xf0]  ;;  %v3593_v55 = vpop.permute.xlu1 %3592  ;;  %1840 = vrot.lane.b32.xlu2 %v1801_v41, %s5059_s9  ;;  %v2521_v19 = vor.u32 %v2520_v61, %v2517_v46  ;;  %v4655_v61 = vld [vmem:[%s5135_s7 + $0x4c] sm:$0xf] }
 0x1ee   : > { %3467 = vst.msk [vmem:[#allocation2 + $0x1c] sm:$0xf] %vm244_vm4, %v3347_v11  ;;  %v4742_v9 = vld [vmem:[#allocation2 + $0x18] sm:$0xf]  ;;  %v1999_v34 = vpop.permute.xlu0 %1998  ;;  %v2142_v16 = vpop.f32.mrf.mxu1 }
 0x1ef   : > { %3635 = vst.msk [vmem:[#allocation2 + $0x1c] sm:$0xf] %vm528_vm5, %v6594_v22  ;;  %v4743_v30 = vor.u32 %v4954_v40, %v4742_v9  ;;  %v2557_v10 = vpop.permute.xlu2 %2556  ;;  %v6660_v22 = vrot.slane %v2524_v56, 5  ;;  %v2182_v51 = vsub.f32 %v2142_v16, %v6670_v14  ;;  %v2522_v16 = vrot.slane %v2521_v19, 4 }
 0x1f0   : > { %3466 = vst.msk [vmem:[#allocation2 + $0x18] sm:$0xf] %vm244_vm4, %v3337_v13 }
 0x1f1   : > { %3634 = vst.msk [vmem:[#allocation2 + $0x18] sm:$0xf] %vm528_vm5, %v3593_v55  ;;  %4767 = vmatmul.msk.bf16.gmra.mxu2 %vm991_vm11, %v4743_v30  ;;  %v2531_v33 = vor.u32 %v2530_v45, %v6660_v22  ;;  %v2236_v47 = vmul.f32 %v2182_v51, %v2182_v51  ;;  %v2897_v55 = vrot.slane %v2895_v57, 4  ;;  %v4724_v30 = vld [vmem:[%s5135_s7 + $0x70] sm:$0xf]  ;;  %v3354_v45 = vrot.slane %v3352_v15, 5 }
 0x1f2   : > { %2037 = vst.msk [vmem:[#allocation2 + $0x24] sm:$0xf] %vm910_vm10, %v1999_v34  ;;  %v2900_v34 = vrot.slane %v2898_v48, 5  ;;  %v2904_v43 = vshll.u32 %v4724_v30, 16  ;;  %v2908_v2 = vshrl.u32 %v4724_v30, 16  ;;  %v3365_v48 = vor.u32 %v3364_v20, %v6727_v24 }
 0x1f3   : > { %3606 = vrot.lane.b32.xlu1 %v3572_v3, %s5058_s8  ;;  %v2532_v18 = vrot.slane %v2531_v33, 4  ;;  %v2252_v23 = vsel %vm1084_vm12, %v2236_v47, 0.0  ;;  %v4019_v3 = vrot.slane %v4872_v4, 5  ;;  %v3355_v38 = vor.u32 %v3354_v45, %v3351_v7  ;;  %v4819_v47 = vld [vmem:[%s5135_s7 + $0x68] sm:$0x1] }
 0x1f4   : > { %3604 = vrot.lane.b32.xlu0 %v3569_v6, %s5058_s8  ;;  %v2901_v32 = vor.u32 %v2900_v34, %v2897_v55  ;;  %v2906_v25 = vrot.slane %v2904_v43, 5  ;;  %v3577_v55 = vrot.slane %v3575_v52, 4  ;;  %v3578_v59 = vrot.slane %v4819_v47, 5  ;;  %v4874_v47 = vld [vmem:[%s5135_s7 + $0x70] sm:$0xf] }
 0x1f5   : > { %v3875_v49 = vpop.permute.xlu1 %3874  ;;  %2010 = vrot.lane.b32.xlu2 %v1979_v44, %s5060_s10  ;;  %v2537_v42 = vsel %vm5146_vm3, %v2532_v18, %v2536_v8  ;;  %v2527_v44 = vsel %vm5146_vm3, %v2522_v16, %v6660_v22  ;;  %v3356_v12 = vrot.slane %v3355_v38, 4  ;;  %v4725_v18 = vld [vmem:[%s5135_s7 + $0x74] sm:$0x1]  ;;  %v6761_v15 = vrot.slane %v3365_v48, 4  ;;  %v4654_v48 = vld [vmem:[%s5135_s7 + $0x48] sm:$0xf] }
 0x1f6   : > { %3915 = vst.msk [vmem:[#allocation2 + $0x1c] sm:$0xf] %vm629_vm9, %v3875_v49  ;;  %v3873_v58 = vpop.permute.xlu0 %3872  ;;  %v2144_v50 = vpop.f32.mrf.mxu1  ;;  %v4850_v49 = vld [vmem:[%s5135_s7 + $0x70] sm:$0xf]  ;;  %v2902_v22 = vrot.slane %v2901_v32, 4 }
 0x1f7   : > { %3914 = vst.msk [vmem:[#allocation2 + $0x18] sm:$0xf] %vm629_vm9, %v3873_v58  ;;  %v6681_v29 = vpop.permute.xlu2 %2934  ;;  %v2183_v41 = vsub.f32 %v2144_v50, %v6670_v14  ;;  %v6733_v58 = vld [vmem:[%s5135_s7 + $0x60] sm:$0xe] }
 0x1f8   : > { %4082 = vst.msk [vmem:[#allocation2 + $0x18] sm:$0xf] %vm910_vm10, %v6619_v37  ;;  %v2198_v37 = vsel %vm1084_vm12, %v2182_v51, 0.0  ;;  %v2907_v8 = vsel %vm5146_vm3, %v2902_v22, %v2906_v25 }
 0x1f9   : > { %v4946_v11 = vld [vmem:[#allocation2 + $0x20] sm:$0xf0]  ;;  %v2199_v62 = vsel %vm1084_vm12, %v2183_v41, 0.0  ;;  %v2237_v56 = vmul.f32 %v2183_v41, %v2183_v41 }
 0x1fa   : > { %2315 = vst.msk [vmem:[#allocation2 + $0x24] sm:$0xf] %vm244_vm4, %v4653_v53  ;;  %v6697_v40 = vadd.f32 %v2199_v62, %v2198_v37  ;;  %v4619_v13 = vor.u32 %v4946_v11, %v6601_v28  ;;  %v2910_v53 = vrot.slane %v2908_v2, 4  ;;  %v4849_v37 = vld [vmem:[%s5135_s7 + $0x6c] sm:$0xf] }
 0x1fb   : > { %4052 = vrot.lane.b32.xlu1 %v4017_v60, %s5060_s10  ;;  %2595 = vst.msk [vmem:[#allocation2 + $0x24] sm:$0xf] %vm528_vm5, %v2557_v10  ;;  %v2253_v9 = vsel %vm1084_vm12, %v2237_v56, 0.0  ;;  %v4018_v10 = vrot.slane %v4016_v21, 4  ;;  %v4786_v21 = vld [vmem:[%s5135_s7 + $0x44] sm:$0x1] }
 0x1fc   : > { %3886 = vrot.lane.b32.xlu0 %v3835_v17, %s5059_s9  ;;  %v6707_v54 = vadd.f32 %v2253_v9, %v2252_v23  ;;  %4640 = vmatmul.msk.bf16.gmra.mxu1 %vm991_vm11, %v4619_v13  ;;  %v3368_v41 = vshll.u32 %v4786_v21, 16  ;;  %v3846_v60 = vshll.u32 %v4850_v49, 16  ;;  %v3850_v17 = vshrl.u32 %v4850_v49, 16 }
 0x1fd   : > { %v2555_v28 = vpop.permute.xlu1 %2554  ;;  %3884 = vrot.lane.b32.xlu2 %v3825_v26, %s5059_s9  ;;  %v4020_v51 = vsel %vm5385_vm8, %v4018_v10, %v4019_v3  ;;  %v4701_v26 = vld [vmem:[%s5135_s7 + $0x70] sm:$0xf]  ;;  %v4827_v13 = vrot.slane %v6733_v58, 9  ;;  %v2914_v23 = vshll.u32 %v4725_v18, 16  ;;  %v3837_v9 = vshrl.u32 %v4849_v37, 16 }
 0x1fe   : > { %2594 = vst.msk [vmem:[#allocation2 + $0x20] sm:$0xf] %vm528_vm5, %v2555_v28  ;;  %v4043_v0 = vpop.permute.xlu0 %4042  ;;  %v3840_v34 = vshll.u32 %v4849_v37, 16  ;;  %v6763_v28 = vrot.slane %v3368_v41, 5  ;;  %v6765_v16 = vrot.slane %v3846_v60, 5  ;;  %v3361_v3 = vsel %vm5146_vm3, %v3356_v12, %v6727_v24 }
 0x1ff   : > { %4083 = vst.msk [vmem:[#allocation2 + $0x1c] sm:$0xf] %vm910_vm10, %v4043_v0  ;;  %v2003_v6 = vpop.permute.xlu2 %2002  ;;  %v2916_v2 = vrot.slane %v2914_v23, 5  ;;  %v4023_v37 = vrot.slane %v4874_v47, 5 }
 0x200   : > { %2039 = vst.msk [vmem:[#allocation2 + $0x2c] sm:$0xf] %vm910_vm10, %v2003_v6  ;;  %v3852_v6 = vrot.slane %v3850_v17, 4  ;;  %v3842_v21 = vrot.slane %v3840_v34, 5  ;;  %v3371_v12 = vsel %vm5146_vm3, %v6761_v15, %v6763_v28 }
 0x203   : > { %2568 = vrot.lane.b32.xlu1 %v2537_v42, %s5058_s8  ;;  %v4851_v42 = vld [vmem:[%s5135_s7 + $0x74] sm:$0x1] }
 0x204   : > { %2566 = vrot.lane.b32.xlu0 %v2527_v44, %s5058_s8  ;;  %v3080_v33 = vpop.f32.mrf.mxu2 }
 0x205   : > { %v2657_v46 = vpop.permute.xlu1 %2656  ;;  %4054 = vrot.lane.b32.xlu2 %v4020_v51, %s5060_s10  ;;  %v3120_v62 = vsub.f32 %v3080_v33, %v6670_v14  ;;  %v3839_v51 = vrot.slane %v3837_v9, 4 }
 0x206   : > { %2695 = vst.msk [vmem:[#allocation2 + $0x24] sm:$0xf] %vm629_vm9, %v2657_v46  ;;  %v2655_v50 = vpop.permute.xlu0 %2654  ;;  %v4963_v57 = vld [vmem:[#allocation2 + $0x18] sm:$0xff]  ;;  %v3579_v46 = vsel %vm5385_vm8, %v3577_v55, %v3578_v59 }
 0x207   : > { %2694 = vst.msk [vmem:[#allocation2 + $0x20] sm:$0xf] %vm629_vm9, %v2655_v50  ;;  %v6741_v11 = vpop.permute.xlu2 %3876  ;;  %4925 = vmatmul.msk.bf16.gmra.mxu3 %vm991_vm11, %v4963_v57  ;;  %v6749_v19 = vld [vmem:[#allocation2 + $0x28] sm:$0xf0]  ;;  %v3174_v1 = vmul.f32 %v3120_v62, %v3120_v62  ;;  %v3136_v24 = vsel %vm1084_vm12, %v3120_v62, 0.0  ;;  %v3853_v50 = vor.u32 %v3852_v6, %v6765_v16  ;;  %v3856_v57 = vshll.u32 %v4851_v42, 16 }
 0x208   : > { %2974 = vst.msk [vmem:[#allocation2 + $0x20] sm:$0xf] %vm910_vm10, %v6681_v29  ;;  %v2911_v29 = vor.u32 %v2910_v53, %v2906_v25  ;;  %v3576_v25 = vsel %vm5385_vm8, %v4827_v13, %v3575_v52  ;;  %v3843_v60 = vor.u32 %v3842_v21, %v3839_v51 }
 0x209   : > { %v2147_v56 = vpop.f32.mrf.mxu1  ;;  %2317 = vst.msk [vmem:[#allocation2 + $0x2c] sm:$0xf] %vm244_vm4, %v4655_v61  ;;  %v3190_v61 = vsel %vm1084_vm12, %v3174_v1, 0.0  ;;  %v3854_v13 = vrot.slane %v3853_v50, 4  ;;  %v3858_v55 = vrot.slane %v3856_v57, 5  ;;  %v4025_v1 = vrot.slane %v4023_v37, 4 }
 0x20a   : > { %v2184_v4 = vsub.f32 %v2147_v56, %v6670_v14  ;;  %v2912_v32 = vrot.slane %v2911_v29, 4  ;;  %v3844_v9 = vrot.slane %v3843_v60, 4 }
 0x20b   : > { %2946 = vrot.lane.b32.xlu1 %v2907_v8, %s5060_s10 }
 0x20c   : > { %v2201_v30 = vsel %vm1084_vm12, %v2184_v4, 0.0  ;;  %v2238_v0 = vmul.f32 %v2184_v4, %v2184_v4  ;;  %2668 = vrot.lane.b32.xlu0 %v4701_v26, %s5059_s9  ;;  %v3082_v10 = vpop.f32.mrf.mxu2  ;;  %v2917_v52 = vsel %vm5146_vm3, %v2912_v32, %v2916_v2 }
 0x20d   : > { %v2202_v36 = vadd.f32 %v2201_v30, %v6697_v40  ;;  %v3121_v7 = vsub.f32 %v3082_v10, %v6670_v14  ;;  %v2001_v45 = vpop.permute.xlu1 %2000  ;;  %2666 = vrot.lane.b32.xlu2 %v4700_v63, %s5059_s9  ;;  %v3849_v30 = vsel %vm5146_vm3, %v3844_v9, %v6765_v16  ;;  %v4875_v10 = vld [vmem:[%s5135_s7 + $0x74] sm:$0x1]  ;;  %v4787_v16 = vld [vmem:[%s5135_s7 + $0x48] sm:$0xf] }
 0x20e   : > { %v2255_v43 = vsel %vm1084_vm12, %v2238_v0, 0.0  ;;  %2038 = vst.msk [vmem:[#allocation2 + $0x28] sm:$0xf] %vm910_vm10, %v2001_v45  ;;  %v2937_v44 = vpop.permute.xlu0 %2936  ;;  %v3373_v32 = vshrl.u32 %v4787_v16, 16  ;;  %v3376_v21 = vshll.u32 %v4787_v16, 16 }
 0x20f   : > { %v2256_v40 = vadd.f32 %v2255_v43, %v6707_v54  ;;  %v3137_v20 = vsel %vm1084_vm12, %v3121_v7, 0.0  ;;  %v3175_v38 = vmul.f32 %v3121_v7, %v3121_v7  ;;  %2975 = vst.msk [vmem:[#allocation2 + $0x24] sm:$0xf] %vm910_vm10, %v2937_v44  ;;  %v4746_v49 = vld [vmem:[#allocation2 + $0x20] sm:$0xf]  ;;  %v4047_v33 = vpop.permute.xlu2 %4046 }
 0x210   : > { %v6782_v22 = vadd.f32 %v3137_v20, %v3136_v24  ;;  %3468 = vst.msk [vmem:[#allocation2 + $0x20] sm:$0xf] %vm244_vm4, %v3361_v3  ;;  %v4873_v54 = vld [vmem:[%s5135_s7 + $0x6c] sm:$0xe] }
 0x211   : > { %v3191_v58 = vsel %vm1084_vm12, %v3175_v38, 0.0  ;;  %v2149_v53 = vpop.f32.mrf.mxu1  ;;  %v4883_v8 = vrot.slane %v4873_v54, 9 }
 0x212   : > { %v6796_v41 = vadd.f32 %v3191_v58, %v3190_v61  ;;  %v2185_v35 = vsub.f32 %v2149_v53, %v6670_v14 }
 0x213   : > { %3610 = vrot.lane.b32.xlu1 %v3579_v46, %s5058_s8  ;;  %v4024_v28 = vsel %vm5385_vm8, %v4883_v8, %v4023_v37  ;;  %v3375_v46 = vrot.slane %v3373_v32, 4  ;;  %v4789_v8 = vld [vmem:[%s5135_s7 + $0x50] sm:$0x1] }
 0x214   : > { %v2203_v17 = vsel %vm1084_vm12, %v2185_v35, 0.0  ;;  %v2239_v18 = vmul.f32 %v2185_v35, %v2185_v35  ;;  %3608 = vrot.lane.b32.xlu0 %v3576_v25, %s5058_s8 }
 0x215   : > { %v4622_v62 = vld [vmem:[#allocation2 + $0x28] sm:$0xf]  ;;  %v6809_v56 = vadd.f32 %v2203_v17, %v2202_v36  ;;  %v3599_v26 = vpop.permute.xlu1 %3598  ;;  %2948 = vrot.lane.b32.xlu2 %v2917_v52, %s5060_s10  ;;  %v4026_v36 = vrot.slane %v4875_v10, 5  ;;  %v3378_v52 = vrot.slane %v3376_v21, 5 }
 0x216   : > { %2316 = vst.msk [vmem:[#allocation2 + $0x28] sm:$0xf] %vm244_vm4, %v4654_v48  ;;  %v2257_v29 = vsel %vm1084_vm12, %v2239_v18, 0.0  ;;  %v4955_v4 = vld [vmem:[#allocation2 + $0x20] sm:$0xf0]  ;;  %v3597_v63 = vpop.permute.xlu0 %3596  ;;  %v4623_v23 = vor.u32 %v6749_v19, %v4622_v62  ;;  %v3859_v19 = vsel %vm5146_vm3, %v3854_v13, %v3858_v55 }
 0x217   : > { %v2258_v34 = vadd.f32 %v2257_v29, %v2256_v40  ;;  %3469 = vst.msk [vmem:[#allocation2 + $0x24] sm:$0xf] %vm244_vm4, %v3371_v12  ;;  %v4747_v59 = vor.u32 %v4955_v4, %v4746_v49  ;;  %v2659_v15 = vpop.permute.xlu2 %2658  ;;  %v4027_v45 = vsel %vm5385_vm8, %v4025_v1, %v4026_v36  ;;  %v4788_v49 = vld [vmem:[%s5135_s7 + $0x4c] sm:$0xf] }
 0x218   : > { %3637 = vst.msk [vmem:[#allocation2 + $0x24] sm:$0xf] %vm528_vm5, %v3599_v26  ;;  %4641 = vmatmul.msk.bf16.gmra.mxu1 %vm991_vm11, %v4623_v23  ;;  %v3386_v54 = vshrl.u32 %v4788_v49, 16  ;;  %v3382_v60 = vshll.u32 %v4788_v49, 16  ;;  %v3379_v26 = vor.u32 %v3378_v52, %v3375_v46 }
 0x219   : > { %3636 = vst.msk [vmem:[#allocation2 + $0x20] sm:$0xf] %vm528_vm5, %v3597_v63  ;;  %4768 = vmatmul.msk.bf16.gmra.mxu2 %vm991_vm11, %v4747_v59  ;;  %v3392_v63 = vshll.u32 %v4789_v8, 16 }
 0x21a   : > { %3916 = vst.msk [vmem:[#allocation2 + $0x20] sm:$0xf] %vm629_vm9, %v6741_v11  ;;  %v4190_v0 = vpop.f32.mrf.mxu3  ;;  %v3388_v17 = vrot.slane %v3386_v54, 4  ;;  %v3384_v13 = vrot.slane %v3382_v60, 5  ;;  %v3380_v59 = vrot.slane %v3379_v26, 4 }
 0x21b   : > { %4056 = vrot.lane.b32.xlu1 %v4024_v28, %s5060_s10  ;;  %v4230_v7 = vsub.f32 %v4190_v0, %v6670_v14 }
 0x21c   : > { %3890 = vrot.lane.b32.xlu0 %v3859_v19, %s5059_s9  ;;  %v3389_v4 = vor.u32 %v3388_v17, %v3384_v13  ;;  %v3394_v19 = vrot.slane %v3392_v63, 5 }
 0x21d   : > { %v4045_v3 = vpop.permute.xlu1 %4044  ;;  %3888 = vrot.lane.b32.xlu2 %v3849_v30, %s5059_s9  ;;  %v4284_v43 = vmul.f32 %v4230_v7, %v4230_v7  ;;  %v4246_v24 = vsel %vm1084_vm12, %v4230_v7, 0.0 }
 0x21e   : > { %4084 = vst.msk [vmem:[#allocation2 + $0x20] sm:$0xf] %vm910_vm10, %v4045_v3  ;;  %v3879_v6 = vpop.permute.xlu0 %3878  ;;  %v3390_v28 = vrot.slane %v3389_v4, 4  ;;  %v3385_v3 = vsel %vm5146_vm3, %v3380_v59, %v3384_v13  ;;  %v4791_v13 = vld [vmem:[%s5135_s7 + $0x58] sm:$0xf] }
 0x21f   : > { %3917 = vst.msk [vmem:[#allocation2 + $0x24] sm:$0xf] %vm629_vm9, %v3879_v6  ;;  %v2941_v11 = vpop.permute.xlu2 %2940  ;;  %v4300_v58 = vsel %vm1084_vm12, %v4284_v43, 0.0  ;;  %v4657_v43 = vld [vmem:[%s5135_s7 + $0x58] sm:$0xf] }
 0x220   : > { %4085 = vst.msk [vmem:[#allocation2 + $0x24] sm:$0xf] %vm910_vm10, %v4047_v33 }
 0x222   : > { %v4192_v42 = vpop.f32.mrf.mxu3 }
 0x223   : > { %v4231_v44 = vsub.f32 %v4192_v42, %v6670_v14 }
 0x225   : > { %v2561_v2 = vpop.permute.xlu1 %2560  ;;  %v2152_v51 = vpop.f32.mrf.mxu1  ;;  %4058 = vrot.lane.b32.xlu2 %v4027_v45, %s5060_s10  ;;  %v4247_v40 = vsel %vm1084_vm12, %v4231_v44, 0.0  ;;  %v4285_v20 = vmul.f32 %v4231_v44, %v4231_v44  ;;  %v4656_v44 = vld [vmem:[%s5135_s7 + $0x54] sm:$0xf] }
 0x226   : > { %2597 = vst.msk [vmem:[#allocation2 + $0x2c] sm:$0xf] %vm528_vm5, %v2561_v2  ;;  %v2559_v31 = vpop.permute.xlu0 %2558  ;;  %v2186_v38 = vsub.f32 %v2152_v51, %v6670_v14  ;;  %v6847_v33 = vadd.f32 %v4247_v40, %v4246_v24 }
 0x227   : > { %2596 = vst.msk [vmem:[#allocation2 + $0x28] sm:$0xf] %vm528_vm5, %v2559_v31  ;;  %v4964_v25 = vld [vmem:[#allocation2 + $0x20] sm:$0xff]  ;;  %v3601_v61 = vpop.permute.xlu2 %3600  ;;  %v4301_v53 = vsel %vm1084_vm12, %v4285_v20, 0.0 }
 0x228   : > { %v2205_v50 = vsel %vm1084_vm12, %v2186_v38, 0.0  ;;  %v2240_v57 = vmul.f32 %v2186_v38, %v2186_v38  ;;  %2696 = vst.msk [vmem:[#allocation2 + $0x28] sm:$0xf] %vm629_vm9, %v2659_v15  ;;  %v6854_v47 = vadd.f32 %v4301_v53, %v4300_v58  ;;  %4926 = vmatmul.msk.bf16.gmra.mxu3 %vm991_vm11, %v4964_v25  ;;  %v4790_v58 = vld [vmem:[%s5135_s7 + $0x54] sm:$0xf] }
 0x229   : > { %v6857_v35 = vadd.f32 %v2205_v50, %v6809_v56  ;;  %v3400_v52 = vshll.u32 %v4790_v58, 16 }
 0x22a   : > { %v2259_v48 = vsel %vm1084_vm12, %v2240_v57, 0.0  ;;  %v3397_v57 = vshrl.u32 %v4790_v58, 16 }
 0x22b   : > { %v6861_v12 = vadd.f32 %v2259_v48, %v2258_v34 }
 0x22c   : > { %v3085_v18 = vpop.f32.mrf.mxu2 }
 0x22d   : > { %v3122_v37 = vsub.f32 %v3085_v18, %v6670_v14  ;;  %v2939_v62 = vpop.permute.xlu1 %2938 }
 0x22e   : > { %2976 = vst.msk [vmem:[#allocation2 + $0x28] sm:$0xf] %vm910_vm10, %v2939_v62  ;;  %v2661_v56 = vpop.permute.xlu0 %2660  ;;  %v3402_v62 = vrot.slane %v3400_v52, 5 }
 0x22f   : > { %v3139_v55 = vsel %vm1084_vm12, %v3122_v37, 0.0  ;;  %v3176_v29 = vmul.f32 %v3122_v37, %v3122_v37  ;;  %2697 = vst.msk [vmem:[#allocation2 + $0x2c] sm:$0xf] %vm629_vm9, %v2661_v56  ;;  %v3883_v23 = vpop.permute.xlu2 %3882  ;;  %v3399_v37 = vrot.slane %v3397_v57, 4 }
 0x230   : > { %v3140_v9 = vadd.f32 %v3139_v55, %v6782_v22  ;;  %2977 = vst.msk [vmem:[#allocation2 + $0x2c] sm:$0xf] %vm910_vm10, %v2941_v11  ;;  %v3395_v11 = vsel %vm5146_vm3, %v3390_v28, %v3394_v19 }
 0x231   : > { %v3193_v34 = vsel %vm1084_vm12, %v3176_v29, 0.0  ;;  %v3403_v29 = vor.u32 %v3402_v62, %v3399_v37 }
 0x232   : > { %v3194_v15 = vadd.f32 %v3193_v34, %v6796_v41  ;;  %v3410_v34 = vshrl.u32 %v4791_v13, 16 }
 0x234   : > { %v3087_v30 = vpop.f32.mrf.mxu2 }
 0x235   : > { %v3123_v0 = vsub.f32 %v3087_v30, %v6670_v14  ;;  %v2007_v10 = vpop.permute.xlu1 %2006  ;;  %v4750_v6 = vld [vmem:[#allocation2 + $0x28] sm:$0xf]  ;;  %v3404_v30 = vrot.slane %v3403_v29, 4 }
 0x236   : > { %2041 = vst.msk [vmem:[#allocation2 + $0x34] sm:$0xf] %vm910_vm10, %v2007_v10  ;;  %v2005_v22 = vpop.permute.xlu0 %2004 }
 0x237   : > { %v3141_v1 = vsel %vm1084_vm12, %v3123_v0, 0.0  ;;  %v3177_v36 = vmul.f32 %v3123_v0, %v3123_v0  ;;  %2040 = vst.msk [vmem:[#allocation2 + $0x30] sm:$0xf] %vm910_vm10, %v2005_v22  ;;  %v4956_v41 = vld [vmem:[#allocation2 + $0x28] sm:$0xf0]  ;;  %v2563_v7 = vpop.permute.xlu2 %2562 }
 0x238   : > { %v6880_v16 = vadd.f32 %v3141_v1, %v3140_v9  ;;  %3470 = vst.msk [vmem:[#allocation2 + $0x28] sm:$0xf] %vm244_vm4, %v3385_v3  ;;  %v4751_v45 = vor.u32 %v4956_v41, %v4750_v6  ;;  %v3406_v9 = vshll.u32 %v4791_v13, 16  ;;  %v3412_v3 = vrot.slane %v3410_v34, 4  ;;  %v4792_v22 = vld [vmem:[%s5135_s7 + $0x5c] sm:$0x1] }
 0x239   : > { %v3195_v42 = vsel %vm1084_vm12, %v3177_v36, 0.0  ;;  %3638 = vst.msk [vmem:[#allocation2 + $0x28] sm:$0xf] %vm528_vm5, %v3601_v61 }
 0x23a   : > { %v6885_v32 = vadd.f32 %v3195_v42, %v3194_v15  ;;  %4769 = vmatmul.msk.bf16.gmra.mxu2 %vm991_vm11, %v4751_v45  ;;  %3471 = vst.msk [vmem:[#allocation2 + $0x2c] sm:$0xf] %vm244_vm4, %v3395_v11  ;;  %v3408_v10 = vrot.slane %v3406_v9, 5  ;;  %v4795_v9 = vld [vmem:[%s5135_s7 + $0x68] sm:$0x1] }
 0x23b   : > { %v4195_v2 = vpop.f32.mrf.mxu3 }
 0x23c   : > { %v4232_v21 = vsub.f32 %v4195_v2, %v6670_v14  ;;  %v3409_v36 = vsel %vm5146_vm3, %v3404_v30, %v3408_v10  ;;  %v3413_v11 = vor.u32 %v3412_v3, %v3408_v10 }
 0x23d   : > { %v4948_v51 = vld [vmem:[#allocation2 + $0x30] sm:$0xf0]  ;;  %v3881_v24 = vpop.permute.xlu1 %3880 }
 0x23e   : > { %2319 = vst.msk [vmem:[#allocation2 + $0x34] sm:$0xf] %vm244_vm4, %v4657_v43  ;;  %v4626_v40 = vld [vmem:[#allocation2 + $0x30] sm:$0xf]  ;;  %v3603_v20 = vpop.permute.xlu0 %3602  ;;  %v4249_v31 = vsel %vm1084_vm12, %v4232_v21, 0.0  ;;  %v4286_v38 = vmul.f32 %v4232_v21, %v4232_v21 }
 0x23f   : > { %2318 = vst.msk [vmem:[#allocation2 + $0x30] sm:$0xf] %vm244_vm4, %v4656_v44  ;;  %v4627_v49 = vor.u32 %v4948_v51, %v4626_v40  ;;  %v2665_v25 = vpop.permute.xlu2 %2664  ;;  %v4250_v46 = vadd.f32 %v4249_v31, %v6847_v33  ;;  %v4658_v51 = vld [vmem:[%s5135_s7 + $0x60] sm:$0xf] }
 0x240   : > { %3918 = vst.msk [vmem:[#allocation2 + $0x28] sm:$0xf] %vm629_vm9, %v3881_v24  ;;  %v4303_v54 = vsel %vm1084_vm12, %v4286_v38, 0.0 }
 0x241   : > { %3639 = vst.msk [vmem:[#allocation2 + $0x2c] sm:$0xf] %vm528_vm5, %v3603_v20  ;;  %4642 = vmatmul.msk.bf16.gmra.mxu1 %vm991_vm11, %v4627_v49  ;;  %v4304_v61 = vadd.f32 %v4303_v54, %v6854_v47  ;;  %v4659_v20 = vld [vmem:[%s5135_s7 + $0x64] sm:$0xf] }
 0x242   : > { %3919 = vst.msk [vmem:[#allocation2 + $0x2c] sm:$0xf] %vm629_vm9, %v3883_v23 }
 0x243   : > { %2598 = vst.msk [vmem:[#allocation2 + $0x30] sm:$0xf] %vm528_vm5, %v2563_v7  ;;  %v4197_v53 = vpop.f32.mrf.mxu3  ;;  %v3416_v7 = vshll.u32 %v4792_v22, 16 }
 0x244   : > { %v4233_v50 = vsub.f32 %v4197_v53, %v6670_v14 }
 0x245   : > { %v4051_v33 = vpop.permute.xlu1 %4050  ;;  %v3418_v45 = vrot.slane %v3416_v7, 5 }
 0x246   : > { %4087 = vst.msk [vmem:[#allocation2 + $0x2c] sm:$0xf] %vm910_vm10, %v4051_v33  ;;  %v4049_v60 = vpop.permute.xlu0 %4048  ;;  %v4251_v48 = vsel %vm1084_vm12, %v4233_v50, 0.0  ;;  %v4287_v17 = vmul.f32 %v4233_v50, %v4233_v50 }
 0x247   : > { %4086 = vst.msk [vmem:[#allocation2 + $0x28] sm:$0xf] %vm910_vm10, %v4049_v60  ;;  %v1841_v47 = vpop.permute.xlu2 %1840  ;;  %v4252_v18 = vadd.f32 %v4251_v48, %v4250_v46  ;;  %v4793_v60 = vld [vmem:[%s5135_s7 + $0x60] sm:$0xf]  ;;  %v4794_v48 = vld [vmem:[%s5135_s7 + $0x64] sm:$0xf] }
 0x248   : > { %1874 = vst.msk [vmem:[#allocation2 + $0x38] sm:$0xf] %vm629_vm9, %v1841_v47  ;;  %v4305_v8 = vsel %vm1084_vm12, %v4287_v17, 0.0  ;;  %v3421_v17 = vshrl.u32 %v4793_v60, 16  ;;  %v3424_v47 = vshll.u32 %v4793_v60, 16  ;;  %v3430_v62 = vshll.u32 %v4794_v48, 16 }
 0x249   : > { %v4306_v26 = vadd.f32 %v4305_v8, %v4304_v61  ;;  %v1037_v8 = vpop.f32.mrf.mxu0 }
 0x24d   : > { %v3090_v56 = vpop.f32.mrf.mxu2  ;;  %v2663_v55 = vpop.permute.xlu1 %2662 }
 0x24e   : > { %v3124_v4 = vsub.f32 %v3090_v56, %v6670_v14  ;;  %2698 = vst.msk [vmem:[#allocation2 + $0x30] sm:$0xf] %vm629_vm9, %v2663_v55  ;;  %v2565_v63 = vpop.permute.xlu0 %2564  ;;  %v4965_v23 = vld [vmem:[#allocation2 + $0x28] sm:$0xff]  ;;  %v3423_v56 = vrot.slane %v3421_v17, 4  ;;  %v3426_v55 = vrot.slane %v3424_v47, 5 }
 0x24f   : > { %2599 = vst.msk [vmem:[#allocation2 + $0x34] sm:$0xf] %vm528_vm5, %v2565_v63  ;;  %4927 = vmatmul.msk.bf16.gmra.mxu3 %vm991_vm11, %v4965_v23  ;;  %v2011_v19 = vpop.permute.xlu2 %2010 }
 0x250   : > { %v3143_v59 = vsel %vm1084_vm12, %v3124_v4, 0.0  ;;  %v3178_v15 = vmul.f32 %v3124_v4, %v3124_v4  ;;  %2699 = vst.msk [vmem:[#allocation2 + $0x34] sm:$0xf] %vm629_vm9, %v2665_v25  ;;  %v3432_v4 = vrot.slane %v3430_v62, 5  ;;  %v3427_v23 = vor.u32 %v3426_v55, %v3423_v56 }
 0x251   : > { %v6918_v28 = vadd.f32 %v3143_v59, %v6880_v16  ;;  %v3414_v16 = vrot.slane %v3413_v11, 4 }
 0x252   : > { %v3197_v0 = vsel %vm1084_vm12, %v3178_v15, 0.0  ;;  %v3428_v30 = vrot.slane %v3427_v23, 4 }
 0x253   : > { %v6922_v6 = vadd.f32 %v3197_v0, %v6885_v32  ;;  %v3419_v2 = vsel %vm5146_vm3, %v3414_v16, %v3418_v45  ;;  %v1040_v0 = vpop.f32.mrf.mxu0 }
 0x254   : > { %v3433_v22 = vsel %vm5146_vm3, %v3428_v30, %v3432_v4 }
 0x255   : > { %v2945_v1 = vpop.permute.xlu1 %2944 }
 0x256   : > { %2979 = vst.msk [vmem:[#allocation2 + $0x34] sm:$0xf] %vm910_vm10, %v2945_v1  ;;  %v2943_v41 = vpop.permute.xlu0 %2942 }
 0x257   : > { %2978 = vst.msk [vmem:[#allocation2 + $0x30] sm:$0xf] %vm910_vm10, %v2943_v41  ;;  %v3885_v42 = vpop.permute.xlu2 %3884 }
 0x258   : > { %3472 = vst.msk [vmem:[#allocation2 + $0x30] sm:$0xf] %vm244_vm4, %v3409_v36 }
 0x25d   : > { %v2009_v32 = vpop.permute.xlu1 %2008 }
 0x25e   : > { %2042 = vst.msk [vmem:[#allocation2 + $0x38] sm:$0xf] %vm910_vm10, %v2009_v32  ;;  %v1843_v43 = vpop.permute.xlu0 %1842 }
 0x25f   : > { %v4957_v44 = vld [vmem:[#allocation2 + $0x30] sm:$0xff]  ;;  %1875 = vst.msk [vmem:[#allocation2 + $0x3c] sm:$0xf] %vm629_vm9, %v1843_v43  ;;  %v4055_v38 = vpop.permute.xlu2 %4054 }
 0x260   : > { %2043 = vst.msk [vmem:[#allocation2 + $0x3c] sm:$0xf] %vm910_vm10, %v2011_v19  ;;  %4770 = vmatmul.msk.bf16.gmra.mxu2 %vm991_vm11, %v4957_v44  ;;  %v3440_v19 = vshll.u32 %v4795_v9, 16 }
 0x261   : > { %3473 = vst.msk [vmem:[#allocation2 + $0x34] sm:$0xf] %vm244_vm4, %v3419_v2  ;;  %v2154_v2 = vpop.f32.mrf.mxu1 }
 0x262   : > { %v4200_v21 = vpop.f32.mrf.mxu3  ;;  %v3442_v3 = vrot.slane %v3440_v19, 5 }
 0x263   : > { %v4234_v24 = vsub.f32 %v4200_v21, %v6670_v14 }
 0x265   : > { %v4630_v40 = vld [vmem:[#allocation2 + $0x38] sm:$0xf]  ;;  %v3607_v31 = vpop.permute.xlu1 %3606  ;;  %v4253_v49 = vsel %vm1084_vm12, %v4234_v24, 0.0  ;;  %v4288_v25 = vmul.f32 %v4234_v24, %v4234_v24 }
 0x266   : > { %2320 = vst.msk [vmem:[#allocation2 + $0x38] sm:$0xf] %vm244_vm4, %v4658_v51  ;;  %v3605_v46 = vpop.permute.xlu0 %3604  ;;  %v6942_v61 = vadd.f32 %v4253_v49, %v4252_v18 }
 0x267   : > { %v4949_v54 = vld [vmem:[#allocation2 + $0x38] sm:$0xf0]  ;;  %3641 = vst.msk [vmem:[#allocation2 + $0x34] sm:$0xf] %vm528_vm5, %v3607_v31  ;;  %v4307_v58 = vsel %vm1084_vm12, %v4288_v25, 0.0  ;;  %v2667_v52 = vpop.permute.xlu2 %2666 }
 0x268   : > { %2321 = vst.msk [vmem:[#allocation2 + $0x3c] sm:$0xf] %vm244_vm4, %v4659_v20  ;;  %v4631_v53 = vor.u32 %v4949_v54, %v4630_v40  ;;  %v6947_v50 = vadd.f32 %v4307_v58, %v4306_v26  ;;  %v3434_v26 = vshrl.u32 %v4794_v48, 16  ;;  %v1073_v58 = vsub.f32 %v1037_v8, %v6670_v14 }
 0x269   : > { %3640 = vst.msk [vmem:[#allocation2 + $0x30] sm:$0xf] %vm528_vm5, %v3605_v46  ;;  %v2157_v24 = vpop.f32.mrf.mxu1  ;;  %v6985_v46 = vpop.f32.mrf.mxu2 }
 0x26a   : > { %3920 = vst.msk [vmem:[#allocation2 + $0x30] sm:$0xf] %vm629_vm9, %v3885_v42  ;;  %4643 = vmatmul.msk.bf16.gmra.mxu1 %vm991_vm11, %v4631_v53  ;;  %v3436_v63 = vrot.slane %v3434_v26, 4  ;;  %v1042_v42 = vpop.f32.mrf.mxu0  ;;  %v1094_v47 = vsel %vm1084_vm12, %v1073_v58, 0.0  ;;  %v6998_v26 = vpop.f32.mrf.mxu3 }
 0x26b   : > { %v1075_v60 = vsub.f32 %v1042_v42, %v6670_v14 }
 0x26c   : > { %v3437_v15 = vor.u32 %v3436_v63, %v3432_v4  ;;  %v1095_v4 = vadd.f32 %v1094_v47, %v6384_v39 }
 0x26d   : > { %v4053_v33 = vpop.permute.xlu1 %4052  ;;  %v1098_v9 = vsel %vm1084_vm12, %v1075_v60, 0.0 }
 0x26e   : > { %4088 = vst.msk [vmem:[#allocation2 + $0x30] sm:$0xf] %vm910_vm10, %v4053_v33  ;;  %v3887_v57 = vpop.permute.xlu0 %3886  ;;  %v3438_v10 = vrot.slane %v3437_v15, 4  ;;  %v1074_v33 = vsub.f32 %v1040_v0, %v6670_v14 }
 0x26f   : > { %3921 = vst.msk [vmem:[#allocation2 + $0x34] sm:$0xf] %vm629_vm9, %v3887_v57  ;;  %v2949_v29 = vpop.permute.xlu2 %2948 }
 0x270   : > { %4089 = vst.msk [vmem:[#allocation2 + $0x34] sm:$0xf] %vm910_vm10, %v4055_v38  ;;  %v3443_v7 = vsel %vm5146_vm3, %v3438_v10, %v3442_v3  ;;  %v1129_v48 = vmul.f32 %v1074_v33, %v1074_v33 }
 0x271   : > { %v6979_v20 = vpop.f32.mrf.mxu1 }
 0x272   : > { %v1045_v27 = vpop.f32.mrf.mxu0  ;;  %v1150_v56 = vsel %vm1084_vm12, %v1129_v48, 0.0 }
 0x273   : > { %v1076_v17 = vsub.f32 %v1045_v27, %v6670_v14 }
 0x274   : > { %v6990_v53 = vpop.f32.mrf.mxu2 }
 0x275   : > { %v2569_v18 = vpop.permute.xlu1 %2568  ;;  %v1131_v55 = vmul.f32 %v1076_v17, %v1076_v17  ;;  %v1100_v10 = vsel %vm1084_vm12, %v1076_v17, 0.0 }
 0x276   : > { %2601 = vst.msk [vmem:[#allocation2 + $0x3c] sm:$0xf] %vm528_vm5, %v2569_v18  ;;  %v2567_v37 = vpop.permute.xlu0 %2566 }
 0x277   : > { %2600 = vst.msk [vmem:[#allocation2 + $0x38] sm:$0xf] %vm528_vm5, %v2567_v37  ;;  %v4966_v13 = vld [vmem:[#allocation2 + $0x30] sm:$0xff]  ;;  %v3889_v1 = vpop.permute.xlu2 %3888  ;;  %v1130_v37 = vmul.f32 %v1075_v60, %v1075_v60  ;;  %v1154_v3 = vsel %vm1084_vm12, %v1131_v55, 0.0 }
 0x278   : > { %2700 = vst.msk [vmem:[#allocation2 + $0x38] sm:$0xf] %vm629_vm9, %v2667_v52  ;;  %4928 = vmatmul.msk.bf16.gmra.mxu3 %vm991_vm11, %v4966_v13  ;;  %v1128_v52 = vmul.f32 %v1073_v58, %v1073_v58  ;;  %v1096_v13 = vsel %vm1084_vm12, %v1074_v33, 0.0 }
 0x279   : > { %v6981_v31 = vpop.f32.mrf.mxu1  ;;  %v1097_v30 = vadd.f32 %v1096_v13, %v1095_v4 }
 0x27a   : > { %v1047_v21 = vpop.f32.mrf.mxu0  ;;  %v1148_v18 = vsel %vm1084_vm12, %v1128_v52, 0.0 }
 0x27b   : > { %v1077_v62 = vsub.f32 %v1047_v21, %v6670_v14  ;;  %v1149_v63 = vadd.f32 %v1148_v18, %v6394_v5  ;;  %v1099_v5 = vadd.f32 %v1098_v9, %v1097_v30 }
 0x27c   : > { %v7007_v23 = vpop.f32.mrf.mxu2 }
 0x27d   : > { %v2947_v34 = vpop.permute.xlu1 %2946  ;;  %v1151_v0 = vadd.f32 %v1150_v56, %v1149_v63 }
 0x27e   : > { %2980 = vst.msk [vmem:[#allocation2 + $0x38] sm:$0xf] %vm910_vm10, %v2947_v34  ;;  %v2669_v59 = vpop.permute.xlu0 %2668  ;;  %v1152_v34 = vsel %vm1084_vm12, %v1130_v37, 0.0 }
 0x27f   : > { %2701 = vst.msk [vmem:[#allocation2 + $0x3c] sm:$0xf] %vm629_vm9, %v2669_v59  ;;  %v4059_v32 = vpop.permute.xlu2 %4058  ;;  %v1132_v59 = vmul.f32 %v1077_v62, %v1077_v62 }
 0x280   : > { %2981 = vst.msk [vmem:[#allocation2 + $0x3c] sm:$0xf] %vm910_vm10, %v2949_v29 }
 0x281   : > { %v6983_v49 = vpop.f32.mrf.mxu1 }
 0x282   : > { %v1050_v40 = vpop.f32.mrf.mxu0 }
 0x283   : > { %v1078_v29 = vsub.f32 %v1050_v40, %v6670_v14 }
 0x285   : > { %v4758_v36 = vld [vmem:[#allocation2 + $0x38] sm:$0xf]  ;;  %v3611_v41 = vpop.permute.xlu1 %3610 }
 0x286   : > { %v3609_v11 = vpop.permute.xlu0 %3608  ;;  %3474 = vst.msk [vmem:[#allocation2 + $0x38] sm:$0xf] %vm244_vm4, %v3433_v22  ;;  %v1133_v22 = vmul.f32 %v1078_v29, %v1078_v29 }
 0x287   : > { %3642 = vst.msk [vmem:[#allocation2 + $0x38] sm:$0xf] %vm528_vm5, %v3609_v11  ;;  %v4958_v16 = vld [vmem:[#allocation2 + $0x38] sm:$0xf0] }
 0x288   : > { %3922 = vst.msk [vmem:[#allocation2 + $0x38] sm:$0xf] %vm629_vm9, %v3889_v1  ;;  %v4759_v45 = vor.u32 %v4958_v16, %v4758_v36  ;;  %v1153_v1 = vadd.f32 %v1152_v34, %v1151_v0  ;;  %v1102_v36 = vsel %vm1084_vm12, %v1077_v62, 0.0 }
 0x289   : > { %3475 = vst.msk [vmem:[#allocation2 + $0x3c] sm:$0xf] %vm244_vm4, %v3443_v7 }
 0x28a   : > { %3643 = vst.msk [vmem:[#allocation2 + $0x3c] sm:$0xf] %vm528_vm5, %v3611_v41  ;;  %4771 = vmatmul.msk.bf16.gmra.mxu2 %vm991_vm11, %v4759_v45  ;;  %v1052_v38 = vpop.f32.mrf.mxu0  ;;  %v1156_v41 = vsel %vm1084_vm12, %v1132_v59, 0.0  ;;  %v7018_v16 = vpop.f32.mrf.mxu3  ;;  %v1101_v45 = vadd.f32 %v1100_v10, %v1099_v5  ;;  %v1155_v42 = vadd.f32 %v1154_v3, %v1153_v1 }
 0x28b   : > { %v1079_v15 = vsub.f32 %v1052_v38, %v6670_v14 }
 0x28c   : > { %v1103_v21 = vadd.f32 %v1102_v36, %v1101_v45  ;;  %v1157_v40 = vadd.f32 %v1156_v41, %v1155_v42 }
 0x28d   : > { %v4057_v43 = vpop.permute.xlu1 %4056  ;;  %v1134_v11 = vmul.f32 %v1079_v15, %v1079_v15 }
 0x28e   : > { %v3891_v44 = vpop.permute.xlu0 %3890  ;;  %4090 = vst.msk [vmem:[#allocation2 + $0x38] sm:$0xf] %vm910_vm10, %v4057_v43  ;;  %v1104_v43 = vsel %vm1084_vm12, %v1078_v29, 0.0 }
 0x28f   : > { %3923 = vst.msk [vmem:[#allocation2 + $0x3c] sm:$0xf] %vm629_vm9, %v3891_v44  ;;  %v1158_v44 = vsel %vm1084_vm12, %v1133_v22, 0.0  ;;  %v1160_v58 = vsel %vm1084_vm12, %v1134_v11, 0.0  ;;  %v1105_v60 = vadd.f32 %v1104_v43, %v1103_v21 }
 0x290   : > { %4091 = vst.msk [vmem:[#allocation2 + $0x3c] sm:$0xf] %vm910_vm10, %v4059_v32  ;;  %v1159_v48 = vadd.f32 %v1158_v44, %v1157_v40 }
 0x292   : > { %v1055_v25 = vpop.f32.mrf.mxu0  ;;  %v1161_v62 = vadd.f32 %v1160_v58, %v1159_v48  ;;  %v7048_v30 = vpop.f32.mrf.mxu3 }
 0x293   : > { %v1080_v39 = vsub.f32 %v1055_v25, %v6670_v14  ;;  %v1106_v25 = vsel %vm1084_vm12, %v1079_v15, 0.0 }
 0x294   : > { %v1107_v37 = vadd.f32 %v1106_v25, %v1105_v60 }
 0x295   : > { %v6987_v54 = vpop.f32.mrf.mxu1  ;;  %v1135_v27 = vmul.f32 %v1080_v39, %v1080_v39 }
 0x297   : > { %v4967_v51 = vld [vmem:[#allocation2 + $0x38] sm:$0xff] }
 0x298   : > { %4929 = vmatmul.msk.bf16.gmra.mxu3 %vm991_vm11, %v4967_v51  ;;  %v2187_v51 = vsub.f32 %v2154_v2, %v6670_v14  ;;  %v1162_v2 = vsel %vm1084_vm12, %v1135_v27, 0.0 }
 0x299   : > { %v1163_v9 = vadd.f32 %v1162_v2, %v1161_v62 }
 0x29a   : > { %v1057_v57 = vpop.f32.mrf.mxu0  ;;  %v2241_v47 = vmul.f32 %v2187_v51, %v2187_v51 }
 0x29b   : > { %v1081_v7 = vsub.f32 %v1057_v57, %v6670_v14  ;;  %v7030_v57 = vld [vmem:[%s7205_s2] ss:$0 sm:$0xff]  ;;  %v1108_v14 = vsel %vm1084_vm12, %v1080_v39, 0.0 }
 0x29c   : > { %v7023_v38 = vpop.f32.mrf.mxu2  ;;  %v2188_v52 = vsub.f32 %v2157_v24, %v7030_v57  ;;  %v2189_v18 = vsub.f32 %v6979_v20, %v7030_v57  ;;  %v2207_v24 = vsel %vm1084_vm12, %v2187_v51, 0.0  ;;  %v2190_v4 = vsub.f32 %v6981_v31, %v7030_v57 }
 0x29d   : > { %v7000_v8 = vpop.f32.mrf.mxu1  ;;  %v1136_v33 = vmul.f32 %v1081_v7, %v1081_v7  ;;  %v1110_v13 = vsel %vm1084_vm12, %v1081_v7, 0.0  ;;  %v1109_v63 = vadd.f32 %v1108_v14, %v1107_v37  ;;  %v2261_v20 = vsel %vm1084_vm12, %v2241_v47, 0.0 }
 0x29e   : > { %v2242_v29 = vmul.f32 %v2188_v52, %v2188_v52  ;;  %v2209_v59 = vsel %vm1084_vm12, %v2188_v52, 0.0  ;;  %v2243_v15 = vmul.f32 %v2189_v18, %v2189_v18  ;;  %v2208_v22 = vadd.f32 %v2207_v24, %v6857_v35 }
 0x29f   : > { %v1164_v55 = vsel %vm1084_vm12, %v1136_v33, 0.0  ;;  %v1111_v0 = vadd.f32 %v1110_v13, %v1109_v63  ;;  %v2211_v5 = vsel %vm1084_vm12, %v2189_v18, 0.0  ;;  %v2244_v1 = vmul.f32 %v2190_v4, %v2190_v4 }
 0x2a0   : > { %v1165_v10 = vadd.f32 %v1164_v55, %v1163_v9  ;;  %v2263_v39 = vsel %vm1084_vm12, %v2242_v29, 0.0  ;;  %v2192_v36 = vsub.f32 %v6987_v54, %v7030_v57  ;;  %v2210_v7 = vadd.f32 %v2209_v59, %v2208_v22 }
 0x2a1   : > { %v2265_v42 = vsel %vm1084_vm12, %v2243_v15, 0.0  ;;  %v2213_v35 = vsel %vm1084_vm12, %v2190_v4, 0.0  ;;  %v2193_v44 = vsub.f32 %v7000_v8, %v7030_v57  ;;  %v2267_v40 = vsel %vm1084_vm12, %v2244_v1, 0.0 }
 0x2a2   : > { %v1060_v19 = vpop.f32.mrf.mxu0  ;;  %v2212_v21 = vadd.f32 %v2211_v5, %v2210_v7  ;;  %v2246_v25 = vmul.f32 %v2192_v36, %v2192_v36  ;;  %v2217_v14 = vsel %vm1084_vm12, %v2192_v36, 0.0 }
 0x2a3   : > { %v1082_v56 = vsub.f32 %v1060_v19, %v7030_v57  ;;  %v2191_v19 = vsub.f32 %v6983_v49, %v7030_v57  ;;  %v2262_v49 = vadd.f32 %v2261_v20, %v6861_v12  ;;  %v2247_v2 = vmul.f32 %v2193_v44, %v2193_v44 }
 0x2a4   : > { %v7057_v45 = vpop.f32.mrf.mxu2  ;;  %v2214_v48 = vadd.f32 %v2213_v35, %v2212_v21  ;;  %v2219_v55 = vsel %vm1084_vm12, %v2193_v44, 0.0 }
 0x2a5   : > { %v1137_v3 = vmul.f32 %v1082_v56, %v1082_v56  ;;  %v1112_v41 = vsel %vm1084_vm12, %v1082_v56, 0.0  ;;  %v2245_v43 = vmul.f32 %v2191_v19, %v2191_v19  ;;  %v2264_v51 = vadd.f32 %v2263_v39, %v2262_v49 }
 0x2a6   : > { %v2215_v12 = vsel %vm1084_vm12, %v2191_v19, 0.0  ;;  %v1113_v33 = vadd.f32 %v1112_v41, %v1111_v0  ;;  %v2273_v20 = vsel %vm1084_vm12, %v2247_v2, 0.0 }
 0x2a7   : > { %v1166_v27 = vsel %vm1084_vm12, %v1137_v3, 0.0  ;;  %v2266_v60 = vadd.f32 %v2265_v42, %v2264_v51  ;;  %v2269_v8 = vsel %vm1084_vm12, %v2245_v43, 0.0  ;;  %v2216_v13 = vadd.f32 %v2215_v12, %v2214_v48 }
 0x2a8   : > { %v1167_v18 = vadd.f32 %v1166_v27, %v1165_v10 }
 0x2a9   : > { %v2268_v62 = vadd.f32 %v2267_v40, %v2266_v60  ;;  %v2218_v9 = vadd.f32 %v2217_v14, %v2216_v13 }
 0x2aa   : > { %v1062_v17 = vpop.f32.mrf.mxu0 }
 0x2ab   : > { %v1083_v34 = vsub.f32 %v1062_v17, %v7030_v57  ;;  %v7071_v17 = vpop.f32.mrf.mxu3  ;;  %v2270_v63 = vadd.f32 %v2269_v8, %v2268_v62  ;;  %v2220_v10 = vadd.f32 %v2219_v55, %v2218_v9 }
 0x2ad   : > { %v1138_v11 = vmul.f32 %v1083_v34, %v1083_v34  ;;  %v1114_v54 = vsel %vm1084_vm12, %v1083_v34, 0.0 }
 0x2ae   : > { %v1115_v37 = vadd.f32 %v1114_v54, %v1113_v33 }
 0x2af   : > { %v1168_v52 = vsel %vm1084_vm12, %v1138_v11, 0.0 }
 0x2b0   : > { %v1169_v4 = vadd.f32 %v1168_v52, %v1167_v18  ;;  %v1116_v19 = vrot.slane %v1115_v37, 4 }
 0x2b2   : > { %v1170_v39 = vrot.slane %v1169_v4, 4  ;;  %v1117_v11 = vadd.f32 %v1116_v19, %v1115_v37 }
 0x2b3   : > { %v7085_v35 = vpop.f32.mrf.mxu3 }
 0x2b4   : > { %v1171_v27 = vadd.f32 %v1170_v39, %v1169_v4  ;;  %v1118_v12 = vrot.slane %v1117_v11, 2 }
 0x2b6   : > { %v1172_v60 = vrot.slane %v1171_v27, 2  ;;  %v1119_v14 = vadd.f32 %v1118_v12, %v1117_v11 }
 0x2b8   : > { %v1173_v37 = vadd.f32 %v1172_v60, %v1171_v27 }
 0x2ba   : > { %v1174_v4 = vrot.slane %v1173_v37, 1 }
 0x2bd   : > { %v7077_v34 = vpop.f32.mrf.mxu2 }
 0x2be   : > { %v2172_v32 = vpop.f32.mrf.mxu1  ;;  %v3130_v27 = vsub.f32 %v7077_v34, %v7030_v57 }
 0x2bf   : > { %v2194_v58 = vsub.f32 %v2172_v32, %v7030_v57  ;;  %v2271_v32 = vsel %vm1084_vm12, %v2246_v25, 0.0 }
 0x2c0   : > { %v2272_v0 = vadd.f32 %v2271_v32, %v2270_v63 }
 0x2c1   : > { %v2248_v24 = vmul.f32 %v2194_v58, %v2194_v58  ;;  %v2221_v59 = vsel %vm1084_vm12, %v2194_v58, 0.0 }
 0x2c2   : > { %v2274_v5 = vadd.f32 %v2273_v20, %v2272_v0  ;;  %v2222_v1 = vadd.f32 %v2221_v59, %v2220_v10  ;;  %v3126_v20 = vsub.f32 %v6990_v53, %v7030_v57  ;;  %v3127_v10 = vsub.f32 %v7007_v23, %v7030_v57 }
 0x2c3   : > { %v2275_v3 = vsel %vm1084_vm12, %v2248_v24, 0.0  ;;  %v3128_v53 = vsub.f32 %v7023_v38, %v7030_v57 }
 0x2c4   : > { %v2276_v49 = vadd.f32 %v2275_v3, %v2274_v5  ;;  %v1175_v3 = vadd.f32 %v1174_v4, %v1173_v37  ;;  %v3180_v5 = vmul.f32 %v3126_v20, %v3126_v20  ;;  %v3147_v23 = vsel %vm1084_vm12, %v3126_v20, 0.0 }
 0x2c5   : > { %v3107_v25 = vpop.f32.mrf.mxu2  ;;  %v3181_v11 = vmul.f32 %v3127_v10, %v3127_v10  ;;  %v3149_v38 = vsel %vm1084_vm12, %v3127_v10, 0.0 }
 0x2c6   : > { %v2174_v31 = vpop.f32.mrf.mxu1  ;;  %v3131_v12 = vsub.f32 %v3107_v25, %v7030_v57 }
 0x2c7   : > { %v2195_v47 = vsub.f32 %v2174_v31, %v7030_v57 }
 0x2c9   : > { %v2249_v15 = vmul.f32 %v2195_v47, %v2195_v47  ;;  %v2223_v22 = vsel %vm1084_vm12, %v2195_v47, 0.0 }
 0x2ca   : > { %v2224_v7 = vadd.f32 %v2223_v22, %v2222_v1  ;;  %v4235_v22 = vsub.f32 %v6998_v26, %v7030_v57  ;;  %v3129_v26 = vsub.f32 %v7057_v45, %v7030_v57  ;;  %v3203_v45 = vsel %vm1084_vm12, %v3181_v11, 0.0 }
 0x2cb   : > { %v2277_v36 = vsel %vm1084_vm12, %v2249_v15, 0.0 }
 0x2cc   : > { %v2278_v54 = vadd.f32 %v2277_v36, %v2276_v49 }
 0x2d2   : > { %v7091_v18 = vpop.f32.mrf.mxu3 }
 0x2da   : > { %v7106_v1 = vpop.f32.mrf.mxu3 }
 0x2e3   : > { %v3110_v32 = vpop.f32.mrf.mxu2 }
 0x2e7   : > { %v2177_v56 = vpop.f32.mrf.mxu1 }
 0x2e8   : > { %v2196_v29 = vsub.f32 %v2177_v56, %v7030_v57  ;;  %v1120_v56 = vrot.slane %v1119_v14, 1 }
 0x2ea   : > { %v2250_v31 = vmul.f32 %v2196_v29, %v2196_v29  ;;  %v2225_v41 = vsel %vm1084_vm12, %v2196_v29, 0.0  ;;  %v3125_v29 = vsub.f32 %v6985_v46, %v7030_v57  ;;  %v1121_v59 = vadd.f32 %v1120_v56, %v1119_v14 }
 0x2eb   : > { %v2226_v51 = vadd.f32 %v2225_v41, %v2224_v7  ;;  %v4289_v7 = vmul.f32 %v4235_v22, %v4235_v22 }
 0x2ec   : > { %v2279_v43 = vsel %vm1084_vm12, %v2250_v31, 0.0  ;;  %v3179_v0 = vmul.f32 %v3125_v29, %v3125_v29  ;;  %v3145_v39 = vsel %vm1084_vm12, %v3125_v29, 0.0 }
 0x2ed   : > { %v2280_v58 = vadd.f32 %v2279_v43, %v2278_v54  ;;  %v3146_v49 = vadd.f32 %v3145_v39, %v6918_v28  ;;  %v3201_v43 = vsel %vm1084_vm12, %v3180_v5, 0.0  ;;  %v3151_v28 = vsel %vm1084_vm12, %v3128_v53, 0.0 }
 0x2ee   : > { %v3199_v41 = vsel %vm1084_vm12, %v3179_v0, 0.0 }
 0x2ef   : > { %v2179_v42 = vpop.f32.mrf.mxu1  ;;  %v3200_v54 = vadd.f32 %v3199_v41, %v6922_v6  ;;  %v3153_v6 = vsel %vm1084_vm12, %v3129_v26, 0.0 }
 0x2f0   : > { %v2197_v44 = vsub.f32 %v2179_v42, %v7030_v57  ;;  %v3112_v42 = vpop.f32.mrf.mxu2 }
 0x2f1   : > { %v3133_v56 = vsub.f32 %v3112_v42, %v7030_v57 }
 0x2f2   : > { %v2227_v21 = vsel %vm1084_vm12, %v2197_v44, 0.0  ;;  %v2251_v40 = vmul.f32 %v2197_v44, %v2197_v44  ;;  %v3182_v44 = vmul.f32 %v3128_v53, %v3128_v53  ;;  %v4239_v53 = vsub.f32 %v7085_v35, %v7030_v57 }
 0x2f3   : > { %v2228_v33 = vadd.f32 %v2227_v21, %v2226_v51  ;;  %v3148_v51 = vadd.f32 %v3147_v23, %v3146_v49  ;;  %v4236_v21 = vsub.f32 %v7018_v16, %v7030_v57  ;;  %v3132_v16 = vsub.f32 %v3110_v32, %v7030_v57 }
 0x2f4   : > { %v2281_v52 = vsel %vm1084_vm12, %v2251_v40, 0.0  ;;  %v3183_v40 = vmul.f32 %v3129_v26, %v3129_v26  ;;  %v3205_v34 = vsel %vm1084_vm12, %v3182_v44, 0.0  ;;  %v3161_v23 = vsel %vm1084_vm12, %v3133_v56, 0.0 }
 0x2f5   : > { %v2229_v48 = vrot.slane %v2228_v33, 4  ;;  %v2282_v8 = vadd.f32 %v2281_v52, %v2280_v58  ;;  %v4255_v58 = vsel %vm1084_vm12, %v4235_v22, 0.0  ;;  %v3202_v52 = vadd.f32 %v3201_v43, %v3200_v54 }
 0x2f6   : > { %v3150_v60 = vadd.f32 %v3149_v38, %v3148_v51  ;;  %v3207_v37 = vsel %vm1084_vm12, %v3183_v40, 0.0  ;;  %v4240_v38 = vsub.f32 %v7091_v18, %v7030_v57  ;;  %v4241_v40 = vsub.f32 %v7106_v1, %v7030_v57 }
 0x2f7   : > { %v2230_v2 = vadd.f32 %v2229_v48, %v2228_v33  ;;  %v2283_v47 = vrot.slane %v2282_v8, 4  ;;  %v4309_v33 = vsel %vm1084_vm12, %v4289_v7, 0.0  ;;  %v3184_v48 = vmul.f32 %v3130_v27, %v3130_v27 }
 0x2f8   : > { %v3204_v14 = vadd.f32 %v3203_v45, %v3202_v52  ;;  %v3152_v25 = vadd.f32 %v3151_v28, %v3150_v60  ;;  %v4293_v28 = vmul.f32 %v4239_v53, %v4239_v53 }
 0x2f9   : > { %v2231_v62 = vrot.slane %v2230_v2, 2  ;;  %v2284_v13 = vadd.f32 %v2283_v47, %v2282_v8  ;;  %v4237_v47 = vsub.f32 %v7048_v30, %v7030_v57  ;;  %v3186_v30 = vmul.f32 %v3132_v16, %v3132_v16 }
 0x2fa   : > { %v3206_v29 = vadd.f32 %v3205_v34, %v3204_v14  ;;  %v3154_v32 = vadd.f32 %v3153_v6, %v3152_v25  ;;  %v4294_v34 = vmul.f32 %v4240_v38, %v4240_v38 }
 0x2fb   : > { %v2232_v55 = vadd.f32 %v2231_v62, %v2230_v2  ;;  %v2285_v24 = vrot.slane %v2284_v13, 2  ;;  %v4220_v8 = vpop.f32.mrf.mxu3  ;;  %v4290_v2 = vmul.f32 %v4236_v21, %v4236_v21  ;;  %v3155_v62 = vsel %vm1084_vm12, %v3130_v27, 0.0 }
 0x2fc   : > { %v3156_v0 = vadd.f32 %v3155_v62, %v3154_v32  ;;  %v4291_v10 = vmul.f32 %v4237_v47, %v4237_v47  ;;  %v4259_v22 = vsel %vm1084_vm12, %v4237_v47, 0.0  ;;  %v3213_v41 = vsel %vm1084_vm12, %v3186_v30, 0.0 }
 0x2fd   : > { %v2233_v63 = vrot.slane %v2232_v55, 1  ;;  %v2286_v9 = vadd.f32 %v2285_v24, %v2284_v13  ;;  %v3185_v13 = vmul.f32 %v3131_v12, %v3131_v12  ;;  %v4310_v24 = vadd.f32 %v4309_v33, %v6947_v50 }
 0x2fe   : > { %v3159_v50 = vsel %vm1084_vm12, %v3132_v16, 0.0  ;;  %v4313_v43 = vsel %vm1084_vm12, %v4291_v10, 0.0  ;;  %v4242_v6 = vsub.f32 %v4220_v8, %v7030_v57  ;;  %v4295_v62 = vmul.f32 %v4241_v40, %v4241_v40 }
 0x2ff   : > { %v2234_v15 = vadd.f32 %v2233_v63, %v2232_v55  ;;  %v2287_v19 = vrot.slane %v2286_v9, 1  ;;  %v4256_v55 = vadd.f32 %v4255_v58, %v6942_v61  ;;  %v3209_v63 = vsel %vm1084_vm12, %v3184_v48, 0.0 }
 0x300   : > { %v3211_v61 = vsel %vm1084_vm12, %v3185_v13, 0.0  ;;  %v4267_v30 = vsel %vm1084_vm12, %v4241_v40, 0.0  ;;  %v4321_v10 = vsel %vm1084_vm12, %v4295_v62, 0.0 }
 0x301   : > { %v7101_v31 = vadd.f32 %v2234_v15, %v1121_v59  ;;  %v2288_v46 = vadd.f32 %v2287_v19, %v2286_v9  ;;  %v3157_v9 = vsel %vm1084_vm12, %v3131_v12, 0.0  ;;  %v4257_v59 = vsel %vm1084_vm12, %v4236_v21, 0.0 }
 0x302   : > { %v4311_v15 = vsel %vm1084_vm12, %v4290_v2, 0.0  ;;  %v3208_v19 = vadd.f32 %v3207_v37, %v3206_v29  ;;  %v3158_v5 = vadd.f32 %v3157_v9, %v3156_v0  ;;  %v4258_v26 = vadd.f32 %v4257_v59, %v4256_v55 }
 0x303   : > { %v7108_v36 = vadd.f32 %v2288_v46, %v1175_v3  ;;  %v3187_v3 = vmul.f32 %v3133_v56, %v3133_v56  ;;  %v4238_v46 = vsub.f32 %v7071_v17, %v7030_v57  ;;  %v4312_v49 = vadd.f32 %v4311_v15, %v4310_v24  ;;  %v4222_v44 = vpop.f32.mrf.mxu3 }
 0x304   : > { %v3210_v39 = vadd.f32 %v3209_v63, %v3208_v19  ;;  %v3160_v42 = vadd.f32 %v3159_v50, %v3158_v5  ;;  %v4260_v35 = vadd.f32 %v4259_v22, %v4258_v26  ;;  %v4263_v2 = vsel %vm1084_vm12, %v4239_v53, 0.0 }
 0x305   : > { %v3215_v17 = vsel %vm1084_vm12, %v3187_v3, 0.0  ;;  %v4292_v54 = vmul.f32 %v4238_v46, %v4238_v46  ;;  %v4314_v33 = vadd.f32 %v4313_v43, %v4312_v49  ;;  %v4261_v18 = vsel %vm1084_vm12, %v4238_v46, 0.0 }
 0x306   : > { %v3212_v7 = vadd.f32 %v3211_v61, %v3210_v39  ;;  %v3162_v21 = vadd.f32 %v3161_v23, %v3160_v42  ;;  %v4262_v25 = vadd.f32 %v4261_v18, %v4260_v35  ;;  %v4317_v37 = vsel %vm1084_vm12, %v4293_v28, 0.0 }
 0x307   : > { %v4315_v14 = vsel %vm1084_vm12, %v4292_v54, 0.0  ;;  %v4265_v56 = vsel %vm1084_vm12, %v4240_v38, 0.0  ;;  %v4243_v55 = vsub.f32 %v4222_v44, %v7030_v57  ;;  %v4296_v63 = vmul.f32 %v4242_v6, %v4242_v6 }
 0x308   : > { %v3214_v51 = vadd.f32 %v3213_v41, %v3212_v7  ;;  %v4316_v29 = vadd.f32 %v4315_v14, %v4314_v33  ;;  %v4264_v32 = vadd.f32 %v4263_v2, %v4262_v25  ;;  %v4269_v61 = vsel %vm1084_vm12, %v4242_v6, 0.0 }
 0x309   : > { %v4297_v50 = vmul.f32 %v4243_v55, %v4243_v55  ;;  %v4323_v5 = vsel %vm1084_vm12, %v4296_v63, 0.0  ;;  %v4271_v53 = vsel %vm1084_vm12, %v4243_v55, 0.0  ;;  %v4342_v55 = vld [vmem:[%s5126_s28] sm:$0x1] }
 0x30a   : > { %v3216_v52 = vadd.f32 %v3215_v17, %v3214_v51  ;;  %v4318_v19 = vadd.f32 %v4317_v37, %v4316_v29  ;;  %v4266_v0 = vadd.f32 %v4265_v56, %v4264_v32 }
 0x30b   : > { %v4325_v7 = vsel %vm1084_vm12, %v4297_v50, 0.0 }
 0x30c   : > { %v4268_v39 = vadd.f32 %v4267_v30, %v4266_v0 }
 0x30d   : > { %v3115_v4 = vpop.f32.mrf.mxu2 }
 0x30e   : > { %v3134_v20 = vsub.f32 %v3115_v4, %v7030_v57  ;;  %v4319_v4 = vsel %vm1084_vm12, %v4294_v34, 0.0  ;;  %v4270_v49 = vadd.f32 %v4269_v61, %v4268_v39 }
 0x30f   : > { %v4320_v46 = vadd.f32 %v4319_v4, %v4318_v19 }
 0x310   : > { %v3188_v11 = vmul.f32 %v3134_v20, %v3134_v20  ;;  %v3163_v27 = vsel %vm1084_vm12, %v3134_v20, 0.0  ;;  %v4272_v44 = vadd.f32 %v4271_v53, %v4270_v49 }
 0x311   : > { %v3164_v60 = vadd.f32 %v3163_v27, %v3162_v21  ;;  %v4322_v26 = vadd.f32 %v4321_v10, %v4320_v46 }
 0x312   : > { %v3217_v12 = vsel %vm1084_vm12, %v3188_v11, 0.0 }
 0x313   : > { %v3218_v1 = vadd.f32 %v3217_v12, %v3216_v52  ;;  %v4324_v17 = vadd.f32 %v4323_v5, %v4322_v26 }
 0x315   : > { %v3117_v45 = vpop.f32.mrf.mxu2 }
 0x316   : > { %v3135_v58 = vsub.f32 %v3117_v45, %v7030_v57  ;;  %v4326_v45 = vadd.f32 %v4325_v7, %v4324_v17 }
 0x318   : > { %v3165_v48 = vsel %vm1084_vm12, %v3135_v58, 0.0  ;;  %v3189_v16 = vmul.f32 %v3135_v58, %v3135_v58 }
 0x319   : > { %v3166_v47 = vadd.f32 %v3165_v48, %v3164_v60 }
 0x31a   : > { %v3219_v13 = vsel %vm1084_vm12, %v3189_v16, 0.0 }
 0x31b   : > { %v3167_v8 = vrot.slane %v3166_v47, 4  ;;  %v3220_v24 = vadd.f32 %v3219_v13, %v3218_v1  ;;  %v4225_v9 = vpop.f32.mrf.mxu3  ;;  %v4338_v13 = vld [vmem:[%s5121_s25] sm:$0x1] }
 0x31c   : > { %v4244_v15 = vsub.f32 %v4225_v9, %v7030_v57 }
 0x31d   : > { %v3168_v20 = vadd.f32 %v3167_v8, %v3166_v47  ;;  %v3221_v59 = vrot.slane %v3220_v24, 4 }
 0x31e   : > { %v4298_v11 = vmul.f32 %v4244_v15, %v4244_v15  ;;  %v4273_v38 = vsel %vm1084_vm12, %v4244_v15, 0.0 }
 0x31f   : > { %v3169_v3 = vrot.slane %v3168_v20, 2  ;;  %v3222_v22 = vadd.f32 %v3221_v59, %v3220_v24  ;;  %v4274_v28 = vadd.f32 %v4273_v38, %v4272_v44 }
 0x320   : > { %v4327_v51 = vsel %vm1084_vm12, %v4298_v11, 0.0 }
 0x321   : > { %v3170_v41 = vadd.f32 %v3169_v3, %v3168_v20  ;;  %v3223_v23 = vrot.slane %v3222_v22, 2  ;;  %v4328_v18 = vadd.f32 %v4327_v51, %v4326_v45 }
 0x323   : > { %v3171_v42 = vrot.slane %v3170_v41, 1  ;;  %v3224_v43 = vadd.f32 %v3223_v23, %v3222_v22  ;;  %v4227_v27 = vpop.f32.mrf.mxu3 }
 0x324   : > { %v4245_v21 = vsub.f32 %v4227_v27, %v7030_v57 }
 0x325   : > { %v3172_v35 = vadd.f32 %v3171_v42, %v3170_v41  ;;  %v3225_v54 = vrot.slane %v3224_v43, 1 }
 0x326   : > { %v4275_v58 = vsel %vm1084_vm12, %v4245_v21, 0.0  ;;  %v4299_v33 = vmul.f32 %v4245_v21, %v4245_v21 }
 0x327   : > { %v3173_v40 = vadd.f32 %v3172_v35, %v7101_v31  ;;  %v3226_v12 = vadd.f32 %v3225_v54, %v3224_v43  ;;  %v4276_v52 = vadd.f32 %v4275_v58, %v4274_v28 }
 0x328   : > { %v4329_v34 = vsel %vm1084_vm12, %v4299_v33, 0.0 }
 0x329   : > { %v3227_v60 = vadd.f32 %v3226_v12, %v7108_v36  ;;  %v4277_v6 = vrot.slane %v4276_v52, 4  ;;  %v4330_v48 = vadd.f32 %v4329_v34, %v4328_v18 }
 0x32b   : > { %v4278_v16 = vadd.f32 %v4277_v6, %v4276_v52  ;;  %v4331_v57 = vrot.slane %v4330_v48, 4 }
 0x32d   : > { %v4279_v14 = vrot.slane %v4278_v16, 2  ;;  %v4332_v2 = vadd.f32 %v4331_v57, %v4330_v48 }
 0x32f   : > { %v4280_v31 = vadd.f32 %v4279_v14, %v4278_v16  ;;  %v4333_v1 = vrot.slane %v4332_v2, 2 }
 0x331   : > { %v4281_v47 = vrot.slane %v4280_v31, 1  ;;  %v4334_v25 = vadd.f32 %v4333_v1, %v4332_v2 }
 0x333   : > { %v4282_v37 = vadd.f32 %v4281_v47, %v4280_v31  ;;  %v4335_v62 = vrot.slane %v4334_v25, 1 }
 0x335   : > { %v4283_v56 = vadd.f32 %v4282_v37, %v3173_v40  ;;  %v4336_v36 = vadd.f32 %v4335_v62, %v4334_v25 }
 0x337   : > { %v4337_v8 = vadd.f32 %v4336_v36, %v3227_v60  ;;  %v4339_v24 = vadd.f32 %v4338_v13, %v4283_v56 }
 0x339   : > { %4341 = vst.msk [vmem:[%s5121_s25] sm:$0x1] %vm4340_vm13, %v4339_v24  ;;  %v4343_v29 = vadd.f32 %v4342_v55, %v4337_v8 }
 0x33b   : > { %4344 = vst.msk [vmem:[%s5126_s28] sm:$0x1] %vm4340_vm13, %v4343_v29 }
 0x33c PF: > { %s15_s19 = sadd.s32 1, %s5055_s19   ;;  %s7212_s15 = smov %s5047_s17 }
 0x33d   : > { %p12_p7 = scmp.ge.s32.totalorder %s15_s19, 6   ;;  %s7213_s16 = smov %s5051_s18 }
 0x33e   : > { %s7214_s17 = smov %s7217_s20  ;;  %s7215_s18 = smov %s7221_s21 }
 0x33f   :  { %14 = sbr.rel (!%p12_p7) target bundleno = 3 (0x3), region = 84 }

</bundles_post_ra>
